<compile_context>
chip_gen: v7x
topology: tpu7x:2x2x1
jax: 0.10.0
libtpu: 0.0.40
codegen_flags: <defaults>
</compile_context>

<pallas_src>
import functools

import jax
import jax.numpy as jnp
from jax import lax
from jax.experimental import pallas as pl
from jax.experimental.pallas import tpu as pltpu

EPS = 1e-3


def _round_up(x, m):
    return ((x + m - 1) // m) * m


def _lane_pad(c):
    # Pad small channel counts up to 128 so outputs are lane-dense.
    return c if c >= 128 else 128


# ---------------------------------------------------------------------------
# Kernel 1: matmul + folded-BN shift + ReLU   (all 1x1 convolutions)
# ---------------------------------------------------------------------------
def _matmul_shift_relu_kernel(x_ref, w_ref, shift_ref, o_ref):
    # x_ref: (TM, K) bf16, w_ref: (K, OC) bf16, shift_ref: (1, OC) f32
    acc = jnp.dot(x_ref[...], w_ref[...], preferred_element_type=jnp.float32)
    o_ref[...] = jnp.maximum(acc + shift_ref[...], 0.0).astype(o_ref.dtype)


def matmul_shift_relu(x2d, w2d, shift, *, tm=512):
    """x2d: (M, K) bf16, w2d: (K, OC) bf16, shift: (1, OC) f32 -> (M, OC) bf16."""
    m, k = x2d.shape
    _, oc = w2d.shape
    tm_eff = min(tm, _round_up(m, 8))
    m_pad = _round_up(m, tm_eff)
    if m_pad != m:
        x2d = jnp.pad(x2d, ((0, m_pad - m), (0, 0)))
    out = pl.pallas_call(
        _matmul_shift_relu_kernel,
        out_shape=jax.ShapeDtypeStruct((m_pad, oc), jnp.bfloat16),
        grid_spec=pltpu.PrefetchScalarGridSpec(
            num_scalar_prefetch=0,
            grid=(m_pad // tm_eff,),
            in_specs=[
                pl.BlockSpec((tm_eff, k), lambda i: (i, 0)),
                pl.BlockSpec((k, oc), lambda i: (0, 0)),
                pl.BlockSpec((1, oc), lambda i: (0, 0)),
            ],
            out_specs=pl.BlockSpec((tm_eff, oc), lambda i: (i, 0)),
        ),
        compiler_params=pltpu.CompilerParams(
            dimension_semantics=("parallel",)),
    )(x2d, w2d, shift)
    return out[:m] if m_pad != m else out


# ---------------------------------------------------------------------------
# Kernel 2: 1x7 conv (pad 3 along W) + folded-BN shift + ReLU
#   - accumulates 7 tap-matmuls from a single padded NHWC block (no im2col).
#   - (7,1) convs reuse this kernel via an H<->W transpose in the wrapper.
# ---------------------------------------------------------------------------
def _conv_w7_kernel(x_ref, w_ref, shift_ref, o_ref, *, out_w):
    # x_ref: (H, W+6, Cin) bf16; w_ref: (7, Cin, OC) bf16; shift_ref: (1, OC) f32
    # o_ref: (H*W, OC) bf16
    h, _, cin = x_ref.shape
    oc = o_ref.shape[1]
    x = x_ref[...]
    acc = jnp.zeros((h * out_w, oc), dtype=jnp.float32)
    for t in range(7):  # static unroll over kernel taps
        xt = x[:, t:t + out_w, :].reshape(h * out_w, cin)
        acc = acc + jnp.dot(xt, w_ref[t], preferred_element_type=jnp.float32)
    y = jnp.maximum(acc + shift_ref[...], 0.0)
    o_ref[...] = y.astype(o_ref.dtype)


def conv_1x7_shift_relu(x, w_taps, shift):
    """kernel=(1,7), padding=(0,3), stride 1, fused BN-shift + ReLU.

    x: (N, H, W, Cin) bf16; w_taps: (7, Cin, OC) bf16; shift: (1, OC) f32.
    Returns (N, H, W, OC) bf16.
    """
    n, h, w, cin = x.shape
    oc = w_taps.shape[-1]
    xp = jnp.pad(x, ((0, 0), (0, 0), (3, 3), (0, 0)))
    wp = w + 6
    out = pl.pallas_call(
        functools.partial(_conv_w7_kernel, out_w=w),
        out_shape=jax.ShapeDtypeStruct((n, h * w, oc), jnp.bfloat16),
        grid_spec=pltpu.PrefetchScalarGridSpec(
            num_scalar_prefetch=0,
            grid=(n,),
            in_specs=[
                pl.BlockSpec((None, h, wp, cin), lambda i: (i, 0, 0, 0)),
                pl.BlockSpec((7, cin, oc), lambda i: (0, 0, 0)),
                pl.BlockSpec((1, oc), lambda i: (0, 0)),
            ],
            out_specs=pl.BlockSpec((None, h * w, oc), lambda i: (i, 0, 0)),
        ),
        compiler_params=pltpu.CompilerParams(
            dimension_semantics=("parallel",)),
    )(xp, w_taps, shift)
    return out.reshape(n, h, w, oc)


def conv_7x1_shift_relu(x, w_taps, shift):
    """kernel=(7,1), padding=(3,0): run the (1,7) kernel on H<->W transposed x."""
    xt = jnp.transpose(x, (0, 2, 1, 3))
    yt = conv_1x7_shift_relu(xt, w_taps, shift)
    return jnp.transpose(yt, (0, 2, 1, 3))


# ---------------------------------------------------------------------------
# BatchNorm folding (eval mode) + weight layout helpers
# ---------------------------------------------------------------------------
def _fold_bn(p):
    scale = p["gamma"] / jnp.sqrt(p["var"] + EPS)          # (OC,)
    shift = p["beta"] - p["mean"] * scale                  # (OC,)
    w = p["w"] * scale[:, None, None, None]                # (OC, IC, KH, KW)
    return w, shift


def _fold_1x1(p, cout_pad=None):
    w, shift = _fold_bn(p)
    oc, ic = w.shape[:2]
    cout_pad = oc if cout_pad is None else cout_pad
    w2d = jnp.pad(w.reshape(oc, ic).T, ((0, 0), (0, cout_pad - oc)))
    shift = jnp.pad(shift, (0, cout_pad - oc))
    return w2d.astype(jnp.bfloat16), shift.astype(jnp.float32)


def _fold_w7(p, cin_pad, cout_pad):
    # Works for both (1,7) and (7,1) kernels: taps end up on the leading axis.
    w, shift = _fold_bn(p)
    oc, ic = w.shape[:2]
    w_taps = jnp.transpose(w.reshape(oc, ic, 7), (2, 1, 0))     # (7, IC, OC)
    w_taps = jnp.pad(w_taps, ((0, 0), (0, cin_pad - ic), (0, cout_pad - oc)))
    shift = jnp.pad(shift, (0, cout_pad - oc))
    return w_taps.astype(jnp.bfloat16), shift.reshape(1, -1).astype(jnp.float32)


# ---------------------------------------------------------------------------
# InceptionC forward (Pallas path)
# ---------------------------------------------------------------------------
@jax.jit
def inception_c_forward(x_nchw, params):
    xh = jnp.transpose(x_nchw, (0, 2, 3, 1))                    # NHWC, f32
    n, h, w, cin = xh.shape
    m = n * h * w
    c7 = params["branch7x7_1"]["w"].shape[0]
    c7p = _lane_pad(c7)
    x_bf = xh.astype(jnp.bfloat16)

    # --- fused head: branch1x1 + branch7x7_1 + branch7x7dbl_1 (1x1 convs on x) ---
    w_a, s_a = _fold_1x1(params["branch1x1"])                   # (Cin, 192)
    w_b, s_b = _fold_1x1(params["branch7x7_1"], cout_pad=c7p)   # (Cin, c7p)
    w_c, s_c = _fold_1x1(params["branch7x7dbl_1"], cout_pad=c7p)
    w_head = jnp.concatenate([w_a, w_b, w_c], axis=1)
    s_head = jnp.concatenate([s_a, s_b, s_c]).reshape(1, -1)
    head = matmul_shift_relu(x_bf.reshape(m, cin), w_head, s_head)
    head = head.reshape(n, h, w, 192 + 2 * c7p)
    branch1x1 = head[..., :192]
    b77 = head[..., 192:192 + c7p]
    bdbl = head[..., 192 + c7p:]

    # --- branch 7x7: (1,7) then (7,1) ---
    b77 = conv_1x7_shift_relu(b77, *_fold_w7(params["branch7x7_2"], c7p, c7p))
    b77 = conv_7x1_shift_relu(b77, *_fold_w7(params["branch7x7_3"], c7p, 192))

    # --- branch 7x7 double ---
    bdbl = conv_7x1_shift_relu(bdbl, *_fold_w7(params["branch7x7dbl_2"], c7p, c7p))
    bdbl = conv_1x7_shift_relu(bdbl, *_fold_w7(params["branch7x7dbl_3"], c7p, c7p))
    bdbl = conv_7x1_shift_relu(bdbl, *_fold_w7(params["branch7x7dbl_4"], c7p, c7p))
    bdbl = conv_1x7_shift_relu(bdbl, *_fold_w7(params["branch7x7dbl_5"], c7p, 192))

    # --- pool branch: 3x3 avg pool (count_include_pad=True) then 1x1 conv ---
    pooled = lax.reduce_window(xh, 0.0, lax.add, (1, 3, 3, 1), (1, 1, 1, 1),
                               ((0, 0), (1, 1), (1, 1), (0, 0))) / 9.0
    w_p, s_p = _fold_1x1(params["branch_pool"])
    bpool = matmul_shift_relu(pooled.astype(jnp.bfloat16).reshape(m, cin),
                              w_p, s_p.reshape(1, -1))
    bpool = bpool.reshape(n, h, w, 192)

    out = jnp.concatenate([branch1x1, b77, bdbl, bpool], axis=-1)
    return jnp.transpose(out.astype(jnp.float32), (0, 3, 1, 2))  # NCHW


# ---------------------------------------------------------------------------
# Pure-JAX reference (f32), matching the PyTorch module in eval mode
# ---------------------------------------------------------------------------
def _ref_basic_conv(x, p, padding):
    y = lax.conv_general_dilated(
        x, p["w"], window_strides=(1, 1), padding=padding,
        dimension_numbers=("NCHW", "OIHW", "NCHW"))
    scale = p["gamma"] / jnp.sqrt(p["var"] + EPS)
    shift = p["beta"] - p["mean"] * scale
    y = y * scale[None, :, None, None] + shift[None, :, None, None]
    return jnp.maximum(y, 0.0)


def inception_c_reference(x, params):
    b1 = _ref_basic_conv(x, params["branch1x1"], ((0, 0), (0, 0)))

    b77 = _ref_basic_conv(x, params["branch7x7_1"], ((0, 0), (0, 0)))
    b77 = _ref_basic_conv(b77, params["branch7x7_2"], ((0, 0), (3, 3)))
    b77 = _ref_basic_conv(b77, params["branch7x7_3"], ((3, 3), (0, 0)))

    bd = _ref_basic_conv(x, params["branch7x7dbl_1"], ((0, 0), (0, 0)))
    bd = _ref_basic_conv(bd, params["branch7x7dbl_2"], ((3, 3), (0, 0)))
    bd = _ref_basic_conv(bd, params["branch7x7dbl_3"], ((0, 0), (3, 3)))
    bd = _ref_basic_conv(bd, params["branch7x7dbl_4"], ((3, 3), (0, 0)))
    bd = _ref_basic_conv(bd, params["branch7x7dbl_5"], ((0, 0), (3, 3)))

    bp = lax.reduce_window(x, 0.0, lax.add, (1, 1, 3, 3), (1, 1, 1, 1),
                           ((0, 0), (0, 0), (1, 1), (1, 1))) / 9.0
    bp = _ref_basic_conv(bp, params["branch_pool"], ((0, 0), (0, 0)))

    return jnp.concatenate([b1, b77, bd, bp], axis=1)


# ---------------------------------------------------------------------------
# Deterministic parameter init
# ---------------------------------------------------------------------------
def init_params(key, in_channels, c7):
    specs = {
        "branch1x1":      (192, in_channels, 1, 1),
        "branch7x7_1":    (c7, in_channels, 1, 1),
        "branch7x7_2":    (c7, c7, 1, 7),
        "branch7x7_3":    (192, c7, 7, 1),
        "branch7x7dbl_1": (c7, in_channels, 1, 1),
        "branch7x7dbl_2": (c7, c7, 7, 1),
        "branch7x7dbl_3": (c7, c7, 1, 7),
        "branch7x7dbl_4": (c7, c7, 7, 1),
        "branch7x7dbl_5": (192, c7, 1, 7),
        "branch_pool":    (192, in_channels, 1, 1),
    }
    params = {}
    for name, (oc, ic, kh, kw) in specs.items():
        key, k_w, k_g, k_b, k_m, k_v = jax.random.split(key, 6)
        fan_in = float(ic * kh * kw)
        params[name] = {
            "w": jax.random.normal(k_w, (oc, ic, kh, kw), jnp.float32)
                 * (1.0 / fan_in ** 0.5),
            "gamma": 1.0 + 0.1 * jax.random.normal(k_g, (oc,), jnp.float32),
            "beta": 0.1 * jax.random.normal(k_b, (oc,), jnp.float32),
            "mean": 0.05 * jax.random.normal(k_m, (oc,), jnp.float32),
            "var": jnp.abs(1.0 + 0.1 * jax.random.normal(k_v, (oc,), jnp.float32)),
        }
    return params


if __name__ == "__main__":
    key = jax.random.PRNGKey(0)
    k_x, k_p = jax.random.split(key)

    N, C_IN, H, W = 2, 16, 16, 16
    C7 = 16

    x = jax.random.normal(k_x, (N, C_IN, H, W), dtype=jnp.float32)
    params = init_params(k_p, C_IN, C7)

    out = inception_c_forward(x, params)
    out = jax.block_until_ready(out)

    ref = inception_c_reference(x, params)
    assert out.shape == (N, 768, H, W), out.shape
    max_err = float(jnp.max(jnp.abs(out - ref)))
    # bf16 matmul operands (f32 accumulation) through up to 5 chained convs.
    assert jnp.allclose(out, ref, atol=5e-2, rtol=5e-2), (
        f"mismatch vs reference (max abs err {max_err})")

    print("KERNEL_OK")
</pallas_src>

<mosaic_0001>
module attributes {stable_mosaic.version = 11 : i64} {
  func.func @_matmul_shift_relu_kernel(%arg0: i32, %arg1: memref<512x16xbf16, #tpu.memory_space<vmem>>, %arg2: memref<16x192xbf16, #tpu.memory_space<vmem>>, %arg3: memref<1x192xf32, #tpu.memory_space<vmem>>, %arg4: memref<512x192xbf16, #tpu.memory_space<vmem>>) attributes {dimension_semantics = [#tpu.dimension_semantics<parallel>], iteration_bounds = array<i64: 1>, scalar_prefetch = 0 : i64, scratch_operands = 0 : i64, tpu.core_type = #tpu.core_type<tc>, window_params = [{transform_indices = @transform_0, window_bounds = array<i64: 512, 16>}, {pipeline_mode = #tpu.pipeline_mode<synchronous>, transform_indices = @transform_1, window_bounds = array<i64: 16, 192>}, {pipeline_mode = #tpu.pipeline_mode<synchronous>, transform_indices = @transform_2, window_bounds = array<i64: 1, 192>}, {transform_indices = @transform_3, window_bounds = array<i64: 512, 192>}]} {
    %c0 = arith.constant 0 : index
    %c0_0 = arith.constant 0 : index
    %0 = vector.load %arg1[%c0, %c0_0] : memref<512x16xbf16, #tpu.memory_space<vmem>>, vector<512x16xbf16>
    %c0_1 = arith.constant 0 : index
    %c0_2 = arith.constant 0 : index
    %1 = vector.load %arg2[%c0_1, %c0_2] : memref<16x192xbf16, #tpu.memory_space<vmem>>, vector<16x192xbf16>
    %cst = arith.constant dense<0.000000e+00> : vector<512x192xf32>
    %2 = tpu.matmul %0, %1, %cst {dimension_numbers = #tpu.dot_dimension_numbers<[1], [0], [0], [1], [0, 0, 1, 1], [], []>} : vector<512x16xbf16>, vector<16x192xbf16>, vector<512x192xf32> -> vector<512x192xf32>
    %c0_3 = arith.constant 0 : index
    %c0_4 = arith.constant 0 : index
    %3 = vector.load %arg3[%c0_3, %c0_4] : memref<1x192xf32, #tpu.memory_space<vmem>>, vector<1x192xf32>
    %4 = vector.broadcast %3 : vector<1x192xf32> to vector<512x192xf32>
    %5 = arith.addf %2, %4 : vector<512x192xf32>
    %cst_5 = arith.constant 0.000000e+00 : f32
    %6 = vector.broadcast %cst_5 : f32 to vector<512x192xf32>
    %7 = arith.maximumf %5, %6 : vector<512x192xf32>
    %8 = arith.truncf %7 : vector<512x192xf32> to vector<512x192xbf16>
    %c0_6 = arith.constant 0 : index
    %c0_7 = arith.constant 0 : index
    %9 = vector.load %arg4[%c0_6, %c0_7] : memref<512x192xbf16, #tpu.memory_space<vmem>>, vector<512x192xbf16>
    tpu.vector_store %arg4[%c0_6, %c0_7], %8 {strides = array<i32>} : memref<512x192xbf16, #tpu.memory_space<vmem>>, vector<512x192xbf16>,
    return
  }
  func.func @transform_0(%arg0: i32) -> (i32, i32) {
    %c0_i32 = arith.constant 0 : i32
    %c0_i32_0 = arith.constant 0 : i32
    return %arg0, %c0_i32 : i32, i32
  }
  func.func @transform_1(%arg0: i32) -> (i32, i32) {
    %c0_i32 = arith.constant 0 : i32
    %c0_i32_0 = arith.constant 0 : i32
    %c0_i32_1 = arith.constant 0 : i32
    return %c0_i32, %c0_i32_0 : i32, i32
  }
  func.func @transform_2(%arg0: i32) -> (i32, i32) {
    %c0_i32 = arith.constant 0 : i32
    %c0_i32_0 = arith.constant 0 : i32
    %c0_i32_1 = arith.constant 0 : i32
    return %c0_i32, %c0_i32_0 : i32, i32
  }
  func.func @transform_3(%arg0: i32) -> (i32, i32) {
    %c0_i32 = arith.constant 0 : i32
    %c0_i32_0 = arith.constant 0 : i32
    return %arg0, %c0_i32 : i32, i32
  }
}

module attributes {stable_mosaic.version = 11 : i64} {
  func.func @_matmul_shift_relu_kernel(%arg0: i32, %arg1: memref<512x16xbf16, #tpu.memory_space<vmem>>, %arg2: memref<16x448xbf16, #tpu.memory_space<vmem>>, %arg3: memref<1x448xf32, #tpu.memory_space<vmem>>, %arg4: memref<512x448xbf16, #tpu.memory_space<vmem>>) attributes {dimension_semantics = [#tpu.dimension_semantics<parallel>], iteration_bounds = array<i64: 1>, scalar_prefetch = 0 : i64, scratch_operands = 0 : i64, tpu.core_type = #tpu.core_type<tc>, window_params = [{transform_indices = @transform_0, window_bounds = array<i64: 512, 16>}, {pipeline_mode = #tpu.pipeline_mode<synchronous>, transform_indices = @transform_1, window_bounds = array<i64: 16, 448>}, {pipeline_mode = #tpu.pipeline_mode<synchronous>, transform_indices = @transform_2, window_bounds = array<i64: 1, 448>}, {transform_indices = @transform_3, window_bounds = array<i64: 512, 448>}]} {
    %c0 = arith.constant 0 : index
    %c0_0 = arith.constant 0 : index
    %0 = vector.load %arg1[%c0, %c0_0] : memref<512x16xbf16, #tpu.memory_space<vmem>>, vector<512x16xbf16>
    %c0_1 = arith.constant 0 : index
    %c0_2 = arith.constant 0 : index
    %1 = vector.load %arg2[%c0_1, %c0_2] : memref<16x448xbf16, #tpu.memory_space<vmem>>, vector<16x448xbf16>
    %cst = arith.constant dense<0.000000e+00> : vector<512x448xf32>
    %2 = tpu.matmul %0, %1, %cst {dimension_numbers = #tpu.dot_dimension_numbers<[1], [0], [0], [1], [0, 0, 1, 1], [], []>} : vector<512x16xbf16>, vector<16x448xbf16>, vector<512x448xf32> -> vector<512x448xf32>
    %c0_3 = arith.constant 0 : index
    %c0_4 = arith.constant 0 : index
    %3 = vector.load %arg3[%c0_3, %c0_4] : memref<1x448xf32, #tpu.memory_space<vmem>>, vector<1x448xf32>
    %4 = vector.broadcast %3 : vector<1x448xf32> to vector<512x448xf32>
    %5 = arith.addf %2, %4 : vector<512x448xf32>
    %cst_5 = arith.constant 0.000000e+00 : f32
    %6 = vector.broadcast %cst_5 : f32 to vector<512x448xf32>
    %7 = arith.maximumf %5, %6 : vector<512x448xf32>
    %8 = arith.truncf %7 : vector<512x448xf32> to vector<512x448xbf16>
    %c0_6 = arith.constant 0 : index
    %c0_7 = arith.constant 0 : index
    %9 = vector.load %arg4[%c0_6, %c0_7] : memref<512x448xbf16, #tpu.memory_space<vmem>>, vector<512x448xbf16>
    tpu.vector_store %arg4[%c0_6, %c0_7], %8 {strides = array<i32>} : memref<512x448xbf16, #tpu.memory_space<vmem>>, vector<512x448xbf16>,
    return
  }
  func.func @transform_0(%arg0: i32) -> (i32, i32) {
    %c0_i32 = arith.constant 0 : i32
    %c0_i32_0 = arith.constant 0 : i32
    return %arg0, %c0_i32 : i32, i32
  }
  func.func @transform_1(%arg0: i32) -> (i32, i32) {
    %c0_i32 = arith.constant 0 : i32
    %c0_i32_0 = arith.constant 0 : i32
    %c0_i32_1 = arith.constant 0 : i32
    return %c0_i32, %c0_i32_0 : i32, i32
  }
  func.func @transform_2(%arg0: i32) -> (i32, i32) {
    %c0_i32 = arith.constant 0 : i32
    %c0_i32_0 = arith.constant 0 : i32
    %c0_i32_1 = arith.constant 0 : i32
    return %c0_i32, %c0_i32_0 : i32, i32
  }
  func.func @transform_3(%arg0: i32) -> (i32, i32) {
    %c0_i32 = arith.constant 0 : i32
    %c0_i32_0 = arith.constant 0 : i32
    return %arg0, %c0_i32 : i32, i32
  }
}

module attributes {stable_mosaic.version = 11 : i64} {
  func.func @_conv_w7_kernel(%arg0: i32, %arg1: memref<1x16x22x128xbf16, #tpu.memory_space<vmem>>, %arg2: memref<7x128x128xbf16, #tpu.memory_space<vmem>>, %arg3: memref<1x128xf32, #tpu.memory_space<vmem>>, %arg4: memref<1x256x128xbf16, #tpu.memory_space<vmem>>) attributes {dimension_semantics = [#tpu.dimension_semantics<parallel>], iteration_bounds = array<i64: 2>, scalar_prefetch = 0 : i64, scratch_operands = 0 : i64, tpu.core_type = #tpu.core_type<tc>, window_params = [{transform_indices = @transform_0, window_bounds = array<i64: 1, 16, 22, 128>}, {pipeline_mode = #tpu.pipeline_mode<synchronous>, transform_indices = @transform_1, window_bounds = array<i64: 7, 128, 128>}, {pipeline_mode = #tpu.pipeline_mode<synchronous>, transform_indices = @transform_2, window_bounds = array<i64: 1, 128>}, {transform_indices = @transform_3, window_bounds = array<i64: 1, 256, 128>}]} {
    %c0 = arith.constant 0 : index
    %c0_0 = arith.constant 0 : index
    %c0_1 = arith.constant 0 : index
    %c0_2 = arith.constant 0 : index
    %0 = vector.load %arg1[%c0, %c0_0, %c0_1, %c0_2] : memref<1x16x22x128xbf16, #tpu.memory_space<vmem>>, vector<1x16x22x128xbf16>
    %1 = vector.shape_cast %0 : vector<1x16x22x128xbf16> to vector<16x22x128xbf16>
    %cst = arith.constant 0.000000e+00 : f32
    %2 = vector.broadcast %cst : f32 to vector<256x128xf32>
    %3 = vector.extract_strided_slice %1 {offsets = [0, 0, 0], sizes = [16, 16, 128], strides = [1, 1, 1]} : vector<16x22x128xbf16> to vector<16x16x128xbf16>
    %4 = vector.shape_cast %3 : vector<16x16x128xbf16> to vector<256x128xbf16>
    %c0_3 = arith.constant 0 : index
    %c0_4 = arith.constant 0 : index
    %c0_5 = arith.constant 0 : index
    %5 = vector.load %arg2[%c0_3, %c0_4, %c0_5] : memref<7x128x128xbf16, #tpu.memory_space<vmem>>, vector<1x128x128xbf16>
    %6 = vector.shape_cast %5 : vector<1x128x128xbf16> to vector<128x128xbf16>
    %cst_6 = arith.constant dense<0.000000e+00> : vector<256x128xf32>
    %7 = tpu.matmul %4, %6, %cst_6 {dimension_numbers = #tpu.dot_dimension_numbers<[1], [0], [0], [1], [0, 0, 1, 1], [], []>} : vector<256x128xbf16>, vector<128x128xbf16>, vector<256x128xf32> -> vector<256x128xf32>
    %8 = arith.addf %2, %7 : vector<256x128xf32>
    %9 = vector.extract_strided_slice %1 {offsets = [0, 1, 0], sizes = [16, 16, 128], strides = [1, 1, 1]} : vector<16x22x128xbf16> to vector<16x16x128xbf16>
    %10 = vector.shape_cast %9 : vector<16x16x128xbf16> to vector<256x128xbf16>
    %c1 = arith.constant 1 : index
    %c0_7 = arith.constant 0 : index
    %c0_8 = arith.constant 0 : index
    %11 = vector.load %arg2[%c1, %c0_7, %c0_8] : memref<7x128x128xbf16, #tpu.memory_space<vmem>>, vector<1x128x128xbf16>
    %12 = vector.shape_cast %11 : vector<1x128x128xbf16> to vector<128x128xbf16>
    %cst_9 = arith.constant dense<0.000000e+00> : vector<256x128xf32>
    %13 = tpu.matmul %10, %12, %cst_9 {dimension_numbers = #tpu.dot_dimension_numbers<[1], [0], [0], [1], [0, 0, 1, 1], [], []>} : vector<256x128xbf16>, vector<128x128xbf16>, vector<256x128xf32> -> vector<256x128xf32>
    %14 = arith.addf %8, %13 : vector<256x128xf32>
    %15 = vector.extract_strided_slice %1 {offsets = [0, 2, 0], sizes = [16, 16, 128], strides = [1, 1, 1]} : vector<16x22x128xbf16> to vector<16x16x128xbf16>
    %16 = vector.shape_cast %15 : vector<16x16x128xbf16> to vector<256x128xbf16>
    %c2 = arith.constant 2 : index
    %c0_10 = arith.constant 0 : index
    %c0_11 = arith.constant 0 : index
    %17 = vector.load %arg2[%c2, %c0_10, %c0_11] : memref<7x128x128xbf16, #tpu.memory_space<vmem>>, vector<1x128x128xbf16>
    %18 = vector.shape_cast %17 : vector<1x128x128xbf16> to vector<128x128xbf16>
    %cst_12 = arith.constant dense<0.000000e+00> : vector<256x128xf32>
    %19 = tpu.matmul %16, %18, %cst_12 {dimension_numbers = #tpu.dot_dimension_numbers<[1], [0], [0], [1], [0, 0, 1, 1], [], []>} : vector<256x128xbf16>, vector<128x128xbf16>, vector<256x128xf32> -> vector<256x128xf32>
    %20 = arith.addf %14, %19 : vector<256x128xf32>
    %21 = vector.extract_strided_slice %1 {offsets = [0, 3, 0], sizes = [16, 16, 128], strides = [1, 1, 1]} : vector<16x22x128xbf16> to vector<16x16x128xbf16>
    %22 = vector.shape_cast %21 : vector<16x16x128xbf16> to vector<256x128xbf16>
    %c3 = arith.constant 3 : index
    %c0_13 = arith.constant 0 : index
    %c0_14 = arith.constant 0 : index
    %23 = vector.load %arg2[%c3, %c0_13, %c0_14] : memref<7x128x128xbf16, #tpu.memory_space<vmem>>, vector<1x128x128xbf16>
    %24 = vector.shape_cast %23 : vector<1x128x128xbf16> to vector<128x128xbf16>
    %cst_15 = arith.constant dense<0.000000e+00> : vector<256x128xf32>
    %25 = tpu.matmul %22, %24, %cst_15 {dimension_numbers = #tpu.dot_dimension_numbers<[1], [0], [0], [1], [0, 0, 1, 1], [], []>} : vector<256x128xbf16>, vector<128x128xbf16>, vector<256x128xf32> -> vector<256x128xf32>
    %26 = arith.addf %20, %25 : vector<256x128xf32>
    %27 = vector.extract_strided_slice %1 {offsets = [0, 4, 0], sizes = [16, 16, 128], strides = [1, 1, 1]} : vector<16x22x128xbf16> to vector<16x16x128xbf16>
    %28 = vector.shape_cast %27 : vector<16x16x128xbf16> to vector<256x128xbf16>
    %c4 = arith.constant 4 : index
    %c0_16 = arith.constant 0 : index
    %c0_17 = arith.constant 0 : index
    %29 = vector.load %arg2[%c4, %c0_16, %c0_17] : memref<7x128x128xbf16, #tpu.memory_space<vmem>>, vector<1x128x128xbf16>
    %30 = vector.shape_cast %29 : vector<1x128x128xbf16> to vector<128x128xbf16>
    %cst_18 = arith.constant dense<0.000000e+00> : vector<256x128xf32>
    %31 = tpu.matmul %28, %30, %cst_18 {dimension_numbers = #tpu.dot_dimension_numbers<[1], [0], [0], [1], [0, 0, 1, 1], [], []>} : vector<256x128xbf16>, vector<128x128xbf16>, vector<256x128xf32> -> vector<256x128xf32>
    %32 = arith.addf %26, %31 : vector<256x128xf32>
    %33 = vector.extract_strided_slice %1 {offsets = [0, 5, 0], sizes = [16, 16, 128], strides = [1, 1, 1]} : vector<16x22x128xbf16> to vector<16x16x128xbf16>
    %34 = vector.shape_cast %33 : vector<16x16x128xbf16> to vector<256x128xbf16>
    %c5 = arith.constant 5 : index
    %c0_19 = arith.constant 0 : index
    %c0_20 = arith.constant 0 : index
    %35 = vector.load %arg2[%c5, %c0_19, %c0_20] : memref<7x128x128xbf16, #tpu.memory_space<vmem>>, vector<1x128x128xbf16>
    %36 = vector.shape_cast %35 : vector<1x128x128xbf16> to vector<128x128xbf16>
    %cst_21 = arith.constant dense<0.000000e+00> : vector<256x128xf32>
    %37 = tpu.matmul %34, %36, %cst_21 {dimension_numbers = #tpu.dot_dimension_numbers<[1], [0], [0], [1], [0, 0, 1, 1], [], []>} : vector<256x128xbf16>, vector<128x128xbf16>, vector<256x128xf32> -> vector<256x128xf32>
    %38 = arith.addf %32, %37 : vector<256x128xf32>
    %39 = vector.extract_strided_slice %1 {offsets = [0, 6, 0], sizes = [16, 16, 128], strides = [1, 1, 1]} : vector<16x22x128xbf16> to vector<16x16x128xbf16>
    %40 = vector.shape_cast %39 : vector<16x16x128xbf16> to vector<256x128xbf16>
    %c6 = arith.constant 6 : index
    %c0_22 = arith.constant 0 : index
    %c0_23 = arith.constant 0 : index
    %41 = vector.load %arg2[%c6, %c0_22, %c0_23] : memref<7x128x128xbf16, #tpu.memory_space<vmem>>, vector<1x128x128xbf16>
    %42 = vector.shape_cast %41 : vector<1x128x128xbf16> to vector<128x128xbf16>
    %cst_24 = arith.constant dense<0.000000e+00> : vector<256x128xf32>
    %43 = tpu.matmul %40, %42, %cst_24 {dimension_numbers = #tpu.dot_dimension_numbers<[1], [0], [0], [1], [0, 0, 1, 1], [], []>} : vector<256x128xbf16>, vector<128x128xbf16>, vector<256x128xf32> -> vector<256x128xf32>
    %44 = arith.addf %38, %43 : vector<256x128xf32>
    %c0_25 = arith.constant 0 : index
    %c0_26 = arith.constant 0 : index
    %45 = vector.load %arg3[%c0_25, %c0_26] : memref<1x128xf32, #tpu.memory_space<vmem>>, vector<1x128xf32>
    %46 = vector.broadcast %45 : vector<1x128xf32> to vector<256x128xf32>
    %47 = arith.addf %44, %46 : vector<256x128xf32>
    %cst_27 = arith.constant 0.000000e+00 : f32
    %48 = vector.broadcast %cst_27 : f32 to vector<256x128xf32>
    %49 = arith.maximumf %47, %48 : vector<256x128xf32>
    %50 = arith.truncf %49 : vector<256x128xf32> to vector<256x128xbf16>
    %c0_28 = arith.constant 0 : index
    %c0_29 = arith.constant 0 : index
    %c0_30 = arith.constant 0 : index
    %51 = vector.load %arg4[%c0_28, %c0_29, %c0_30] : memref<1x256x128xbf16, #tpu.memory_space<vmem>>, vector<1x256x128xbf16>
    %52 = vector.shape_cast %51 : vector<1x256x128xbf16> to vector<256x128xbf16>
    %53 = vector.shape_cast %50 : vector<256x128xbf16> to vector<1x256x128xbf16>
    tpu.vector_store %arg4[%c0_28, %c0_29, %c0_30], %53 {strides = array<i32>} : memref<1x256x128xbf16, #tpu.memory_space<vmem>>, vector<1x256x128xbf16>,
    return
  }
  func.func @transform_0(%arg0: i32) -> (i32, i32, i32, i32) {
    %c0_i32 = arith.constant 0 : i32
    %c0_i32_0 = arith.constant 0 : i32
    %c0_i32_1 = arith.constant 0 : i32
    %c0_i32_2 = arith.constant 0 : i32
    return %arg0, %c0_i32, %c0_i32_0, %c0_i32_1 : i32, i32, i32, i32
  }
  func.func @transform_1(%arg0: i32) -> (i32, i32, i32) {
    %c0_i32 = arith.constant 0 : i32
    %c0_i32_0 = arith.constant 0 : i32
    %c0_i32_1 = arith.constant 0 : i32
    %c0_i32_2 = arith.constant 0 : i32
    return %c0_i32, %c0_i32_0, %c0_i32_1 : i32, i32, i32
  }
  func.func @transform_2(%arg0: i32) -> (i32, i32) {
    %c0_i32 = arith.constant 0 : i32
    %c0_i32_0 = arith.constant 0 : i32
    %c0_i32_1 = arith.constant 0 : i32
    return %c0_i32, %c0_i32_0 : i32, i32
  }
  func.func @transform_3(%arg0: i32) -> (i32, i32, i32) {
    %c0_i32 = arith.constant 0 : i32
    %c0_i32_0 = arith.constant 0 : i32
    %c0_i32_1 = arith.constant 0 : i32
    return %arg0, %c0_i32, %c0_i32_0 : i32, i32, i32
  }
}

module attributes {stable_mosaic.version = 11 : i64} {
  func.func @_conv_w7_kernel(%arg0: i32, %arg1: memref<1x16x22x128xbf16, #tpu.memory_space<vmem>>, %arg2: memref<7x128x192xbf16, #tpu.memory_space<vmem>>, %arg3: memref<1x192xf32, #tpu.memory_space<vmem>>, %arg4: memref<1x256x192xbf16, #tpu.memory_space<vmem>>) attributes {dimension_semantics = [#tpu.dimension_semantics<parallel>], iteration_bounds = array<i64: 2>, scalar_prefetch = 0 : i64, scratch_operands = 0 : i64, tpu.core_type = #tpu.core_type<tc>, window_params = [{transform_indices = @transform_0, window_bounds = array<i64: 1, 16, 22, 128>}, {pipeline_mode = #tpu.pipeline_mode<synchronous>, transform_indices = @transform_1, window_bounds = array<i64: 7, 128, 192>}, {pipeline_mode = #tpu.pipeline_mode<synchronous>, transform_indices = @transform_2, window_bounds = array<i64: 1, 192>}, {transform_indices = @transform_3, window_bounds = array<i64: 1, 256, 192>}]} {
    %c0 = arith.constant 0 : index
    %c0_0 = arith.constant 0 : index
    %c0_1 = arith.constant 0 : index
    %c0_2 = arith.constant 0 : index
    %0 = vector.load %arg1[%c0, %c0_0, %c0_1, %c0_2] : memref<1x16x22x128xbf16, #tpu.memory_space<vmem>>, vector<1x16x22x128xbf16>
    %1 = vector.shape_cast %0 : vector<1x16x22x128xbf16> to vector<16x22x128xbf16>
    %cst = arith.constant 0.000000e+00 : f32
    %2 = vector.broadcast %cst : f32 to vector<256x192xf32>
    %3 = vector.extract_strided_slice %1 {offsets = [0, 0, 0], sizes = [16, 16, 128], strides = [1, 1, 1]} : vector<16x22x128xbf16> to vector<16x16x128xbf16>
    %4 = vector.shape_cast %3 : vector<16x16x128xbf16> to vector<256x128xbf16>
    %c0_3 = arith.constant 0 : index
    %c0_4 = arith.constant 0 : index
    %c0_5 = arith.constant 0 : index
    %5 = vector.load %arg2[%c0_3, %c0_4, %c0_5] : memref<7x128x192xbf16, #tpu.memory_space<vmem>>, vector<1x128x192xbf16>
    %6 = vector.shape_cast %5 : vector<1x128x192xbf16> to vector<128x192xbf16>
    %cst_6 = arith.constant dense<0.000000e+00> : vector<256x192xf32>
    %7 = tpu.matmul %4, %6, %cst_6 {dimension_numbers = #tpu.dot_dimension_numbers<[1], [0], [0], [1], [0, 0, 1, 1], [], []>} : vector<256x128xbf16>, vector<128x192xbf16>, vector<256x192xf32> -> vector<256x192xf32>
    %8 = arith.addf %2, %7 : vector<256x192xf32>
    %9 = vector.extract_strided_slice %1 {offsets = [0, 1, 0], sizes = [16, 16, 128], strides = [1, 1, 1]} : vector<16x22x128xbf16> to vector<16x16x128xbf16>
    %10 = vector.shape_cast %9 : vector<16x16x128xbf16> to vector<256x128xbf16>
    %c1 = arith.constant 1 : index
    %c0_7 = arith.constant 0 : index
    %c0_8 = arith.constant 0 : index
    %11 = vector.load %arg2[%c1, %c0_7, %c0_8] : memref<7x128x192xbf16, #tpu.memory_space<vmem>>, vector<1x128x192xbf16>
    %12 = vector.shape_cast %11 : vector<1x128x192xbf16> to vector<128x192xbf16>
    %cst_9 = arith.constant dense<0.000000e+00> : vector<256x192xf32>
    %13 = tpu.matmul %10, %12, %cst_9 {dimension_numbers = #tpu.dot_dimension_numbers<[1], [0], [0], [1], [0, 0, 1, 1], [], []>} : vector<256x128xbf16>, vector<128x192xbf16>, vector<256x192xf32> -> vector<256x192xf32>
    %14 = arith.addf %8, %13 : vector<256x192xf32>
    %15 = vector.extract_strided_slice %1 {offsets = [0, 2, 0], sizes = [16, 16, 128], strides = [1, 1, 1]} : vector<16x22x128xbf16> to vector<16x16x128xbf16>
    %16 = vector.shape_cast %15 : vector<16x16x128xbf16> to vector<256x128xbf16>
    %c2 = arith.constant 2 : index
    %c0_10 = arith.constant 0 : index
    %c0_11 = arith.constant 0 : index
    %17 = vector.load %arg2[%c2, %c0_10, %c0_11] : memref<7x128x192xbf16, #tpu.memory_space<vmem>>, vector<1x128x192xbf16>
    %18 = vector.shape_cast %17 : vector<1x128x192xbf16> to vector<128x192xbf16>
    %cst_12 = arith.constant dense<0.000000e+00> : vector<256x192xf32>
    %19 = tpu.matmul %16, %18, %cst_12 {dimension_numbers = #tpu.dot_dimension_numbers<[1], [0], [0], [1], [0, 0, 1, 1], [], []>} : vector<256x128xbf16>, vector<128x192xbf16>, vector<256x192xf32> -> vector<256x192xf32>
    %20 = arith.addf %14, %19 : vector<256x192xf32>
    %21 = vector.extract_strided_slice %1 {offsets = [0, 3, 0], sizes = [16, 16, 128], strides = [1, 1, 1]} : vector<16x22x128xbf16> to vector<16x16x128xbf16>
    %22 = vector.shape_cast %21 : vector<16x16x128xbf16> to vector<256x128xbf16>
    %c3 = arith.constant 3 : index
    %c0_13 = arith.constant 0 : index
    %c0_14 = arith.constant 0 : index
    %23 = vector.load %arg2[%c3, %c0_13, %c0_14] : memref<7x128x192xbf16, #tpu.memory_space<vmem>>, vector<1x128x192xbf16>
    %24 = vector.shape_cast %23 : vector<1x128x192xbf16> to vector<128x192xbf16>
    %cst_15 = arith.constant dense<0.000000e+00> : vector<256x192xf32>
    %25 = tpu.matmul %22, %24, %cst_15 {dimension_numbers = #tpu.dot_dimension_numbers<[1], [0], [0], [1], [0, 0, 1, 1], [], []>} : vector<256x128xbf16>, vector<128x192xbf16>, vector<256x192xf32> -> vector<256x192xf32>
    %26 = arith.addf %20, %25 : vector<256x192xf32>
    %27 = vector.extract_strided_slice %1 {offsets = [0, 4, 0], sizes = [16, 16, 128], strides = [1, 1, 1]} : vector<16x22x128xbf16> to vector<16x16x128xbf16>
    %28 = vector.shape_cast %27 : vector<16x16x128xbf16> to vector<256x128xbf16>
    %c4 = arith.constant 4 : index
    %c0_16 = arith.constant 0 : index
    %c0_17 = arith.constant 0 : index
    %29 = vector.load %arg2[%c4, %c0_16, %c0_17] : memref<7x128x192xbf16, #tpu.memory_space<vmem>>, vector<1x128x192xbf16>
    %30 = vector.shape_cast %29 : vector<1x128x192xbf16> to vector<128x192xbf16>
    %cst_18 = arith.constant dense<0.000000e+00> : vector<256x192xf32>
    %31 = tpu.matmul %28, %30, %cst_18 {dimension_numbers = #tpu.dot_dimension_numbers<[1], [0], [0], [1], [0, 0, 1, 1], [], []>} : vector<256x128xbf16>, vector<128x192xbf16>, vector<256x192xf32> -> vector<256x192xf32>
    %32 = arith.addf %26, %31 : vector<256x192xf32>
    %33 = vector.extract_strided_slice %1 {offsets = [0, 5, 0], sizes = [16, 16, 128], strides = [1, 1, 1]} : vector<16x22x128xbf16> to vector<16x16x128xbf16>
    %34 = vector.shape_cast %33 : vector<16x16x128xbf16> to vector<256x128xbf16>
    %c5 = arith.constant 5 : index
    %c0_19 = arith.constant 0 : index
    %c0_20 = arith.constant 0 : index
    %35 = vector.load %arg2[%c5, %c0_19, %c0_20] : memref<7x128x192xbf16, #tpu.memory_space<vmem>>, vector<1x128x192xbf16>
    %36 = vector.shape_cast %35 : vector<1x128x192xbf16> to vector<128x192xbf16>
    %cst_21 = arith.constant dense<0.000000e+00> : vector<256x192xf32>
    %37 = tpu.matmul %34, %36, %cst_21 {dimension_numbers = #tpu.dot_dimension_numbers<[1], [0], [0], [1], [0, 0, 1, 1], [], []>} : vector<256x128xbf16>, vector<128x192xbf16>, vector<256x192xf32> -> vector<256x192xf32>
    %38 = arith.addf %32, %37 : vector<256x192xf32>
    %39 = vector.extract_strided_slice %1 {offsets = [0, 6, 0], sizes = [16, 16, 128], strides = [1, 1, 1]} : vector<16x22x128xbf16> to vector<16x16x128xbf16>
    %40 = vector.shape_cast %39 : vector<16x16x128xbf16> to vector<256x128xbf16>
    %c6 = arith.constant 6 : index
    %c0_22 = arith.constant 0 : index
    %c0_23 = arith.constant 0 : index
    %41 = vector.load %arg2[%c6, %c0_22, %c0_23] : memref<7x128x192xbf16, #tpu.memory_space<vmem>>, vector<1x128x192xbf16>
    %42 = vector.shape_cast %41 : vector<1x128x192xbf16> to vector<128x192xbf16>
    %cst_24 = arith.constant dense<0.000000e+00> : vector<256x192xf32>
    %43 = tpu.matmul %40, %42, %cst_24 {dimension_numbers = #tpu.dot_dimension_numbers<[1], [0], [0], [1], [0, 0, 1, 1], [], []>} : vector<256x128xbf16>, vector<128x192xbf16>, vector<256x192xf32> -> vector<256x192xf32>
    %44 = arith.addf %38, %43 : vector<256x192xf32>
    %c0_25 = arith.constant 0 : index
    %c0_26 = arith.constant 0 : index
    %45 = vector.load %arg3[%c0_25, %c0_26] : memref<1x192xf32, #tpu.memory_space<vmem>>, vector<1x192xf32>
    %46 = vector.broadcast %45 : vector<1x192xf32> to vector<256x192xf32>
    %47 = arith.addf %44, %46 : vector<256x192xf32>
    %cst_27 = arith.constant 0.000000e+00 : f32
    %48 = vector.broadcast %cst_27 : f32 to vector<256x192xf32>
    %49 = arith.maximumf %47, %48 : vector<256x192xf32>
    %50 = arith.truncf %49 : vector<256x192xf32> to vector<256x192xbf16>
    %c0_28 = arith.constant 0 : index
    %c0_29 = arith.constant 0 : index
    %c0_30 = arith.constant 0 : index
    %51 = vector.load %arg4[%c0_28, %c0_29, %c0_30] : memref<1x256x192xbf16, #tpu.memory_space<vmem>>, vector<1x256x192xbf16>
    %52 = vector.shape_cast %51 : vector<1x256x192xbf16> to vector<256x192xbf16>
    %53 = vector.shape_cast %50 : vector<256x192xbf16> to vector<1x256x192xbf16>
    tpu.vector_store %arg4[%c0_28, %c0_29, %c0_30], %53 {strides = array<i32>} : memref<1x256x192xbf16, #tpu.memory_space<vmem>>, vector<1x256x192xbf16>,
    return
  }
  func.func @transform_0(%arg0: i32) -> (i32, i32, i32, i32) {
    %c0_i32 = arith.constant 0 : i32
    %c0_i32_0 = arith.constant 0 : i32
    %c0_i32_1 = arith.constant 0 : i32
    %c0_i32_2 = arith.constant 0 : i32
    return %arg0, %c0_i32, %c0_i32_0, %c0_i32_1 : i32, i32, i32, i32
  }
  func.func @transform_1(%arg0: i32) -> (i32, i32, i32) {
    %c0_i32 = arith.constant 0 : i32
    %c0_i32_0 = arith.constant 0 : i32
    %c0_i32_1 = arith.constant 0 : i32
    %c0_i32_2 = arith.constant 0 : i32
    return %c0_i32, %c0_i32_0, %c0_i32_1 : i32, i32, i32
  }
  func.func @transform_2(%arg0: i32) -> (i32, i32) {
    %c0_i32 = arith.constant 0 : i32
    %c0_i32_0 = arith.constant 0 : i32
    %c0_i32_1 = arith.constant 0 : i32
    return %c0_i32, %c0_i32_0 : i32, i32
  }
  func.func @transform_3(%arg0: i32) -> (i32, i32, i32) {
    %c0_i32 = arith.constant 0 : i32
    %c0_i32_0 = arith.constant 0 : i32
    %c0_i32_1 = arith.constant 0 : i32
    return %arg0, %c0_i32, %c0_i32_0 : i32, i32, i32
  }
}

</mosaic_0001>

<bundles_post_ra>
// kernel: inception_c_forward.15
= control target key start
LH: loop header
LB: loop body
LE: loop exit
PB: predicated region body
PF: predicated region fallthrough
CT: control target
= control target key end

     0   :  { %v1528_v1 = vmov 0   ;;  %vm263_vm0 = vcmask 130048   ;;  %v83_v35 = vlaneseq  ;;  %vm1225_vm1 = vcmask 1043456   ;;  %s2176_s1 = inlined_call_operand.vmem [shape: bf16[16,192], index: 1, kind: input, shape index: {}]   ;;  %s2177_s0 = inlined_call_operand.vmem [shape: bf16[512,16], index: 0, kind: input, shape index: {}]   ;;  %s2178_s2 = inlined_call_operand.vmem [shape: f32[1,192], index: 2, kind: input, shape index: {}]   ;;  %s2179_s3 = inlined_call_operand.vmem [shape: bf16[512,192], index: 3, kind: output, shape index: {}]  }
   0x1   :  { %v1493_v0 = vld [vmem:[%s2176_s1 + $0x4] ss:$8 sps:$4 sm:$0xff]   ;;  %392 = vmatprep.mubr.bf16.mxu0 %v1528_v1  ;;  %552 = vmatprep.mubr.bf16.mxu1 %v1528_v1  ;;  %v1495_v2 = vld [vmem:[%s2176_s1] ss:$8 sps:$4 sm:$0xff]   ;;  %v1500_v7 = vld [vmem:[%s2177_s0 + $0x10] sm:$0xff]   ;;  %vm1226_vm2 = vcmask 523268  }
   0x2   :  { %360 = vmatprep.subr.bf16.mxu0 %v1493_v0  ;;  %1490 = vmatprep.subr.bf16.mxu1 %v1493_v0  ;;  %v1496_v3 = vld [vmem:[%s2177_s0] sm:$0xff]   ;;  %v1498_v5 = vld [vmem:[%s2177_s0 + $0x8] sm:$0xff]   ;;  %v1501_v8 = vld [vmem:[%s2177_s0 + $0x90] sm:$0xff]   ;;  %v84_v36 = vshrl.u32 %v83_v35, 7 }
   0x3   :  { %361 = vmatpush1.bf16.msra.mxu0 %v1495_v2  ;;  %1491 = vmatpush1.bf16.msra.mxu1 %v1495_v2  ;;  %v1497_v4 = vld [vmem:[%s2177_s0 + $0x80] sm:$0xff]   ;;  %v1499_v6 = vld [vmem:[%s2177_s0 + $0x88] sm:$0xff]   ;;  %v1502_v9 = vld [vmem:[%s2177_s0 + $0x18] sm:$0xff]  }
   0x4   :  { %v1503_v10 = vld [vmem:[%s2177_s0 + $0x98] sm:$0xff]   ;;  %v1504_v11 = vld [vmem:[%s2177_s0 + $0x20] sm:$0xff]   ;;  %v1506_v13 = vld [vmem:[%s2177_s0 + $0x28] sm:$0xff]   ;;  %v85_v37 = vsub.s32 0, %v84_v36  ;;  %v89_v39 = vsub.s32 1, %v84_v36 }
   0x5   :  { %v1505_v12 = vld [vmem:[%s2177_s0 + $0xa0] sm:$0xff]   ;;  %v1507_v14 = vld [vmem:[%s2177_s0 + $0xa8] sm:$0xff]   ;;  %v1508_v15 = vld [vmem:[%s2177_s0 + $0x30] sm:$0xff]  }
   0x6   :  { %1330 = vmatmul.mubr.msk.bf16.vlgmr.msra.gmra.mrb[0].mxu0 %vm263_vm0, %v1496_v3  ;;  %1346 = vmatmul.mubr.msk.bf16.vlgmr.msra.gmra.mrb[0].mxu1 %vm263_vm0, %v1497_v4  ;;  %v1509_v16 = vld [vmem:[%s2177_s0 + $0xb0] sm:$0xff]   ;;  %v1510_v17 = vld [vmem:[%s2177_s0 + $0x38] sm:$0xff]   ;;  %v1512_v19 = vld [vmem:[%s2177_s0 + $0x40] sm:$0xff]  }
   0x7   :  { %402 = vmatprep.mubr.bf16.mxu0 %v1528_v1  ;;  %562 = vmatprep.mubr.bf16.mxu1 %v1528_v1  ;;  %v1511_v18 = vld [vmem:[%s2177_s0 + $0xb8] sm:$0xff]   ;;  %v1513_v20 = vld [vmem:[%s2177_s0 + $0xc0] sm:$0xff]   ;;  %v1514_v21 = vld [vmem:[%s2177_s0 + $0x48] sm:$0xff]  }
   0x8   :  { %v1515_v22 = vld [vmem:[%s2177_s0 + $0xc8] sm:$0xff]   ;;  %v1516_v23 = vld [vmem:[%s2177_s0 + $0x50] sm:$0xff]   ;;  %v1518_v25 = vld [vmem:[%s2177_s0 + $0x58] sm:$0xff]  }
   0x9   :  { %v1517_v24 = vld [vmem:[%s2177_s0 + $0xd0] sm:$0xff]   ;;  %v1519_v26 = vld [vmem:[%s2177_s0 + $0xd8] sm:$0xff]   ;;  %v1520_v27 = vld [vmem:[%s2177_s0 + $0x60] sm:$0xff]  }
   0xa   :  { %v1521_v28 = vld [vmem:[%s2177_s0 + $0xe0] sm:$0xff]   ;;  %v1522_v29 = vld [vmem:[%s2177_s0 + $0x68] sm:$0xff]   ;;  %v1524_v31 = vld [vmem:[%s2177_s0 + $0x70] sm:$0xff]  }
   0xb   :  { %v1523_v30 = vld [vmem:[%s2177_s0 + $0xe8] sm:$0xff]   ;;  %v1525_v32 = vld [vmem:[%s2177_s0 + $0xf0] sm:$0xff]   ;;  %v1526_v33 = vld [vmem:[%s2177_s0 + $0x78] sm:$0xff]  }
   0xc   :  { %v1527_v34 = vld [vmem:[%s2177_s0 + $0xf8] sm:$0xff]   ;;  %v81_v38 = vld [vmem:[%s2178_s2] sm:$0x3]  ;;  %vm1732_vm3 = vmor %vm1226_vm2, %vm1225_vm1 }
   0xd   :  { %v1718_v40 = vrot.slane %v81_v38, %v85_v37  ;;  %v1720_v41 = vrot.slane %v81_v38, %v89_v39 }
   0xe   :  { %1331 = vmatmul.mubr.msk.bf16.gmra.mrb[4].mxu0 %vm263_vm0, %v1498_v5  ;;  %1347 = vmatmul.mubr.msk.bf16.gmra.mrb[4].mxu1 %vm263_vm0, %v1499_v6 }
   0xf   :  { %412 = vmatprep.mubr.bf16.mxu0 %v1528_v1  ;;  %572 = vmatprep.mubr.bf16.mxu1 %v1528_v1 }
  0x16   :  { %1332 = vmatmul.mubr.msk.bf16.gmra.mrb[8].mxu0 %vm263_vm0, %v1500_v7  ;;  %1348 = vmatmul.mubr.msk.bf16.gmra.mrb[8].mxu1 %vm263_vm0, %v1501_v8 }
  0x17   :  { %422 = vmatprep.mubr.bf16.mxu0 %v1528_v1  ;;  %582 = vmatprep.mubr.bf16.mxu1 %v1528_v1 }
  0x1e   :  { %1333 = vmatmul.mubr.msk.bf16.gmra.mrb[12].mxu0 %vm263_vm0, %v1502_v9  ;;  %1349 = vmatmul.mubr.msk.bf16.gmra.mrb[12].mxu1 %vm263_vm0, %v1503_v10 }
  0x1f   :  { %432 = vmatprep.mubr.bf16.mxu0 %v1528_v1  ;;  %592 = vmatprep.mubr.bf16.mxu1 %v1528_v1 }
  0x26   :  { %1334 = vmatmul.mubr.msk.bf16.gmra.mrb[16].mxu0 %vm263_vm0, %v1504_v11  ;;  %1350 = vmatmul.mubr.msk.bf16.gmra.mrb[16].mxu1 %vm263_vm0, %v1505_v12 }
  0x27   :  { %442 = vmatprep.mubr.bf16.mxu0 %v1528_v1  ;;  %602 = vmatprep.mubr.bf16.mxu1 %v1528_v1 }
  0x2e   :  { %1335 = vmatmul.mubr.msk.bf16.gmra.mrb[20].mxu0 %vm263_vm0, %v1506_v13  ;;  %1351 = vmatmul.mubr.msk.bf16.gmra.mrb[20].mxu1 %vm263_vm0, %v1507_v14 }
  0x2f   :  { %452 = vmatprep.mubr.bf16.mxu0 %v1528_v1  ;;  %612 = vmatprep.mubr.bf16.mxu1 %v1528_v1 }
  0x36   :  { %1336 = vmatmul.mubr.msk.bf16.gmra.mrb[24].mxu0 %vm263_vm0, %v1508_v15  ;;  %1352 = vmatmul.mubr.msk.bf16.gmra.mrb[24].mxu1 %vm263_vm0, %v1509_v16 }
  0x37   :  { %462 = vmatprep.mubr.bf16.mxu0 %v1528_v1  ;;  %622 = vmatprep.mubr.bf16.mxu1 %v1528_v1 }
  0x3e   :  { %1337 = vmatmul.mubr.msk.bf16.gmra.mrb[28].mxu0 %vm263_vm0, %v1510_v17  ;;  %1353 = vmatmul.mubr.msk.bf16.gmra.mrb[28].mxu1 %vm263_vm0, %v1511_v18 }
  0x3f   :  { %472 = vmatprep.mubr.bf16.mxu0 %v1528_v1  ;;  %632 = vmatprep.mubr.bf16.mxu1 %v1528_v1 }
  0x46   :  { %1338 = vmatmul.mubr.msk.bf16.gmra.mrb[32].mxu0 %vm263_vm0, %v1512_v19  ;;  %1354 = vmatmul.mubr.msk.bf16.gmra.mrb[32].mxu1 %vm263_vm0, %v1513_v20 }
  0x47   :  { %482 = vmatprep.mubr.bf16.mxu0 %v1528_v1  ;;  %642 = vmatprep.mubr.bf16.mxu1 %v1528_v1 }
  0x4e   :  { %1339 = vmatmul.mubr.msk.bf16.gmra.mrb[36].mxu0 %vm263_vm0, %v1514_v21  ;;  %1355 = vmatmul.mubr.msk.bf16.gmra.mrb[36].mxu1 %vm263_vm0, %v1515_v22 }
  0x4f   :  { %492 = vmatprep.mubr.bf16.mxu0 %v1528_v1  ;;  %652 = vmatprep.mubr.bf16.mxu1 %v1528_v1 }
  0x56   :  { %1340 = vmatmul.mubr.msk.bf16.gmra.mrb[40].mxu0 %vm263_vm0, %v1516_v23  ;;  %1356 = vmatmul.mubr.msk.bf16.gmra.mrb[40].mxu1 %vm263_vm0, %v1517_v24 }
  0x57   :  { %502 = vmatprep.mubr.bf16.mxu0 %v1528_v1  ;;  %662 = vmatprep.mubr.bf16.mxu1 %v1528_v1 }
  0x5e   :  { %1341 = vmatmul.mubr.msk.bf16.gmra.mrb[44].mxu0 %vm263_vm0, %v1518_v25  ;;  %1357 = vmatmul.mubr.msk.bf16.gmra.mrb[44].mxu1 %vm263_vm0, %v1519_v26 }
  0x5f   :  { %512 = vmatprep.mubr.bf16.mxu0 %v1528_v1  ;;  %672 = vmatprep.mubr.bf16.mxu1 %v1528_v1 }
  0x66   :  { %1342 = vmatmul.mubr.msk.bf16.gmra.mrb[48].mxu0 %vm263_vm0, %v1520_v27  ;;  %1358 = vmatmul.mubr.msk.bf16.gmra.mrb[48].mxu1 %vm263_vm0, %v1521_v28 }
  0x67   :  { %522 = vmatprep.mubr.bf16.mxu0 %v1528_v1  ;;  %682 = vmatprep.mubr.bf16.mxu1 %v1528_v1 }
  0x6e   :  { %1343 = vmatmul.mubr.msk.bf16.gmra.mrb[52].mxu0 %vm263_vm0, %v1522_v29  ;;  %1359 = vmatmul.mubr.msk.bf16.gmra.mrb[52].mxu1 %vm263_vm0, %v1523_v30 }
  0x6f   :  { %532 = vmatprep.mubr.bf16.mxu0 %v1528_v1  ;;  %692 = vmatprep.mubr.bf16.mxu1 %v1528_v1 }
  0x76   :  { %1344 = vmatmul.mubr.msk.bf16.gmra.mrb[56].mxu0 %vm263_vm0, %v1524_v31  ;;  %1360 = vmatmul.mubr.msk.bf16.gmra.mrb[56].mxu1 %vm263_vm0, %v1525_v32 }
  0x77   :  { %542 = vmatprep.mubr.bf16.mxu0 %v1528_v1  ;;  %702 = vmatprep.mubr.bf16.mxu1 %v1528_v1 }
  0x7e   :  { %1345 = vmatmul.mubr.msk.bf16.gmra.mrb[60].mxu0 %vm263_vm0, %v1526_v33  ;;  %1361 = vmatmul.mubr.msk.bf16.gmra.mrb[60].mxu1 %vm263_vm0, %v1527_v34 }
  0xd9   :  { %v394_v42 = vpop.f32.mrb[0].mxu0  ;;  %v554_v43 = vpop.f32.mrb[0].mxu1 }
  0xda   :  { %v395_v44 = vadd.f32 %v394_v42, %v1718_v40  ;;  %v555_v45 = vadd.f32 %v554_v43, %v1718_v40  ;;  %v396_v46 = vpop.f32.mrb[1].mxu0  ;;  %v556_v47 = vpop.f32.mrb[1].mxu1 }
  0xdb   :  { %v397_v48 = vadd.f32 %v396_v46, %v1720_v41  ;;  %v557_v49 = vadd.f32 %v556_v47, %v1720_v41  ;;  %v398_v50 = vpop.f32.mrb[2].mxu0  ;;  %v558_v51 = vpop.f32.mrb[2].mxu1 }
  0xdc   :  { %v713_v52 = vmax.f32 %v395_v44, 0.0  ;;  %v777_v53 = vmax.f32 %v555_v45, 0.0  ;;  %v399_v54 = vadd.f32 %v398_v50, %v1718_v40  ;;  %v559_v55 = vadd.f32 %v558_v51, %v1718_v40  ;;  %v400_v56 = vpop.f32.mrb[3].mxu0  ;;  %v560_v57 = vpop.f32.mrb[3].mxu1 }
  0xdd   :  { %v714_v58 = vmax.f32 %v397_v48, 0.0  ;;  %v778_v59 = vmax.f32 %v557_v49, 0.0  ;;  %v401_v60 = vadd.f32 %v400_v56, %v1720_v41  ;;  %v561_v61 = vadd.f32 %v560_v57, %v1720_v41 }
  0xde   :  { %v715_v63 = vmax.f32 %v399_v54, 0.0  ;;  %v779_v0 = vmax.f32 %v559_v55, 0.0 }
  0xdf   :  { %v1426_v1 = vpack.c.bf16 %v714_v58, %v713_v52  ;;  %v1458_v2 = vpack.c.bf16 %v778_v59, %v777_v53  ;;  %v716_v3 = vmax.f32 %v401_v60, 0.0  ;;  %v780_v4 = vmax.f32 %v561_v61, 0.0 }
  0xe1   :  { %1228 = vst.msk [vmem:[%s2179_s3] sm:$0xff] %vm1732_vm3, %v1426_v1  ;;  %1260 = vst.msk [vmem:[%s2179_s3 + $0x100] sm:$0xff] %vm1732_vm3, %v1458_v2  ;;  %v1427_v5 = vpack.c.bf16 %v716_v3, %v715_v63  ;;  %v1459_v6 = vpack.c.bf16 %v780_v4, %v779_v0  ;;  %v404_v7 = vpop.f32.mrb[4].mxu0  ;;  %v564_v8 = vpop.f32.mrb[4].mxu1 }
  0xe2   :  { %v405_v9 = vadd.f32 %v404_v7, %v1718_v40  ;;  %v565_v10 = vadd.f32 %v564_v8, %v1718_v40  ;;  %v406_v11 = vpop.f32.mrb[5].mxu0  ;;  %v566_v12 = vpop.f32.mrb[5].mxu1 }
  0xe3   :  { %1229 = vst.msk [vmem:[%s2179_s3 + $0x8] sm:$0xff] %vm1732_vm3, %v1427_v5  ;;  %1261 = vst.msk [vmem:[%s2179_s3 + $0x108] sm:$0xff] %vm1732_vm3, %v1459_v6  ;;  %v407_v13 = vadd.f32 %v406_v11, %v1720_v41  ;;  %v567_v14 = vadd.f32 %v566_v12, %v1720_v41  ;;  %v408_v15 = vpop.f32.mrb[6].mxu0  ;;  %v568_v16 = vpop.f32.mrb[6].mxu1 }
  0xe4   :  { %v717_v17 = vmax.f32 %v405_v9, 0.0  ;;  %v781_v18 = vmax.f32 %v565_v10, 0.0  ;;  %v409_v19 = vadd.f32 %v408_v15, %v1718_v40  ;;  %v569_v20 = vadd.f32 %v568_v16, %v1718_v40  ;;  %v410_v21 = vpop.f32.mrb[7].mxu0  ;;  %v570_v22 = vpop.f32.mrb[7].mxu1 }
  0xe5   :  { %v718_v23 = vmax.f32 %v407_v13, 0.0  ;;  %v782_v24 = vmax.f32 %v567_v14, 0.0  ;;  %v411_v25 = vadd.f32 %v410_v21, %v1720_v41  ;;  %v571_v26 = vadd.f32 %v570_v22, %v1720_v41 }
  0xe6   :  { %v719_v27 = vmax.f32 %v409_v19, 0.0  ;;  %v783_v28 = vmax.f32 %v569_v20, 0.0 }
  0xe7   :  { %v1428_v29 = vpack.c.bf16 %v718_v23, %v717_v17  ;;  %v1460_v30 = vpack.c.bf16 %v782_v24, %v781_v18  ;;  %v720_v31 = vmax.f32 %v411_v25, 0.0  ;;  %v784_v32 = vmax.f32 %v571_v26, 0.0 }
  0xe9   :  { %1230 = vst.msk [vmem:[%s2179_s3 + $0x10] sm:$0xff] %vm1732_vm3, %v1428_v29  ;;  %1262 = vst.msk [vmem:[%s2179_s3 + $0x110] sm:$0xff] %vm1732_vm3, %v1460_v30  ;;  %v1429_v33 = vpack.c.bf16 %v720_v31, %v719_v27  ;;  %v1461_v34 = vpack.c.bf16 %v784_v32, %v783_v28  ;;  %v414_v35 = vpop.f32.mrb[8].mxu0  ;;  %v574_v36 = vpop.f32.mrb[8].mxu1 }
  0xea   :  { %v415_v37 = vadd.f32 %v414_v35, %v1718_v40  ;;  %v575_v38 = vadd.f32 %v574_v36, %v1718_v40  ;;  %v416_v39 = vpop.f32.mrb[9].mxu0  ;;  %v576_v42 = vpop.f32.mrb[9].mxu1 }
  0xeb   :  { %1231 = vst.msk [vmem:[%s2179_s3 + $0x18] sm:$0xff] %vm1732_vm3, %v1429_v33  ;;  %1263 = vst.msk [vmem:[%s2179_s3 + $0x118] sm:$0xff] %vm1732_vm3, %v1461_v34  ;;  %v417_v43 = vadd.f32 %v416_v39, %v1720_v41  ;;  %v577_v44 = vadd.f32 %v576_v42, %v1720_v41  ;;  %v418_v45 = vpop.f32.mrb[10].mxu0  ;;  %v578_v46 = vpop.f32.mrb[10].mxu1 }
  0xec   :  { %v721_v47 = vmax.f32 %v415_v37, 0.0  ;;  %v785_v48 = vmax.f32 %v575_v38, 0.0  ;;  %v419_v49 = vadd.f32 %v418_v45, %v1718_v40  ;;  %v579_v50 = vadd.f32 %v578_v46, %v1718_v40  ;;  %v420_v51 = vpop.f32.mrb[11].mxu0  ;;  %v580_v52 = vpop.f32.mrb[11].mxu1 }
  0xed   :  { %v722_v53 = vmax.f32 %v417_v43, 0.0  ;;  %v786_v54 = vmax.f32 %v577_v44, 0.0  ;;  %v421_v55 = vadd.f32 %v420_v51, %v1720_v41  ;;  %v581_v56 = vadd.f32 %v580_v52, %v1720_v41 }
  0xee   :  { %v723_v57 = vmax.f32 %v419_v49, 0.0  ;;  %v787_v58 = vmax.f32 %v579_v50, 0.0 }
  0xef   :  { %v1430_v59 = vpack.c.bf16 %v722_v53, %v721_v47  ;;  %v1462_v60 = vpack.c.bf16 %v786_v54, %v785_v48  ;;  %v724_v61 = vmax.f32 %v421_v55, 0.0  ;;  %v788_v63 = vmax.f32 %v581_v56, 0.0 }
  0xf1   :  { %1232 = vst.msk [vmem:[%s2179_s3 + $0x20] sm:$0xff] %vm1732_vm3, %v1430_v59  ;;  %1264 = vst.msk [vmem:[%s2179_s3 + $0x120] sm:$0xff] %vm1732_vm3, %v1462_v60  ;;  %v1431_v0 = vpack.c.bf16 %v724_v61, %v723_v57  ;;  %v1463_v1 = vpack.c.bf16 %v788_v63, %v787_v58  ;;  %v424_v2 = vpop.f32.mrb[12].mxu0  ;;  %v584_v3 = vpop.f32.mrb[12].mxu1 }
  0xf2   :  { %v425_v4 = vadd.f32 %v424_v2, %v1718_v40  ;;  %v585_v5 = vadd.f32 %v584_v3, %v1718_v40  ;;  %v426_v6 = vpop.f32.mrb[13].mxu0  ;;  %v586_v7 = vpop.f32.mrb[13].mxu1 }
  0xf3   :  { %1233 = vst.msk [vmem:[%s2179_s3 + $0x28] sm:$0xff] %vm1732_vm3, %v1431_v0  ;;  %1265 = vst.msk [vmem:[%s2179_s3 + $0x128] sm:$0xff] %vm1732_vm3, %v1463_v1  ;;  %v427_v8 = vadd.f32 %v426_v6, %v1720_v41  ;;  %v587_v9 = vadd.f32 %v586_v7, %v1720_v41  ;;  %v428_v10 = vpop.f32.mrb[14].mxu0  ;;  %v588_v11 = vpop.f32.mrb[14].mxu1 }
  0xf4   :  { %v725_v12 = vmax.f32 %v425_v4, 0.0  ;;  %v789_v13 = vmax.f32 %v585_v5, 0.0  ;;  %v429_v14 = vadd.f32 %v428_v10, %v1718_v40  ;;  %v589_v15 = vadd.f32 %v588_v11, %v1718_v40  ;;  %v430_v16 = vpop.f32.mrb[15].mxu0  ;;  %v590_v17 = vpop.f32.mrb[15].mxu1 }
  0xf5   :  { %v726_v18 = vmax.f32 %v427_v8, 0.0  ;;  %v790_v19 = vmax.f32 %v587_v9, 0.0  ;;  %v431_v20 = vadd.f32 %v430_v16, %v1720_v41  ;;  %v591_v21 = vadd.f32 %v590_v17, %v1720_v41 }
  0xf6   :  { %v727_v22 = vmax.f32 %v429_v14, 0.0  ;;  %v791_v23 = vmax.f32 %v589_v15, 0.0 }
  0xf7   :  { %v1432_v24 = vpack.c.bf16 %v726_v18, %v725_v12  ;;  %v1464_v25 = vpack.c.bf16 %v790_v19, %v789_v13  ;;  %v728_v26 = vmax.f32 %v431_v20, 0.0  ;;  %v792_v27 = vmax.f32 %v591_v21, 0.0 }
  0xf9   :  { %1234 = vst.msk [vmem:[%s2179_s3 + $0x30] sm:$0xff] %vm1732_vm3, %v1432_v24  ;;  %1266 = vst.msk [vmem:[%s2179_s3 + $0x130] sm:$0xff] %vm1732_vm3, %v1464_v25  ;;  %v1433_v28 = vpack.c.bf16 %v728_v26, %v727_v22  ;;  %v1465_v29 = vpack.c.bf16 %v792_v27, %v791_v23  ;;  %v434_v30 = vpop.f32.mrb[16].mxu0  ;;  %v594_v31 = vpop.f32.mrb[16].mxu1 }
  0xfa   :  { %v435_v32 = vadd.f32 %v434_v30, %v1718_v40  ;;  %v595_v33 = vadd.f32 %v594_v31, %v1718_v40  ;;  %v436_v34 = vpop.f32.mrb[17].mxu0  ;;  %v596_v35 = vpop.f32.mrb[17].mxu1 }
  0xfb   :  { %1235 = vst.msk [vmem:[%s2179_s3 + $0x38] sm:$0xff] %vm1732_vm3, %v1433_v28  ;;  %1267 = vst.msk [vmem:[%s2179_s3 + $0x138] sm:$0xff] %vm1732_vm3, %v1465_v29  ;;  %v437_v36 = vadd.f32 %v436_v34, %v1720_v41  ;;  %v597_v37 = vadd.f32 %v596_v35, %v1720_v41  ;;  %v438_v38 = vpop.f32.mrb[18].mxu0  ;;  %v598_v39 = vpop.f32.mrb[18].mxu1 }
  0xfc   :  { %v729_v42 = vmax.f32 %v435_v32, 0.0  ;;  %v793_v43 = vmax.f32 %v595_v33, 0.0  ;;  %v439_v44 = vadd.f32 %v438_v38, %v1718_v40  ;;  %v599_v45 = vadd.f32 %v598_v39, %v1718_v40  ;;  %v440_v46 = vpop.f32.mrb[19].mxu0  ;;  %v600_v47 = vpop.f32.mrb[19].mxu1 }
  0xfd   :  { %v730_v48 = vmax.f32 %v437_v36, 0.0  ;;  %v794_v49 = vmax.f32 %v597_v37, 0.0  ;;  %v441_v50 = vadd.f32 %v440_v46, %v1720_v41  ;;  %v601_v51 = vadd.f32 %v600_v47, %v1720_v41 }
  0xfe   :  { %v731_v52 = vmax.f32 %v439_v44, 0.0  ;;  %v795_v53 = vmax.f32 %v599_v45, 0.0 }
  0xff   :  { %v1434_v54 = vpack.c.bf16 %v730_v48, %v729_v42  ;;  %v1466_v55 = vpack.c.bf16 %v794_v49, %v793_v43  ;;  %v732_v56 = vmax.f32 %v441_v50, 0.0  ;;  %v796_v57 = vmax.f32 %v601_v51, 0.0 }
 0x101   :  { %1236 = vst.msk [vmem:[%s2179_s3 + $0x40] sm:$0xff] %vm1732_vm3, %v1434_v54  ;;  %1268 = vst.msk [vmem:[%s2179_s3 + $0x140] sm:$0xff] %vm1732_vm3, %v1466_v55  ;;  %v1435_v58 = vpack.c.bf16 %v732_v56, %v731_v52  ;;  %v1467_v59 = vpack.c.bf16 %v796_v57, %v795_v53  ;;  %v444_v60 = vpop.f32.mrb[20].mxu0  ;;  %v604_v61 = vpop.f32.mrb[20].mxu1 }
 0x102   :  { %v445_v63 = vadd.f32 %v444_v60, %v1718_v40  ;;  %v605_v0 = vadd.f32 %v604_v61, %v1718_v40  ;;  %v446_v1 = vpop.f32.mrb[21].mxu0  ;;  %v606_v2 = vpop.f32.mrb[21].mxu1 }
 0x103   :  { %1237 = vst.msk [vmem:[%s2179_s3 + $0x48] sm:$0xff] %vm1732_vm3, %v1435_v58  ;;  %1269 = vst.msk [vmem:[%s2179_s3 + $0x148] sm:$0xff] %vm1732_vm3, %v1467_v59  ;;  %v447_v3 = vadd.f32 %v446_v1, %v1720_v41  ;;  %v607_v4 = vadd.f32 %v606_v2, %v1720_v41  ;;  %v448_v5 = vpop.f32.mrb[22].mxu0  ;;  %v608_v6 = vpop.f32.mrb[22].mxu1 }
 0x104   :  { %v733_v7 = vmax.f32 %v445_v63, 0.0  ;;  %v797_v8 = vmax.f32 %v605_v0, 0.0  ;;  %v449_v9 = vadd.f32 %v448_v5, %v1718_v40  ;;  %v609_v10 = vadd.f32 %v608_v6, %v1718_v40  ;;  %v450_v11 = vpop.f32.mrb[23].mxu0  ;;  %v610_v12 = vpop.f32.mrb[23].mxu1 }
 0x105   :  { %v734_v13 = vmax.f32 %v447_v3, 0.0  ;;  %v798_v14 = vmax.f32 %v607_v4, 0.0  ;;  %v451_v15 = vadd.f32 %v450_v11, %v1720_v41  ;;  %v611_v16 = vadd.f32 %v610_v12, %v1720_v41 }
 0x106   :  { %v735_v17 = vmax.f32 %v449_v9, 0.0  ;;  %v799_v18 = vmax.f32 %v609_v10, 0.0 }
 0x107   :  { %v1436_v19 = vpack.c.bf16 %v734_v13, %v733_v7  ;;  %v1468_v20 = vpack.c.bf16 %v798_v14, %v797_v8  ;;  %v736_v21 = vmax.f32 %v451_v15, 0.0  ;;  %v800_v22 = vmax.f32 %v611_v16, 0.0 }
 0x109   :  { %1238 = vst.msk [vmem:[%s2179_s3 + $0x50] sm:$0xff] %vm1732_vm3, %v1436_v19  ;;  %1270 = vst.msk [vmem:[%s2179_s3 + $0x150] sm:$0xff] %vm1732_vm3, %v1468_v20  ;;  %v1437_v23 = vpack.c.bf16 %v736_v21, %v735_v17  ;;  %v1469_v24 = vpack.c.bf16 %v800_v22, %v799_v18  ;;  %v454_v25 = vpop.f32.mrb[24].mxu0  ;;  %v614_v26 = vpop.f32.mrb[24].mxu1 }
 0x10a   :  { %v455_v27 = vadd.f32 %v454_v25, %v1718_v40  ;;  %v615_v28 = vadd.f32 %v614_v26, %v1718_v40  ;;  %v456_v29 = vpop.f32.mrb[25].mxu0  ;;  %v616_v30 = vpop.f32.mrb[25].mxu1 }
 0x10b   :  { %1239 = vst.msk [vmem:[%s2179_s3 + $0x58] sm:$0xff] %vm1732_vm3, %v1437_v23  ;;  %1271 = vst.msk [vmem:[%s2179_s3 + $0x158] sm:$0xff] %vm1732_vm3, %v1469_v24  ;;  %v457_v31 = vadd.f32 %v456_v29, %v1720_v41  ;;  %v617_v32 = vadd.f32 %v616_v30, %v1720_v41  ;;  %v458_v33 = vpop.f32.mrb[26].mxu0  ;;  %v618_v34 = vpop.f32.mrb[26].mxu1 }
 0x10c   :  { %v737_v35 = vmax.f32 %v455_v27, 0.0  ;;  %v801_v36 = vmax.f32 %v615_v28, 0.0  ;;  %v459_v37 = vadd.f32 %v458_v33, %v1718_v40  ;;  %v619_v38 = vadd.f32 %v618_v34, %v1718_v40  ;;  %v460_v39 = vpop.f32.mrb[27].mxu0  ;;  %v620_v42 = vpop.f32.mrb[27].mxu1 }
 0x10d   :  { %v738_v43 = vmax.f32 %v457_v31, 0.0  ;;  %v802_v44 = vmax.f32 %v617_v32, 0.0  ;;  %v461_v45 = vadd.f32 %v460_v39, %v1720_v41  ;;  %v621_v46 = vadd.f32 %v620_v42, %v1720_v41 }
 0x10e   :  { %v739_v47 = vmax.f32 %v459_v37, 0.0  ;;  %v803_v48 = vmax.f32 %v619_v38, 0.0 }
 0x10f   :  { %v1438_v49 = vpack.c.bf16 %v738_v43, %v737_v35  ;;  %v1470_v50 = vpack.c.bf16 %v802_v44, %v801_v36  ;;  %v740_v51 = vmax.f32 %v461_v45, 0.0  ;;  %v804_v52 = vmax.f32 %v621_v46, 0.0 }
 0x111   :  { %1240 = vst.msk [vmem:[%s2179_s3 + $0x60] sm:$0xff] %vm1732_vm3, %v1438_v49  ;;  %1272 = vst.msk [vmem:[%s2179_s3 + $0x160] sm:$0xff] %vm1732_vm3, %v1470_v50  ;;  %v1439_v53 = vpack.c.bf16 %v740_v51, %v739_v47  ;;  %v1471_v54 = vpack.c.bf16 %v804_v52, %v803_v48  ;;  %v464_v55 = vpop.f32.mrb[28].mxu0  ;;  %v624_v56 = vpop.f32.mrb[28].mxu1 }
 0x112   :  { %v465_v57 = vadd.f32 %v464_v55, %v1718_v40  ;;  %v625_v58 = vadd.f32 %v624_v56, %v1718_v40  ;;  %v466_v59 = vpop.f32.mrb[29].mxu0  ;;  %v626_v60 = vpop.f32.mrb[29].mxu1 }
 0x113   :  { %1241 = vst.msk [vmem:[%s2179_s3 + $0x68] sm:$0xff] %vm1732_vm3, %v1439_v53  ;;  %1273 = vst.msk [vmem:[%s2179_s3 + $0x168] sm:$0xff] %vm1732_vm3, %v1471_v54  ;;  %v467_v61 = vadd.f32 %v466_v59, %v1720_v41  ;;  %v627_v63 = vadd.f32 %v626_v60, %v1720_v41  ;;  %v468_v0 = vpop.f32.mrb[30].mxu0  ;;  %v628_v1 = vpop.f32.mrb[30].mxu1 }
 0x114   :  { %v741_v2 = vmax.f32 %v465_v57, 0.0  ;;  %v805_v3 = vmax.f32 %v625_v58, 0.0  ;;  %v469_v4 = vadd.f32 %v468_v0, %v1718_v40  ;;  %v629_v5 = vadd.f32 %v628_v1, %v1718_v40  ;;  %v470_v6 = vpop.f32.mrb[31].mxu0  ;;  %v630_v7 = vpop.f32.mrb[31].mxu1 }
 0x115   :  { %v742_v8 = vmax.f32 %v467_v61, 0.0  ;;  %v806_v9 = vmax.f32 %v627_v63, 0.0  ;;  %v471_v10 = vadd.f32 %v470_v6, %v1720_v41  ;;  %v631_v11 = vadd.f32 %v630_v7, %v1720_v41 }
 0x116   :  { %v743_v12 = vmax.f32 %v469_v4, 0.0  ;;  %v807_v13 = vmax.f32 %v629_v5, 0.0 }
 0x117   :  { %v1440_v14 = vpack.c.bf16 %v742_v8, %v741_v2  ;;  %v1472_v15 = vpack.c.bf16 %v806_v9, %v805_v3  ;;  %v744_v16 = vmax.f32 %v471_v10, 0.0  ;;  %v808_v17 = vmax.f32 %v631_v11, 0.0 }
 0x119   :  { %1242 = vst.msk [vmem:[%s2179_s3 + $0x70] sm:$0xff] %vm1732_vm3, %v1440_v14  ;;  %1274 = vst.msk [vmem:[%s2179_s3 + $0x170] sm:$0xff] %vm1732_vm3, %v1472_v15  ;;  %v1441_v18 = vpack.c.bf16 %v744_v16, %v743_v12  ;;  %v1473_v19 = vpack.c.bf16 %v808_v17, %v807_v13  ;;  %v474_v20 = vpop.f32.mrb[32].mxu0  ;;  %v634_v21 = vpop.f32.mrb[32].mxu1 }
 0x11a   :  { %v475_v22 = vadd.f32 %v474_v20, %v1718_v40  ;;  %v635_v23 = vadd.f32 %v634_v21, %v1718_v40  ;;  %v476_v24 = vpop.f32.mrb[33].mxu0  ;;  %v636_v25 = vpop.f32.mrb[33].mxu1 }
 0x11b   :  { %1243 = vst.msk [vmem:[%s2179_s3 + $0x78] sm:$0xff] %vm1732_vm3, %v1441_v18  ;;  %1275 = vst.msk [vmem:[%s2179_s3 + $0x178] sm:$0xff] %vm1732_vm3, %v1473_v19  ;;  %v477_v26 = vadd.f32 %v476_v24, %v1720_v41  ;;  %v637_v27 = vadd.f32 %v636_v25, %v1720_v41  ;;  %v478_v28 = vpop.f32.mrb[34].mxu0  ;;  %v638_v29 = vpop.f32.mrb[34].mxu1 }
 0x11c   :  { %v745_v30 = vmax.f32 %v475_v22, 0.0  ;;  %v809_v31 = vmax.f32 %v635_v23, 0.0  ;;  %v479_v32 = vadd.f32 %v478_v28, %v1718_v40  ;;  %v639_v33 = vadd.f32 %v638_v29, %v1718_v40  ;;  %v480_v34 = vpop.f32.mrb[35].mxu0  ;;  %v640_v35 = vpop.f32.mrb[35].mxu1 }
 0x11d   :  { %v746_v36 = vmax.f32 %v477_v26, 0.0  ;;  %v810_v37 = vmax.f32 %v637_v27, 0.0  ;;  %v481_v38 = vadd.f32 %v480_v34, %v1720_v41  ;;  %v641_v39 = vadd.f32 %v640_v35, %v1720_v41 }
 0x11e   :  { %v747_v42 = vmax.f32 %v479_v32, 0.0  ;;  %v811_v43 = vmax.f32 %v639_v33, 0.0 }
 0x11f   :  { %v1442_v44 = vpack.c.bf16 %v746_v36, %v745_v30  ;;  %v1474_v45 = vpack.c.bf16 %v810_v37, %v809_v31  ;;  %v748_v46 = vmax.f32 %v481_v38, 0.0  ;;  %v812_v47 = vmax.f32 %v641_v39, 0.0 }
 0x121   :  { %1244 = vst.msk [vmem:[%s2179_s3 + $0x80] sm:$0xff] %vm1732_vm3, %v1442_v44  ;;  %1276 = vst.msk [vmem:[%s2179_s3 + $0x180] sm:$0xff] %vm1732_vm3, %v1474_v45  ;;  %v1443_v48 = vpack.c.bf16 %v748_v46, %v747_v42  ;;  %v1475_v49 = vpack.c.bf16 %v812_v47, %v811_v43  ;;  %v484_v50 = vpop.f32.mrb[36].mxu0  ;;  %v644_v51 = vpop.f32.mrb[36].mxu1 }
 0x122   :  { %v485_v52 = vadd.f32 %v484_v50, %v1718_v40  ;;  %v645_v53 = vadd.f32 %v644_v51, %v1718_v40  ;;  %v486_v54 = vpop.f32.mrb[37].mxu0  ;;  %v646_v55 = vpop.f32.mrb[37].mxu1 }
 0x123   :  { %1245 = vst.msk [vmem:[%s2179_s3 + $0x88] sm:$0xff] %vm1732_vm3, %v1443_v48  ;;  %1277 = vst.msk [vmem:[%s2179_s3 + $0x188] sm:$0xff] %vm1732_vm3, %v1475_v49  ;;  %v487_v56 = vadd.f32 %v486_v54, %v1720_v41  ;;  %v647_v57 = vadd.f32 %v646_v55, %v1720_v41  ;;  %v488_v58 = vpop.f32.mrb[38].mxu0  ;;  %v648_v59 = vpop.f32.mrb[38].mxu1 }
 0x124   :  { %v749_v60 = vmax.f32 %v485_v52, 0.0  ;;  %v813_v61 = vmax.f32 %v645_v53, 0.0  ;;  %v489_v63 = vadd.f32 %v488_v58, %v1718_v40  ;;  %v649_v0 = vadd.f32 %v648_v59, %v1718_v40  ;;  %v490_v1 = vpop.f32.mrb[39].mxu0  ;;  %v650_v2 = vpop.f32.mrb[39].mxu1 }
 0x125   :  { %v750_v3 = vmax.f32 %v487_v56, 0.0  ;;  %v814_v4 = vmax.f32 %v647_v57, 0.0  ;;  %v491_v5 = vadd.f32 %v490_v1, %v1720_v41  ;;  %v651_v6 = vadd.f32 %v650_v2, %v1720_v41 }
 0x126   :  { %v751_v7 = vmax.f32 %v489_v63, 0.0  ;;  %v815_v8 = vmax.f32 %v649_v0, 0.0 }
 0x127   :  { %v1444_v9 = vpack.c.bf16 %v750_v3, %v749_v60  ;;  %v1476_v10 = vpack.c.bf16 %v814_v4, %v813_v61  ;;  %v752_v11 = vmax.f32 %v491_v5, 0.0  ;;  %v816_v12 = vmax.f32 %v651_v6, 0.0 }
 0x129   :  { %1246 = vst.msk [vmem:[%s2179_s3 + $0x90] sm:$0xff] %vm1732_vm3, %v1444_v9  ;;  %1278 = vst.msk [vmem:[%s2179_s3 + $0x190] sm:$0xff] %vm1732_vm3, %v1476_v10  ;;  %v1445_v13 = vpack.c.bf16 %v752_v11, %v751_v7  ;;  %v1477_v14 = vpack.c.bf16 %v816_v12, %v815_v8  ;;  %v494_v15 = vpop.f32.mrb[40].mxu0  ;;  %v654_v16 = vpop.f32.mrb[40].mxu1 }
 0x12a   :  { %v495_v17 = vadd.f32 %v494_v15, %v1718_v40  ;;  %v655_v18 = vadd.f32 %v654_v16, %v1718_v40  ;;  %v496_v19 = vpop.f32.mrb[41].mxu0  ;;  %v656_v20 = vpop.f32.mrb[41].mxu1 }
 0x12b   :  { %1247 = vst.msk [vmem:[%s2179_s3 + $0x98] sm:$0xff] %vm1732_vm3, %v1445_v13  ;;  %1279 = vst.msk [vmem:[%s2179_s3 + $0x198] sm:$0xff] %vm1732_vm3, %v1477_v14  ;;  %v497_v21 = vadd.f32 %v496_v19, %v1720_v41  ;;  %v657_v22 = vadd.f32 %v656_v20, %v1720_v41  ;;  %v498_v23 = vpop.f32.mrb[42].mxu0  ;;  %v658_v24 = vpop.f32.mrb[42].mxu1 }
 0x12c   :  { %v753_v25 = vmax.f32 %v495_v17, 0.0  ;;  %v817_v26 = vmax.f32 %v655_v18, 0.0  ;;  %v499_v27 = vadd.f32 %v498_v23, %v1718_v40  ;;  %v659_v28 = vadd.f32 %v658_v24, %v1718_v40  ;;  %v500_v29 = vpop.f32.mrb[43].mxu0  ;;  %v660_v30 = vpop.f32.mrb[43].mxu1 }
 0x12d   :  { %v754_v31 = vmax.f32 %v497_v21, 0.0  ;;  %v818_v32 = vmax.f32 %v657_v22, 0.0  ;;  %v501_v33 = vadd.f32 %v500_v29, %v1720_v41  ;;  %v661_v34 = vadd.f32 %v660_v30, %v1720_v41 }
 0x12e   :  { %v755_v35 = vmax.f32 %v499_v27, 0.0  ;;  %v819_v36 = vmax.f32 %v659_v28, 0.0 }
 0x12f   :  { %v1446_v37 = vpack.c.bf16 %v754_v31, %v753_v25  ;;  %v1478_v38 = vpack.c.bf16 %v818_v32, %v817_v26  ;;  %v756_v39 = vmax.f32 %v501_v33, 0.0  ;;  %v820_v42 = vmax.f32 %v661_v34, 0.0 }
 0x131   :  { %1248 = vst.msk [vmem:[%s2179_s3 + $0xa0] sm:$0xff] %vm1732_vm3, %v1446_v37  ;;  %1280 = vst.msk [vmem:[%s2179_s3 + $0x1a0] sm:$0xff] %vm1732_vm3, %v1478_v38  ;;  %v1447_v43 = vpack.c.bf16 %v756_v39, %v755_v35  ;;  %v1479_v44 = vpack.c.bf16 %v820_v42, %v819_v36  ;;  %v504_v45 = vpop.f32.mrb[44].mxu0  ;;  %v664_v46 = vpop.f32.mrb[44].mxu1 }
 0x132   :  { %v505_v47 = vadd.f32 %v504_v45, %v1718_v40  ;;  %v665_v48 = vadd.f32 %v664_v46, %v1718_v40  ;;  %v506_v49 = vpop.f32.mrb[45].mxu0  ;;  %v666_v50 = vpop.f32.mrb[45].mxu1 }
 0x133   :  { %1249 = vst.msk [vmem:[%s2179_s3 + $0xa8] sm:$0xff] %vm1732_vm3, %v1447_v43  ;;  %1281 = vst.msk [vmem:[%s2179_s3 + $0x1a8] sm:$0xff] %vm1732_vm3, %v1479_v44  ;;  %v507_v51 = vadd.f32 %v506_v49, %v1720_v41  ;;  %v667_v52 = vadd.f32 %v666_v50, %v1720_v41  ;;  %v508_v53 = vpop.f32.mrb[46].mxu0  ;;  %v668_v54 = vpop.f32.mrb[46].mxu1 }
 0x134   :  { %v757_v55 = vmax.f32 %v505_v47, 0.0  ;;  %v821_v56 = vmax.f32 %v665_v48, 0.0  ;;  %v509_v57 = vadd.f32 %v508_v53, %v1718_v40  ;;  %v669_v58 = vadd.f32 %v668_v54, %v1718_v40  ;;  %v510_v59 = vpop.f32.mrb[47].mxu0  ;;  %v670_v60 = vpop.f32.mrb[47].mxu1 }
 0x135   :  { %v758_v61 = vmax.f32 %v507_v51, 0.0  ;;  %v822_v63 = vmax.f32 %v667_v52, 0.0  ;;  %v511_v0 = vadd.f32 %v510_v59, %v1720_v41  ;;  %v671_v1 = vadd.f32 %v670_v60, %v1720_v41 }
 0x136   :  { %v759_v2 = vmax.f32 %v509_v57, 0.0  ;;  %v823_v3 = vmax.f32 %v669_v58, 0.0 }
 0x137   :  { %v1448_v4 = vpack.c.bf16 %v758_v61, %v757_v55  ;;  %v1480_v5 = vpack.c.bf16 %v822_v63, %v821_v56  ;;  %v760_v6 = vmax.f32 %v511_v0, 0.0  ;;  %v824_v7 = vmax.f32 %v671_v1, 0.0 }
 0x139   :  { %1250 = vst.msk [vmem:[%s2179_s3 + $0xb0] sm:$0xff] %vm1732_vm3, %v1448_v4  ;;  %1282 = vst.msk [vmem:[%s2179_s3 + $0x1b0] sm:$0xff] %vm1732_vm3, %v1480_v5  ;;  %v1449_v8 = vpack.c.bf16 %v760_v6, %v759_v2  ;;  %v1481_v9 = vpack.c.bf16 %v824_v7, %v823_v3  ;;  %v514_v10 = vpop.f32.mrb[48].mxu0  ;;  %v674_v11 = vpop.f32.mrb[48].mxu1 }
 0x13a   :  { %v515_v12 = vadd.f32 %v514_v10, %v1718_v40  ;;  %v675_v13 = vadd.f32 %v674_v11, %v1718_v40  ;;  %v516_v14 = vpop.f32.mrb[49].mxu0  ;;  %v676_v15 = vpop.f32.mrb[49].mxu1 }
 0x13b   :  { %1251 = vst.msk [vmem:[%s2179_s3 + $0xb8] sm:$0xff] %vm1732_vm3, %v1449_v8  ;;  %1283 = vst.msk [vmem:[%s2179_s3 + $0x1b8] sm:$0xff] %vm1732_vm3, %v1481_v9  ;;  %v517_v16 = vadd.f32 %v516_v14, %v1720_v41  ;;  %v677_v17 = vadd.f32 %v676_v15, %v1720_v41  ;;  %v518_v18 = vpop.f32.mrb[50].mxu0  ;;  %v678_v19 = vpop.f32.mrb[50].mxu1 }
 0x13c   :  { %v761_v20 = vmax.f32 %v515_v12, 0.0  ;;  %v825_v21 = vmax.f32 %v675_v13, 0.0  ;;  %v519_v22 = vadd.f32 %v518_v18, %v1718_v40  ;;  %v679_v23 = vadd.f32 %v678_v19, %v1718_v40  ;;  %v520_v24 = vpop.f32.mrb[51].mxu0  ;;  %v680_v25 = vpop.f32.mrb[51].mxu1 }
 0x13d   :  { %v762_v26 = vmax.f32 %v517_v16, 0.0  ;;  %v826_v27 = vmax.f32 %v677_v17, 0.0  ;;  %v521_v28 = vadd.f32 %v520_v24, %v1720_v41  ;;  %v681_v29 = vadd.f32 %v680_v25, %v1720_v41 }
 0x13e   :  { %v763_v30 = vmax.f32 %v519_v22, 0.0  ;;  %v827_v31 = vmax.f32 %v679_v23, 0.0 }
 0x13f   :  { %v1450_v32 = vpack.c.bf16 %v762_v26, %v761_v20  ;;  %v1482_v33 = vpack.c.bf16 %v826_v27, %v825_v21  ;;  %v764_v34 = vmax.f32 %v521_v28, 0.0  ;;  %v828_v35 = vmax.f32 %v681_v29, 0.0 }
 0x141   :  { %1252 = vst.msk [vmem:[%s2179_s3 + $0xc0] sm:$0xff] %vm1732_vm3, %v1450_v32  ;;  %1284 = vst.msk [vmem:[%s2179_s3 + $0x1c0] sm:$0xff] %vm1732_vm3, %v1482_v33  ;;  %v1451_v36 = vpack.c.bf16 %v764_v34, %v763_v30  ;;  %v1483_v37 = vpack.c.bf16 %v828_v35, %v827_v31  ;;  %v524_v38 = vpop.f32.mrb[52].mxu0  ;;  %v684_v39 = vpop.f32.mrb[52].mxu1 }
 0x142   :  { %v525_v42 = vadd.f32 %v524_v38, %v1718_v40  ;;  %v685_v43 = vadd.f32 %v684_v39, %v1718_v40  ;;  %v526_v44 = vpop.f32.mrb[53].mxu0  ;;  %v686_v45 = vpop.f32.mrb[53].mxu1 }
 0x143   :  { %1253 = vst.msk [vmem:[%s2179_s3 + $0xc8] sm:$0xff] %vm1732_vm3, %v1451_v36  ;;  %1285 = vst.msk [vmem:[%s2179_s3 + $0x1c8] sm:$0xff] %vm1732_vm3, %v1483_v37  ;;  %v527_v46 = vadd.f32 %v526_v44, %v1720_v41  ;;  %v687_v47 = vadd.f32 %v686_v45, %v1720_v41  ;;  %v528_v48 = vpop.f32.mrb[54].mxu0  ;;  %v688_v49 = vpop.f32.mrb[54].mxu1 }
 0x144   :  { %v765_v50 = vmax.f32 %v525_v42, 0.0  ;;  %v829_v51 = vmax.f32 %v685_v43, 0.0  ;;  %v529_v52 = vadd.f32 %v528_v48, %v1718_v40  ;;  %v689_v53 = vadd.f32 %v688_v49, %v1718_v40  ;;  %v530_v54 = vpop.f32.mrb[55].mxu0  ;;  %v690_v55 = vpop.f32.mrb[55].mxu1 }
 0x145   :  { %v766_v56 = vmax.f32 %v527_v46, 0.0  ;;  %v830_v57 = vmax.f32 %v687_v47, 0.0  ;;  %v531_v58 = vadd.f32 %v530_v54, %v1720_v41  ;;  %v691_v59 = vadd.f32 %v690_v55, %v1720_v41 }
 0x146   :  { %v767_v60 = vmax.f32 %v529_v52, 0.0  ;;  %v831_v61 = vmax.f32 %v689_v53, 0.0 }
 0x147   :  { %v1452_v63 = vpack.c.bf16 %v766_v56, %v765_v50  ;;  %v1484_v0 = vpack.c.bf16 %v830_v57, %v829_v51  ;;  %v768_v1 = vmax.f32 %v531_v58, 0.0  ;;  %v832_v2 = vmax.f32 %v691_v59, 0.0 }
 0x149   :  { %1254 = vst.msk [vmem:[%s2179_s3 + $0xd0] sm:$0xff] %vm1732_vm3, %v1452_v63  ;;  %1286 = vst.msk [vmem:[%s2179_s3 + $0x1d0] sm:$0xff] %vm1732_vm3, %v1484_v0  ;;  %v1453_v3 = vpack.c.bf16 %v768_v1, %v767_v60  ;;  %v1485_v4 = vpack.c.bf16 %v832_v2, %v831_v61  ;;  %v534_v5 = vpop.f32.mrb[56].mxu0  ;;  %v694_v6 = vpop.f32.mrb[56].mxu1 }
 0x14a   :  { %v535_v7 = vadd.f32 %v534_v5, %v1718_v40  ;;  %v695_v8 = vadd.f32 %v694_v6, %v1718_v40  ;;  %v536_v9 = vpop.f32.mrb[57].mxu0  ;;  %v696_v10 = vpop.f32.mrb[57].mxu1 }
 0x14b   :  { %1255 = vst.msk [vmem:[%s2179_s3 + $0xd8] sm:$0xff] %vm1732_vm3, %v1453_v3  ;;  %1287 = vst.msk [vmem:[%s2179_s3 + $0x1d8] sm:$0xff] %vm1732_vm3, %v1485_v4  ;;  %v537_v11 = vadd.f32 %v536_v9, %v1720_v41  ;;  %v697_v12 = vadd.f32 %v696_v10, %v1720_v41  ;;  %v538_v13 = vpop.f32.mrb[58].mxu0  ;;  %v698_v14 = vpop.f32.mrb[58].mxu1 }
 0x14c   :  { %v769_v15 = vmax.f32 %v535_v7, 0.0  ;;  %v833_v16 = vmax.f32 %v695_v8, 0.0  ;;  %v539_v17 = vadd.f32 %v538_v13, %v1718_v40  ;;  %v699_v18 = vadd.f32 %v698_v14, %v1718_v40  ;;  %v540_v19 = vpop.f32.mrb[59].mxu0  ;;  %v700_v20 = vpop.f32.mrb[59].mxu1 }
 0x14d   :  { %v770_v21 = vmax.f32 %v537_v11, 0.0  ;;  %v834_v22 = vmax.f32 %v697_v12, 0.0  ;;  %v541_v23 = vadd.f32 %v540_v19, %v1720_v41  ;;  %v701_v24 = vadd.f32 %v700_v20, %v1720_v41 }
 0x14e   :  { %v771_v25 = vmax.f32 %v539_v17, 0.0  ;;  %v835_v26 = vmax.f32 %v699_v18, 0.0 }
 0x14f   :  { %v1454_v27 = vpack.c.bf16 %v770_v21, %v769_v15  ;;  %v1486_v28 = vpack.c.bf16 %v834_v22, %v833_v16  ;;  %v772_v29 = vmax.f32 %v541_v23, 0.0  ;;  %v836_v30 = vmax.f32 %v701_v24, 0.0 }
 0x151   :  { %1256 = vst.msk [vmem:[%s2179_s3 + $0xe0] sm:$0xff] %vm1732_vm3, %v1454_v27  ;;  %1288 = vst.msk [vmem:[%s2179_s3 + $0x1e0] sm:$0xff] %vm1732_vm3, %v1486_v28  ;;  %v1455_v31 = vpack.c.bf16 %v772_v29, %v771_v25  ;;  %v1487_v32 = vpack.c.bf16 %v836_v30, %v835_v26  ;;  %v544_v33 = vpop.f32.mrb[60].mxu0  ;;  %v704_v34 = vpop.f32.mrb[60].mxu1 }
 0x152   :  { %v545_v35 = vadd.f32 %v544_v33, %v1718_v40  ;;  %v705_v36 = vadd.f32 %v704_v34, %v1718_v40  ;;  %v546_v37 = vpop.f32.mrb[61].mxu0  ;;  %v706_v38 = vpop.f32.mrb[61].mxu1 }
 0x153   :  { %1257 = vst.msk [vmem:[%s2179_s3 + $0xe8] sm:$0xff] %vm1732_vm3, %v1455_v31  ;;  %1289 = vst.msk [vmem:[%s2179_s3 + $0x1e8] sm:$0xff] %vm1732_vm3, %v1487_v32  ;;  %v547_v39 = vadd.f32 %v546_v37, %v1720_v41  ;;  %v707_v42 = vadd.f32 %v706_v38, %v1720_v41  ;;  %v548_v43 = vpop.f32.mrb[62].mxu0  ;;  %v708_v44 = vpop.f32.mrb[62].mxu1 }
 0x154   :  { %v773_v45 = vmax.f32 %v545_v35, 0.0  ;;  %v837_v46 = vmax.f32 %v705_v36, 0.0  ;;  %v549_v47 = vadd.f32 %v548_v43, %v1718_v40  ;;  %v709_v48 = vadd.f32 %v708_v44, %v1718_v40  ;;  %v550_v49 = vpop.f32.mrb[63].mxu0  ;;  %v710_v50 = vpop.f32.mrb[63].mxu1 }
 0x155   :  { %v774_v51 = vmax.f32 %v547_v39, 0.0  ;;  %v838_v52 = vmax.f32 %v707_v42, 0.0  ;;  %v551_v53 = vadd.f32 %v550_v49, %v1720_v41  ;;  %v711_v54 = vadd.f32 %v710_v50, %v1720_v41 }
 0x156   :  { %v775_v55 = vmax.f32 %v549_v47, 0.0  ;;  %v839_v56 = vmax.f32 %v709_v48, 0.0 }
 0x157   :  { %v1456_v57 = vpack.c.bf16 %v774_v51, %v773_v45  ;;  %v1488_v58 = vpack.c.bf16 %v838_v52, %v837_v46  ;;  %v776_v59 = vmax.f32 %v551_v53, 0.0  ;;  %v840_v60 = vmax.f32 %v711_v54, 0.0 }
 0x159   :  { %1258 = vst.msk [vmem:[%s2179_s3 + $0xf0] sm:$0xff] %vm1732_vm3, %v1456_v57  ;;  %1290 = vst.msk [vmem:[%s2179_s3 + $0x1f0] sm:$0xff] %vm1732_vm3, %v1488_v58  ;;  %v1457_v40 = vpack.c.bf16 %v776_v59, %v775_v55  ;;  %v1489_v41 = vpack.c.bf16 %v840_v60, %v839_v56 }
 0x15b   :  { %1259 = vst.msk [vmem:[%s2179_s3 + $0xf8] sm:$0xff] %vm1732_vm3, %v1457_v40  ;;  %1291 = vst.msk [vmem:[%s2179_s3 + $0x1f8] sm:$0xff] %vm1732_vm3, %v1489_v41 }

// kernel: inception_c_forward.8
= control target key start
LH: loop header
LB: loop body
LE: loop exit
PB: predicated region body
PF: predicated region fallthrough
CT: control target
= control target key end

     0   :  { %v2642_v1 = vmov 0   ;;  %vm285_vm0 = vcmask 130048   ;;  %v85_v31 = vlaneseq  ;;  %vm2113_vm1 = vcmask 1043456   ;;  %s3683_s1 = inlined_call_operand.vmem [shape: bf16[16,448], index: 1, kind: input, shape index: {}]   ;;  %s3684_s0 = inlined_call_operand.vmem [shape: bf16[512,16], index: 0, kind: input, shape index: {}]   ;;  %s3685_s2 = inlined_call_operand.vmem [shape: f32[1,448], index: 2, kind: input, shape index: {}]   ;;  %s3686_s3 = inlined_call_operand.vmem [shape: bf16[512,448], index: 3, kind: output, shape index: {}]  }
   0x1   :  { %v2604_v0 = vld [vmem:[%s3683_s1 + $0x4] ss:$16 sps:$4 sm:$0xff]   ;;  %414 = vmatprep.mubr.bf16.mxu0 %v2642_v1  ;;  %767 = vmatprep.mubr.bf16.mxu1 %v2642_v1  ;;  %v2606_v2 = vld [vmem:[%s3683_s1 + $0xc] ss:$16 sps:$4 sm:$0xff]   ;;  %v2608_v3 = vld [vmem:[%s3683_s1] ss:$16 sps:$4 sm:$0xff]  }
   0x2   :  { %382 = vmatprep.subr.bf16.mxu0 %v2604_v0  ;;  %v2609_v4 = vld [vmem:[%s3683_s1 + $0x8] ss:$16 sps:$4 sm:$0xff]   ;;  %735 = vmatprep.subr.bf16.mxu1 %v2606_v2  ;;  %v2610_v5 = vld [vmem:[%s3684_s0] sm:$0xff]   ;;  %v2612_v7 = vld [vmem:[%s3684_s0 + $0x10] sm:$0xff]   ;;  %v86_v32 = vshrl.u32 %v85_v31, 7  ;;  %vm2114_vm2 = vcmask 523268  }
   0x3   :  { %383 = vmatpush1.bf16.msra.mxu0 %v2608_v3  ;;  %736 = vmatpush1.bf16.msra.mxu1 %v2609_v4  ;;  %v2611_v6 = vld [vmem:[%s3684_s0 + $0x8] sm:$0xff]   ;;  %v2613_v8 = vld [vmem:[%s3684_s0 + $0x18] sm:$0xff]   ;;  %v2614_v9 = vld [vmem:[%s3684_s0 + $0x20] sm:$0xff]  }
   0x4   :  { %v2615_v10 = vld [vmem:[%s3684_s0 + $0x28] sm:$0xff]   ;;  %v2616_v11 = vld [vmem:[%s3684_s0 + $0x30] sm:$0xff]   ;;  %v2617_v12 = vld [vmem:[%s3684_s0 + $0x38] sm:$0xff]   ;;  %v87_v34 = vsub.s32 0, %v86_v32  ;;  %v95_v35 = vsub.s32 2, %v86_v32  ;;  %v91_v37 = vsub.s32 1, %v86_v32 }
   0x5   :  { %v2618_v13 = vld [vmem:[%s3684_s0 + $0x40] sm:$0xff]   ;;  %v2619_v14 = vld [vmem:[%s3684_s0 + $0x48] sm:$0xff]   ;;  %v2620_v15 = vld [vmem:[%s3684_s0 + $0x50] sm:$0xff]   ;;  %v99_v38 = vsub.s32 3, %v86_v32 }
   0x6   :  { %2283 = vmatmul.mubr.msk.bf16.vlgmr.msra.gmra.mrb[0].mxu0 %vm285_vm0, %v2610_v5  ;;  %2315 = vmatmul.mubr.msk.bf16.vlgmr.msra.gmra.mrb[0].mxu1 %vm285_vm0, %v2610_v5  ;;  %v2621_v16 = vld [vmem:[%s3684_s0 + $0x58] sm:$0xff]   ;;  %v2622_v17 = vld [vmem:[%s3684_s0 + $0x60] sm:$0xff]   ;;  %v2623_v18 = vld [vmem:[%s3684_s0 + $0x68] sm:$0xff]  }
   0x7   :  { %424 = vmatprep.mubr.bf16.mxu0 %v2642_v1  ;;  %777 = vmatprep.mubr.bf16.mxu1 %v2642_v1  ;;  %v2624_v19 = vld [vmem:[%s3684_s0 + $0x70] sm:$0xff]   ;;  %v2625_v20 = vld [vmem:[%s3684_s0 + $0x78] sm:$0xff]   ;;  %v2626_v21 = vld [vmem:[%s3684_s0 + $0x80] sm:$0xff]  }
   0x8   :  { %v2627_v22 = vld [vmem:[%s3684_s0 + $0x88] sm:$0xff]   ;;  %v2628_v23 = vld [vmem:[%s3684_s0 + $0x90] sm:$0xff]   ;;  %v2629_v24 = vld [vmem:[%s3684_s0 + $0x98] sm:$0xff]  }
   0x9   :  { %v2630_v25 = vld [vmem:[%s3684_s0 + $0xa0] sm:$0xff]   ;;  %v2631_v26 = vld [vmem:[%s3684_s0 + $0xa8] sm:$0xff]   ;;  %v2632_v27 = vld [vmem:[%s3684_s0 + $0xb0] sm:$0xff]  }
   0xa   :  { %v2633_v28 = vld [vmem:[%s3684_s0 + $0xb8] sm:$0xff]   ;;  %v2634_v29 = vld [vmem:[%s3684_s0 + $0xc0] sm:$0xff]   ;;  %v2635_v30 = vld [vmem:[%s3684_s0 + $0xc8] sm:$0xff]  }
   0xb   :  { %v2636_v33 = vld [vmem:[%s3684_s0 + $0xd0] sm:$0xff]   ;;  %v83_v36 = vld [vmem:[%s3685_s2] sm:$0xf]  ;;  %v2637_v49 = vld [vmem:[%s3684_s0 + $0xd8] sm:$0xff]  }
   0xc   :  { %v2867_v39 = vrot.slane %v83_v36, %v87_v34  ;;  %v2869_v40 = vrot.slane %v83_v36, %v95_v35  ;;  %v2871_v41 = vrot.slane %v83_v36, %v91_v37  ;;  %v2873_v42 = vrot.slane %v83_v36, %v99_v38  ;;  %vm2889_vm3 = vmor %vm2114_vm2, %vm2113_vm1 }
   0xe   :  { %2284 = vmatmul.mubr.msk.bf16.gmra.mrb[4].mxu0 %vm285_vm0, %v2611_v6  ;;  %2316 = vmatmul.mubr.msk.bf16.gmra.mrb[4].mxu1 %vm285_vm0, %v2611_v6 }
   0xf   :  { %434 = vmatprep.mubr.bf16.mxu0 %v2642_v1  ;;  %787 = vmatprep.mubr.bf16.mxu1 %v2642_v1 }
  0x16   :  { %2285 = vmatmul.mubr.msk.bf16.gmra.mrb[8].mxu0 %vm285_vm0, %v2612_v7  ;;  %2317 = vmatmul.mubr.msk.bf16.gmra.mrb[8].mxu1 %vm285_vm0, %v2612_v7 }
  0x17   :  { %444 = vmatprep.mubr.bf16.mxu0 %v2642_v1  ;;  %797 = vmatprep.mubr.bf16.mxu1 %v2642_v1 }
  0x1e   :  { %2286 = vmatmul.mubr.msk.bf16.gmra.mrb[12].mxu0 %vm285_vm0, %v2613_v8  ;;  %2318 = vmatmul.mubr.msk.bf16.gmra.mrb[12].mxu1 %vm285_vm0, %v2613_v8 }
  0x1f   :  { %454 = vmatprep.mubr.bf16.mxu0 %v2642_v1  ;;  %807 = vmatprep.mubr.bf16.mxu1 %v2642_v1 }
  0x26   :  { %2287 = vmatmul.mubr.msk.bf16.gmra.mrb[16].mxu0 %vm285_vm0, %v2614_v9  ;;  %2319 = vmatmul.mubr.msk.bf16.gmra.mrb[16].mxu1 %vm285_vm0, %v2614_v9 }
  0x27   :  { %464 = vmatprep.mubr.bf16.mxu0 %v2642_v1  ;;  %817 = vmatprep.mubr.bf16.mxu1 %v2642_v1 }
  0x2e   :  { %2288 = vmatmul.mubr.msk.bf16.gmra.mrb[20].mxu0 %vm285_vm0, %v2615_v10  ;;  %2320 = vmatmul.mubr.msk.bf16.gmra.mrb[20].mxu1 %vm285_vm0, %v2615_v10 }
  0x2f   :  { %474 = vmatprep.mubr.bf16.mxu0 %v2642_v1  ;;  %827 = vmatprep.mubr.bf16.mxu1 %v2642_v1 }
  0x36   :  { %2289 = vmatmul.mubr.msk.bf16.gmra.mrb[24].mxu0 %vm285_vm0, %v2616_v11  ;;  %2321 = vmatmul.mubr.msk.bf16.gmra.mrb[24].mxu1 %vm285_vm0, %v2616_v11 }
  0x37   :  { %484 = vmatprep.mubr.bf16.mxu0 %v2642_v1  ;;  %837 = vmatprep.mubr.bf16.mxu1 %v2642_v1 }
  0x3e   :  { %2290 = vmatmul.mubr.msk.bf16.gmra.mrb[28].mxu0 %vm285_vm0, %v2617_v12  ;;  %2322 = vmatmul.mubr.msk.bf16.gmra.mrb[28].mxu1 %vm285_vm0, %v2617_v12 }
  0x3f   :  { %494 = vmatprep.mubr.bf16.mxu0 %v2642_v1  ;;  %847 = vmatprep.mubr.bf16.mxu1 %v2642_v1 }
  0x46   :  { %2291 = vmatmul.mubr.msk.bf16.gmra.mrb[32].mxu0 %vm285_vm0, %v2618_v13  ;;  %2323 = vmatmul.mubr.msk.bf16.gmra.mrb[32].mxu1 %vm285_vm0, %v2618_v13 }
  0x47   :  { %504 = vmatprep.mubr.bf16.mxu0 %v2642_v1  ;;  %857 = vmatprep.mubr.bf16.mxu1 %v2642_v1 }
  0x4e   :  { %2292 = vmatmul.mubr.msk.bf16.gmra.mrb[36].mxu0 %vm285_vm0, %v2619_v14  ;;  %2324 = vmatmul.mubr.msk.bf16.gmra.mrb[36].mxu1 %vm285_vm0, %v2619_v14 }
  0x4f   :  { %514 = vmatprep.mubr.bf16.mxu0 %v2642_v1  ;;  %867 = vmatprep.mubr.bf16.mxu1 %v2642_v1 }
  0x56   :  { %2293 = vmatmul.mubr.msk.bf16.gmra.mrb[40].mxu0 %vm285_vm0, %v2620_v15  ;;  %2325 = vmatmul.mubr.msk.bf16.gmra.mrb[40].mxu1 %vm285_vm0, %v2620_v15 }
  0x57   :  { %524 = vmatprep.mubr.bf16.mxu0 %v2642_v1  ;;  %877 = vmatprep.mubr.bf16.mxu1 %v2642_v1 }
  0x5e   :  { %2294 = vmatmul.mubr.msk.bf16.gmra.mrb[44].mxu0 %vm285_vm0, %v2621_v16  ;;  %2326 = vmatmul.mubr.msk.bf16.gmra.mrb[44].mxu1 %vm285_vm0, %v2621_v16  ;;  %v2638_v16 = vld [vmem:[%s3684_s0 + $0xe0] sm:$0xff]  }
  0x5f   :  { %534 = vmatprep.mubr.bf16.mxu0 %v2642_v1  ;;  %887 = vmatprep.mubr.bf16.mxu1 %v2642_v1 }
  0x66   :  { %2295 = vmatmul.mubr.msk.bf16.gmra.mrb[48].mxu0 %vm285_vm0, %v2622_v17  ;;  %2327 = vmatmul.mubr.msk.bf16.gmra.mrb[48].mxu1 %vm285_vm0, %v2622_v17 }
  0x67   :  { %544 = vmatprep.mubr.bf16.mxu0 %v2642_v1  ;;  %897 = vmatprep.mubr.bf16.mxu1 %v2642_v1 }
  0x6e   :  { %2296 = vmatmul.mubr.msk.bf16.gmra.mrb[52].mxu0 %vm285_vm0, %v2623_v18  ;;  %2328 = vmatmul.mubr.msk.bf16.gmra.mrb[52].mxu1 %vm285_vm0, %v2623_v18 }
  0x6f   :  { %554 = vmatprep.mubr.bf16.mxu0 %v2642_v1  ;;  %907 = vmatprep.mubr.bf16.mxu1 %v2642_v1 }
  0x76   :  { %2297 = vmatmul.mubr.msk.bf16.gmra.mrb[56].mxu0 %vm285_vm0, %v2624_v19  ;;  %2329 = vmatmul.mubr.msk.bf16.gmra.mrb[56].mxu1 %vm285_vm0, %v2624_v19 }
  0x77   :  { %564 = vmatprep.mubr.bf16.mxu0 %v2642_v1  ;;  %917 = vmatprep.mubr.bf16.mxu1 %v2642_v1 }
  0x7e   :  { %2298 = vmatmul.mubr.msk.bf16.gmra.mrb[60].mxu0 %vm285_vm0, %v2625_v20  ;;  %2330 = vmatmul.mubr.msk.bf16.gmra.mrb[60].mxu1 %vm285_vm0, %v2625_v20 }
  0x7f   :  { %574 = vmatprep.mubr.bf16.mxu0 %v2642_v1  ;;  %927 = vmatprep.mubr.bf16.mxu1 %v2642_v1 }
  0x86   :  { %2299 = vmatmul.mubr.msk.bf16.gmra.mrb[64].mxu0 %vm285_vm0, %v2626_v21  ;;  %2331 = vmatmul.mubr.msk.bf16.gmra.mrb[64].mxu1 %vm285_vm0, %v2626_v21 }
  0x87   :  { %584 = vmatprep.mubr.bf16.mxu0 %v2642_v1  ;;  %937 = vmatprep.mubr.bf16.mxu1 %v2642_v1 }
  0x8e   :  { %2300 = vmatmul.mubr.msk.bf16.gmra.mrb[68].mxu0 %vm285_vm0, %v2627_v22  ;;  %2332 = vmatmul.mubr.msk.bf16.gmra.mrb[68].mxu1 %vm285_vm0, %v2627_v22 }
  0x8f   :  { %594 = vmatprep.mubr.bf16.mxu0 %v2642_v1  ;;  %947 = vmatprep.mubr.bf16.mxu1 %v2642_v1 }
  0x96   :  { %2301 = vmatmul.mubr.msk.bf16.gmra.mrb[72].mxu0 %vm285_vm0, %v2628_v23  ;;  %2333 = vmatmul.mubr.msk.bf16.gmra.mrb[72].mxu1 %vm285_vm0, %v2628_v23 }
  0x97   :  { %604 = vmatprep.mubr.bf16.mxu0 %v2642_v1  ;;  %957 = vmatprep.mubr.bf16.mxu1 %v2642_v1 }
  0x9e   :  { %2302 = vmatmul.mubr.msk.bf16.gmra.mrb[76].mxu0 %vm285_vm0, %v2629_v24  ;;  %2334 = vmatmul.mubr.msk.bf16.gmra.mrb[76].mxu1 %vm285_vm0, %v2629_v24 }
  0x9f   :  { %614 = vmatprep.mubr.bf16.mxu0 %v2642_v1  ;;  %967 = vmatprep.mubr.bf16.mxu1 %v2642_v1 }
  0xa6   :  { %2303 = vmatmul.mubr.msk.bf16.gmra.mrb[80].mxu0 %vm285_vm0, %v2630_v25  ;;  %2335 = vmatmul.mubr.msk.bf16.gmra.mrb[80].mxu1 %vm285_vm0, %v2630_v25 }
  0xa7   :  { %624 = vmatprep.mubr.bf16.mxu0 %v2642_v1  ;;  %977 = vmatprep.mubr.bf16.mxu1 %v2642_v1 }
  0xae   :  { %2304 = vmatmul.mubr.msk.bf16.gmra.mrb[84].mxu0 %vm285_vm0, %v2631_v26  ;;  %2336 = vmatmul.mubr.msk.bf16.gmra.mrb[84].mxu1 %vm285_vm0, %v2631_v26 }
  0xaf   :  { %634 = vmatprep.mubr.bf16.mxu0 %v2642_v1  ;;  %987 = vmatprep.mubr.bf16.mxu1 %v2642_v1 }
  0xb6   :  { %2305 = vmatmul.mubr.msk.bf16.gmra.mrb[88].mxu0 %vm285_vm0, %v2632_v27  ;;  %2337 = vmatmul.mubr.msk.bf16.gmra.mrb[88].mxu1 %vm285_vm0, %v2632_v27 }
  0xb7   :  { %644 = vmatprep.mubr.bf16.mxu0 %v2642_v1  ;;  %997 = vmatprep.mubr.bf16.mxu1 %v2642_v1 }
  0xbe   :  { %2306 = vmatmul.mubr.msk.bf16.gmra.mrb[92].mxu0 %vm285_vm0, %v2633_v28  ;;  %2338 = vmatmul.mubr.msk.bf16.gmra.mrb[92].mxu1 %vm285_vm0, %v2633_v28 }
  0xbf   :  { %654 = vmatprep.mubr.bf16.mxu0 %v2642_v1  ;;  %1007 = vmatprep.mubr.bf16.mxu1 %v2642_v1 }
  0xc6   :  { %2307 = vmatmul.mubr.msk.bf16.gmra.mrb[96].mxu0 %vm285_vm0, %v2634_v29  ;;  %2339 = vmatmul.mubr.msk.bf16.gmra.mrb[96].mxu1 %vm285_vm0, %v2634_v29 }
  0xc7   :  { %664 = vmatprep.mubr.bf16.mxu0 %v2642_v1  ;;  %1017 = vmatprep.mubr.bf16.mxu1 %v2642_v1 }
  0xce   :  { %2308 = vmatmul.mubr.msk.bf16.gmra.mrb[100].mxu0 %vm285_vm0, %v2635_v30  ;;  %2340 = vmatmul.mubr.msk.bf16.gmra.mrb[100].mxu1 %vm285_vm0, %v2635_v30 }
  0xcf   :  { %674 = vmatprep.mubr.bf16.mxu0 %v2642_v1  ;;  %1027 = vmatprep.mubr.bf16.mxu1 %v2642_v1 }
  0xd6   :  { %2309 = vmatmul.mubr.msk.bf16.gmra.mrb[104].mxu0 %vm285_vm0, %v2636_v33  ;;  %2341 = vmatmul.mubr.msk.bf16.gmra.mrb[104].mxu1 %vm285_vm0, %v2636_v33 }
  0xd7   :  { %684 = vmatprep.mubr.bf16.mxu0 %v2642_v1  ;;  %1037 = vmatprep.mubr.bf16.mxu1 %v2642_v1 }
  0xd9   :  { %v416_v43 = vpop.f32.mrb[0].mxu0  ;;  %v769_v44 = vpop.f32.mrb[0].mxu1 }
  0xda   :  { %v417_v45 = vadd.f32 %v416_v43, %v2867_v39  ;;  %v770_v46 = vadd.f32 %v769_v44, %v2869_v40  ;;  %v418_v47 = vpop.f32.mrb[1].mxu0  ;;  %v771_v48 = vpop.f32.mrb[1].mxu1 }
  0xdb   :  { %v419_v50 = vadd.f32 %v418_v47, %v2871_v41  ;;  %v772_v51 = vadd.f32 %v771_v48, %v2873_v42  ;;  %v420_v52 = vpop.f32.mrb[2].mxu0  ;;  %v773_v53 = vpop.f32.mrb[2].mxu1 }
  0xdc   :  { %v1088_v54 = vmax.f32 %v417_v45, 0.0  ;;  %v1090_v55 = vmax.f32 %v770_v46, 0.0  ;;  %v421_v56 = vadd.f32 %v420_v52, %v2867_v39  ;;  %v774_v57 = vadd.f32 %v773_v53, %v2869_v40  ;;  %v422_v58 = vpop.f32.mrb[3].mxu0  ;;  %v775_v59 = vpop.f32.mrb[3].mxu1 }
  0xdd   :  { %v1089_v60 = vmax.f32 %v419_v50, 0.0  ;;  %v1091_v61 = vmax.f32 %v772_v51, 0.0  ;;  %v423_v62 = vadd.f32 %v422_v58, %v2871_v41  ;;  %v776_v63 = vadd.f32 %v775_v59, %v2873_v42 }
  0xde   :  { %v1092_v2 = vmax.f32 %v421_v56, 0.0  ;;  %v1094_v3 = vmax.f32 %v774_v57, 0.0  ;;  %2310 = vmatmul.mubr.msk.bf16.gmra.mrb[108].mxu0 %vm285_vm0, %v2637_v49  ;;  %2342 = vmatmul.mubr.msk.bf16.gmra.mrb[108].mxu1 %vm285_vm0, %v2637_v49  ;;  %v2639_v49 = vld [vmem:[%s3684_s0 + $0xe8] sm:$0xff]  }
  0xdf   :  { %v2475_v4 = vpack.c.bf16 %v1089_v60, %v1088_v54  ;;  %v2476_v5 = vpack.c.bf16 %v1091_v61, %v1090_v55  ;;  %v1093_v6 = vmax.f32 %v423_v62, 0.0  ;;  %v1095_v7 = vmax.f32 %v776_v63, 0.0  ;;  %694 = vmatprep.mubr.bf16.mxu0 %v2642_v1  ;;  %1047 = vmatprep.mubr.bf16.mxu1 %v2642_v1 }
  0xe1   :  { %2112 = vst [vmem:[%s3686_s3] sm:$0xff] %v2475_v4  ;;  %2116 = vst.msk [vmem:[%s3686_s3 + $0x8] sm:$0xff] %vm2889_vm3, %v2476_v5  ;;  %v2477_v8 = vpack.c.bf16 %v1093_v6, %v1092_v2  ;;  %v2478_v9 = vpack.c.bf16 %v1095_v7, %v1094_v3  ;;  %v426_v10 = vpop.f32.mrb[4].mxu0  ;;  %v779_v11 = vpop.f32.mrb[4].mxu1 }
  0xe2   :  { %v427_v12 = vadd.f32 %v426_v10, %v2867_v39  ;;  %v780_v13 = vadd.f32 %v779_v11, %v2869_v40  ;;  %v428_v14 = vpop.f32.mrb[5].mxu0  ;;  %v781_v15 = vpop.f32.mrb[5].mxu1 }
  0xe3   :  { %2117 = vst [vmem:[%s3686_s3 + $0x10] sm:$0xff] %v2477_v8  ;;  %2118 = vst.msk [vmem:[%s3686_s3 + $0x18] sm:$0xff] %vm2889_vm3, %v2478_v9  ;;  %v429_v17 = vadd.f32 %v428_v14, %v2871_v41  ;;  %v782_v18 = vadd.f32 %v781_v15, %v2873_v42  ;;  %v430_v19 = vpop.f32.mrb[6].mxu0  ;;  %v783_v20 = vpop.f32.mrb[6].mxu1 }
  0xe4   :  { %v1096_v21 = vmax.f32 %v427_v12, 0.0  ;;  %v1098_v22 = vmax.f32 %v780_v13, 0.0  ;;  %v431_v23 = vadd.f32 %v430_v19, %v2867_v39  ;;  %v784_v24 = vadd.f32 %v783_v20, %v2869_v40  ;;  %v432_v25 = vpop.f32.mrb[7].mxu0  ;;  %v785_v26 = vpop.f32.mrb[7].mxu1 }
  0xe5   :  { %v1097_v27 = vmax.f32 %v429_v17, 0.0  ;;  %v1099_v28 = vmax.f32 %v782_v18, 0.0  ;;  %v433_v29 = vadd.f32 %v432_v25, %v2871_v41  ;;  %v786_v30 = vadd.f32 %v785_v26, %v2873_v42 }
  0xe6   :  { %v1100_v31 = vmax.f32 %v431_v23, 0.0  ;;  %v1102_v32 = vmax.f32 %v784_v24, 0.0  ;;  %2311 = vmatmul.mubr.msk.bf16.gmra.mrb[112].mxu0 %vm285_vm0, %v2638_v16  ;;  %2343 = vmatmul.mubr.msk.bf16.gmra.mrb[112].mxu1 %vm285_vm0, %v2638_v16  ;;  %v2640_v16 = vld [vmem:[%s3684_s0 + $0xf0] sm:$0xff]  }
  0xe7   :  { %v2479_v33 = vpack.c.bf16 %v1097_v27, %v1096_v21  ;;  %v2480_v34 = vpack.c.bf16 %v1099_v28, %v1098_v22  ;;  %v1101_v35 = vmax.f32 %v433_v29, 0.0  ;;  %v1103_v36 = vmax.f32 %v786_v30, 0.0  ;;  %704 = vmatprep.mubr.bf16.mxu0 %v2642_v1  ;;  %1057 = vmatprep.mubr.bf16.mxu1 %v2642_v1 }
  0xe9   :  { %2119 = vst [vmem:[%s3686_s3 + $0x20] sm:$0xff] %v2479_v33  ;;  %2120 = vst.msk [vmem:[%s3686_s3 + $0x28] sm:$0xff] %vm2889_vm3, %v2480_v34  ;;  %v2481_v37 = vpack.c.bf16 %v1101_v35, %v1100_v31  ;;  %v2482_v38 = vpack.c.bf16 %v1103_v36, %v1102_v32  ;;  %v436_v43 = vpop.f32.mrb[8].mxu0  ;;  %v789_v44 = vpop.f32.mrb[8].mxu1 }
  0xea   :  { %v437_v45 = vadd.f32 %v436_v43, %v2867_v39  ;;  %v790_v46 = vadd.f32 %v789_v44, %v2869_v40  ;;  %v438_v47 = vpop.f32.mrb[9].mxu0  ;;  %v791_v48 = vpop.f32.mrb[9].mxu1 }
  0xeb   :  { %2121 = vst [vmem:[%s3686_s3 + $0x30] sm:$0xff] %v2481_v37  ;;  %2122 = vst.msk [vmem:[%s3686_s3 + $0x38] sm:$0xff] %vm2889_vm3, %v2482_v38  ;;  %v439_v50 = vadd.f32 %v438_v47, %v2871_v41  ;;  %v792_v51 = vadd.f32 %v791_v48, %v2873_v42  ;;  %v440_v52 = vpop.f32.mrb[10].mxu0  ;;  %v793_v53 = vpop.f32.mrb[10].mxu1  ;;  %v2641_v48 = vld [vmem:[%s3684_s0 + $0xf8] sm:$0xff]  }
  0xec   :  { %v1104_v54 = vmax.f32 %v437_v45, 0.0  ;;  %v1106_v55 = vmax.f32 %v790_v46, 0.0  ;;  %v441_v56 = vadd.f32 %v440_v52, %v2867_v39  ;;  %v794_v57 = vadd.f32 %v793_v53, %v2869_v40  ;;  %v442_v58 = vpop.f32.mrb[11].mxu0  ;;  %v795_v59 = vpop.f32.mrb[11].mxu1 }
  0xed   :  { %v1105_v60 = vmax.f32 %v439_v50, 0.0  ;;  %v1107_v61 = vmax.f32 %v792_v51, 0.0  ;;  %v443_v62 = vadd.f32 %v442_v58, %v2871_v41  ;;  %v796_v63 = vadd.f32 %v795_v59, %v2873_v42 }
  0xee   :  { %v1108_v2 = vmax.f32 %v441_v56, 0.0  ;;  %v1110_v3 = vmax.f32 %v794_v57, 0.0  ;;  %2312 = vmatmul.mubr.msk.bf16.gmra.mrb[116].mxu0 %vm285_vm0, %v2639_v49  ;;  %2344 = vmatmul.mubr.msk.bf16.gmra.mrb[116].mxu1 %vm285_vm0, %v2639_v49 }
  0xef   :  { %v2483_v4 = vpack.c.bf16 %v1105_v60, %v1104_v54  ;;  %v2484_v5 = vpack.c.bf16 %v1107_v61, %v1106_v55  ;;  %v1109_v6 = vmax.f32 %v443_v62, 0.0  ;;  %v1111_v7 = vmax.f32 %v796_v63, 0.0  ;;  %714 = vmatprep.mubr.bf16.mxu0 %v2642_v1  ;;  %1067 = vmatprep.mubr.bf16.mxu1 %v2642_v1 }
  0xf1   :  { %2123 = vst [vmem:[%s3686_s3 + $0x40] sm:$0xff] %v2483_v4  ;;  %2124 = vst.msk [vmem:[%s3686_s3 + $0x48] sm:$0xff] %vm2889_vm3, %v2484_v5  ;;  %v2485_v8 = vpack.c.bf16 %v1109_v6, %v1108_v2  ;;  %v2486_v9 = vpack.c.bf16 %v1111_v7, %v1110_v3  ;;  %v446_v10 = vpop.f32.mrb[12].mxu0  ;;  %v799_v11 = vpop.f32.mrb[12].mxu1 }
  0xf2   :  { %v447_v12 = vadd.f32 %v446_v10, %v2867_v39  ;;  %v800_v13 = vadd.f32 %v799_v11, %v2869_v40  ;;  %v448_v14 = vpop.f32.mrb[13].mxu0  ;;  %v801_v15 = vpop.f32.mrb[13].mxu1 }
  0xf3   :  { %2125 = vst [vmem:[%s3686_s3 + $0x50] sm:$0xff] %v2485_v8  ;;  %2126 = vst.msk [vmem:[%s3686_s3 + $0x58] sm:$0xff] %vm2889_vm3, %v2486_v9  ;;  %v449_v17 = vadd.f32 %v448_v14, %v2871_v41  ;;  %v802_v18 = vadd.f32 %v801_v15, %v2873_v42  ;;  %v450_v19 = vpop.f32.mrb[14].mxu0  ;;  %v803_v20 = vpop.f32.mrb[14].mxu1 }
  0xf4   :  { %v1112_v21 = vmax.f32 %v447_v12, 0.0  ;;  %v1114_v22 = vmax.f32 %v800_v13, 0.0  ;;  %v451_v23 = vadd.f32 %v450_v19, %v2867_v39  ;;  %v804_v24 = vadd.f32 %v803_v20, %v2869_v40  ;;  %v452_v25 = vpop.f32.mrb[15].mxu0  ;;  %v805_v26 = vpop.f32.mrb[15].mxu1 }
  0xf5   :  { %v1113_v27 = vmax.f32 %v449_v17, 0.0  ;;  %v1115_v28 = vmax.f32 %v802_v18, 0.0  ;;  %v453_v29 = vadd.f32 %v452_v25, %v2871_v41  ;;  %v806_v30 = vadd.f32 %v805_v26, %v2873_v42 }
  0xf6   :  { %v1116_v31 = vmax.f32 %v451_v23, 0.0  ;;  %v1118_v32 = vmax.f32 %v804_v24, 0.0  ;;  %2313 = vmatmul.mubr.msk.bf16.gmra.mrb[120].mxu0 %vm285_vm0, %v2640_v16  ;;  %2345 = vmatmul.mubr.msk.bf16.gmra.mrb[120].mxu1 %vm285_vm0, %v2640_v16 }
  0xf7   :  { %v2487_v33 = vpack.c.bf16 %v1113_v27, %v1112_v21  ;;  %v2488_v34 = vpack.c.bf16 %v1115_v28, %v1114_v22  ;;  %v1117_v35 = vmax.f32 %v453_v29, 0.0  ;;  %v1119_v36 = vmax.f32 %v806_v30, 0.0  ;;  %724 = vmatprep.mubr.bf16.mxu0 %v2642_v1  ;;  %1077 = vmatprep.mubr.bf16.mxu1 %v2642_v1 }
  0xf9   :  { %2127 = vst [vmem:[%s3686_s3 + $0x60] sm:$0xff] %v2487_v33  ;;  %2128 = vst.msk [vmem:[%s3686_s3 + $0x68] sm:$0xff] %vm2889_vm3, %v2488_v34  ;;  %v2489_v37 = vpack.c.bf16 %v1117_v35, %v1116_v31  ;;  %v2490_v38 = vpack.c.bf16 %v1119_v36, %v1118_v32  ;;  %v456_v43 = vpop.f32.mrb[16].mxu0  ;;  %v809_v44 = vpop.f32.mrb[16].mxu1 }
  0xfa   :  { %v457_v45 = vadd.f32 %v456_v43, %v2867_v39  ;;  %v810_v46 = vadd.f32 %v809_v44, %v2869_v40  ;;  %v458_v47 = vpop.f32.mrb[17].mxu0  ;;  %v811_v1 = vpop.f32.mrb[17].mxu1 }
  0xfb   :  { %2129 = vst [vmem:[%s3686_s3 + $0x70] sm:$0xff] %v2489_v37  ;;  %2130 = vst.msk [vmem:[%s3686_s3 + $0x78] sm:$0xff] %vm2889_vm3, %v2490_v38  ;;  %v459_v49 = vadd.f32 %v458_v47, %v2871_v41  ;;  %v812_v50 = vadd.f32 %v811_v1, %v2873_v42  ;;  %v460_v51 = vpop.f32.mrb[18].mxu0  ;;  %v813_v52 = vpop.f32.mrb[18].mxu1 }
  0xfc   :  { %v1120_v53 = vmax.f32 %v457_v45, 0.0  ;;  %v1122_v54 = vmax.f32 %v810_v46, 0.0  ;;  %v461_v55 = vadd.f32 %v460_v51, %v2867_v39  ;;  %v814_v56 = vadd.f32 %v813_v52, %v2869_v40  ;;  %v462_v57 = vpop.f32.mrb[19].mxu0  ;;  %v815_v58 = vpop.f32.mrb[19].mxu1 }
  0xfd   :  { %v1121_v59 = vmax.f32 %v459_v49, 0.0  ;;  %v1123_v60 = vmax.f32 %v812_v50, 0.0  ;;  %v463_v61 = vadd.f32 %v462_v57, %v2871_v41  ;;  %v816_v62 = vadd.f32 %v815_v58, %v2873_v42 }
  0xfe   :  { %v1124_v63 = vmax.f32 %v461_v55, 0.0  ;;  %v1126_v2 = vmax.f32 %v814_v56, 0.0  ;;  %2314 = vmatmul.mubr.msk.bf16.gmra.mrb[124].mxu0 %vm285_vm0, %v2641_v48  ;;  %2346 = vmatmul.mubr.msk.bf16.gmra.mrb[124].mxu1 %vm285_vm0, %v2641_v48 }
  0xff   :  { %v2491_v3 = vpack.c.bf16 %v1121_v59, %v1120_v53  ;;  %v2492_v4 = vpack.c.bf16 %v1123_v60, %v1122_v54  ;;  %v1125_v5 = vmax.f32 %v463_v61, 0.0  ;;  %v1127_v6 = vmax.f32 %v816_v62, 0.0 }
 0x101   :  { %2131 = vst [vmem:[%s3686_s3 + $0x80] sm:$0xff] %v2491_v3  ;;  %2132 = vst.msk [vmem:[%s3686_s3 + $0x88] sm:$0xff] %vm2889_vm3, %v2492_v4  ;;  %v2493_v7 = vpack.c.bf16 %v1125_v5, %v1124_v63  ;;  %v2494_v8 = vpack.c.bf16 %v1127_v6, %v1126_v2  ;;  %v466_v9 = vpop.f32.mrb[20].mxu0  ;;  %v819_v10 = vpop.f32.mrb[20].mxu1 }
 0x102   :  { %v467_v11 = vadd.f32 %v466_v9, %v2867_v39  ;;  %v820_v12 = vadd.f32 %v819_v10, %v2869_v40  ;;  %v468_v13 = vpop.f32.mrb[21].mxu0  ;;  %v821_v14 = vpop.f32.mrb[21].mxu1 }
 0x103   :  { %2133 = vst [vmem:[%s3686_s3 + $0x90] sm:$0xff] %v2493_v7  ;;  %2134 = vst.msk [vmem:[%s3686_s3 + $0x98] sm:$0xff] %vm2889_vm3, %v2494_v8  ;;  %v469_v15 = vadd.f32 %v468_v13, %v2871_v41  ;;  %v822_v16 = vadd.f32 %v821_v14, %v2873_v42  ;;  %v470_v17 = vpop.f32.mrb[22].mxu0  ;;  %v823_v18 = vpop.f32.mrb[22].mxu1 }
 0x104   :  { %v1128_v19 = vmax.f32 %v467_v11, 0.0  ;;  %v1130_v20 = vmax.f32 %v820_v12, 0.0  ;;  %v471_v21 = vadd.f32 %v470_v17, %v2867_v39  ;;  %v824_v22 = vadd.f32 %v823_v18, %v2869_v40  ;;  %v472_v23 = vpop.f32.mrb[23].mxu0  ;;  %v825_v24 = vpop.f32.mrb[23].mxu1 }
 0x105   :  { %v1129_v25 = vmax.f32 %v469_v15, 0.0  ;;  %v1131_v26 = vmax.f32 %v822_v16, 0.0  ;;  %v473_v27 = vadd.f32 %v472_v23, %v2871_v41  ;;  %v826_v28 = vadd.f32 %v825_v24, %v2873_v42 }
 0x106   :  { %v1132_v29 = vmax.f32 %v471_v21, 0.0  ;;  %v1134_v30 = vmax.f32 %v824_v22, 0.0 }
 0x107   :  { %v2495_v31 = vpack.c.bf16 %v1129_v25, %v1128_v19  ;;  %v2496_v32 = vpack.c.bf16 %v1131_v26, %v1130_v20  ;;  %v1133_v33 = vmax.f32 %v473_v27, 0.0  ;;  %v1135_v34 = vmax.f32 %v826_v28, 0.0 }
 0x109   :  { %2135 = vst [vmem:[%s3686_s3 + $0xa0] sm:$0xff] %v2495_v31  ;;  %2136 = vst.msk [vmem:[%s3686_s3 + $0xa8] sm:$0xff] %vm2889_vm3, %v2496_v32  ;;  %v2497_v35 = vpack.c.bf16 %v1133_v33, %v1132_v29  ;;  %v2498_v36 = vpack.c.bf16 %v1135_v34, %v1134_v30  ;;  %v476_v37 = vpop.f32.mrb[24].mxu0  ;;  %v829_v38 = vpop.f32.mrb[24].mxu1 }
 0x10a   :  { %v477_v43 = vadd.f32 %v476_v37, %v2867_v39  ;;  %v830_v44 = vadd.f32 %v829_v38, %v2869_v40  ;;  %v478_v45 = vpop.f32.mrb[25].mxu0  ;;  %v831_v46 = vpop.f32.mrb[25].mxu1 }
 0x10b   :  { %2137 = vst [vmem:[%s3686_s3 + $0xb0] sm:$0xff] %v2497_v35  ;;  %2138 = vst.msk [vmem:[%s3686_s3 + $0xb8] sm:$0xff] %vm2889_vm3, %v2498_v36  ;;  %v479_v47 = vadd.f32 %v478_v45, %v2871_v41  ;;  %v832_v1 = vadd.f32 %v831_v46, %v2873_v42  ;;  %v480_v48 = vpop.f32.mrb[26].mxu0  ;;  %v833_v49 = vpop.f32.mrb[26].mxu1 }
 0x10c   :  { %v1136_v50 = vmax.f32 %v477_v43, 0.0  ;;  %v1138_v51 = vmax.f32 %v830_v44, 0.0  ;;  %v481_v52 = vadd.f32 %v480_v48, %v2867_v39  ;;  %v834_v53 = vadd.f32 %v833_v49, %v2869_v40  ;;  %v482_v54 = vpop.f32.mrb[27].mxu0  ;;  %v835_v55 = vpop.f32.mrb[27].mxu1 }
 0x10d   :  { %v1137_v56 = vmax.f32 %v479_v47, 0.0  ;;  %v1139_v57 = vmax.f32 %v832_v1, 0.0  ;;  %v483_v58 = vadd.f32 %v482_v54, %v2871_v41  ;;  %v836_v59 = vadd.f32 %v835_v55, %v2873_v42 }
 0x10e   :  { %v1140_v60 = vmax.f32 %v481_v52, 0.0  ;;  %v1142_v61 = vmax.f32 %v834_v53, 0.0 }
 0x10f   :  { %v2499_v62 = vpack.c.bf16 %v1137_v56, %v1136_v50  ;;  %v2500_v63 = vpack.c.bf16 %v1139_v57, %v1138_v51  ;;  %v1141_v2 = vmax.f32 %v483_v58, 0.0  ;;  %v1143_v3 = vmax.f32 %v836_v59, 0.0 }
 0x111   :  { %2139 = vst [vmem:[%s3686_s3 + $0xc0] sm:$0xff] %v2499_v62  ;;  %2140 = vst.msk [vmem:[%s3686_s3 + $0xc8] sm:$0xff] %vm2889_vm3, %v2500_v63  ;;  %v2501_v4 = vpack.c.bf16 %v1141_v2, %v1140_v60  ;;  %v2502_v5 = vpack.c.bf16 %v1143_v3, %v1142_v61  ;;  %v486_v6 = vpop.f32.mrb[28].mxu0  ;;  %v839_v7 = vpop.f32.mrb[28].mxu1 }
 0x112   :  { %v487_v8 = vadd.f32 %v486_v6, %v2867_v39  ;;  %v840_v9 = vadd.f32 %v839_v7, %v2869_v40  ;;  %v488_v10 = vpop.f32.mrb[29].mxu0  ;;  %v841_v11 = vpop.f32.mrb[29].mxu1 }
 0x113   :  { %2141 = vst [vmem:[%s3686_s3 + $0xd0] sm:$0xff] %v2501_v4  ;;  %2142 = vst.msk [vmem:[%s3686_s3 + $0xd8] sm:$0xff] %vm2889_vm3, %v2502_v5  ;;  %v489_v12 = vadd.f32 %v488_v10, %v2871_v41  ;;  %v842_v13 = vadd.f32 %v841_v11, %v2873_v42  ;;  %v490_v14 = vpop.f32.mrb[30].mxu0  ;;  %v843_v15 = vpop.f32.mrb[30].mxu1 }
 0x114   :  { %v1144_v16 = vmax.f32 %v487_v8, 0.0  ;;  %v1146_v17 = vmax.f32 %v840_v9, 0.0  ;;  %v491_v18 = vadd.f32 %v490_v14, %v2867_v39  ;;  %v844_v19 = vadd.f32 %v843_v15, %v2869_v40  ;;  %v492_v20 = vpop.f32.mrb[31].mxu0  ;;  %v845_v21 = vpop.f32.mrb[31].mxu1 }
 0x115   :  { %v1145_v22 = vmax.f32 %v489_v12, 0.0  ;;  %v1147_v23 = vmax.f32 %v842_v13, 0.0  ;;  %v493_v24 = vadd.f32 %v492_v20, %v2871_v41  ;;  %v846_v25 = vadd.f32 %v845_v21, %v2873_v42 }
 0x116   :  { %v1148_v26 = vmax.f32 %v491_v18, 0.0  ;;  %v1150_v27 = vmax.f32 %v844_v19, 0.0 }
 0x117   :  { %v2503_v28 = vpack.c.bf16 %v1145_v22, %v1144_v16  ;;  %v2504_v29 = vpack.c.bf16 %v1147_v23, %v1146_v17  ;;  %v1149_v30 = vmax.f32 %v493_v24, 0.0  ;;  %v1151_v31 = vmax.f32 %v846_v25, 0.0 }
 0x119   :  { %2143 = vst [vmem:[%s3686_s3 + $0xe0] sm:$0xff] %v2503_v28  ;;  %2144 = vst.msk [vmem:[%s3686_s3 + $0xe8] sm:$0xff] %vm2889_vm3, %v2504_v29  ;;  %v2505_v32 = vpack.c.bf16 %v1149_v30, %v1148_v26  ;;  %v2506_v33 = vpack.c.bf16 %v1151_v31, %v1150_v27  ;;  %v496_v34 = vpop.f32.mrb[32].mxu0  ;;  %v849_v35 = vpop.f32.mrb[32].mxu1 }
 0x11a   :  { %v497_v36 = vadd.f32 %v496_v34, %v2867_v39  ;;  %v850_v37 = vadd.f32 %v849_v35, %v2869_v40  ;;  %v498_v38 = vpop.f32.mrb[33].mxu0  ;;  %v851_v43 = vpop.f32.mrb[33].mxu1 }
 0x11b   :  { %2145 = vst [vmem:[%s3686_s3 + $0xf0] sm:$0xff] %v2505_v32  ;;  %2146 = vst.msk [vmem:[%s3686_s3 + $0xf8] sm:$0xff] %vm2889_vm3, %v2506_v33  ;;  %v499_v44 = vadd.f32 %v498_v38, %v2871_v41  ;;  %v852_v45 = vadd.f32 %v851_v43, %v2873_v42  ;;  %v500_v46 = vpop.f32.mrb[34].mxu0  ;;  %v853_v47 = vpop.f32.mrb[34].mxu1 }
 0x11c   :  { %v1152_v1 = vmax.f32 %v497_v36, 0.0  ;;  %v1154_v48 = vmax.f32 %v850_v37, 0.0  ;;  %v501_v49 = vadd.f32 %v500_v46, %v2867_v39  ;;  %v854_v50 = vadd.f32 %v853_v47, %v2869_v40  ;;  %v502_v51 = vpop.f32.mrb[35].mxu0  ;;  %v855_v52 = vpop.f32.mrb[35].mxu1 }
 0x11d   :  { %v1153_v53 = vmax.f32 %v499_v44, 0.0  ;;  %v1155_v54 = vmax.f32 %v852_v45, 0.0  ;;  %v503_v55 = vadd.f32 %v502_v51, %v2871_v41  ;;  %v856_v56 = vadd.f32 %v855_v52, %v2873_v42 }
 0x11e   :  { %v1156_v57 = vmax.f32 %v501_v49, 0.0  ;;  %v1158_v58 = vmax.f32 %v854_v50, 0.0 }
 0x11f   :  { %v2507_v59 = vpack.c.bf16 %v1153_v53, %v1152_v1  ;;  %v2508_v60 = vpack.c.bf16 %v1155_v54, %v1154_v48  ;;  %v1157_v61 = vmax.f32 %v503_v55, 0.0  ;;  %v1159_v62 = vmax.f32 %v856_v56, 0.0 }
 0x121   :  { %2147 = vst [vmem:[%s3686_s3 + $0x100] sm:$0xff] %v2507_v59  ;;  %2148 = vst.msk [vmem:[%s3686_s3 + $0x108] sm:$0xff] %vm2889_vm3, %v2508_v60  ;;  %v2509_v63 = vpack.c.bf16 %v1157_v61, %v1156_v57  ;;  %v2510_v2 = vpack.c.bf16 %v1159_v62, %v1158_v58  ;;  %v506_v3 = vpop.f32.mrb[36].mxu0  ;;  %v859_v4 = vpop.f32.mrb[36].mxu1 }
 0x122   :  { %v507_v5 = vadd.f32 %v506_v3, %v2867_v39  ;;  %v860_v6 = vadd.f32 %v859_v4, %v2869_v40  ;;  %v508_v7 = vpop.f32.mrb[37].mxu0  ;;  %v861_v8 = vpop.f32.mrb[37].mxu1 }
 0x123   :  { %2149 = vst [vmem:[%s3686_s3 + $0x110] sm:$0xff] %v2509_v63  ;;  %2150 = vst.msk [vmem:[%s3686_s3 + $0x118] sm:$0xff] %vm2889_vm3, %v2510_v2  ;;  %v509_v9 = vadd.f32 %v508_v7, %v2871_v41  ;;  %v862_v10 = vadd.f32 %v861_v8, %v2873_v42  ;;  %v510_v11 = vpop.f32.mrb[38].mxu0  ;;  %v863_v12 = vpop.f32.mrb[38].mxu1 }
 0x124   :  { %v1160_v13 = vmax.f32 %v507_v5, 0.0  ;;  %v1162_v14 = vmax.f32 %v860_v6, 0.0  ;;  %v511_v15 = vadd.f32 %v510_v11, %v2867_v39  ;;  %v864_v16 = vadd.f32 %v863_v12, %v2869_v40  ;;  %v512_v17 = vpop.f32.mrb[39].mxu0  ;;  %v865_v18 = vpop.f32.mrb[39].mxu1 }
 0x125   :  { %v1161_v19 = vmax.f32 %v509_v9, 0.0  ;;  %v1163_v20 = vmax.f32 %v862_v10, 0.0  ;;  %v513_v21 = vadd.f32 %v512_v17, %v2871_v41  ;;  %v866_v22 = vadd.f32 %v865_v18, %v2873_v42 }
 0x126   :  { %v1164_v23 = vmax.f32 %v511_v15, 0.0  ;;  %v1166_v24 = vmax.f32 %v864_v16, 0.0 }
 0x127   :  { %v2511_v25 = vpack.c.bf16 %v1161_v19, %v1160_v13  ;;  %v2512_v26 = vpack.c.bf16 %v1163_v20, %v1162_v14  ;;  %v1165_v27 = vmax.f32 %v513_v21, 0.0  ;;  %v1167_v28 = vmax.f32 %v866_v22, 0.0 }
 0x129   :  { %2151 = vst [vmem:[%s3686_s3 + $0x120] sm:$0xff] %v2511_v25  ;;  %2152 = vst.msk [vmem:[%s3686_s3 + $0x128] sm:$0xff] %vm2889_vm3, %v2512_v26  ;;  %v2513_v29 = vpack.c.bf16 %v1165_v27, %v1164_v23  ;;  %v2514_v30 = vpack.c.bf16 %v1167_v28, %v1166_v24  ;;  %v516_v31 = vpop.f32.mrb[40].mxu0  ;;  %v869_v32 = vpop.f32.mrb[40].mxu1 }
 0x12a   :  { %v517_v33 = vadd.f32 %v516_v31, %v2867_v39  ;;  %v870_v34 = vadd.f32 %v869_v32, %v2869_v40  ;;  %v518_v35 = vpop.f32.mrb[41].mxu0  ;;  %v871_v36 = vpop.f32.mrb[41].mxu1 }
 0x12b   :  { %2153 = vst [vmem:[%s3686_s3 + $0x130] sm:$0xff] %v2513_v29  ;;  %2154 = vst.msk [vmem:[%s3686_s3 + $0x138] sm:$0xff] %vm2889_vm3, %v2514_v30  ;;  %v519_v37 = vadd.f32 %v518_v35, %v2871_v41  ;;  %v872_v38 = vadd.f32 %v871_v36, %v2873_v42  ;;  %v520_v43 = vpop.f32.mrb[42].mxu0  ;;  %v873_v44 = vpop.f32.mrb[42].mxu1 }
 0x12c   :  { %v1168_v45 = vmax.f32 %v517_v33, 0.0  ;;  %v1170_v46 = vmax.f32 %v870_v34, 0.0  ;;  %v521_v47 = vadd.f32 %v520_v43, %v2867_v39  ;;  %v874_v1 = vadd.f32 %v873_v44, %v2869_v40  ;;  %v522_v48 = vpop.f32.mrb[43].mxu0  ;;  %v875_v49 = vpop.f32.mrb[43].mxu1 }
 0x12d   :  { %v1169_v50 = vmax.f32 %v519_v37, 0.0  ;;  %v1171_v51 = vmax.f32 %v872_v38, 0.0  ;;  %v523_v52 = vadd.f32 %v522_v48, %v2871_v41  ;;  %v876_v53 = vadd.f32 %v875_v49, %v2873_v42 }
 0x12e   :  { %v1172_v54 = vmax.f32 %v521_v47, 0.0  ;;  %v1174_v55 = vmax.f32 %v874_v1, 0.0 }
 0x12f   :  { %v2515_v56 = vpack.c.bf16 %v1169_v50, %v1168_v45  ;;  %v2516_v57 = vpack.c.bf16 %v1171_v51, %v1170_v46  ;;  %v1173_v58 = vmax.f32 %v523_v52, 0.0  ;;  %v1175_v59 = vmax.f32 %v876_v53, 0.0 }
 0x131   :  { %2155 = vst [vmem:[%s3686_s3 + $0x140] sm:$0xff] %v2515_v56  ;;  %2156 = vst.msk [vmem:[%s3686_s3 + $0x148] sm:$0xff] %vm2889_vm3, %v2516_v57  ;;  %v2517_v60 = vpack.c.bf16 %v1173_v58, %v1172_v54  ;;  %v2518_v61 = vpack.c.bf16 %v1175_v59, %v1174_v55  ;;  %v526_v62 = vpop.f32.mrb[44].mxu0  ;;  %v879_v63 = vpop.f32.mrb[44].mxu1 }
 0x132   :  { %v527_v2 = vadd.f32 %v526_v62, %v2867_v39  ;;  %v880_v3 = vadd.f32 %v879_v63, %v2869_v40  ;;  %v528_v4 = vpop.f32.mrb[45].mxu0  ;;  %v881_v5 = vpop.f32.mrb[45].mxu1 }
 0x133   :  { %2157 = vst [vmem:[%s3686_s3 + $0x150] sm:$0xff] %v2517_v60  ;;  %2158 = vst.msk [vmem:[%s3686_s3 + $0x158] sm:$0xff] %vm2889_vm3, %v2518_v61  ;;  %v529_v6 = vadd.f32 %v528_v4, %v2871_v41  ;;  %v882_v7 = vadd.f32 %v881_v5, %v2873_v42  ;;  %v530_v8 = vpop.f32.mrb[46].mxu0  ;;  %v883_v9 = vpop.f32.mrb[46].mxu1 }
 0x134   :  { %v1176_v10 = vmax.f32 %v527_v2, 0.0  ;;  %v1178_v11 = vmax.f32 %v880_v3, 0.0  ;;  %v531_v12 = vadd.f32 %v530_v8, %v2867_v39  ;;  %v884_v13 = vadd.f32 %v883_v9, %v2869_v40  ;;  %v532_v14 = vpop.f32.mrb[47].mxu0  ;;  %v885_v15 = vpop.f32.mrb[47].mxu1 }
 0x135   :  { %v1177_v16 = vmax.f32 %v529_v6, 0.0  ;;  %v1179_v17 = vmax.f32 %v882_v7, 0.0  ;;  %v533_v18 = vadd.f32 %v532_v14, %v2871_v41  ;;  %v886_v19 = vadd.f32 %v885_v15, %v2873_v42 }
 0x136   :  { %v1180_v20 = vmax.f32 %v531_v12, 0.0  ;;  %v1182_v21 = vmax.f32 %v884_v13, 0.0 }
 0x137   :  { %v2519_v22 = vpack.c.bf16 %v1177_v16, %v1176_v10  ;;  %v2520_v23 = vpack.c.bf16 %v1179_v17, %v1178_v11  ;;  %v1181_v24 = vmax.f32 %v533_v18, 0.0  ;;  %v1183_v25 = vmax.f32 %v886_v19, 0.0 }
 0x139   :  { %2159 = vst [vmem:[%s3686_s3 + $0x160] sm:$0xff] %v2519_v22  ;;  %2160 = vst.msk [vmem:[%s3686_s3 + $0x168] sm:$0xff] %vm2889_vm3, %v2520_v23  ;;  %v2521_v26 = vpack.c.bf16 %v1181_v24, %v1180_v20  ;;  %v2522_v27 = vpack.c.bf16 %v1183_v25, %v1182_v21  ;;  %v536_v28 = vpop.f32.mrb[48].mxu0  ;;  %v889_v29 = vpop.f32.mrb[48].mxu1 }
 0x13a   :  { %v537_v30 = vadd.f32 %v536_v28, %v2867_v39  ;;  %v890_v31 = vadd.f32 %v889_v29, %v2869_v40  ;;  %v538_v32 = vpop.f32.mrb[49].mxu0  ;;  %v891_v33 = vpop.f32.mrb[49].mxu1 }
 0x13b   :  { %2161 = vst [vmem:[%s3686_s3 + $0x170] sm:$0xff] %v2521_v26  ;;  %2162 = vst.msk [vmem:[%s3686_s3 + $0x178] sm:$0xff] %vm2889_vm3, %v2522_v27  ;;  %v539_v34 = vadd.f32 %v538_v32, %v2871_v41  ;;  %v892_v35 = vadd.f32 %v891_v33, %v2873_v42  ;;  %v540_v36 = vpop.f32.mrb[50].mxu0  ;;  %v893_v37 = vpop.f32.mrb[50].mxu1 }
 0x13c   :  { %v1184_v38 = vmax.f32 %v537_v30, 0.0  ;;  %v1186_v43 = vmax.f32 %v890_v31, 0.0  ;;  %v541_v44 = vadd.f32 %v540_v36, %v2867_v39  ;;  %v894_v45 = vadd.f32 %v893_v37, %v2869_v40  ;;  %v542_v46 = vpop.f32.mrb[51].mxu0  ;;  %v895_v47 = vpop.f32.mrb[51].mxu1 }
 0x13d   :  { %v1185_v1 = vmax.f32 %v539_v34, 0.0  ;;  %v1187_v48 = vmax.f32 %v892_v35, 0.0  ;;  %v543_v49 = vadd.f32 %v542_v46, %v2871_v41  ;;  %v896_v50 = vadd.f32 %v895_v47, %v2873_v42 }
 0x13e   :  { %v1188_v51 = vmax.f32 %v541_v44, 0.0  ;;  %v1190_v52 = vmax.f32 %v894_v45, 0.0 }
 0x13f   :  { %v2523_v53 = vpack.c.bf16 %v1185_v1, %v1184_v38  ;;  %v2524_v54 = vpack.c.bf16 %v1187_v48, %v1186_v43  ;;  %v1189_v55 = vmax.f32 %v543_v49, 0.0  ;;  %v1191_v56 = vmax.f32 %v896_v50, 0.0 }
 0x141   :  { %2163 = vst [vmem:[%s3686_s3 + $0x180] sm:$0xff] %v2523_v53  ;;  %2164 = vst.msk [vmem:[%s3686_s3 + $0x188] sm:$0xff] %vm2889_vm3, %v2524_v54  ;;  %v2525_v57 = vpack.c.bf16 %v1189_v55, %v1188_v51  ;;  %v2526_v58 = vpack.c.bf16 %v1191_v56, %v1190_v52  ;;  %v546_v59 = vpop.f32.mrb[52].mxu0  ;;  %v899_v60 = vpop.f32.mrb[52].mxu1 }
 0x142   :  { %v547_v61 = vadd.f32 %v546_v59, %v2867_v39  ;;  %v900_v62 = vadd.f32 %v899_v60, %v2869_v40  ;;  %v548_v63 = vpop.f32.mrb[53].mxu0  ;;  %v901_v2 = vpop.f32.mrb[53].mxu1 }
 0x143   :  { %2165 = vst [vmem:[%s3686_s3 + $0x190] sm:$0xff] %v2525_v57  ;;  %2166 = vst.msk [vmem:[%s3686_s3 + $0x198] sm:$0xff] %vm2889_vm3, %v2526_v58  ;;  %v549_v3 = vadd.f32 %v548_v63, %v2871_v41  ;;  %v902_v4 = vadd.f32 %v901_v2, %v2873_v42  ;;  %v550_v5 = vpop.f32.mrb[54].mxu0  ;;  %v903_v6 = vpop.f32.mrb[54].mxu1 }
 0x144   :  { %v1192_v7 = vmax.f32 %v547_v61, 0.0  ;;  %v1194_v8 = vmax.f32 %v900_v62, 0.0  ;;  %v551_v9 = vadd.f32 %v550_v5, %v2867_v39  ;;  %v904_v10 = vadd.f32 %v903_v6, %v2869_v40  ;;  %v552_v11 = vpop.f32.mrb[55].mxu0  ;;  %v905_v12 = vpop.f32.mrb[55].mxu1 }
 0x145   :  { %v1193_v13 = vmax.f32 %v549_v3, 0.0  ;;  %v1195_v14 = vmax.f32 %v902_v4, 0.0  ;;  %v553_v15 = vadd.f32 %v552_v11, %v2871_v41  ;;  %v906_v16 = vadd.f32 %v905_v12, %v2873_v42 }
 0x146   :  { %v1196_v17 = vmax.f32 %v551_v9, 0.0  ;;  %v1198_v18 = vmax.f32 %v904_v10, 0.0 }
 0x147   :  { %v2527_v19 = vpack.c.bf16 %v1193_v13, %v1192_v7  ;;  %v2528_v20 = vpack.c.bf16 %v1195_v14, %v1194_v8  ;;  %v1197_v21 = vmax.f32 %v553_v15, 0.0  ;;  %v1199_v22 = vmax.f32 %v906_v16, 0.0 }
 0x149   :  { %2167 = vst [vmem:[%s3686_s3 + $0x1a0] sm:$0xff] %v2527_v19  ;;  %2168 = vst.msk [vmem:[%s3686_s3 + $0x1a8] sm:$0xff] %vm2889_vm3, %v2528_v20  ;;  %v2529_v23 = vpack.c.bf16 %v1197_v21, %v1196_v17  ;;  %v2530_v24 = vpack.c.bf16 %v1199_v22, %v1198_v18  ;;  %v556_v25 = vpop.f32.mrb[56].mxu0  ;;  %v909_v26 = vpop.f32.mrb[56].mxu1 }
 0x14a   :  { %v557_v27 = vadd.f32 %v556_v25, %v2867_v39  ;;  %v910_v28 = vadd.f32 %v909_v26, %v2869_v40  ;;  %v558_v29 = vpop.f32.mrb[57].mxu0  ;;  %v911_v30 = vpop.f32.mrb[57].mxu1 }
 0x14b   :  { %2169 = vst [vmem:[%s3686_s3 + $0x1b0] sm:$0xff] %v2529_v23  ;;  %2170 = vst.msk [vmem:[%s3686_s3 + $0x1b8] sm:$0xff] %vm2889_vm3, %v2530_v24  ;;  %v559_v31 = vadd.f32 %v558_v29, %v2871_v41  ;;  %v912_v32 = vadd.f32 %v911_v30, %v2873_v42  ;;  %v560_v33 = vpop.f32.mrb[58].mxu0  ;;  %v913_v34 = vpop.f32.mrb[58].mxu1 }
 0x14c   :  { %v1200_v35 = vmax.f32 %v557_v27, 0.0  ;;  %v1202_v36 = vmax.f32 %v910_v28, 0.0  ;;  %v561_v37 = vadd.f32 %v560_v33, %v2867_v39  ;;  %v914_v38 = vadd.f32 %v913_v34, %v2869_v40  ;;  %v562_v43 = vpop.f32.mrb[59].mxu0  ;;  %v915_v44 = vpop.f32.mrb[59].mxu1 }
 0x14d   :  { %v1201_v45 = vmax.f32 %v559_v31, 0.0  ;;  %v1203_v46 = vmax.f32 %v912_v32, 0.0  ;;  %v563_v47 = vadd.f32 %v562_v43, %v2871_v41  ;;  %v916_v1 = vadd.f32 %v915_v44, %v2873_v42 }
 0x14e   :  { %v1204_v48 = vmax.f32 %v561_v37, 0.0  ;;  %v1206_v49 = vmax.f32 %v914_v38, 0.0 }
 0x14f   :  { %v2531_v50 = vpack.c.bf16 %v1201_v45, %v1200_v35  ;;  %v2532_v51 = vpack.c.bf16 %v1203_v46, %v1202_v36  ;;  %v1205_v52 = vmax.f32 %v563_v47, 0.0  ;;  %v1207_v53 = vmax.f32 %v916_v1, 0.0 }
 0x151   :  { %2171 = vst [vmem:[%s3686_s3 + $0x1c0] sm:$0xff] %v2531_v50  ;;  %2172 = vst.msk [vmem:[%s3686_s3 + $0x1c8] sm:$0xff] %vm2889_vm3, %v2532_v51  ;;  %v2533_v54 = vpack.c.bf16 %v1205_v52, %v1204_v48  ;;  %v2534_v55 = vpack.c.bf16 %v1207_v53, %v1206_v49  ;;  %v566_v56 = vpop.f32.mrb[60].mxu0  ;;  %v919_v57 = vpop.f32.mrb[60].mxu1 }
 0x152   :  { %v567_v58 = vadd.f32 %v566_v56, %v2867_v39  ;;  %v920_v59 = vadd.f32 %v919_v57, %v2869_v40  ;;  %v568_v60 = vpop.f32.mrb[61].mxu0  ;;  %v921_v61 = vpop.f32.mrb[61].mxu1 }
 0x153   :  { %2173 = vst [vmem:[%s3686_s3 + $0x1d0] sm:$0xff] %v2533_v54  ;;  %2174 = vst.msk [vmem:[%s3686_s3 + $0x1d8] sm:$0xff] %vm2889_vm3, %v2534_v55  ;;  %v569_v62 = vadd.f32 %v568_v60, %v2871_v41  ;;  %v922_v63 = vadd.f32 %v921_v61, %v2873_v42  ;;  %v570_v2 = vpop.f32.mrb[62].mxu0  ;;  %v923_v3 = vpop.f32.mrb[62].mxu1 }
 0x154   :  { %v1208_v4 = vmax.f32 %v567_v58, 0.0  ;;  %v1210_v5 = vmax.f32 %v920_v59, 0.0  ;;  %v571_v6 = vadd.f32 %v570_v2, %v2867_v39  ;;  %v924_v7 = vadd.f32 %v923_v3, %v2869_v40  ;;  %v572_v8 = vpop.f32.mrb[63].mxu0  ;;  %v925_v9 = vpop.f32.mrb[63].mxu1 }
 0x155   :  { %v1209_v10 = vmax.f32 %v569_v62, 0.0  ;;  %v1211_v11 = vmax.f32 %v922_v63, 0.0  ;;  %v573_v12 = vadd.f32 %v572_v8, %v2871_v41  ;;  %v926_v13 = vadd.f32 %v925_v9, %v2873_v42 }
 0x156   :  { %v1212_v14 = vmax.f32 %v571_v6, 0.0  ;;  %v1214_v15 = vmax.f32 %v924_v7, 0.0 }
 0x157   :  { %v2535_v16 = vpack.c.bf16 %v1209_v10, %v1208_v4  ;;  %v2536_v17 = vpack.c.bf16 %v1211_v11, %v1210_v5  ;;  %v1213_v18 = vmax.f32 %v573_v12, 0.0  ;;  %v1215_v19 = vmax.f32 %v926_v13, 0.0 }
 0x159   :  { %2175 = vst [vmem:[%s3686_s3 + $0x1e0] sm:$0xff] %v2535_v16  ;;  %2176 = vst.msk [vmem:[%s3686_s3 + $0x1e8] sm:$0xff] %vm2889_vm3, %v2536_v17  ;;  %v2537_v20 = vpack.c.bf16 %v1213_v18, %v1212_v14  ;;  %v2538_v21 = vpack.c.bf16 %v1215_v19, %v1214_v15  ;;  %v576_v22 = vpop.f32.mrb[64].mxu0  ;;  %v929_v23 = vpop.f32.mrb[64].mxu1 }
 0x15a   :  { %v577_v24 = vadd.f32 %v576_v22, %v2867_v39  ;;  %v930_v25 = vadd.f32 %v929_v23, %v2869_v40  ;;  %v578_v26 = vpop.f32.mrb[65].mxu0  ;;  %v931_v27 = vpop.f32.mrb[65].mxu1 }
 0x15b   :  { %2177 = vst [vmem:[%s3686_s3 + $0x1f0] sm:$0xff] %v2537_v20  ;;  %2178 = vst.msk [vmem:[%s3686_s3 + $0x1f8] sm:$0xff] %vm2889_vm3, %v2538_v21  ;;  %v579_v28 = vadd.f32 %v578_v26, %v2871_v41  ;;  %v932_v29 = vadd.f32 %v931_v27, %v2873_v42  ;;  %v580_v30 = vpop.f32.mrb[66].mxu0  ;;  %v933_v31 = vpop.f32.mrb[66].mxu1 }
 0x15c   :  { %v1216_v32 = vmax.f32 %v577_v24, 0.0  ;;  %v1218_v33 = vmax.f32 %v930_v25, 0.0  ;;  %v581_v34 = vadd.f32 %v580_v30, %v2867_v39  ;;  %v934_v35 = vadd.f32 %v933_v31, %v2869_v40  ;;  %v582_v36 = vpop.f32.mrb[67].mxu0  ;;  %v935_v37 = vpop.f32.mrb[67].mxu1 }
 0x15d   :  { %v1217_v38 = vmax.f32 %v579_v28, 0.0  ;;  %v1219_v43 = vmax.f32 %v932_v29, 0.0  ;;  %v583_v44 = vadd.f32 %v582_v36, %v2871_v41  ;;  %v936_v45 = vadd.f32 %v935_v37, %v2873_v42 }
 0x15e   :  { %v1220_v46 = vmax.f32 %v581_v34, 0.0  ;;  %v1222_v47 = vmax.f32 %v934_v35, 0.0 }
 0x15f   :  { %v2539_v1 = vpack.c.bf16 %v1217_v38, %v1216_v32  ;;  %v2540_v48 = vpack.c.bf16 %v1219_v43, %v1218_v33  ;;  %v1221_v49 = vmax.f32 %v583_v44, 0.0  ;;  %v1223_v50 = vmax.f32 %v936_v45, 0.0 }
 0x161   :  { %2179 = vst [vmem:[%s3686_s3 + $0x200] sm:$0xff] %v2539_v1  ;;  %2180 = vst.msk [vmem:[%s3686_s3 + $0x208] sm:$0xff] %vm2889_vm3, %v2540_v48  ;;  %v2541_v51 = vpack.c.bf16 %v1221_v49, %v1220_v46  ;;  %v2542_v52 = vpack.c.bf16 %v1223_v50, %v1222_v47  ;;  %v586_v53 = vpop.f32.mrb[68].mxu0  ;;  %v939_v54 = vpop.f32.mrb[68].mxu1 }
 0x162   :  { %v587_v55 = vadd.f32 %v586_v53, %v2867_v39  ;;  %v940_v56 = vadd.f32 %v939_v54, %v2869_v40  ;;  %v588_v57 = vpop.f32.mrb[69].mxu0  ;;  %v941_v58 = vpop.f32.mrb[69].mxu1 }
 0x163   :  { %2181 = vst [vmem:[%s3686_s3 + $0x210] sm:$0xff] %v2541_v51  ;;  %2182 = vst.msk [vmem:[%s3686_s3 + $0x218] sm:$0xff] %vm2889_vm3, %v2542_v52  ;;  %v589_v59 = vadd.f32 %v588_v57, %v2871_v41  ;;  %v942_v60 = vadd.f32 %v941_v58, %v2873_v42  ;;  %v590_v61 = vpop.f32.mrb[70].mxu0  ;;  %v943_v62 = vpop.f32.mrb[70].mxu1 }
 0x164   :  { %v1224_v63 = vmax.f32 %v587_v55, 0.0  ;;  %v1226_v2 = vmax.f32 %v940_v56, 0.0  ;;  %v591_v3 = vadd.f32 %v590_v61, %v2867_v39  ;;  %v944_v4 = vadd.f32 %v943_v62, %v2869_v40  ;;  %v592_v5 = vpop.f32.mrb[71].mxu0  ;;  %v945_v6 = vpop.f32.mrb[71].mxu1 }
 0x165   :  { %v1225_v7 = vmax.f32 %v589_v59, 0.0  ;;  %v1227_v8 = vmax.f32 %v942_v60, 0.0  ;;  %v593_v9 = vadd.f32 %v592_v5, %v2871_v41  ;;  %v946_v10 = vadd.f32 %v945_v6, %v2873_v42 }
 0x166   :  { %v1228_v11 = vmax.f32 %v591_v3, 0.0  ;;  %v1230_v12 = vmax.f32 %v944_v4, 0.0 }
 0x167   :  { %v2543_v13 = vpack.c.bf16 %v1225_v7, %v1224_v63  ;;  %v2544_v14 = vpack.c.bf16 %v1227_v8, %v1226_v2  ;;  %v1229_v15 = vmax.f32 %v593_v9, 0.0  ;;  %v1231_v16 = vmax.f32 %v946_v10, 0.0 }
 0x169   :  { %2183 = vst [vmem:[%s3686_s3 + $0x220] sm:$0xff] %v2543_v13  ;;  %2184 = vst.msk [vmem:[%s3686_s3 + $0x228] sm:$0xff] %vm2889_vm3, %v2544_v14  ;;  %v2545_v17 = vpack.c.bf16 %v1229_v15, %v1228_v11  ;;  %v2546_v18 = vpack.c.bf16 %v1231_v16, %v1230_v12  ;;  %v596_v19 = vpop.f32.mrb[72].mxu0  ;;  %v949_v20 = vpop.f32.mrb[72].mxu1 }
 0x16a   :  { %v597_v21 = vadd.f32 %v596_v19, %v2867_v39  ;;  %v950_v22 = vadd.f32 %v949_v20, %v2869_v40  ;;  %v598_v23 = vpop.f32.mrb[73].mxu0  ;;  %v951_v24 = vpop.f32.mrb[73].mxu1 }
 0x16b   :  { %2185 = vst [vmem:[%s3686_s3 + $0x230] sm:$0xff] %v2545_v17  ;;  %2186 = vst.msk [vmem:[%s3686_s3 + $0x238] sm:$0xff] %vm2889_vm3, %v2546_v18  ;;  %v599_v25 = vadd.f32 %v598_v23, %v2871_v41  ;;  %v952_v26 = vadd.f32 %v951_v24, %v2873_v42  ;;  %v600_v27 = vpop.f32.mrb[74].mxu0  ;;  %v953_v28 = vpop.f32.mrb[74].mxu1 }
 0x16c   :  { %v1232_v29 = vmax.f32 %v597_v21, 0.0  ;;  %v1234_v30 = vmax.f32 %v950_v22, 0.0  ;;  %v601_v31 = vadd.f32 %v600_v27, %v2867_v39  ;;  %v954_v32 = vadd.f32 %v953_v28, %v2869_v40  ;;  %v602_v33 = vpop.f32.mrb[75].mxu0  ;;  %v955_v34 = vpop.f32.mrb[75].mxu1 }
 0x16d   :  { %v1233_v35 = vmax.f32 %v599_v25, 0.0  ;;  %v1235_v36 = vmax.f32 %v952_v26, 0.0  ;;  %v603_v37 = vadd.f32 %v602_v33, %v2871_v41  ;;  %v956_v38 = vadd.f32 %v955_v34, %v2873_v42 }
 0x16e   :  { %v1236_v43 = vmax.f32 %v601_v31, 0.0  ;;  %v1238_v44 = vmax.f32 %v954_v32, 0.0 }
 0x16f   :  { %v2547_v45 = vpack.c.bf16 %v1233_v35, %v1232_v29  ;;  %v2548_v46 = vpack.c.bf16 %v1235_v36, %v1234_v30  ;;  %v1237_v47 = vmax.f32 %v603_v37, 0.0  ;;  %v1239_v1 = vmax.f32 %v956_v38, 0.0 }
 0x171   :  { %2187 = vst [vmem:[%s3686_s3 + $0x240] sm:$0xff] %v2547_v45  ;;  %2188 = vst.msk [vmem:[%s3686_s3 + $0x248] sm:$0xff] %vm2889_vm3, %v2548_v46  ;;  %v2549_v48 = vpack.c.bf16 %v1237_v47, %v1236_v43  ;;  %v2550_v49 = vpack.c.bf16 %v1239_v1, %v1238_v44  ;;  %v606_v50 = vpop.f32.mrb[76].mxu0  ;;  %v959_v51 = vpop.f32.mrb[76].mxu1 }
 0x172   :  { %v607_v52 = vadd.f32 %v606_v50, %v2867_v39  ;;  %v960_v53 = vadd.f32 %v959_v51, %v2869_v40  ;;  %v608_v54 = vpop.f32.mrb[77].mxu0  ;;  %v961_v55 = vpop.f32.mrb[77].mxu1 }
 0x173   :  { %2189 = vst [vmem:[%s3686_s3 + $0x250] sm:$0xff] %v2549_v48  ;;  %2190 = vst.msk [vmem:[%s3686_s3 + $0x258] sm:$0xff] %vm2889_vm3, %v2550_v49  ;;  %v609_v56 = vadd.f32 %v608_v54, %v2871_v41  ;;  %v962_v57 = vadd.f32 %v961_v55, %v2873_v42  ;;  %v610_v58 = vpop.f32.mrb[78].mxu0  ;;  %v963_v59 = vpop.f32.mrb[78].mxu1 }
 0x174   :  { %v1240_v60 = vmax.f32 %v607_v52, 0.0  ;;  %v1242_v61 = vmax.f32 %v960_v53, 0.0  ;;  %v611_v62 = vadd.f32 %v610_v58, %v2867_v39  ;;  %v964_v63 = vadd.f32 %v963_v59, %v2869_v40  ;;  %v612_v2 = vpop.f32.mrb[79].mxu0  ;;  %v965_v3 = vpop.f32.mrb[79].mxu1 }
 0x175   :  { %v1241_v4 = vmax.f32 %v609_v56, 0.0  ;;  %v1243_v5 = vmax.f32 %v962_v57, 0.0  ;;  %v613_v6 = vadd.f32 %v612_v2, %v2871_v41  ;;  %v966_v7 = vadd.f32 %v965_v3, %v2873_v42 }
 0x176   :  { %v1244_v8 = vmax.f32 %v611_v62, 0.0  ;;  %v1246_v9 = vmax.f32 %v964_v63, 0.0 }
 0x177   :  { %v2551_v10 = vpack.c.bf16 %v1241_v4, %v1240_v60  ;;  %v2552_v11 = vpack.c.bf16 %v1243_v5, %v1242_v61  ;;  %v1245_v12 = vmax.f32 %v613_v6, 0.0  ;;  %v1247_v13 = vmax.f32 %v966_v7, 0.0 }
 0x179   :  { %2191 = vst [vmem:[%s3686_s3 + $0x260] sm:$0xff] %v2551_v10  ;;  %2192 = vst.msk [vmem:[%s3686_s3 + $0x268] sm:$0xff] %vm2889_vm3, %v2552_v11  ;;  %v2553_v14 = vpack.c.bf16 %v1245_v12, %v1244_v8  ;;  %v2554_v15 = vpack.c.bf16 %v1247_v13, %v1246_v9  ;;  %v616_v16 = vpop.f32.mrb[80].mxu0  ;;  %v969_v17 = vpop.f32.mrb[80].mxu1 }
 0x17a   :  { %v617_v18 = vadd.f32 %v616_v16, %v2867_v39  ;;  %v970_v19 = vadd.f32 %v969_v17, %v2869_v40  ;;  %v618_v20 = vpop.f32.mrb[81].mxu0  ;;  %v971_v21 = vpop.f32.mrb[81].mxu1 }
 0x17b   :  { %2193 = vst [vmem:[%s3686_s3 + $0x270] sm:$0xff] %v2553_v14  ;;  %2194 = vst.msk [vmem:[%s3686_s3 + $0x278] sm:$0xff] %vm2889_vm3, %v2554_v15  ;;  %v619_v22 = vadd.f32 %v618_v20, %v2871_v41  ;;  %v972_v23 = vadd.f32 %v971_v21, %v2873_v42  ;;  %v620_v24 = vpop.f32.mrb[82].mxu0  ;;  %v973_v25 = vpop.f32.mrb[82].mxu1 }
 0x17c   :  { %v1248_v26 = vmax.f32 %v617_v18, 0.0  ;;  %v1250_v27 = vmax.f32 %v970_v19, 0.0  ;;  %v621_v28 = vadd.f32 %v620_v24, %v2867_v39  ;;  %v974_v29 = vadd.f32 %v973_v25, %v2869_v40  ;;  %v622_v30 = vpop.f32.mrb[83].mxu0  ;;  %v975_v31 = vpop.f32.mrb[83].mxu1 }
 0x17d   :  { %v1249_v32 = vmax.f32 %v619_v22, 0.0  ;;  %v1251_v33 = vmax.f32 %v972_v23, 0.0  ;;  %v623_v34 = vadd.f32 %v622_v30, %v2871_v41  ;;  %v976_v35 = vadd.f32 %v975_v31, %v2873_v42 }
 0x17e   :  { %v1252_v36 = vmax.f32 %v621_v28, 0.0  ;;  %v1254_v37 = vmax.f32 %v974_v29, 0.0 }
 0x17f   :  { %v2555_v38 = vpack.c.bf16 %v1249_v32, %v1248_v26  ;;  %v2556_v43 = vpack.c.bf16 %v1251_v33, %v1250_v27  ;;  %v1253_v44 = vmax.f32 %v623_v34, 0.0  ;;  %v1255_v45 = vmax.f32 %v976_v35, 0.0 }
 0x181   :  { %2195 = vst [vmem:[%s3686_s3 + $0x280] sm:$0xff] %v2555_v38  ;;  %2196 = vst.msk [vmem:[%s3686_s3 + $0x288] sm:$0xff] %vm2889_vm3, %v2556_v43  ;;  %v2557_v46 = vpack.c.bf16 %v1253_v44, %v1252_v36  ;;  %v2558_v47 = vpack.c.bf16 %v1255_v45, %v1254_v37  ;;  %v626_v1 = vpop.f32.mrb[84].mxu0  ;;  %v979_v48 = vpop.f32.mrb[84].mxu1 }
 0x182   :  { %v627_v49 = vadd.f32 %v626_v1, %v2867_v39  ;;  %v980_v50 = vadd.f32 %v979_v48, %v2869_v40  ;;  %v628_v51 = vpop.f32.mrb[85].mxu0  ;;  %v981_v52 = vpop.f32.mrb[85].mxu1 }
 0x183   :  { %2197 = vst [vmem:[%s3686_s3 + $0x290] sm:$0xff] %v2557_v46  ;;  %2198 = vst.msk [vmem:[%s3686_s3 + $0x298] sm:$0xff] %vm2889_vm3, %v2558_v47  ;;  %v629_v53 = vadd.f32 %v628_v51, %v2871_v41  ;;  %v982_v54 = vadd.f32 %v981_v52, %v2873_v42  ;;  %v630_v55 = vpop.f32.mrb[86].mxu0  ;;  %v983_v56 = vpop.f32.mrb[86].mxu1 }
 0x184   :  { %v1256_v57 = vmax.f32 %v627_v49, 0.0  ;;  %v1258_v58 = vmax.f32 %v980_v50, 0.0  ;;  %v631_v59 = vadd.f32 %v630_v55, %v2867_v39  ;;  %v984_v60 = vadd.f32 %v983_v56, %v2869_v40  ;;  %v632_v61 = vpop.f32.mrb[87].mxu0  ;;  %v985_v62 = vpop.f32.mrb[87].mxu1 }
 0x185   :  { %v1257_v63 = vmax.f32 %v629_v53, 0.0  ;;  %v1259_v2 = vmax.f32 %v982_v54, 0.0  ;;  %v633_v3 = vadd.f32 %v632_v61, %v2871_v41  ;;  %v986_v4 = vadd.f32 %v985_v62, %v2873_v42 }
 0x186   :  { %v1260_v5 = vmax.f32 %v631_v59, 0.0  ;;  %v1262_v6 = vmax.f32 %v984_v60, 0.0 }
 0x187   :  { %v2559_v7 = vpack.c.bf16 %v1257_v63, %v1256_v57  ;;  %v2560_v8 = vpack.c.bf16 %v1259_v2, %v1258_v58  ;;  %v1261_v9 = vmax.f32 %v633_v3, 0.0  ;;  %v1263_v10 = vmax.f32 %v986_v4, 0.0 }
 0x189   :  { %2199 = vst [vmem:[%s3686_s3 + $0x2a0] sm:$0xff] %v2559_v7  ;;  %2200 = vst.msk [vmem:[%s3686_s3 + $0x2a8] sm:$0xff] %vm2889_vm3, %v2560_v8  ;;  %v2561_v11 = vpack.c.bf16 %v1261_v9, %v1260_v5  ;;  %v2562_v12 = vpack.c.bf16 %v1263_v10, %v1262_v6  ;;  %v636_v13 = vpop.f32.mrb[88].mxu0  ;;  %v989_v14 = vpop.f32.mrb[88].mxu1 }
 0x18a   :  { %v637_v15 = vadd.f32 %v636_v13, %v2867_v39  ;;  %v990_v16 = vadd.f32 %v989_v14, %v2869_v40  ;;  %v638_v17 = vpop.f32.mrb[89].mxu0  ;;  %v991_v18 = vpop.f32.mrb[89].mxu1 }
 0x18b   :  { %2201 = vst [vmem:[%s3686_s3 + $0x2b0] sm:$0xff] %v2561_v11  ;;  %2202 = vst.msk [vmem:[%s3686_s3 + $0x2b8] sm:$0xff] %vm2889_vm3, %v2562_v12  ;;  %v639_v19 = vadd.f32 %v638_v17, %v2871_v41  ;;  %v992_v20 = vadd.f32 %v991_v18, %v2873_v42  ;;  %v640_v21 = vpop.f32.mrb[90].mxu0  ;;  %v993_v22 = vpop.f32.mrb[90].mxu1 }
 0x18c   :  { %v1264_v23 = vmax.f32 %v637_v15, 0.0  ;;  %v1266_v24 = vmax.f32 %v990_v16, 0.0  ;;  %v641_v25 = vadd.f32 %v640_v21, %v2867_v39  ;;  %v994_v26 = vadd.f32 %v993_v22, %v2869_v40  ;;  %v642_v27 = vpop.f32.mrb[91].mxu0  ;;  %v995_v28 = vpop.f32.mrb[91].mxu1 }
 0x18d   :  { %v1265_v29 = vmax.f32 %v639_v19, 0.0  ;;  %v1267_v30 = vmax.f32 %v992_v20, 0.0  ;;  %v643_v31 = vadd.f32 %v642_v27, %v2871_v41  ;;  %v996_v32 = vadd.f32 %v995_v28, %v2873_v42 }
 0x18e   :  { %v1268_v33 = vmax.f32 %v641_v25, 0.0  ;;  %v1270_v34 = vmax.f32 %v994_v26, 0.0 }
 0x18f   :  { %v2563_v35 = vpack.c.bf16 %v1265_v29, %v1264_v23  ;;  %v2564_v36 = vpack.c.bf16 %v1267_v30, %v1266_v24  ;;  %v1269_v37 = vmax.f32 %v643_v31, 0.0  ;;  %v1271_v38 = vmax.f32 %v996_v32, 0.0 }
 0x191   :  { %2203 = vst [vmem:[%s3686_s3 + $0x2c0] sm:$0xff] %v2563_v35  ;;  %2204 = vst.msk [vmem:[%s3686_s3 + $0x2c8] sm:$0xff] %vm2889_vm3, %v2564_v36  ;;  %v2565_v43 = vpack.c.bf16 %v1269_v37, %v1268_v33  ;;  %v2566_v44 = vpack.c.bf16 %v1271_v38, %v1270_v34  ;;  %v646_v45 = vpop.f32.mrb[92].mxu0  ;;  %v999_v46 = vpop.f32.mrb[92].mxu1 }
 0x192   :  { %v647_v47 = vadd.f32 %v646_v45, %v2867_v39  ;;  %v1000_v1 = vadd.f32 %v999_v46, %v2869_v40  ;;  %v648_v48 = vpop.f32.mrb[93].mxu0  ;;  %v1001_v49 = vpop.f32.mrb[93].mxu1 }
 0x193   :  { %2205 = vst [vmem:[%s3686_s3 + $0x2d0] sm:$0xff] %v2565_v43  ;;  %2206 = vst.msk [vmem:[%s3686_s3 + $0x2d8] sm:$0xff] %vm2889_vm3, %v2566_v44  ;;  %v649_v50 = vadd.f32 %v648_v48, %v2871_v41  ;;  %v1002_v51 = vadd.f32 %v1001_v49, %v2873_v42  ;;  %v650_v52 = vpop.f32.mrb[94].mxu0  ;;  %v1003_v53 = vpop.f32.mrb[94].mxu1 }
 0x194   :  { %v1272_v54 = vmax.f32 %v647_v47, 0.0  ;;  %v1274_v55 = vmax.f32 %v1000_v1, 0.0  ;;  %v651_v56 = vadd.f32 %v650_v52, %v2867_v39  ;;  %v1004_v57 = vadd.f32 %v1003_v53, %v2869_v40  ;;  %v652_v58 = vpop.f32.mrb[95].mxu0  ;;  %v1005_v59 = vpop.f32.mrb[95].mxu1 }
 0x195   :  { %v1273_v60 = vmax.f32 %v649_v50, 0.0  ;;  %v1275_v61 = vmax.f32 %v1002_v51, 0.0  ;;  %v653_v62 = vadd.f32 %v652_v58, %v2871_v41  ;;  %v1006_v63 = vadd.f32 %v1005_v59, %v2873_v42 }
 0x196   :  { %v1276_v2 = vmax.f32 %v651_v56, 0.0  ;;  %v1278_v3 = vmax.f32 %v1004_v57, 0.0 }
 0x197   :  { %v2567_v4 = vpack.c.bf16 %v1273_v60, %v1272_v54  ;;  %v2568_v5 = vpack.c.bf16 %v1275_v61, %v1274_v55  ;;  %v1277_v6 = vmax.f32 %v653_v62, 0.0  ;;  %v1279_v7 = vmax.f32 %v1006_v63, 0.0 }
 0x199   :  { %2207 = vst [vmem:[%s3686_s3 + $0x2e0] sm:$0xff] %v2567_v4  ;;  %2208 = vst.msk [vmem:[%s3686_s3 + $0x2e8] sm:$0xff] %vm2889_vm3, %v2568_v5  ;;  %v2569_v8 = vpack.c.bf16 %v1277_v6, %v1276_v2  ;;  %v2570_v9 = vpack.c.bf16 %v1279_v7, %v1278_v3  ;;  %v656_v10 = vpop.f32.mrb[96].mxu0  ;;  %v1009_v11 = vpop.f32.mrb[96].mxu1 }
 0x19a   :  { %v657_v12 = vadd.f32 %v656_v10, %v2867_v39  ;;  %v1010_v13 = vadd.f32 %v1009_v11, %v2869_v40  ;;  %v658_v14 = vpop.f32.mrb[97].mxu0  ;;  %v1011_v15 = vpop.f32.mrb[97].mxu1 }
 0x19b   :  { %2209 = vst [vmem:[%s3686_s3 + $0x2f0] sm:$0xff] %v2569_v8  ;;  %2210 = vst.msk [vmem:[%s3686_s3 + $0x2f8] sm:$0xff] %vm2889_vm3, %v2570_v9  ;;  %v659_v16 = vadd.f32 %v658_v14, %v2871_v41  ;;  %v1012_v17 = vadd.f32 %v1011_v15, %v2873_v42  ;;  %v660_v18 = vpop.f32.mrb[98].mxu0  ;;  %v1013_v19 = vpop.f32.mrb[98].mxu1 }
 0x19c   :  { %v1280_v20 = vmax.f32 %v657_v12, 0.0  ;;  %v1282_v21 = vmax.f32 %v1010_v13, 0.0  ;;  %v661_v22 = vadd.f32 %v660_v18, %v2867_v39  ;;  %v1014_v23 = vadd.f32 %v1013_v19, %v2869_v40  ;;  %v662_v24 = vpop.f32.mrb[99].mxu0  ;;  %v1015_v25 = vpop.f32.mrb[99].mxu1 }
 0x19d   :  { %v1281_v26 = vmax.f32 %v659_v16, 0.0  ;;  %v1283_v27 = vmax.f32 %v1012_v17, 0.0  ;;  %v663_v28 = vadd.f32 %v662_v24, %v2871_v41  ;;  %v1016_v29 = vadd.f32 %v1015_v25, %v2873_v42 }
 0x19e   :  { %v1284_v30 = vmax.f32 %v661_v22, 0.0  ;;  %v1286_v31 = vmax.f32 %v1014_v23, 0.0 }
 0x19f   :  { %v2571_v32 = vpack.c.bf16 %v1281_v26, %v1280_v20  ;;  %v2572_v33 = vpack.c.bf16 %v1283_v27, %v1282_v21  ;;  %v1285_v34 = vmax.f32 %v663_v28, 0.0  ;;  %v1287_v35 = vmax.f32 %v1016_v29, 0.0 }
 0x1a1   :  { %2211 = vst [vmem:[%s3686_s3 + $0x300] sm:$0xff] %v2571_v32  ;;  %2212 = vst.msk [vmem:[%s3686_s3 + $0x308] sm:$0xff] %vm2889_vm3, %v2572_v33  ;;  %v2573_v36 = vpack.c.bf16 %v1285_v34, %v1284_v30  ;;  %v2574_v37 = vpack.c.bf16 %v1287_v35, %v1286_v31  ;;  %v666_v38 = vpop.f32.mrb[100].mxu0  ;;  %v1019_v43 = vpop.f32.mrb[100].mxu1 }
 0x1a2   :  { %v667_v44 = vadd.f32 %v666_v38, %v2867_v39  ;;  %v1020_v45 = vadd.f32 %v1019_v43, %v2869_v40  ;;  %v668_v46 = vpop.f32.mrb[101].mxu0  ;;  %v1021_v47 = vpop.f32.mrb[101].mxu1 }
 0x1a3   :  { %2213 = vst [vmem:[%s3686_s3 + $0x310] sm:$0xff] %v2573_v36  ;;  %2214 = vst.msk [vmem:[%s3686_s3 + $0x318] sm:$0xff] %vm2889_vm3, %v2574_v37  ;;  %v669_v1 = vadd.f32 %v668_v46, %v2871_v41  ;;  %v1022_v48 = vadd.f32 %v1021_v47, %v2873_v42  ;;  %v670_v49 = vpop.f32.mrb[102].mxu0  ;;  %v1023_v50 = vpop.f32.mrb[102].mxu1 }
 0x1a4   :  { %v1288_v51 = vmax.f32 %v667_v44, 0.0  ;;  %v1290_v52 = vmax.f32 %v1020_v45, 0.0  ;;  %v671_v53 = vadd.f32 %v670_v49, %v2867_v39  ;;  %v1024_v54 = vadd.f32 %v1023_v50, %v2869_v40  ;;  %v672_v55 = vpop.f32.mrb[103].mxu0  ;;  %v1025_v56 = vpop.f32.mrb[103].mxu1 }
 0x1a5   :  { %v1289_v57 = vmax.f32 %v669_v1, 0.0  ;;  %v1291_v58 = vmax.f32 %v1022_v48, 0.0  ;;  %v673_v59 = vadd.f32 %v672_v55, %v2871_v41  ;;  %v1026_v60 = vadd.f32 %v1025_v56, %v2873_v42 }
 0x1a6   :  { %v1292_v61 = vmax.f32 %v671_v53, 0.0  ;;  %v1294_v62 = vmax.f32 %v1024_v54, 0.0 }
 0x1a7   :  { %v2575_v63 = vpack.c.bf16 %v1289_v57, %v1288_v51  ;;  %v2576_v2 = vpack.c.bf16 %v1291_v58, %v1290_v52  ;;  %v1293_v3 = vmax.f32 %v673_v59, 0.0  ;;  %v1295_v4 = vmax.f32 %v1026_v60, 0.0 }
 0x1a9   :  { %2215 = vst [vmem:[%s3686_s3 + $0x320] sm:$0xff] %v2575_v63  ;;  %2216 = vst.msk [vmem:[%s3686_s3 + $0x328] sm:$0xff] %vm2889_vm3, %v2576_v2  ;;  %v2577_v5 = vpack.c.bf16 %v1293_v3, %v1292_v61  ;;  %v2578_v6 = vpack.c.bf16 %v1295_v4, %v1294_v62  ;;  %v676_v7 = vpop.f32.mrb[104].mxu0  ;;  %v1029_v8 = vpop.f32.mrb[104].mxu1 }
 0x1aa   :  { %v677_v9 = vadd.f32 %v676_v7, %v2867_v39  ;;  %v1030_v10 = vadd.f32 %v1029_v8, %v2869_v40  ;;  %v678_v11 = vpop.f32.mrb[105].mxu0  ;;  %v1031_v12 = vpop.f32.mrb[105].mxu1 }
 0x1ab   :  { %2217 = vst [vmem:[%s3686_s3 + $0x330] sm:$0xff] %v2577_v5  ;;  %2218 = vst.msk [vmem:[%s3686_s3 + $0x338] sm:$0xff] %vm2889_vm3, %v2578_v6  ;;  %v679_v13 = vadd.f32 %v678_v11, %v2871_v41  ;;  %v1032_v14 = vadd.f32 %v1031_v12, %v2873_v42  ;;  %v680_v15 = vpop.f32.mrb[106].mxu0  ;;  %v1033_v16 = vpop.f32.mrb[106].mxu1 }
 0x1ac   :  { %v1296_v17 = vmax.f32 %v677_v9, 0.0  ;;  %v1298_v18 = vmax.f32 %v1030_v10, 0.0  ;;  %v681_v19 = vadd.f32 %v680_v15, %v2867_v39  ;;  %v1034_v20 = vadd.f32 %v1033_v16, %v2869_v40  ;;  %v682_v21 = vpop.f32.mrb[107].mxu0  ;;  %v1035_v22 = vpop.f32.mrb[107].mxu1 }
 0x1ad   :  { %v1297_v23 = vmax.f32 %v679_v13, 0.0  ;;  %v1299_v24 = vmax.f32 %v1032_v14, 0.0  ;;  %v683_v25 = vadd.f32 %v682_v21, %v2871_v41  ;;  %v1036_v26 = vadd.f32 %v1035_v22, %v2873_v42 }
 0x1ae   :  { %v1300_v27 = vmax.f32 %v681_v19, 0.0  ;;  %v1302_v28 = vmax.f32 %v1034_v20, 0.0 }
 0x1af   :  { %v2579_v29 = vpack.c.bf16 %v1297_v23, %v1296_v17  ;;  %v2580_v30 = vpack.c.bf16 %v1299_v24, %v1298_v18  ;;  %v1301_v31 = vmax.f32 %v683_v25, 0.0  ;;  %v1303_v32 = vmax.f32 %v1036_v26, 0.0 }
 0x1b1   :  { %2219 = vst [vmem:[%s3686_s3 + $0x340] sm:$0xff] %v2579_v29  ;;  %2220 = vst.msk [vmem:[%s3686_s3 + $0x348] sm:$0xff] %vm2889_vm3, %v2580_v30  ;;  %v2581_v33 = vpack.c.bf16 %v1301_v31, %v1300_v27  ;;  %v2582_v34 = vpack.c.bf16 %v1303_v32, %v1302_v28  ;;  %v686_v35 = vpop.f32.mrb[108].mxu0  ;;  %v1039_v36 = vpop.f32.mrb[108].mxu1 }
 0x1b2   :  { %v687_v37 = vadd.f32 %v686_v35, %v2867_v39  ;;  %v1040_v38 = vadd.f32 %v1039_v36, %v2869_v40  ;;  %v688_v43 = vpop.f32.mrb[109].mxu0  ;;  %v1041_v44 = vpop.f32.mrb[109].mxu1 }
 0x1b3   :  { %2221 = vst [vmem:[%s3686_s3 + $0x350] sm:$0xff] %v2581_v33  ;;  %2222 = vst.msk [vmem:[%s3686_s3 + $0x358] sm:$0xff] %vm2889_vm3, %v2582_v34  ;;  %v689_v45 = vadd.f32 %v688_v43, %v2871_v41  ;;  %v1042_v46 = vadd.f32 %v1041_v44, %v2873_v42  ;;  %v690_v47 = vpop.f32.mrb[110].mxu0  ;;  %v1043_v1 = vpop.f32.mrb[110].mxu1 }
 0x1b4   :  { %v1304_v48 = vmax.f32 %v687_v37, 0.0  ;;  %v1306_v49 = vmax.f32 %v1040_v38, 0.0  ;;  %v691_v50 = vadd.f32 %v690_v47, %v2867_v39  ;;  %v1044_v51 = vadd.f32 %v1043_v1, %v2869_v40  ;;  %v692_v52 = vpop.f32.mrb[111].mxu0  ;;  %v1045_v53 = vpop.f32.mrb[111].mxu1 }
 0x1b5   :  { %v1305_v54 = vmax.f32 %v689_v45, 0.0  ;;  %v1307_v55 = vmax.f32 %v1042_v46, 0.0  ;;  %v693_v56 = vadd.f32 %v692_v52, %v2871_v41  ;;  %v1046_v57 = vadd.f32 %v1045_v53, %v2873_v42 }
 0x1b6   :  { %v1308_v58 = vmax.f32 %v691_v50, 0.0  ;;  %v1310_v59 = vmax.f32 %v1044_v51, 0.0 }
 0x1b7   :  { %v2583_v60 = vpack.c.bf16 %v1305_v54, %v1304_v48  ;;  %v2584_v61 = vpack.c.bf16 %v1307_v55, %v1306_v49  ;;  %v1309_v62 = vmax.f32 %v693_v56, 0.0  ;;  %v1311_v63 = vmax.f32 %v1046_v57, 0.0 }
 0x1b9   :  { %2223 = vst [vmem:[%s3686_s3 + $0x360] sm:$0xff] %v2583_v60  ;;  %2224 = vst.msk [vmem:[%s3686_s3 + $0x368] sm:$0xff] %vm2889_vm3, %v2584_v61  ;;  %v2585_v2 = vpack.c.bf16 %v1309_v62, %v1308_v58  ;;  %v2586_v3 = vpack.c.bf16 %v1311_v63, %v1310_v59  ;;  %v696_v4 = vpop.f32.mrb[112].mxu0  ;;  %v1049_v5 = vpop.f32.mrb[112].mxu1 }
 0x1ba   :  { %v697_v6 = vadd.f32 %v696_v4, %v2867_v39  ;;  %v1050_v7 = vadd.f32 %v1049_v5, %v2869_v40  ;;  %v698_v8 = vpop.f32.mrb[113].mxu0  ;;  %v1051_v9 = vpop.f32.mrb[113].mxu1 }
 0x1bb   :  { %2225 = vst [vmem:[%s3686_s3 + $0x370] sm:$0xff] %v2585_v2  ;;  %2226 = vst.msk [vmem:[%s3686_s3 + $0x378] sm:$0xff] %vm2889_vm3, %v2586_v3  ;;  %v699_v10 = vadd.f32 %v698_v8, %v2871_v41  ;;  %v1052_v11 = vadd.f32 %v1051_v9, %v2873_v42  ;;  %v700_v12 = vpop.f32.mrb[114].mxu0  ;;  %v1053_v13 = vpop.f32.mrb[114].mxu1 }
 0x1bc   :  { %v1312_v14 = vmax.f32 %v697_v6, 0.0  ;;  %v1314_v15 = vmax.f32 %v1050_v7, 0.0  ;;  %v701_v16 = vadd.f32 %v700_v12, %v2867_v39  ;;  %v1054_v17 = vadd.f32 %v1053_v13, %v2869_v40  ;;  %v702_v18 = vpop.f32.mrb[115].mxu0  ;;  %v1055_v19 = vpop.f32.mrb[115].mxu1 }
 0x1bd   :  { %v1313_v20 = vmax.f32 %v699_v10, 0.0  ;;  %v1315_v21 = vmax.f32 %v1052_v11, 0.0  ;;  %v703_v22 = vadd.f32 %v702_v18, %v2871_v41  ;;  %v1056_v23 = vadd.f32 %v1055_v19, %v2873_v42 }
 0x1be   :  { %v1316_v24 = vmax.f32 %v701_v16, 0.0  ;;  %v1318_v25 = vmax.f32 %v1054_v17, 0.0 }
 0x1bf   :  { %v2587_v26 = vpack.c.bf16 %v1313_v20, %v1312_v14  ;;  %v2588_v27 = vpack.c.bf16 %v1315_v21, %v1314_v15  ;;  %v1317_v28 = vmax.f32 %v703_v22, 0.0  ;;  %v1319_v29 = vmax.f32 %v1056_v23, 0.0 }
 0x1c1   :  { %2227 = vst [vmem:[%s3686_s3 + $0x380] sm:$0xff] %v2587_v26  ;;  %2228 = vst.msk [vmem:[%s3686_s3 + $0x388] sm:$0xff] %vm2889_vm3, %v2588_v27  ;;  %v2589_v30 = vpack.c.bf16 %v1317_v28, %v1316_v24  ;;  %v2590_v31 = vpack.c.bf16 %v1319_v29, %v1318_v25  ;;  %v706_v32 = vpop.f32.mrb[116].mxu0  ;;  %v1059_v33 = vpop.f32.mrb[116].mxu1 }
 0x1c2   :  { %v707_v34 = vadd.f32 %v706_v32, %v2867_v39  ;;  %v1060_v35 = vadd.f32 %v1059_v33, %v2869_v40  ;;  %v708_v36 = vpop.f32.mrb[117].mxu0  ;;  %v1061_v37 = vpop.f32.mrb[117].mxu1 }
 0x1c3   :  { %2229 = vst [vmem:[%s3686_s3 + $0x390] sm:$0xff] %v2589_v30  ;;  %2230 = vst.msk [vmem:[%s3686_s3 + $0x398] sm:$0xff] %vm2889_vm3, %v2590_v31  ;;  %v709_v38 = vadd.f32 %v708_v36, %v2871_v41  ;;  %v1062_v43 = vadd.f32 %v1061_v37, %v2873_v42  ;;  %v710_v44 = vpop.f32.mrb[118].mxu0  ;;  %v1063_v45 = vpop.f32.mrb[118].mxu1 }
 0x1c4   :  { %v1320_v46 = vmax.f32 %v707_v34, 0.0  ;;  %v1322_v47 = vmax.f32 %v1060_v35, 0.0  ;;  %v711_v1 = vadd.f32 %v710_v44, %v2867_v39  ;;  %v1064_v48 = vadd.f32 %v1063_v45, %v2869_v40  ;;  %v712_v49 = vpop.f32.mrb[119].mxu0  ;;  %v1065_v50 = vpop.f32.mrb[119].mxu1 }
 0x1c5   :  { %v1321_v51 = vmax.f32 %v709_v38, 0.0  ;;  %v1323_v52 = vmax.f32 %v1062_v43, 0.0  ;;  %v713_v53 = vadd.f32 %v712_v49, %v2871_v41  ;;  %v1066_v54 = vadd.f32 %v1065_v50, %v2873_v42 }
 0x1c6   :  { %v1324_v55 = vmax.f32 %v711_v1, 0.0  ;;  %v1326_v56 = vmax.f32 %v1064_v48, 0.0 }
 0x1c7   :  { %v2591_v57 = vpack.c.bf16 %v1321_v51, %v1320_v46  ;;  %v2592_v58 = vpack.c.bf16 %v1323_v52, %v1322_v47  ;;  %v1325_v59 = vmax.f32 %v713_v53, 0.0  ;;  %v1327_v60 = vmax.f32 %v1066_v54, 0.0 }
 0x1c9   :  { %2231 = vst [vmem:[%s3686_s3 + $0x3a0] sm:$0xff] %v2591_v57  ;;  %2232 = vst.msk [vmem:[%s3686_s3 + $0x3a8] sm:$0xff] %vm2889_vm3, %v2592_v58  ;;  %v2593_v61 = vpack.c.bf16 %v1325_v59, %v1324_v55  ;;  %v2594_v62 = vpack.c.bf16 %v1327_v60, %v1326_v56  ;;  %v716_v63 = vpop.f32.mrb[120].mxu0  ;;  %v1069_v2 = vpop.f32.mrb[120].mxu1 }
 0x1ca   :  { %v717_v3 = vadd.f32 %v716_v63, %v2867_v39  ;;  %v1070_v4 = vadd.f32 %v1069_v2, %v2869_v40  ;;  %v718_v5 = vpop.f32.mrb[121].mxu0  ;;  %v1071_v6 = vpop.f32.mrb[121].mxu1 }
 0x1cb   :  { %2233 = vst [vmem:[%s3686_s3 + $0x3b0] sm:$0xff] %v2593_v61  ;;  %2234 = vst.msk [vmem:[%s3686_s3 + $0x3b8] sm:$0xff] %vm2889_vm3, %v2594_v62  ;;  %v719_v7 = vadd.f32 %v718_v5, %v2871_v41  ;;  %v1072_v8 = vadd.f32 %v1071_v6, %v2873_v42  ;;  %v720_v9 = vpop.f32.mrb[122].mxu0  ;;  %v1073_v10 = vpop.f32.mrb[122].mxu1 }
 0x1cc   :  { %v1328_v11 = vmax.f32 %v717_v3, 0.0  ;;  %v1330_v12 = vmax.f32 %v1070_v4, 0.0  ;;  %v721_v13 = vadd.f32 %v720_v9, %v2867_v39  ;;  %v1074_v14 = vadd.f32 %v1073_v10, %v2869_v40  ;;  %v722_v15 = vpop.f32.mrb[123].mxu0  ;;  %v1075_v16 = vpop.f32.mrb[123].mxu1 }
 0x1cd   :  { %v1329_v17 = vmax.f32 %v719_v7, 0.0  ;;  %v1331_v18 = vmax.f32 %v1072_v8, 0.0  ;;  %v723_v19 = vadd.f32 %v722_v15, %v2871_v41  ;;  %v1076_v20 = vadd.f32 %v1075_v16, %v2873_v42 }
 0x1ce   :  { %v1332_v21 = vmax.f32 %v721_v13, 0.0  ;;  %v1334_v22 = vmax.f32 %v1074_v14, 0.0 }
 0x1cf   :  { %v2595_v23 = vpack.c.bf16 %v1329_v17, %v1328_v11  ;;  %v2596_v24 = vpack.c.bf16 %v1331_v18, %v1330_v12  ;;  %v1333_v25 = vmax.f32 %v723_v19, 0.0  ;;  %v1335_v26 = vmax.f32 %v1076_v20, 0.0 }
 0x1d1   :  { %2235 = vst [vmem:[%s3686_s3 + $0x3c0] sm:$0xff] %v2595_v23  ;;  %2236 = vst.msk [vmem:[%s3686_s3 + $0x3c8] sm:$0xff] %vm2889_vm3, %v2596_v24  ;;  %v2597_v27 = vpack.c.bf16 %v1333_v25, %v1332_v21  ;;  %v2598_v28 = vpack.c.bf16 %v1335_v26, %v1334_v22  ;;  %v726_v29 = vpop.f32.mrb[124].mxu0  ;;  %v1079_v30 = vpop.f32.mrb[124].mxu1 }
 0x1d2   :  { %v727_v31 = vadd.f32 %v726_v29, %v2867_v39  ;;  %v1080_v32 = vadd.f32 %v1079_v30, %v2869_v40  ;;  %v728_v33 = vpop.f32.mrb[125].mxu0  ;;  %v1081_v34 = vpop.f32.mrb[125].mxu1 }
 0x1d3   :  { %2237 = vst [vmem:[%s3686_s3 + $0x3d0] sm:$0xff] %v2597_v27  ;;  %2238 = vst.msk [vmem:[%s3686_s3 + $0x3d8] sm:$0xff] %vm2889_vm3, %v2598_v28  ;;  %v729_v35 = vadd.f32 %v728_v33, %v2871_v41  ;;  %v1082_v36 = vadd.f32 %v1081_v34, %v2873_v42  ;;  %v730_v37 = vpop.f32.mrb[126].mxu0  ;;  %v1083_v38 = vpop.f32.mrb[126].mxu1 }
 0x1d4   :  { %v1336_v43 = vmax.f32 %v727_v31, 0.0  ;;  %v1338_v44 = vmax.f32 %v1080_v32, 0.0  ;;  %v731_v45 = vadd.f32 %v730_v37, %v2867_v39  ;;  %v1084_v46 = vadd.f32 %v1083_v38, %v2869_v40  ;;  %v732_v47 = vpop.f32.mrb[127].mxu0  ;;  %v1085_v1 = vpop.f32.mrb[127].mxu1 }
 0x1d5   :  { %v1337_v48 = vmax.f32 %v729_v35, 0.0  ;;  %v1339_v49 = vmax.f32 %v1082_v36, 0.0  ;;  %v733_v50 = vadd.f32 %v732_v47, %v2871_v41  ;;  %v1086_v51 = vadd.f32 %v1085_v1, %v2873_v42 }
 0x1d6   :  { %v1340_v52 = vmax.f32 %v731_v45, 0.0  ;;  %v1342_v53 = vmax.f32 %v1084_v46, 0.0 }
 0x1d7   :  { %v2599_v54 = vpack.c.bf16 %v1337_v48, %v1336_v43  ;;  %v2600_v55 = vpack.c.bf16 %v1339_v49, %v1338_v44  ;;  %v1341_v56 = vmax.f32 %v733_v50, 0.0  ;;  %v1343_v57 = vmax.f32 %v1086_v51, 0.0 }
 0x1d9   :  { %2239 = vst [vmem:[%s3686_s3 + $0x3e0] sm:$0xff] %v2599_v54  ;;  %2240 = vst.msk [vmem:[%s3686_s3 + $0x3e8] sm:$0xff] %vm2889_vm3, %v2600_v55  ;;  %v2601_v39 = vpack.c.bf16 %v1341_v56, %v1340_v52  ;;  %v2602_v40 = vpack.c.bf16 %v1343_v57, %v1342_v53 }
 0x1db   :  { %2241 = vst [vmem:[%s3686_s3 + $0x3f0] sm:$0xff] %v2601_v39  ;;  %2242 = vst.msk [vmem:[%s3686_s3 + $0x3f8] sm:$0xff] %vm2889_vm3, %v2602_v40 }

// kernel: inception_c_forward.9
= control target key start
LH: loop header
LB: loop body
LE: loop exit
PB: predicated region body
PF: predicated region fallthrough
CT: control target
= control target key end

     0   :  { %s5290_s12 = smov 0   ;;  %s7303_s0 = inlined_call_operand.vmem [shape: bf16[2,16,22,128], index: 0, kind: input, shape index: {}]   ;;  %s7304_s1 = inlined_call_operand.vmem [shape: bf16[7,128,128], index: 1, kind: input, shape index: {}]   ;;  %s7305_s2 = inlined_call_operand.vmem [shape: f32[1,128], index: 2, kind: input, shape index: {}]   ;;  %s7306_s3 = inlined_call_operand.vmem [shape: bf16[2,256,128], index: 3, kind: output, shape index: {}]  }
   0x1 LB: > { %s3929_s13 = sadd.s32 4294967295, %s5268_s12   ;;  %p3933_p0 = scmp.ge.s32.totalorder %s5268_s12, 1  ;;  %s5268_s12 = sphi %s5290_s12, %s13_s12  }
   0x2   : > { %p137_p1 = scmp.lt.s32.totalorder %s5268_s12, 3 }
   0x4   : > { %p138_p2 = pnand %p3933_p0, %p137_p1 }
   0x6   : > { %141 = sbr.rel (%p138_p2) target bundleno = 530 (0x212), region = 32 }
   0xd   : > { %v5133_v0 = vld [vmem:[%s7304_s1 + $0x40] sm:$0xff]   ;;  %p161_p3 = scmp.lt.s32.totalorder %s3929_s13, 1  ;;  %v5135_v2 = vld [vmem:[%s7304_s1 + $0x48] sm:$0xff]   ;;  %v5137_v4 = vld [vmem:[%s7304_s1 + $0x50] sm:$0xff]   ;;  %vm236_vm0 = vsmask.f32 3328 }
   0xe   : > { %v5134_v1 = vld [vmem:[%s7304_s1 + $0xc0] sm:$0xff]   ;;  %4580 = vmatprep.subr.bf16.mxu1 %v5133_v0  ;;  %v5136_v3 = vld [vmem:[%s7304_s1 + $0xc8] sm:$0xff]   ;;  %v5138_v5 = vld [vmem:[%s7304_s1 + $0xd0] sm:$0xff]   ;;  %vm237_vm1 = vsmask.f32 7440  ;;  %v7453_v44 = vmov 0 }
   0xf   : > { %4724 = vmatprep.subr.bf16.mxu0 %v5134_v1  ;;  %4581 = vmatpush3.bf16.msra.mxu1 %v5133_v0  ;;  %s7724_s13 = smov (!%p161_p3, %s3929_s13), 1  ;;  %v5139_v6 = vld [vmem:[%s7304_s1 + $0x58] sm:$0xff]   ;;  %v5141_v8 = vld [vmem:[%s7304_s1 + $0x60] sm:$0xff]   ;;  %v5143_v10 = vld [vmem:[%s7304_s1 + $0x68] sm:$0xff]   ;;  %vm1671_vm2 = vsmask.f32 2304 }
  0x10   : > { %4725 = vmatpush3.bf16.msra.mxu0 %v5134_v1  ;;  %4582 = vmatprep.subr.bf16.mxu1 %v5135_v2  ;;  %v5140_v7 = vld [vmem:[%s7304_s1 + $0xd8] sm:$0xff]   ;;  %s5124_s30 = smul.u32 192, %s7724_s13  ;;  %v5142_v9 = vld [vmem:[%s7304_s1 + $0xe0] sm:$0xff]   ;;  %v5144_v11 = vld [vmem:[%s7304_s1 + $0xe8] sm:$0xff]   ;;  %vm1672_vm3 = vsmask.f32 6416 }
  0x11   : > { %4726 = vmatprep.subr.bf16.mxu0 %v5136_v3  ;;  %v5145_v20 = vld [vmem:[%s7304_s1 + $0x70] sm:$0xff]   ;;  %v5147_v35 = vld [vmem:[%s7304_s1 + $0x78] sm:$0xff]   ;;  %vm5393_vm4 = vmor %vm236_vm0, %vm237_vm1  ;;  %vm2236_vm6 = vcmask 1041408   ;;  %vm2237_vm7 = vcmask 1045508   ;;  %vm2673_vm9 = vsmask.f32 1280 }
  0x12   : > { %s5334_s10 = scalar_lea.vmem %s7303_s0, %s5124_s30  ;;  %v5146_v29 = vld [vmem:[%s7304_s1 + $0xf0] sm:$0xff]   ;;  %v5148_v42 = vld [vmem:[%s7304_s1 + $0xf8] sm:$0xff]   ;;  %vm5409_vm5 = vmor %vm1671_vm2, %vm1672_vm3  ;;  %vm2674_vm10 = vsmask.f32 5392  ;;  %vm1234_vm12 = vcmask 1042432   ;;  %vm1235_vm13 = vcmask 1046532  }
  0x13   : > { %4583 = vmatpush3.bf16.msra.mxu1 %v5135_v2  ;;  %v5343_v12 = vld [vmem:[%s5334_s10] sm:$0xf]  ;;  %v5346_v13 = vld [vmem:[%s5334_s10 + $0x4] sm:$0xf]  ;;  %v5349_v14 = vld [vmem:[%s5334_s10 + $0x8] sm:$0x7] }
  0x14   : > { %4727 = vmatpush3.bf16.msra.mxu0 %v5136_v3  ;;  %4584 = vmatprep.subr.bf16.mxu1 %v5137_v4  ;;  %v5352_v15 = vshrl.u32 %v5343_v12, 16  ;;  %v5355_v16 = vshll.u32 %v5343_v12, 16  ;;  %v5358_v17 = vshll.u32 %v5346_v13, 16  ;;  %v5361_v18 = vshrl.u32 %v5346_v13, 16  ;;  %v5377_v28 = vld [vmem:[%s5334_s10 + $0xc] sm:$0xf]  ;;  %vm5822_vm8 = vmor %vm2236_vm6, %vm2237_vm7 }
  0x15   : > { %4728 = vmatprep.subr.bf16.mxu0 %v5138_v5  ;;  %v5364_v19 = vshll.u32 %v5349_v14, 16  ;;  %v7309_v33 = vshrl.u32 %v5349_v14, 16  ;;  %v5386_v34 = vld [vmem:[%s5334_s10 + $0x10] sm:$0xf]  ;;  %v5399_v40 = vld [vmem:[%s5334_s10 + $0x14] sm:$0x7]  ;;  %vm6292_vm11 = vmor %vm2673_vm9, %vm2674_vm10 }
  0x16   : > { %v242_v21 = vrot.slane %v5352_v15, 4  ;;  %v245_v22 = vrot.slane %v5355_v16, 5  ;;  %v1674_v23 = vrot.slane %v5352_v15, 5  ;;  %v251_v24 = vrot.slane %v5358_v17, 5  ;;  %v5149_v3 = vld [vmem:[%s7304_s1] sm:$0xff]   ;;  %vm6489_vm14 = vmor %vm1234_vm12, %vm1235_vm13  ;;  %s4284_s26 = sshll.u32 %s7724_s13, 7 }
  0x17   : > { %4585 = vmatpush3.bf16.msra.mxu1 %v5137_v4  ;;  %v255_v25 = vrot.slane %v5361_v18, 4  ;;  %v261_v26 = vrot.slane %v5364_v19, 5  ;;  %v1675_v27 = vrot.slane %v5355_v16, 6  ;;  %v1678_v31 = vrot.slane %v5361_v18, 5  ;;  %s7250_s29 = scalar_lea.vmem %s7306_s3, %s4284_s26 }
  0x18   : > { %4729 = vmatpush3.bf16.msra.mxu0 %v5138_v5  ;;  %4586 = vmatprep.subr.bf16.mxu1 %v5139_v6  ;;  %v246_v30 = vor.u32 %v245_v22, %v242_v21  ;;  %v1679_v32 = vrot.slane %v5358_v17, 6  ;;  %v1686_v39 = vrot.slane %v5364_v19, 6  ;;  %v5402_v41 = vshrl.u32 %v5377_v28, 16  ;;  %v5445_v5 = vld [vmem:[%s5334_s10 + $0x18] sm:$0xf] }
  0x19   : > { %4730 = vmatprep.subr.bf16.mxu0 %v5140_v7  ;;  %v256_v37 = vor.u32 %v255_v25, %v251_v24  ;;  %v1676_v38 = vor.u32 %v1675_v27, %v1674_v23  ;;  %v7454_v44 = vsel %vm5409_vm5, 4294967295, %v7453_v44  ;;  %v1685_v46 = vrot.slane %v7309_v33, 5  ;;  %v5457_v23 = vld [vmem:[%s5334_s10 + $0x1c] sm:$0xf]  ;;  %v5463_v27 = vld [vmem:[%s5334_s10 + $0x20] sm:$0x7] }
  0x1a   : > { %v247_v43 = vrot.slane %v246_v30, 4  ;;  %7455 = vst [vmem:[#allocation2_spill] sm:$0xff] %v7454_v44  ;;  %v1680_v45 = vor.u32 %v1679_v32, %v1678_v31  ;;  %v5416_v47 = vshll.u32 %v5377_v28, 16  ;;  %v266_v50 = vrot.slane %v5402_v41, 4  ;;  %7458 = vst [vmem:[#allocation5_spill] sm:$0xff] %v5463_v27 }
  0x1b   : > { %4587 = vmatpush3.bf16.msra.mxu1 %v5139_v6  ;;  %v257_v48 = vrot.slane %v256_v37, 4  ;;  %v1677_v49 = vrot.slane %v1676_v38, 4  ;;  %v5420_v51 = vshll.u32 %v5386_v34, 16  ;;  %v1687_v54 = vor.u32 %v1686_v39, %v1685_v46 }
  0x1c   : > { %4731 = vmatpush3.bf16.msra.mxu0 %v5140_v7  ;;  %4588 = vmatprep.subr.bf16.mxu1 %v5141_v8  ;;  %v252_v52 = vsel %vm5393_vm4, %v247_v43, %v251_v24  ;;  %v1682_v53 = vrot.slane %v1680_v45, 4  ;;  %v269_v55 = vrot.slane %v5416_v47, 5  ;;  %v5431_v59 = vshrl.u32 %v5386_v34, 16 }
  0x1d   : > { %4732 = vmatprep.subr.bf16.mxu0 %v5142_v9  ;;  %7456 = vst [vmem:[#allocation3_spill] sm:$0xff] %v5420_v51  ;;  %v262_v56 = vsel %vm5393_vm4, %v257_v48, %v261_v26  ;;  %v1681_v57 = vsel %vm5409_vm5, %v1677_v49, %v1680_v45  ;;  %v275_v58 = vrot.slane %v5420_v51, 5  ;;  %v5436_v63 = vshll.u32 %v5399_v40, 16 }
  0x1e   : > { %v3953_v60 = vcombine.low %v252_v52, %v262_v56  ;;  %v1688_v61 = vsel %vm5409_vm5, %v1682_v53, %v1687_v54  ;;  %v270_v62 = vor.u32 %v269_v55, %v266_v50  ;;  %v279_v1 = vrot.slane %v5431_v59, 4  ;;  %v5152_v54 = vld [vmem:[%s7304_s1 + $0x8] sm:$0xff]  }
  0x1f   : > { %4589 = vmatpush3.bf16.msra.mxu1 %v5141_v8  ;;  %7457 = vst [vmem:[#allocation4_spill] sm:$0xff] %v5436_v63  ;;  %v4073_v0 = vcombine.low %v1681_v57, %v1688_v61  ;;  %v1689_v4 = vrot.slane %v5402_v41, 5  ;;  %v285_v7 = vrot.slane %v5436_v63, 5  ;;  %v1694_v21 = vrot.slane %v5420_v51, 6 }
  0x20   : > { %4733 = vmatpush3.bf16.msra.mxu0 %v5142_v9  ;;  %4590 = vmatprep.subr.bf16.mxu1 %v5143_v10  ;;  %v271_v6 = vrot.slane %v270_v62, 4  ;;  %v1690_v9 = vrot.slane %v5416_v47, 6  ;;  %v1698_v22 = vshrl.u32 %v5399_v40, 16  ;;  %v1701_v26 = vrot.slane %v5436_v63, 6  ;;  %v5151_v62 = vld [vmem:[%s7304_s1 + $0x108] sm:$0xff]  }
  0x21   : > { %4734 = vmatprep.subr.bf16.mxu0 %v5144_v11  ;;  %4596 = vmatprep.mubr.bf16.mxu1 %v3953_v60  ;;  %v5472_v39 = vshll.u32 %v5445_v5, 16  ;;  %v5475_v43 = vshll.u32 %v5457_v23, 16  ;;  %v5480_v48 = vshrl.u32 %v5457_v23, 16  ;;  %v5493_v57 = vshll.u32 %v5463_v27, 16  ;;  %v5497_v60 = vld [vmem:[%s5334_s10 + $0x24] sm:$0xf] }
  0x22   : > { %4740 = vmatprep.mubr.bf16.mxu0 %v4073_v0  ;;  %v276_v24 = vsel %vm5393_vm4, %v271_v6, %v275_v58  ;;  %v1691_v25 = vor.u32 %v1690_v9, %v1689_v4  ;;  %v1700_v32 = vrot.slane %v1698_v22, 5  ;;  %v5468_v37 = vrot.slane %v1698_v22, 6 }
  0x23   : > { %4591 = vmatpush3.bf16.msra.mxu1 %v5143_v10  ;;  %v5150_v10 = vld [vmem:[%s7304_s1 + $0x100] sm:$0xff]   ;;  %7461 = vst [vmem:[#allocation8_spill] sm:$0xff] %v5472_v39  ;;  %7462 = vst [vmem:[#allocation9_spill] sm:$0xff] %v5475_v43  ;;  %v293_v52 = vrot.slane %v5472_v39, 5  ;;  %v299_v53 = vrot.slane %v5475_v43, 5  ;;  %v303_v56 = vrot.slane %v5480_v48, 4 }
  0x24   : > { %4735 = vmatpush3.bf16.msra.mxu0 %v5144_v11  ;;  %4592 = vmatprep.subr.bf16.mxu1 %v5145_v20  ;;  %v280_v11 = vor.u32 %v279_v1, %v275_v58  ;;  %7460 = vst [vmem:[#allocation7_spill] sm:$0xff] %v5468_v37  ;;  %v1692_v38 = vrot.slane %v1691_v25, 4  ;;  %v1702_v46 = vor.u32 %v1701_v26, %v1700_v32  ;;  %7463 = vst [vmem:[#allocation10_spill] sm:$0xff] %v5480_v48  ;;  %v5512_v25 = vld [vmem:[%s5334_s10 + $0x2c] sm:$0x7]  ;;  %vm3206_vm15 = vcmask 1040384  }
  0x25   : > { %4736 = vmatprep.subr.bf16.mxu0 %v5146_v29  ;;  %7464 = vst [vmem:[#allocation11_spill] sm:$0xff] %v5493_v57  ;;  %v1705_v1 = vrot.slane %v5472_v39, 6  ;;  %v1708_v4 = vrot.slane %v5480_v48, 5  ;;  %v304_v6 = vor.u32 %v303_v56, %v299_v53  ;;  %v1709_v9 = vrot.slane %v5475_v43, 6  ;;  %v5771_v43 = vld [vmem:[%s5334_s10 + $0x60] sm:$0xf] }
  0x26   : > { %v281_v30 = vrot.slane %v280_v11, 4  ;;  %v7307_v11 = vshrl.u32 %v5463_v27, 16  ;;  %v5515_v26 = vshrl.u32 %v5497_v60, 16  ;;  %vm3207_vm0 = vcmask 1044484  }
  0x27   : > { %4593 = vmatpush3.bf16.msra.mxu1 %v5145_v20  ;;  %v1693_v20 = vrot.slane %v5431_v59, 5  ;;  %vm6883_vm1 = vmor %vm3206_vm15, %vm3207_vm0 }
  0x28   : > { %4737 = vmatpush3.bf16.msra.mxu0 %v5146_v29  ;;  %4594 = vmatprep.subr.bf16.mxu1 %v5147_v35  ;;  %v5466_v29 = vshrl.u32 %v5445_v5, 16  ;;  %7465 = vst [vmem:[#allocation12_spill] sm:$0xff] %v5515_v26  ;;  %v1715_v32 = vrot.slane %v7307_v11, 5 }
  0x29   : > { %4738 = vmatprep.subr.bf16.mxu0 %v5148_v42  ;;  %v1695_v31 = vor.u32 %v1694_v21, %v1693_v20  ;;  %v5508_v20 = vld [vmem:[%s5334_s10 + $0x28] sm:$0xf] }
  0x2a   : > { %7459 = vst [vmem:[#allocation6_spill] sm:$0xff] %v5466_v29  ;;  %v1704_v58 = vrot.slane %v5466_v29, 5 }
  0x2b   : > { %4595 = vmatpush3.bf16.msra.mxu1 %v5147_v35  ;;  %v290_v35 = vrot.slane %v5466_v29, 4  ;;  %v1697_v45 = vrot.slane %v1695_v31, 4  ;;  %v1696_v50 = vsel %vm5409_vm5, %v1692_v38, %v1695_v31  ;;  %v1710_v31 = vor.u32 %v1709_v9, %v1708_v4 }
  0x2c   : > { %4739 = vmatpush3.bf16.msra.mxu0 %v5148_v42  ;;  %4628 = vmatprep.subr.bf16.mxu1 %v5149_v3  ;;  %v286_v42 = vsel %vm5393_vm4, %v281_v30, %v285_v7  ;;  %v309_v7 = vrot.slane %v5493_v57, 5  ;;  %v1706_v22 = vor.u32 %v1705_v1, %v1704_v58  ;;  %v305_v30 = vrot.slane %v304_v6, 4 }
  0x2d   : > { %4772 = vmatprep.subr.bf16.mxu0 %v5150_v10  ;;  %v3954_v49 = vcombine.low %v276_v24, %v286_v42  ;;  %v1703_v55 = vsel %vm5409_vm5, %v1697_v45, %v1702_v46  ;;  %v294_v0 = vor.u32 %v293_v52, %v290_v35  ;;  %v1716_v24 = vrot.slane %v5493_v57, 6 }
  0x2e   : > { %v4074_v61 = vcombine.low %v1696_v50, %v1703_v55  ;;  %v5523_v38 = vshll.u32 %v5497_v60, 16  ;;  %v1707_v42 = vrot.slane %v1706_v22, 4  ;;  %v314_v45 = vrot.slane %v5515_v26, 4 }
  0x2f   : > { %4597 = vmatmul.mubr.bf16.vlgmr.msra.gmra.mrb[0].mxu1 %v3954_v49  ;;  %v295_v21 = vrot.slane %v294_v0, 4  ;;  %v5529_v46 = vshll.u32 %v5508_v20, 16  ;;  %v310_v49 = vsel %vm5393_vm4, %v305_v30, %v309_v7  ;;  %v1712_v50 = vrot.slane %v1710_v31, 4  ;;  %v5158_v0 = vld [vmem:[%s7304_s1 + $0x18] sm:$0xff]   ;;  %v5553_v7 = vld [vmem:[%s5334_s10 + $0x30] sm:$0xf] }
  0x30   : > { %4629 = vmatpush3.bf16.msra.mxu1 %v5149_v3  ;;  %4741 = vmatmul.mubr.bf16.vlgmr.msra.gmra.mrb[0].mxu0 %v4074_v61  ;;  %v5155_v3 = vld [vmem:[%s7304_s1 + $0x10] sm:$0xff]   ;;  %7466 = vst [vmem:[#allocation13_spill] sm:$0xff] %v5523_v38  ;;  %v1717_v52 = vor.u32 %v1716_v24, %v1715_v32  ;;  %v317_v55 = vrot.slane %v5523_v38, 5  ;;  %v1711_v56 = vsel %vm5409_vm5, %v1707_v42, %v1710_v31  ;;  %v5541_v61 = vshrl.u32 %v5508_v20, 16  ;;  %v5154_v24 = vld [vmem:[%s7304_s1 + $0x118] sm:$0xff]  }
  0x31   : > { %4630 = vmatprep.subr.bf16.mxu1 %v5152_v54  ;;  %4773 = vmatpush3.bf16.msra.mxu0 %v5150_v10  ;;  %v300_v35 = vsel %vm5393_vm4, %v295_v21, %v299_v53  ;;  %7467 = vst [vmem:[#allocation14_spill] sm:$0xff] %v5529_v46  ;;  %v5153_v10 = vld [vmem:[%s7304_s1 + $0x110] sm:$0xff]   ;;  %v323_v58 = vrot.slane %v5529_v46, 5  ;;  %v5549_v4 = vshll.u32 %v5512_v25, 16  ;;  %v1719_v6 = vrot.slane %v5515_v26, 5 }
  0x32   : > { %4774 = vmatprep.subr.bf16.mxu0 %v5151_v62  ;;  %v3955_v53 = vcombine.low %v300_v35, %v310_v49  ;;  %7468 = vst [vmem:[#allocation15_spill] sm:$0xff] %v5541_v61  ;;  %v1718_v1 = vsel %vm5409_vm5, %v1712_v50, %v1717_v52  ;;  %v327_v21 = vrot.slane %v5541_v61, 4  ;;  %v1720_v22 = vrot.slane %v5523_v38, 6  ;;  %v5562_v30 = vld [vmem:[%s5334_s10 + $0x34] sm:$0xf] }
  0x33   : > { %7469 = vst [vmem:[#allocation16_spill] sm:$0xff] %v5549_v4  ;;  %v4075_v9 = vcombine.low %v1711_v56, %v1718_v1  ;;  %v333_v32 = vrot.slane %v5549_v4, 5  ;;  %v1724_v35 = vrot.slane %v5529_v46, 6  ;;  %v7308_v42 = vshrl.u32 %v5512_v25, 16  ;;  %v5161_v56 = vld [vmem:[%s7304_s1 + $0x20] sm:$0xff]  }
  0x34   : > { %4631 = vmatpush3.bf16.msra.mxu1 %v5152_v54  ;;  %v318_v54 = vor.u32 %v317_v55, %v314_v45  ;;  %4600 = vmatprep.mubr.bf16.mxu1 %v3955_v53  ;;  %v5568_v45 = vld [vmem:[%s5334_s10 + $0x38] sm:$0x7]  ;;  %v328_v49 = vor.u32 %v327_v21, %v323_v58  ;;  %v1721_v50 = vor.u32 %v1720_v22, %v1719_v6  ;;  %v1731_v52 = vrot.slane %v5549_v4, 6  ;;  %v5156_v53 = vld [vmem:[%s7304_s1 + $0x120] sm:$0xff]  }
  0x35   : > { %4632 = vmatprep.subr.bf16.mxu1 %v5155_v3  ;;  %4775 = vmatpush3.bf16.msra.mxu0 %v5151_v62  ;;  %v1723_v62 = vrot.slane %v5541_v61, 5  ;;  %7470 = vst [vmem:[#allocation17_spill] sm:$0xff] %v5568_v45  ;;  %v5572_v55 = vshrl.u32 %v5553_v7, 16  ;;  %v5585_v6 = vshll.u32 %v5553_v7, 16  ;;  %v5589_v11 = vshll.u32 %v5562_v30, 16  ;;  %v5688_v61 = vld [vmem:[%s7304_s1 + $0x140] sm:$0xff]  }
  0x36   : > { %4776 = vmatprep.subr.bf16.mxu0 %v5153_v10  ;;  %v319_v31 = vrot.slane %v318_v54, 4  ;;  %4744 = vmatprep.mubr.bf16.mxu0 %v4075_v9  ;;  %v1730_v54 = vrot.slane %v7308_v42, 5  ;;  %v329_v9 = vrot.slane %v328_v49, 4  ;;  %v1722_v21 = vrot.slane %v1721_v50, 4  ;;  %v5607_v42 = vld [vmem:[%s5334_s10 + $0x3c] sm:$0xf] }
  0x37   : > { %7471 = vst [vmem:[#allocation18_spill] sm:$0xff] %v5572_v55  ;;  %v1725_v1 = vor.u32 %v1724_v35, %v1723_v62  ;;  %7472 = vst [vmem:[#allocation19_spill] sm:$0xff] %v5585_v6  ;;  %v338_v22 = vrot.slane %v5572_v55, 4  ;;  %v5593_v62 = vshrl.u32 %v5562_v30, 16  ;;  %v347_v35 = vrot.slane %v5589_v11, 5 }
  0x38   : > { %4633 = vmatpush3.bf16.msra.mxu1 %v5155_v3  ;;  %v324_v3 = vsel %vm5393_vm4, %v319_v31, %v323_v58  ;;  %7473 = vst [vmem:[#allocation20_spill] sm:$0xff] %v5589_v11  ;;  %v1732_v8 = vor.u32 %v1731_v52, %v1730_v54  ;;  %v341_v58 = vrot.slane %v5585_v6, 5  ;;  %v5601_v49 = vshll.u32 %v5568_v45, 16 }
  0x39   : > { %4634 = vmatprep.subr.bf16.mxu1 %v5158_v0  ;;  %4777 = vmatpush3.bf16.msra.mxu0 %v5153_v10  ;;  %v1727_v2 = vrot.slane %v1725_v1, 4  ;;  %7474 = vst [vmem:[#allocation21_spill] sm:$0xff] %v5593_v62  ;;  %v334_v10 = vsel %vm5393_vm4, %v329_v9, %v333_v32  ;;  %v1726_v31 = vsel %vm5409_vm5, %v1722_v21, %v1725_v1  ;;  %v5163_v32 = vld [vmem:[%s7304_s1 + $0x28] sm:$0xff]   ;;  %v1735_v21 = vrot.slane %v5585_v6, 6  ;;  %v5626_v6 = vld [vmem:[%s5334_s10 + $0x44] sm:$0x7] }
  0x3a   : > { %4778 = vmatprep.subr.bf16.mxu0 %v5154_v24  ;;  %7475 = vst [vmem:[#allocation22_spill] sm:$0xff] %v5601_v49  ;;  %v3956_v50 = vcombine.low %v324_v3, %v334_v10  ;;  %v342_v54 = vor.u32 %v341_v58, %v338_v22  ;;  %v357_v9 = vrot.slane %v5601_v49, 5  ;;  %v1734_v3 = vrot.slane %v5572_v55, 5  ;;  %v5621_v10 = vld [vmem:[%s5334_s10 + $0x40] sm:$0xf]  ;;  %7476 = vst [vmem:[#allocation23_spill] sm:$0xff] %v5626_v6 }
  0x3b   : > { %v1733_v52 = vsel %vm5409_vm5, %v1727_v2, %v1732_v8  ;;  %v5157_v2 = vld [vmem:[%s7304_s1 + $0x128] sm:$0xff]   ;;  %v1738_v22 = vrot.slane %v5593_v62, 5  ;;  %v1739_v58 = vrot.slane %v5589_v11, 6  ;;  %v1746_v33 = vrot.slane %v5601_v49, 6 }
  0x3c   : > { %4635 = vmatpush3.bf16.msra.mxu1 %v5158_v0  ;;  %v351_v0 = vrot.slane %v5593_v62, 4  ;;  %v4076_v1 = vcombine.low %v1726_v31, %v1733_v52  ;;  %v343_v8 = vrot.slane %v342_v54, 4  ;;  %v1736_v31 = vor.u32 %v1735_v21, %v1734_v3  ;;  %v5165_v54 = vld [vmem:[%s7304_s1 + $0x30] sm:$0xff]  }
  0x3d   : > { %4636 = vmatprep.subr.bf16.mxu1 %v5161_v56  ;;  %4779 = vmatpush3.bf16.msra.mxu0 %v5154_v24  ;;  %v5629_v55 = vshrl.u32 %v5607_v42, 16  ;;  %v1740_v3 = vor.u32 %v1739_v58, %v1738_v22  ;;  %v5640_v21 = vshll.u32 %v5607_v42, 16  ;;  %v7479_v49 = vshrl.u32 %v5568_v45, 16 }
  0x3e   : > { %4780 = vmatprep.subr.bf16.mxu0 %v5156_v53  ;;  %4601 = vmatmul.mubr.bf16.gmra.mrb[4].mxu1 %v3956_v50  ;;  %v352_v24 = vor.u32 %v351_v0, %v347_v35  ;;  %v5159_v50 = vld [vmem:[%s7304_s1 + $0x130] sm:$0xff]   ;;  %v348_v0 = vsel %vm5393_vm4, %v343_v8, %v347_v35  ;;  %v1737_v52 = vrot.slane %v1736_v31, 4  ;;  %v5646_v62 = vshll.u32 %v5621_v10, 16 }
  0x3f   : > { %4745 = vmatmul.mubr.bf16.gmra.mrb[4].mxu0 %v4076_v1  ;;  %7477 = vst [vmem:[#allocation24_spill] sm:$0xff] %v5629_v55  ;;  %7478 = vst [vmem:[#allocation25_spill] sm:$0xff] %v5640_v21  ;;  %v1745_v11 = vrot.slane %v7479_v49, 5  ;;  %v1742_v8 = vrot.slane %v1740_v3, 4  ;;  %v5652_v22 = vshrl.u32 %v5621_v10, 16 }
  0x40   : > { %4637 = vmatpush3.bf16.msra.mxu1 %v5161_v56  ;;  %v353_v1 = vrot.slane %v352_v24, 4  ;;  %v362_v56 = vrot.slane %v5629_v55, 4  ;;  %7480 = vst [vmem:[#allocation26_spill] sm:$0xff] %v5646_v62  ;;  %v365_v24 = vrot.slane %v5640_v21, 5  ;;  %v1741_v58 = vsel %vm5409_vm5, %v1737_v52, %v1740_v3  ;;  %v5671_v3 = vld [vmem:[%s5334_s10 + $0x48] sm:$0xf] }
  0x41   : > { %4781 = vmatpush3.bf16.msra.mxu0 %v5156_v53  ;;  %4638 = vmatprep.subr.bf16.mxu1 %v5163_v32  ;;  %7481 = vst [vmem:[#allocation27_spill] sm:$0xff] %v5652_v22  ;;  %v1747_v49 = vor.u32 %v1746_v33, %v1745_v11  ;;  %v371_v31 = vrot.slane %v5646_v62, 5  ;;  %v375_v46 = vrot.slane %v5652_v22, 4  ;;  %v1750_v11 = vrot.slane %v5640_v21, 6 }
  0x42   : > { %4782 = vmatprep.subr.bf16.mxu0 %v5157_v2  ;;  %v358_v35 = vsel %vm5393_vm4, %v353_v1, %v357_v9  ;;  %v366_v4 = vor.u32 %v365_v24, %v362_v56  ;;  %v5659_v9 = vshll.u32 %v5626_v6, 16  ;;  %v1749_v1 = vrot.slane %v5629_v55, 5  ;;  %v5683_v55 = vld [vmem:[%s5334_s10 + $0x50] sm:$0x7] }
  0x43   : > { %v3957_v53 = vcombine.low %v348_v0, %v358_v35  ;;  %v5160_v0 = vld [vmem:[%s7304_s1 + $0x138] sm:$0xff]   ;;  %v1748_v33 = vsel %vm5409_vm5, %v1742_v8, %v1747_v49  ;;  %v1754_v52 = vrot.slane %v5646_v62, 6  ;;  %v376_v24 = vor.u32 %v375_v46, %v371_v31  ;;  %v5678_v8 = vld [vmem:[%s5334_s10 + $0x4c] sm:$0xf]  ;;  %7483 = vst [vmem:[#allocation29_spill] sm:$0xff] %v5683_v55 }
  0x44   : > { %4639 = vmatpush3.bf16.msra.mxu1 %v5163_v32  ;;  %7482 = vst [vmem:[#allocation28_spill] sm:$0xff] %v5659_v9  ;;  %v1753_v32 = vrot.slane %v5652_v22, 5  ;;  %v4077_v56 = vcombine.low %v1741_v58, %v1748_v33  ;;  %v367_v35 = vrot.slane %v366_v4, 4  ;;  %v1751_v49 = vor.u32 %v1750_v11, %v1749_v1  ;;  %v5701_v33 = vld [vmem:[%s7304_s1 + $0x80] sm:$0xff]  }
  0x45   : > { %4783 = vmatpush3.bf16.msra.mxu0 %v5157_v2  ;;  %4640 = vmatprep.subr.bf16.mxu1 %v5165_v54  ;;  %v5167_v2 = vld [vmem:[%s7304_s1 + $0x38] sm:$0xff]   ;;  %v7322_v22 = vshrl.u32 %v5626_v6, 16  ;;  %v1761_v62 = vrot.slane %v5659_v9, 6  ;;  %v377_v4 = vrot.slane %v376_v24, 4  ;;  %v5693_v58 = vshrl.u32 %v5671_v3, 16 }
  0x46   : > { %4604 = vmatprep.mubr.bf16.mxu1 %v3957_v53  ;;  %4784 = vmatprep.subr.bf16.mxu0 %v5159_v50  ;;  %v381_v53 = vrot.slane %v5659_v9, 5  ;;  %v1755_v21 = vor.u32 %v1754_v52, %v1753_v32  ;;  %v372_v46 = vsel %vm5393_vm4, %v367_v35, %v371_v31  ;;  %v5696_v1 = vshll.u32 %v5671_v3, 16 }
  0x47   : > { %4748 = vmatprep.mubr.bf16.mxu0 %v4077_v56  ;;  %7484 = vst [vmem:[#allocation30_spill] sm:$0xff] %v5693_v58  ;;  %v1752_v11 = vrot.slane %v1751_v49, 4  ;;  %v5706_v31 = vshll.u32 %v5678_v8, 16  ;;  %v5713_v35 = vshrl.u32 %v5678_v8, 16 }
  0x48   : > { %4641 = vmatpush3.bf16.msra.mxu1 %v5165_v54  ;;  %7485 = vst [vmem:[#allocation31_spill] sm:$0xff] %v5696_v1  ;;  %v1757_v32 = vrot.slane %v1755_v21, 4  ;;  %v1760_v54 = vrot.slane %v7322_v22, 5  ;;  %v382_v52 = vsel %vm5393_vm4, %v377_v4, %v381_v53  ;;  %v389_v56 = vrot.slane %v5696_v1, 5 }
  0x49   : > { %4785 = vmatpush3.bf16.msra.mxu0 %v5159_v50  ;;  %7486 = vst [vmem:[#allocation32_spill] sm:$0xff] %v5706_v31  ;;  %4642 = vmatprep.subr.bf16.mxu1 %v5167_v2  ;;  %v386_v50 = vrot.slane %v5693_v58, 4  ;;  %7487 = vst [vmem:[#allocation33_spill] sm:$0xff] %v5713_v35  ;;  %v3958_v24 = vcombine.low %v372_v46, %v382_v52  ;;  %v1756_v49 = vsel %vm5409_vm5, %v1752_v11, %v1755_v21  ;;  %v5730_v11 = vld [vmem:[%s5334_s10 + $0x54] sm:$0xf] }
  0x4a   : > { %4786 = vmatprep.subr.bf16.mxu0 %v5160_v0  ;;  %v1762_v22 = vor.u32 %v1761_v62, %v1760_v54  ;;  %v395_v9 = vrot.slane %v5706_v31, 5  ;;  %v399_v26 = vrot.slane %v5713_v35, 4  ;;  %v5720_v53 = vshll.u32 %v5683_v55, 16 }
  0x4b   : > { %v390_v38 = vor.u32 %v389_v56, %v386_v50  ;;  %v1764_v4 = vrot.slane %v5693_v58, 5  ;;  %4605 = vmatmul.mubr.bf16.gmra.mrb[8].mxu1 %v3958_v24  ;;  %v1765_v62 = vrot.slane %v5696_v1, 6  ;;  %v1769_v46 = vrot.slane %v5706_v31, 6  ;;  %v5735_v56 = vld [vmem:[%s5334_s10 + $0x58] sm:$0xf] }
  0x4c   : > { %4643 = vmatpush3.bf16.msra.mxu1 %v5167_v2  ;;  %7488 = vst [vmem:[#allocation34_spill] sm:$0xff] %v5720_v53  ;;  %v1763_v21 = vsel %vm5409_vm5, %v1757_v32, %v1762_v22  ;;  %v1768_v2 = vrot.slane %v5713_v35, 5  ;;  %v405_v50 = vrot.slane %v5720_v53, 5  ;;  %v7329_v32 = vshrl.u32 %v5683_v55, 16 }
  0x4d   : > { %4787 = vmatpush3.bf16.msra.mxu0 %v5160_v0  ;;  %4676 = vmatprep.subr.bf16.mxu1 %v5701_v33  ;;  %v4078_v54 = vcombine.low %v1756_v49, %v1763_v21  ;;  %v391_v52 = vrot.slane %v390_v38, 4  ;;  %v400_v0 = vor.u32 %v399_v26, %v395_v9  ;;  %v1766_v24 = vor.u32 %v1765_v62, %v1764_v4  ;;  %v5750_v62 = vld [vmem:[%s5334_s10 + $0x5c] sm:$0x7] }
  0x4e   : > { %4820 = vmatprep.subr.bf16.mxu0 %v5688_v61  ;;  %v1770_v22 = vor.u32 %v1769_v46, %v1768_v2  ;;  %v1776_v35 = vrot.slane %v5720_v53, 6  ;;  %v5742_v49 = vshrl.u32 %v5730_v11, 16  ;;  %v5745_v26 = vshll.u32 %v5730_v11, 16 }
  0x4f   : > { %4749 = vmatmul.mubr.bf16.gmra.mrb[8].mxu0 %v4078_v54  ;;  %v396_v31 = vsel %vm5393_vm4, %v391_v52, %v395_v9  ;;  %v401_v1 = vrot.slane %v400_v0, 4  ;;  %v1767_v38 = vrot.slane %v1766_v24, 4  ;;  %v1775_v4 = vrot.slane %v7329_v32, 5 }
  0x50   : > { %7489 = vst [vmem:[#allocation35_spill] sm:$0xff] %v5742_v49  ;;  %7490 = vst [vmem:[#allocation36_spill] sm:$0xff] %v5745_v26  ;;  %v1772_v21 = vrot.slane %v1770_v22, 4  ;;  %v5753_v2 = vshll.u32 %v5735_v56, 16  ;;  %v410_v46 = vrot.slane %v5742_v49, 4  ;;  %v413_v54 = vrot.slane %v5745_v26, 5 }
  0x51   : > { %v406_v9 = vsel %vm5393_vm4, %v401_v1, %v405_v50  ;;  %v5760_v52 = vshrl.u32 %v5735_v56, 16  ;;  %v1771_v24 = vsel %vm5409_vm5, %v1767_v38, %v1770_v22  ;;  %v1777_v32 = vor.u32 %v1776_v35, %v1775_v4  ;;  %v5779_v4 = vld [vmem:[%s5334_s10 + $0x64] sm:$0xf] }
  0x52   : > { %7491 = vst [vmem:[#allocation37_spill] sm:$0xff] %v5753_v2  ;;  %v3959_v0 = vcombine.low %v396_v31, %v406_v9  ;;  %v419_v53 = vrot.slane %v5753_v2, 5  ;;  %v414_v58 = vor.u32 %v413_v54, %v410_v46  ;;  %v5767_v1 = vshll.u32 %v5750_v62, 16 }
  0x53   : > { %7492 = vst [vmem:[#allocation38_spill] sm:$0xff] %v5760_v52  ;;  %v423_v57 = vrot.slane %v5760_v52, 4  ;;  %v1779_v50 = vrot.slane %v5742_v49, 5  ;;  %v1778_v31 = vsel %vm5409_vm5, %v1772_v21, %v1777_v32  ;;  %v1780_v22 = vrot.slane %v5745_v26, 6  ;;  %v5785_v21 = vld [vmem:[%s5334_s10 + $0x68] sm:$0x7] }
  0x54   : > { %7493 = vst [vmem:[#allocation39_spill] sm:$0xff] %v5767_v1  ;;  %4608 = vmatprep.mubr.bf16.mxu1 %v3959_v0  ;;  %v1783_v35 = vrot.slane %v5760_v52, 5  ;;  %v1784_v38 = vrot.slane %v5753_v2, 6  ;;  %v4079_v9 = vcombine.low %v1771_v24, %v1778_v31  ;;  %v415_v46 = vrot.slane %v414_v58, 4  ;;  %v5796_v58 = vld [vmem:[%s5334_s10 + $0x6c] sm:$0xf] }
  0x55   : > { %v424_v54 = vor.u32 %v423_v57, %v419_v53  ;;  %v429_v49 = vrot.slane %v5767_v1, 5  ;;  %v1781_v48 = vor.u32 %v1780_v22, %v1779_v50  ;;  %v7340_v0 = vshrl.u32 %v5750_v62, 16  ;;  %v5814_v26 = vld [vmem:[%s5334_s10 + $0x70] sm:$0xf] }
  0x56   : > { %v1785_v39 = vor.u32 %v1784_v38, %v1783_v35  ;;  %v1791_v32 = vrot.slane %v5767_v1, 6  ;;  %4752 = vmatprep.mubr.bf16.mxu0 %v4079_v9  ;;  %v420_v2 = vsel %vm5393_vm4, %v415_v46, %v419_v53  ;;  %v5790_v24 = vshrl.u32 %v5771_v43, 16 }
  0x57   : > { %v425_v52 = vrot.slane %v424_v54, 4  ;;  %v5793_v57 = vshll.u32 %v5771_v43, 16  ;;  %v1782_v50 = vrot.slane %v1781_v48, 4  ;;  %v1790_v22 = vrot.slane %v7340_v0, 5 }
  0x58   : > { %7494 = vst [vmem:[#allocation40_spill] sm:$0xff] %v5790_v24  ;;  %v1787_v31 = vrot.slane %v1785_v39, 4  ;;  %v5801_v35 = vshll.u32 %v5779_v4, 16  ;;  %v434_v38 = vrot.slane %v5790_v24, 4  ;;  %v5808_v46 = vshrl.u32 %v5779_v4, 16 }
  0x59   : > { %7495 = vst [vmem:[#allocation41_spill] sm:$0xff] %v5793_v57  ;;  %v430_v53 = vsel %vm5393_vm4, %v425_v52, %v429_v49  ;;  %v437_v9 = vrot.slane %v5793_v57, 5  ;;  %v1786_v48 = vsel %vm5409_vm5, %v1782_v50, %v1785_v39  ;;  %v1792_v1 = vor.u32 %v1791_v32, %v1790_v22  ;;  %v5828_v39 = vld [vmem:[%s5334_s10 + $0x74] sm:$0x7]  ;;  %v5183_v52 = vld [vmem:[%s7304_s1 + $0x98] sm:$0xff]  }
  0x5a   : > { %7496 = vst [vmem:[#allocation42_spill] sm:$0xff] %v5801_v35  ;;  %7497 = vst [vmem:[#allocation43_spill] sm:$0xff] %v5808_v46  ;;  %v3960_v54 = vcombine.low %v420_v2, %v430_v53  ;;  %v443_v0 = vrot.slane %v5801_v35, 5  ;;  %v447_v51 = vrot.slane %v5808_v46, 4  ;;  %v5818_v49 = vshll.u32 %v5785_v21, 16 }
  0x5b   : > { %v438_v29 = vor.u32 %v437_v9, %v434_v38  ;;  %v4097_v2 = vrot.slane %v5343_v12, 10  ;;  %v1793_v32 = vsel %vm5409_vm5, %v1787_v31, %v1792_v1  ;;  %v2241_v50 = vrot.slane %v5346_v13, 6 }
  0x5c   : > { %7498 = vst [vmem:[#allocation44_spill] sm:$0xff] %v5818_v49  ;;  %4609 = vmatmul.mubr.bf16.gmra.mrb[12].mxu1 %v3960_v54  ;;  %v2244_v22 = vrot.slane %v5349_v14, 6  ;;  %v5835_v53 = vshrl.u32 %v5796_v58, 16  ;;  %v4080_v38 = vcombine.low %v1786_v48, %v1793_v32  ;;  %v448_v35 = vor.u32 %v447_v51, %v443_v0 }
  0x5d   : > { %v439_v9 = vrot.slane %v438_v29, 4  ;;  %v453_v12 = vrot.slane %v5818_v49, 5  ;;  %v2242_v54 = vsel %vm5822_vm8, %v4097_v2, %v2241_v50  ;;  %v2243_v46 = vrot.slane %v2241_v50, 4  ;;  %v5853_v29 = vld [vmem:[%s5334_s10 + $0x78] sm:$0xf] }
  0x5e   : > { %7501 = vst [vmem:[#allocation45_spill] sm:$0xff] %v5835_v53  ;;  %v458_v1 = vrot.slane %v5835_v53, 4  ;;  %v5842_v13 = vshll.u32 %v5796_v58, 16  ;;  %4753 = vmatmul.mubr.bf16.gmra.mrb[12].mxu0 %v4080_v38  ;;  %v449_v44 = vrot.slane %v448_v35, 4  ;;  %v5847_v48 = vshll.u32 %v5814_v26, 16 }
  0x5f   : > { %v444_v31 = vsel %vm5393_vm4, %v439_v9, %v443_v0  ;;  %v5850_v51 = vshrl.u32 %v5814_v26, 16  ;;  %v5856_v2 = vld [vmem:[%s5334_s10 + $0x7c] sm:$0xf]  ;;  %v2245_v32 = vsel %vm5822_vm8, %v2243_v46, %v2244_v22  ;;  %v5862_v38 = vshll.u32 %v5828_v39, 16  ;;  %v5872_v22 = vld [vmem:[%s5334_s10 + $0x80] sm:$0x7] }
  0x60   : > { %7502 = vst [vmem:[#allocation46_spill] sm:$0xff] %v5842_v13  ;;  %7503 = vst [vmem:[#allocation47_spill] sm:$0xff] %v5847_v48  ;;  %v461_v50 = vrot.slane %v5842_v13, 5  ;;  %v4098_v0 = vrot.slane %v5377_v28, 10  ;;  %v454_v35 = vsel %vm5393_vm4, %v449_v44, %v453_v12  ;;  %v4129_v9 = vcombine.low %v2242_v54, %v2245_v32 }
  0x61   : > { %7504 = vst [vmem:[#allocation48_spill] sm:$0xff] %v5850_v51  ;;  %7505 = vst [vmem:[#allocation49_spill] sm:$0xff] %v5862_v38  ;;  %v467_v53 = vrot.slane %v5847_v48, 5  ;;  %v471_v49 = vrot.slane %v5850_v51, 4  ;;  %v3961_v57 = vcombine.low %v444_v31, %v454_v35  ;;  %v477_v63 = vrot.slane %v5862_v38, 5 }
  0x62   : > { %v462_v24 = vor.u32 %v461_v50, %v458_v1  ;;  %4788 = vmatprep.mubr.bf16.mxu0 %v4129_v9  ;;  %v2248_v44 = vrot.slane %v5386_v34, 6  ;;  %v2251_v12 = vrot.slane %v5399_v40, 6  ;;  %v5878_v1 = vshrl.u32 %v5853_v29, 16  ;;  %v5892_v40 = vld [vmem:[%s5334_s10 + $0x84] sm:$0xf] }
  0x63   : > { %v472_v28 = vor.u32 %v471_v49, %v467_v53  ;;  %4612 = vmatprep.mubr.bf16.mxu1 %v3961_v57  ;;  %v5881_v31 = vshll.u32 %v5853_v29, 16  ;;  %v5884_v32 = vshll.u32 %v5856_v2, 16  ;;  %v5889_v34 = vshrl.u32 %v5856_v2, 16 }
  0x64   : > { %v463_v54 = vrot.slane %v462_v24, 4  ;;  %7506 = vst [vmem:[#allocation50_spill] sm:$0xff] %v5878_v1  ;;  %v2249_v49 = vsel %vm5822_vm8, %v4098_v0, %v2248_v44  ;;  %v2250_v35 = vrot.slane %v2248_v44, 4  ;;  %v5895_v24 = vld [vmem:[%s5334_s10 + $0x88] sm:$0xf]  ;;  %v482_v9 = vrot.slane %v5878_v1, 4 }
  0x65   : > { %7507 = vst [vmem:[#allocation51_spill] sm:$0xff] %v5881_v31  ;;  %7508 = vst [vmem:[#allocation52_spill] sm:$0xff] %v5884_v32  ;;  %v473_v50 = vrot.slane %v472_v28, 4  ;;  %v485_v46 = vrot.slane %v5881_v31, 5  ;;  %v491_v28 = vrot.slane %v5884_v32, 5  ;;  %v495_v13 = vrot.slane %v5889_v34, 4 }
  0x66   : > { %7509 = vst [vmem:[#allocation53_spill] sm:$0xff] %v5889_v34  ;;  %v468_v57 = vsel %vm5393_vm4, %v463_v54, %v467_v53  ;;  %v2252_v44 = vsel %vm5822_vm8, %v2250_v35, %v2251_v12  ;;  %v5908_v38 = vshll.u32 %v5872_v22, 16  ;;  %v4099_v54 = vrot.slane %v5445_v5, 10  ;;  %v5912_v1 = vld [vmem:[%s5334_s10 + $0x8c] sm:$0x7] }
  0x67   : > { %v478_v0 = vsel %vm5393_vm4, %v473_v50, %v477_v63  ;;  %v4130_v51 = vcombine.low %v2249_v49, %v2252_v44  ;;  %v486_v53 = vor.u32 %v485_v46, %v482_v9  ;;  %v5164_v32 = vld [vmem:[%s7304_s1 + $0x148] sm:$0xff]   ;;  %v496_v63 = vor.u32 %v495_v13, %v491_v28  ;;  %v5959_v31 = vld [vmem:[%s5334_s10 + $0x98] sm:$0x7] }
  0x68   : > { %7510 = vst [vmem:[#allocation54_spill] sm:$0xff] %v5908_v38  ;;  %v3962_v48 = vcombine.low %v468_v57, %v478_v0  ;;  %v501_v12 = vrot.slane %v5908_v38, 5  ;;  %v2255_v50 = vrot.slane %v5457_v23, 6  ;;  %v2258_v35 = vrot.slane %v5463_v27, 6  ;;  %v5939_v0 = vld [vmem:[%s5334_s10 + $0x94] sm:$0xf] }
  0x69   : > { %4789 = vmatmul.mubr.bf16.vlgmr.msra.gmra.mrb[0].mxu0 %v4130_v51  ;;  %v487_v46 = vrot.slane %v486_v53, 4  ;;  %v5921_v5 = vshrl.u32 %v5892_v40, 16  ;;  %v5924_v49 = vshll.u32 %v5892_v40, 16  ;;  %v5927_v57 = vshll.u32 %v5895_v24, 16  ;;  %v5936_v51 = vld [vmem:[%s5334_s10 + $0x90] sm:$0xf] }
  0x6a   : > { %4613 = vmatmul.mubr.bf16.gmra.mrb[16].mxu1 %v3962_v48  ;;  %4821 = vmatpush3.bf16.msra.mxu0 %v5688_v61  ;;  %v497_v13 = vrot.slane %v496_v63, 4  ;;  %v2256_v23 = vsel %vm5822_vm8, %v4099_v54, %v2255_v50  ;;  %v2257_v9 = vrot.slane %v2255_v50, 4  ;;  %v5933_v48 = vshrl.u32 %v5895_v24, 16  ;;  %v5166_v54 = vld [vmem:[%s7304_s1 + $0x150] sm:$0xff]   ;;  %7516 = vst [vmem:[#allocation60_spill] sm:$0xff] %v5959_v31 }
  0x6b   : > { %7511 = vst [vmem:[#allocation55_spill] sm:$0xff] %v5921_v5  ;;  %7512 = vst [vmem:[#allocation56_spill] sm:$0xff] %v5924_v49  ;;  %v492_v44 = vsel %vm5393_vm4, %v487_v46, %v491_v28  ;;  %v506_v53 = vrot.slane %v5921_v5, 4  ;;  %v509_v61 = vrot.slane %v5924_v49, 5  ;;  %v515_v63 = vrot.slane %v5927_v57, 5  ;;  %4822 = vmatprep.subr.bf16.mxu0 %v5164_v32 }
  0x6c   : > { %7513 = vst [vmem:[#allocation57_spill] sm:$0xff] %v5927_v57  ;;  %7514 = vst [vmem:[#allocation58_spill] sm:$0xff] %v5933_v48  ;;  %v502_v50 = vsel %vm5393_vm4, %v497_v13, %v501_v12  ;;  %v2259_v38 = vsel %vm5822_vm8, %v2257_v9, %v2258_v35  ;;  %v519_v34 = vrot.slane %v5933_v48, 4  ;;  %v5955_v28 = vshll.u32 %v5912_v1, 16  ;;  %v5168_v13 = vld [vmem:[%s7304_s1 + $0x158] sm:$0xff]  }
  0x6d   : > { %v3963_v46 = vcombine.low %v492_v44, %v502_v50  ;;  %v4131_v49 = vcombine.low %v2256_v23, %v2259_v38  ;;  %v510_v5 = vor.u32 %v509_v61, %v506_v53  ;;  %v4100_v57 = vrot.slane %v5497_v60, 10  ;;  %v5982_v53 = vld [vmem:[%s5334_s10 + $0x9c] sm:$0xf] }
  0x6e   : > { %7515 = vst [vmem:[#allocation59_spill] sm:$0xff] %v5955_v28  ;;  %v520_v27 = vor.u32 %v519_v34, %v515_v63  ;;  %v525_v37 = vrot.slane %v5955_v28, 5  ;;  %v2262_v12 = vrot.slane %v5508_v20, 6  ;;  %v2265_v35 = vrot.slane %v5512_v25, 6  ;;  %4823 = vmatpush3.bf16.msra.mxu0 %v5164_v32 }
  0x6f   : > { %4616 = vmatprep.mubr.bf16.mxu1 %v3963_v46  ;;  %4792 = vmatprep.mubr.bf16.mxu0 %v4131_v49  ;;  %v511_v38 = vrot.slane %v510_v5, 4  ;;  %v5968_v60 = vshrl.u32 %v5936_v51, 16  ;;  %v5971_v34 = vshll.u32 %v5936_v51, 16  ;;  %v5974_v23 = vshll.u32 %v5939_v0, 16  ;;  %v5985_v5 = vld [vmem:[%s5334_s10 + $0xa0] sm:$0xf] }
  0x70   : > { %v521_v20 = vrot.slane %v520_v27, 4  ;;  %v2263_v32 = vsel %vm5822_vm8, %v4100_v57, %v2262_v12  ;;  %v2264_v9 = vrot.slane %v2262_v12, 4  ;;  %v5979_v44 = vshrl.u32 %v5939_v0, 16  ;;  %4824 = vmatprep.subr.bf16.mxu0 %v5166_v54 }
  0x71   : > { %7517 = vst [vmem:[#allocation61_spill] sm:$0xff] %v5968_v60  ;;  %7518 = vst [vmem:[#allocation62_spill] sm:$0xff] %v5971_v34  ;;  %v516_v49 = vsel %vm5393_vm4, %v511_v38, %v515_v63  ;;  %v530_v61 = vrot.slane %v5968_v60, 4  ;;  %v533_v50 = vrot.slane %v5971_v34, 5  ;;  %v539_v27 = vrot.slane %v5974_v23, 5 }
  0x72   : > { %7519 = vst [vmem:[#allocation63_spill] sm:$0xff] %v5974_v23  ;;  %7520 = vst [vmem:[#allocation64_spill] sm:$0xff] %v5979_v44  ;;  %v526_v57 = vsel %vm5393_vm4, %v521_v20, %v525_v37  ;;  %v2266_v46 = vsel %vm5822_vm8, %v2264_v9, %v2265_v35  ;;  %v543_v12 = vrot.slane %v5979_v44, 4  ;;  %v5998_v28 = vshll.u32 %v5959_v31, 16  ;;  %4825 = vmatpush3.bf16.msra.mxu0 %v5166_v54  ;;  %v5172_v37 = vld [vmem:[%s7304_s1 + $0x160] sm:$0xff]  }
  0x73   : > { %v3964_v63 = vcombine.low %v516_v49, %v526_v57  ;;  %v4132_v38 = vcombine.low %v2263_v32, %v2266_v46  ;;  %v534_v60 = vor.u32 %v533_v50, %v530_v61  ;;  %v4101_v34 = vrot.slane %v5553_v7, 10  ;;  %4826 = vmatprep.subr.bf16.mxu0 %v5168_v13  ;;  %v6008_v49 = vld [vmem:[%s5334_s10 + $0xa4] sm:$0x7] }
  0x74   : > { %7521 = vst [vmem:[#allocation65_spill] sm:$0xff] %v5998_v28  ;;  %v544_v20 = vor.u32 %v543_v12, %v539_v27  ;;  %v549_v35 = vrot.slane %v5998_v28, 5  ;;  %v2269_v9 = vrot.slane %v5562_v30, 6  ;;  %v2272_v23 = vrot.slane %v5568_v45, 6  ;;  %7522 = vst [vmem:[#allocation66_spill] sm:$0xff] %v6008_v49 }
  0x75   : > { %4617 = vmatmul.mubr.bf16.gmra.mrb[20].mxu1 %v3964_v63  ;;  %4793 = vmatmul.mubr.bf16.gmra.mrb[4].mxu0 %v4132_v38  ;;  %v535_v54 = vrot.slane %v534_v60, 4  ;;  %v6011_v32 = vshrl.u32 %v5982_v53, 16  ;;  %v6014_v7 = vshll.u32 %v5982_v53, 16  ;;  %v6017_v61 = vshll.u32 %v5985_v5, 16  ;;  %v6136_v45 = vld [vmem:[%s5334_s10] sm:$0xf] }
  0x76   : > { %v545_v50 = vrot.slane %v544_v20, 4  ;;  %v2270_v30 = vsel %vm5822_vm8, %v4101_v34, %v2269_v9  ;;  %v2271_v57 = vrot.slane %v2269_v9, 4  ;;  %v6022_v60 = vshrl.u32 %v5985_v5, 16  ;;  %4827 = vmatpush3.bf16.msra.mxu0 %v5168_v13  ;;  %v5176_v20 = vld [vmem:[%s7304_s1 + $0x168] sm:$0xff]   ;;  %7539 = vst [vmem:[#allocation83_spill] sm:$0xff] %v6136_v45 }
  0x77   : > { %7523 = vst [vmem:[#allocation67_spill] sm:$0xff] %v6011_v32  ;;  %7524 = vst [vmem:[#allocation68_spill] sm:$0xff] %v6014_v7  ;;  %v540_v46 = vsel %vm5393_vm4, %v535_v54, %v539_v27  ;;  %v554_v12 = vrot.slane %v6011_v32, 4  ;;  %v557_v63 = vrot.slane %v6014_v7, 5  ;;  %v563_v38 = vrot.slane %v6017_v61, 5  ;;  %4828 = vmatprep.subr.bf16.mxu0 %v5172_v37 }
  0x78   : > { %7525 = vst [vmem:[#allocation69_spill] sm:$0xff] %v6017_v61  ;;  %7526 = vst [vmem:[#allocation70_spill] sm:$0xff] %v6022_v60  ;;  %v550_v34 = vsel %vm5393_vm4, %v545_v50, %v549_v35  ;;  %v2273_v13 = vsel %vm5822_vm8, %v2271_v57, %v2272_v23  ;;  %v567_v9 = vrot.slane %v6022_v60, 4  ;;  %v6038_v27 = vshll.u32 %v6008_v49, 16  ;;  %v6041_v54 = vld [vmem:[%s5334_s10 + $0xa8] sm:$0xf] }
  0x79   : > { %v6044_v61 = vld [vmem:[%s5334_s10 + $0xac] sm:$0xf]  ;;  %v3965_v7 = vcombine.low %v540_v46, %v550_v34  ;;  %v4133_v32 = vcombine.low %v2270_v30, %v2273_v13  ;;  %v558_v28 = vor.u32 %v557_v63, %v554_v12  ;;  %v4102_v44 = vrot.slane %v5607_v42, 10  ;;  %v5180_v57 = vld [vmem:[%s7304_s1 + $0x170] sm:$0xff]  }
  0x7a   : > { %7527 = vst [vmem:[#allocation71_spill] sm:$0xff] %v6038_v27  ;;  %v568_v48 = vor.u32 %v567_v9, %v563_v38  ;;  %v573_v35 = vrot.slane %v6038_v27, 5  ;;  %v2276_v23 = vrot.slane %v5621_v10, 6  ;;  %v2279_v50 = vrot.slane %v5626_v6, 6  ;;  %4829 = vmatpush3.bf16.msra.mxu0 %v5172_v37  ;;  %v6054_v46 = vld [vmem:[%s5334_s10 + $0xb0] sm:$0x7] }
  0x7b   : > { %4620 = vmatprep.mubr.bf16.mxu1 %v3965_v7  ;;  %4796 = vmatprep.mubr.bf16.mxu0 %v4133_v32  ;;  %v559_v60 = vrot.slane %v558_v28, 4  ;;  %v6057_v30 = vshrl.u32 %v6041_v54, 16  ;;  %v6060_v42 = vshll.u32 %v6041_v54, 16  ;;  %v6063_v12 = vshll.u32 %v6044_v61, 16  ;;  %v6084_v6 = vld [vmem:[%s5334_s10 + $0xb4] sm:$0xf] }
  0x7c   : > { %v569_v37 = vrot.slane %v568_v48, 4  ;;  %v2277_v63 = vsel %vm5822_vm8, %v4102_v44, %v2276_v23  ;;  %v2278_v7 = vrot.slane %v2276_v23, 4  ;;  %v6068_v28 = vshrl.u32 %v6044_v61, 16  ;;  %4830 = vmatprep.subr.bf16.mxu0 %v5176_v20 }
  0x7d   : > { %7528 = vst [vmem:[#allocation72_spill] sm:$0xff] %v6057_v30  ;;  %7529 = vst [vmem:[#allocation73_spill] sm:$0xff] %v6060_v42  ;;  %v564_v32 = vsel %vm5393_vm4, %v559_v60, %v563_v38  ;;  %v578_v34 = vrot.slane %v6057_v30, 4  ;;  %v581_v13 = vrot.slane %v6060_v42, 5  ;;  %v587_v9 = vrot.slane %v6063_v12, 5 }
  0x7e   : > { %7530 = vst [vmem:[#allocation74_spill] sm:$0xff] %v6063_v12  ;;  %7531 = vst [vmem:[#allocation75_spill] sm:$0xff] %v6068_v28  ;;  %v574_v48 = vsel %vm5393_vm4, %v569_v37, %v573_v35  ;;  %v2280_v44 = vsel %vm5822_vm8, %v2278_v7, %v2279_v50  ;;  %v591_v23 = vrot.slane %v6068_v28, 4  ;;  %v6081_v27 = vshll.u32 %v6054_v46, 16  ;;  %v6087_v60 = vld [vmem:[%s5334_s10 + $0xb8] sm:$0xf]  ;;  %4831 = vmatpush3.bf16.msra.mxu0 %v5176_v20 }
  0x7f   : > { %v3966_v38 = vcombine.low %v564_v32, %v574_v48  ;;  %v4134_v42 = vcombine.low %v2277_v63, %v2280_v44  ;;  %v582_v12 = vor.u32 %v581_v13, %v578_v34  ;;  %v4103_v30 = vrot.slane %v5671_v3, 10  ;;  %4832 = vmatprep.subr.bf16.mxu0 %v5180_v57  ;;  %v5184_v35 = vld [vmem:[%s7304_s1 + $0x178] sm:$0xff]  }
  0x80   : > { %7532 = vst [vmem:[#allocation76_spill] sm:$0xff] %v6081_v27  ;;  %v592_v50 = vor.u32 %v591_v23, %v587_v9  ;;  %v597_v37 = vrot.slane %v6081_v27, 5  ;;  %v2283_v7 = vrot.slane %v5678_v8, 6  ;;  %v2286_v28 = vrot.slane %v5683_v55, 6  ;;  %v6097_v32 = vld [vmem:[%s5334_s10 + $0xbc] sm:$0x7] }
  0x81   : > { %4621 = vmatmul.mubr.bf16.gmra.mrb[24].mxu1 %v3966_v38  ;;  %4797 = vmatmul.mubr.bf16.gmra.mrb[8].mxu0 %v4134_v42  ;;  %v583_v20 = vrot.slane %v582_v12, 4  ;;  %7533 = vst [vmem:[#allocation77_spill] sm:$0xff] %v6097_v32  ;;  %v6100_v63 = vshrl.u32 %v6084_v6, 16  ;;  %v6103_v34 = vshll.u32 %v6084_v6, 16  ;;  %v6106_v13 = vshll.u32 %v6087_v60, 16 }
  0x82   : > { %v593_v48 = vrot.slane %v592_v50, 4  ;;  %v2284_v44 = vsel %vm5822_vm8, %v4103_v30, %v2283_v7  ;;  %v2285_v23 = vrot.slane %v2283_v7, 4  ;;  %v6111_v38 = vshrl.u32 %v6087_v60, 16  ;;  %4833 = vmatpush3.bf16.msra.mxu0 %v5180_v57 }
  0x83   : > { %7534 = vst [vmem:[#allocation78_spill] sm:$0xff] %v6100_v63  ;;  %7535 = vst [vmem:[#allocation79_spill] sm:$0xff] %v6103_v34  ;;  %v588_v42 = vsel %vm5393_vm4, %v583_v20, %v587_v9  ;;  %v602_v12 = vrot.slane %v6100_v63, 4  ;;  %v605_v27 = vrot.slane %v6103_v34, 5  ;;  %v611_v55 = vrot.slane %v6106_v13, 5  ;;  %4834 = vmatprep.subr.bf16.mxu0 %v5184_v35  ;;  %v6129_v9 = vld [vmem:[%s7304_s1 + $0x180] sm:$0xff]  }
  0x84   : > { %7536 = vst [vmem:[#allocation80_spill] sm:$0xff] %v6106_v13  ;;  %7537 = vst [vmem:[#allocation81_spill] sm:$0xff] %v6111_v38  ;;  %v598_v50 = vsel %vm5393_vm4, %v593_v48, %v597_v37  ;;  %v2287_v30 = vsel %vm5822_vm8, %v2285_v23, %v2286_v28  ;;  %v615_v7 = vrot.slane %v6111_v38, 4  ;;  %v6124_v57 = vshll.u32 %v6097_v32, 16 }
  0x85   : > { %v3967_v20 = vcombine.low %v588_v42, %v598_v50  ;;  %v4135_v13 = vcombine.low %v2284_v44, %v2287_v30  ;;  %v606_v34 = vor.u32 %v605_v27, %v602_v12  ;;  %v4104_v37 = vrot.slane %v5730_v11, 10  ;;  %v6139_v42 = vld [vmem:[%s5334_s10 + $0x4] sm:$0xf] }
  0x86   : > { %7538 = vst [vmem:[#allocation82_spill] sm:$0xff] %v6124_v57  ;;  %v616_v48 = vor.u32 %v615_v7, %v611_v55  ;;  %v621_v28 = vrot.slane %v6124_v57, 5  ;;  %v2290_v23 = vrot.slane %v5735_v56, 6  ;;  %v2293_v38 = vrot.slane %v5750_v62, 6  ;;  %4835 = vmatpush3.bf16.msra.mxu0 %v5184_v35  ;;  %7540 = vst [vmem:[#allocation84_spill] sm:$0xff] %v6139_v42 }
  0x87   : > { %4624 = vmatprep.mubr.bf16.mxu1 %v3967_v20  ;;  %4800 = vmatprep.mubr.bf16.mxu0 %v4135_v13  ;;  %v607_v63 = vrot.slane %v606_v34, 4  ;;  %v3977_v27 = vcombine.low %v6136_v45, %v6139_v42  ;;  %v4105_v44 = vrot.slane %v5771_v43, 10  ;;  %v2297_v12 = vrot.slane %v5779_v4, 6  ;;  %v6154_v57 = vld [vmem:[%s5334_s10 + $0xc] sm:$0xf] }
  0x88   : > { %v617_v50 = vrot.slane %v616_v48, 4  ;;  %v2291_v35 = vsel %vm5822_vm8, %v4104_v37, %v2290_v23  ;;  %v2292_v30 = vrot.slane %v2290_v23, 4  ;;  %v2300_v13 = vrot.slane %v5785_v21, 6  ;;  %4868 = vmatprep.subr.bf16.mxu0 %v6129_v9  ;;  %v6157_v48 = vld [vmem:[%s5334_s10 + $0x10] sm:$0xf] }
  0x89   : > { %v612_v34 = vsel %vm5393_vm4, %v607_v63, %v611_v55  ;;  %v2298_v7 = vsel %vm5822_vm8, %v4105_v44, %v2297_v12  ;;  %v2299_v20 = vrot.slane %v2297_v12, 4  ;;  %7541 = vst [vmem:[#allocation85_spill] sm:$0xff] %v6157_v48  ;;  %v3978_v37 = vcombine.low %v6154_v57, %v6157_v48 }
  0x8a   : > { %v622_v21 = vsel %vm5393_vm4, %v617_v50, %v621_v28  ;;  %v2294_v23 = vsel %vm5822_vm8, %v2292_v30, %v2293_v38  ;;  %v4106_v55 = vrot.slane %v5796_v58, 10  ;;  %v2304_v63 = vrot.slane %v5814_v26, 6  ;;  %v6173_v50 = vld [vmem:[%s5334_s10 + $0x18] sm:$0xf]  ;;  %v6176_v38 = vld [vmem:[%s5334_s10 + $0x1c] sm:$0xf] }
  0x8b   : > { %v3968_v44 = vcombine.low %v612_v34, %v622_v21  ;;  %v4136_v12 = vcombine.low %v2291_v35, %v2294_v23  ;;  %v2301_v42 = vsel %vm5822_vm8, %v2299_v20, %v2300_v13  ;;  %v2307_v45 = vrot.slane %v5828_v39, 6  ;;  %7542 = vst [vmem:[#allocation86_spill] sm:$0xff] %v6173_v50  ;;  %7543 = vst [vmem:[#allocation87_spill] sm:$0xff] %v6176_v38  ;;  %v6184_v13 = vld [vmem:[%s5334_s10 + $0x24] sm:$0xf] }
  0x8c   : > { %v4137_v48 = vcombine.low %v2298_v7, %v2301_v42  ;;  %v2305_v36 = vsel %vm5822_vm8, %v4106_v55, %v2304_v63  ;;  %v2306_v28 = vrot.slane %v2304_v63, 4  ;;  %v3979_v30 = vcombine.low %v6173_v50, %v6176_v38  ;;  %v6187_v34 = vld [vmem:[%s5334_s10 + $0x28] sm:$0xf]  ;;  %v6202_v7 = vld [vmem:[%s5334_s10 + $0x34] sm:$0xf] }
  0x8d   : > { %4625 = vmatmul.mubr.bf16.gmra.mrb[28].mxu1 %v3968_v44  ;;  %4801 = vmatmul.mubr.bf16.gmra.mrb[12].mxu0 %v4136_v12  ;;  %v4107_v35 = vrot.slane %v5853_v29, 10  ;;  %v2311_v39 = vrot.slane %v5856_v2, 6  ;;  %v2314_v42 = vrot.slane %v5872_v22, 6  ;;  %v4108_v21 = vrot.slane %v5892_v40, 10  ;;  %v6199_v12 = vld [vmem:[%s5334_s10 + $0x30] sm:$0xf] }
  0x8e   : > { %4644 = vmatprep.mubr.bf16.mxu1 %v3977_v27  ;;  %4804 = vmatprep.mubr.bf16.mxu0 %v4137_v48  ;;  %v2308_v20 = vsel %vm5822_vm8, %v2306_v28, %v2307_v45  ;;  %v2318_v23 = vrot.slane %v5895_v24, 6  ;;  %v2321_v55 = vrot.slane %v5912_v1, 6  ;;  %v4109_v28 = vrot.slane %v5936_v51, 10 }
  0x8f   : > { %v4138_v22 = vcombine.low %v2305_v36, %v2308_v20  ;;  %v2312_v63 = vsel %vm5822_vm8, %v4107_v35, %v2311_v39  ;;  %v2313_v44 = vrot.slane %v2311_v39, 4  ;;  %v2325_v1 = vrot.slane %v5939_v0, 6  ;;  %v6216_v39 = vld [vmem:[%s5334_s10 + $0x3c] sm:$0xf] }
  0x90   : > { %v6208_v45 = vsel %vm5822_vm8, %v4108_v21, %v2318_v23  ;;  %v2320_v48 = vrot.slane %v2318_v23, 4  ;;  %v2328_v35 = vrot.slane %v5959_v31, 6  ;;  %v4110_v27 = vrot.slane %v5982_v53, 10 }
  0x91   : > { %v2315_v36 = vsel %vm5822_vm8, %v2313_v44, %v2314_v42  ;;  %v2326_v23 = vsel %vm5822_vm8, %v4109_v28, %v2325_v1  ;;  %v2327_v50 = vrot.slane %v2325_v1, 4  ;;  %v5175_v42 = vld [vmem:[%s7304_s1 + $0x88] sm:$0xff]   ;;  %v2332_v31 = vrot.slane %v5985_v5, 6 }
  0x92   : > { %v4139_v38 = vcombine.low %v2312_v63, %v2315_v36  ;;  %v2322_v21 = vsel %vm5822_vm8, %v2320_v48, %v2321_v55  ;;  %v2335_v20 = vrot.slane %v6008_v49, 6  ;;  %v4111_v48 = vrot.slane %v6041_v54, 10 }
  0x93   : > { %v4140_v44 = vcombine.low %v6208_v45, %v2322_v21  ;;  %v2329_v55 = vsel %vm5822_vm8, %v2327_v50, %v2328_v35  ;;  %v2339_v28 = vrot.slane %v6044_v61, 6  ;;  %v2342_v1 = vrot.slane %v6054_v46, 6 }
  0x94   : > { %v4141_v36 = vcombine.low %v2326_v23, %v2329_v55  ;;  %v6240_v45 = vsel %vm5822_vm8, %v4110_v27, %v2332_v31  ;;  %v2334_v21 = vrot.slane %v2332_v31, 4  ;;  %v5179_v31 = vld [vmem:[%s7304_s1 + $0x90] sm:$0xff]  }
  0x95   : > { %4645 = vmatmul.mubr.bf16.vlgmr.msra.gmra.mrb[0].mxu1 %v3978_v37  ;;  %4805 = vmatmul.mubr.bf16.gmra.mrb[16].mxu0 %v4138_v22  ;;  %v6247_v50 = vsel %vm5822_vm8, %v4111_v48, %v2339_v28  ;;  %v2341_v35 = vrot.slane %v2339_v28, 4  ;;  %v4112_v37 = vrot.slane %v6084_v6, 10  ;;  %v2346_v22 = vrot.slane %v6087_v60, 6 }
  0x96   : > { %4677 = vmatpush3.bf16.msra.mxu1 %v5701_v33  ;;  %4648 = vmatprep.mubr.bf16.mxu1 %v3979_v30  ;;  %v6256_v27 = vsel %vm5822_vm8, %v2334_v21, %v2335_v20  ;;  %v2349_v33 = vrot.slane %v6097_v32, 6  ;;  %v2676_v28 = vrot.slane %v5352_v15, 6  ;;  %v2677_v21 = vrot.slane %v5355_v16, 7 }
  0x97   : > { %4808 = vmatprep.mubr.bf16.mxu0 %v4139_v38  ;;  %4678 = vmatprep.subr.bf16.mxu1 %v5175_v42  ;;  %v6265_v38 = vsel %vm5822_vm8, %v2341_v35, %v2342_v1  ;;  %v6269_v55 = vsel %vm5822_vm8, %v4112_v37, %v2346_v22  ;;  %v2348_v48 = vrot.slane %v2346_v22, 4  ;;  %v2680_v1 = vrot.slane %v5361_v18, 6 }
  0x98   : > { %v2681_v35 = vrot.slane %v5358_v17, 7  ;;  %v7544_v37 = vshrl.u32 %v5349_v14, 16  ;;  %v2678_v20 = vor.u32 %v2677_v21, %v2676_v28  ;;  %v2686_v15 = vrot.slane %v5364_v19, 7  ;;  %v7548_v21 = vld [vmem:[#allocation7_spill] sm:$0xff] }
  0x99   : > { %v6277_v30 = vsel %vm5822_vm8, %v2348_v48, %v2349_v33  ;;  %v2689_v18 = vrot.slane %v5402_v41, 6  ;;  %v2693_v33 = vrot.slane %v5431_v59, 6  ;;  %v7547_v19 = vcombine.low %v6184_v13, %v6187_v34 }
  0x9a   : > { %4679 = vmatpush3.bf16.msra.mxu1 %v5175_v42  ;;  %v2685_v22 = vrot.slane %v7544_v37, 6  ;;  %v2682_v14 = vor.u32 %v2681_v35, %v2680_v1  ;;  %v2690_v42 = vrot.slane %v5416_v47, 7  ;;  %v2679_v48 = vrot.slane %v2678_v20, 4  ;;  %v7549_v37 = vld [vmem:[#allocation4_spill] sm:$0xff]  ;;  %v7552_v35 = vld [vmem:[#allocation3_spill] sm:$0xff]  ;;  %v7557_v1 = vld [vmem:[#allocation9_spill] sm:$0xff] }
  0x9b   : > { %4680 = vmatprep.subr.bf16.mxu1 %v5179_v31  ;;  %v7550_v16 = vrot.slane %v7549_v37, 7  ;;  %v7551_v41 = vcombine.low %v6199_v12, %v6202_v7  ;;  %v7553_v23 = vrot.slane %v7552_v35, 7  ;;  %v2707_v32 = vrot.slane %v7557_v1, 7  ;;  %v7560_v1 = vld [vmem:[#allocation11_spill] sm:$0xff] }
  0x9c   : > { %v2687_v28 = vor.u32 %v2686_v15, %v2685_v22  ;;  %v2684_v47 = vrot.slane %v2682_v14, 4  ;;  %v2691_v59 = vor.u32 %v2690_v42, %v2689_v18  ;;  %v6315_v22 = vsel %vm6292_vm11, %v2679_v48, %v2682_v14  ;;  %v7555_v15 = vld [vmem:[#allocation8_spill] sm:$0xff]  ;;  %v7558_v42 = vld [vmem:[#allocation5_spill] sm:$0xff] }
  0x9d   : > { %4649 = vmatmul.mubr.bf16.gmra.mrb[4].mxu1 %v7547_v19  ;;  %4809 = vmatmul.mubr.bf16.gmra.mrb[20].mxu0 %v4140_v44  ;;  %v2700_v63 = vor.u32 %v7550_v16, %v7548_v21  ;;  %v2695_v19 = vor.u32 %v7553_v23, %v2693_v33  ;;  %v7554_v44 = vld [vmem:[#allocation6_spill] sm:$0xff]  ;;  %v2703_v16 = vrot.slane %v7555_v15, 7  ;;  %v7559_v14 = vshrl.u32 %v7558_v42, 16  ;;  %v7561_v15 = vld [vmem:[#allocation12_spill] sm:$0xff] }
  0x9e   : > { %4652 = vmatprep.mubr.bf16.mxu1 %v7551_v41  ;;  %4812 = vmatprep.mubr.bf16.mxu0 %v4141_v36  ;;  %v2702_v20 = vrot.slane %v7554_v44, 6  ;;  %v7556_v21 = vld [vmem:[#allocation10_spill] sm:$0xff]  ;;  %v6322_v36 = vsel %vm6292_vm11, %v2684_v47, %v2687_v28  ;;  %v2712_v44 = vrot.slane %v7560_v1, 7 }
  0x9f   : > { %4681 = vmatpush3.bf16.msra.mxu1 %v5179_v31  ;;  %v2706_v37 = vrot.slane %v7556_v21, 6  ;;  %v5187_v23 = vld [vmem:[%s7304_s1 + $0xa0] sm:$0xff]   ;;  %v2692_v31 = vrot.slane %v2691_v59, 4  ;;  %v2697_v18 = vrot.slane %v2695_v19, 4  ;;  %v2711_v33 = vrot.slane %v7559_v14, 6 }
  0xa0   : > { %4682 = vmatprep.subr.bf16.mxu1 %v5183_v52  ;;  %v4169_v48 = vcombine.low %v6315_v22, %v6322_v36  ;;  %v2704_v41 = vor.u32 %v2703_v16, %v2702_v20  ;;  %v2715_v21 = vrot.slane %v7561_v15, 6  ;;  %v7564_v14 = vld [vmem:[#allocation14_spill] sm:$0xff]  ;;  %v7565_v15 = vshrl.u32 %v5512_v25, 16  ;;  %v7574_v25 = vld [vmem:[#allocation20_spill] sm:$0xff] }
  0xa1   : > { %v2708_v35 = vor.u32 %v2707_v32, %v2706_v37  ;;  %v6334_v28 = vsel %vm6292_vm11, %v2692_v31, %v2695_v19  ;;  %v6338_v47 = vsel %vm6292_vm11, %v2697_v18, %v2700_v63  ;;  %v2713_v37 = vor.u32 %v2712_v44, %v2711_v33  ;;  %v5191_v19 = vld [vmem:[%s7304_s1 + $0xa8] sm:$0xff]   ;;  %v7562_v31 = vld [vmem:[#allocation13_spill] sm:$0xff]  ;;  %v7577_v20 = vld [vmem:[#allocation22_spill] sm:$0xff] }
  0xa2   : > { %v2705_v32 = vrot.slane %v2704_v41, 4  ;;  %v2716_v63 = vrot.slane %v7562_v31, 7  ;;  %v7563_v18 = vld [vmem:[#allocation15_spill] sm:$0xff]  ;;  %v2720_v1 = vrot.slane %v7564_v14, 7  ;;  %v7566_v59 = vcombine.low %v6216_v39, %v5621_v10  ;;  %v7568_v31 = vld [vmem:[#allocation16_spill] sm:$0xff] }
  0xa3   : > { %4683 = vmatpush3.bf16.msra.mxu1 %v5183_v52  ;;  %v2710_v16 = vrot.slane %v2708_v35, 4  ;;  %v2719_v42 = vrot.slane %v7563_v18, 6  ;;  %v2724_v52 = vrot.slane %v7565_v15, 6  ;;  %v7567_v33 = vcombine.low %v6240_v45, %v6256_v27  ;;  %v7572_v14 = vld [vmem:[#allocation19_spill] sm:$0xff] }
  0xa4   : > { %4684 = vmatprep.subr.bf16.mxu1 %v5187_v23  ;;  %v6361_v41 = vsel %vm6292_vm11, %v2705_v32, %v2708_v35  ;;  %v2725_v18 = vrot.slane %v7568_v31, 7  ;;  %v7569_v10 = vcombine.low %v5671_v3, %v5678_v8  ;;  %v7570_v45 = vcombine.low %v6247_v50, %v6265_v38  ;;  %v7571_v32 = vld [vmem:[#allocation18_spill] sm:$0xff]  ;;  %v7575_v50 = vld [vmem:[#allocation17_spill] sm:$0xff] }
  0xa5   : > { %4653 = vmatmul.mubr.bf16.gmra.mrb[8].mxu1 %v7566_v59  ;;  %4813 = vmatmul.mubr.bf16.gmra.mrb[24].mxu0 %v7567_v33  ;;  %v6365_v44 = vsel %vm6292_vm11, %v2710_v16, %v2713_v37  ;;  %v2717_v35 = vor.u32 %v2716_v63, %v2715_v21  ;;  %v2721_v59 = vor.u32 %v2720_v1, %v2719_v42  ;;  %v2728_v16 = vrot.slane %v7571_v32, 6  ;;  %v7573_v33 = vld [vmem:[#allocation21_spill] sm:$0xff]  ;;  %v5195_v21 = vld [vmem:[%s7304_s1 + $0xb0] sm:$0xff]  }
  0xa6   : > { %4656 = vmatprep.mubr.bf16.mxu1 %v7569_v10  ;;  %4816 = vmatprep.mubr.bf16.mxu0 %v7570_v45  ;;  %v2726_v37 = vor.u32 %v2725_v18, %v2724_v52  ;;  %v2729_v15 = vrot.slane %v7572_v14, 7  ;;  %v2732_v31 = vrot.slane %v7573_v33, 6  ;;  %v2733_v3 = vrot.slane %v7574_v25, 7  ;;  %v7578_v1 = vld [vmem:[#allocation24_spill] sm:$0xff]  ;;  %v7580_v33 = vld [vmem:[#allocation27_spill] sm:$0xff] }
  0xa7   : > { %4685 = vmatpush3.bf16.msra.mxu1 %v5187_v23  ;;  %v2718_v8 = vrot.slane %v2717_v35, 4  ;;  %v2723_v10 = vrot.slane %v2721_v59, 4  ;;  %v7576_v38 = vshrl.u32 %v7575_v50, 16  ;;  %v2738_v27 = vrot.slane %v7577_v20, 7  ;;  %v7579_v35 = vld [vmem:[#allocation25_spill] sm:$0xff]  ;;  %v7581_v50 = vld [vmem:[#allocation26_spill] sm:$0xff] }
  0xa8   : > { %4686 = vmatprep.subr.bf16.mxu1 %v5191_v19  ;;  %v2730_v23 = vor.u32 %v2729_v15, %v2728_v16  ;;  %v2734_v63 = vor.u32 %v2733_v3, %v2732_v31  ;;  %v2741_v52 = vrot.slane %v7578_v1, 6  ;;  %v2742_v32 = vrot.slane %v7579_v35, 7 }
  0xa9   : > { %v2737_v45 = vrot.slane %v7576_v38, 6  ;;  %v6393_v18 = vsel %vm6292_vm11, %v2718_v8, %v2721_v59  ;;  %v6397_v25 = vsel %vm6292_vm11, %v2723_v10, %v2726_v37  ;;  %v2745_v31 = vrot.slane %v7580_v33, 6  ;;  %v7582_v8 = vld [vmem:[#allocation23_spill] sm:$0xff]  ;;  %v7584_v37 = vld [vmem:[#allocation28_spill] sm:$0xff] }
  0xaa   : > { %v4172_v16 = vcombine.low %v6393_v18, %v6397_v25  ;;  %v2731_v14 = vrot.slane %v2730_v23, 4  ;;  %v2736_v15 = vrot.slane %v2734_v63, 4  ;;  %v2743_v3 = vor.u32 %v2742_v32, %v2741_v52  ;;  %v7587_v32 = vld [vmem:[#allocation30_spill] sm:$0xff] }
  0xab   : > { %v2739_v20 = vor.u32 %v2738_v27, %v2737_v45  ;;  %4687 = vmatpush3.bf16.msra.mxu1 %v5191_v19  ;;  %v2746_v59 = vrot.slane %v7581_v50, 7  ;;  %v7583_v38 = vshrl.u32 %v7582_v8, 16  ;;  %v2751_v10 = vrot.slane %v7584_v37, 7  ;;  %v5199_v27 = vld [vmem:[%s7304_s1 + $0xb8] sm:$0xff]   ;;  %v7591_v8 = vld [vmem:[#allocation32_spill] sm:$0xff]  ;;  %v7619_v18 = vld [vmem:[#allocation46_spill] sm:$0xff] }
  0xac   : > { %4688 = vmatprep.subr.bf16.mxu1 %v5195_v21  ;;  %v7585_v19 = vcombine.low %v5730_v11, %v5735_v56  ;;  %v7586_v45 = vcombine.low %v6269_v55, %v6277_v30  ;;  %v6418_v23 = vsel %vm6292_vm11, %v2731_v14, %v2734_v63  ;;  %v2754_v33 = vrot.slane %v7587_v32, 6  ;;  %v7592_v37 = vld [vmem:[#allocation29_spill] sm:$0xff] }
  0xad   : > { %v2750_v1 = vrot.slane %v7583_v38, 6  ;;  %v6422_v52 = vsel %vm6292_vm11, %v2736_v15, %v2739_v20  ;;  %v7588_v11 = vcombine.low %v5771_v43, %v5779_v4  ;;  %v2744_v30 = vrot.slane %v2743_v3, 4  ;;  %v7589_v20 = vld [vmem:[#allocation31_spill] sm:$0xff]  ;;  %v7590_v15 = vld [vmem:[#allocation33_spill] sm:$0xff] }
  0xae   : > { %4657 = vmatmul.mubr.bf16.gmra.mrb[12].mxu1 %v7585_v19  ;;  %4817 = vmatmul.mubr.bf16.gmra.mrb[28].mxu0 %v7586_v45  ;;  %v4173_v56 = vcombine.low %v6418_v23, %v6422_v52  ;;  %v2747_v55 = vor.u32 %v2746_v59, %v2745_v31  ;;  %v2755_v14 = vrot.slane %v7589_v20, 7  ;;  %v2758_v50 = vrot.slane %v7590_v15, 6  ;;  %v7595_v59 = vld [vmem:[#allocation35_spill] sm:$0xff]  ;;  %v7614_v31 = vld [vmem:[#allocation85_spill] sm:$0xff] }
  0xaf   : > { %4660 = vmatprep.mubr.bf16.mxu1 %v7588_v11  ;;  %4836 = vmatprep.mubr.bf16.mxu0 %v4169_v48  ;;  %v2752_v63 = vor.u32 %v2751_v10, %v2750_v1  ;;  %v2759_v38 = vrot.slane %v7591_v8, 7  ;;  %v7593_v43 = vshrl.u32 %v7592_v37, 16  ;;  %v7594_v48 = vld [vmem:[#allocation34_spill] sm:$0xff]  ;;  %v2767_v1 = vrot.slane %v7595_v59, 6  ;;  %v7596_v10 = vld [vmem:[#allocation36_spill] sm:$0xff]  ;;  %v5192_v8 = vld [vmem:[%s7304_s1 + $0x188] sm:$0xff]  }
  0xb0   : > { %4689 = vmatpush3.bf16.msra.mxu1 %v5195_v21  ;;  %v6442_v22 = vsel %vm6292_vm11, %v2744_v30, %v2747_v55  ;;  %v2749_v36 = vrot.slane %v2747_v55, 4  ;;  %v2764_v19 = vrot.slane %v7594_v48, 7  ;;  %v2756_v21 = vor.u32 %v2755_v14, %v2754_v33  ;;  %v7597_v30 = vld [vmem:[#allocation38_spill] sm:$0xff]  ;;  %v7598_v55 = vld [vmem:[#allocation37_spill] sm:$0xff]  ;;  %v6546_v33 = vld [vmem:[%s5334_s10 + $0x74] sm:$0x7] }
  0xb1   : > { %v2763_v4 = vrot.slane %v7593_v43, 6  ;;  %4690 = vmatprep.subr.bf16.mxu1 %v5199_v27  ;;  %v2760_v3 = vor.u32 %v2759_v38, %v2758_v50  ;;  %v2768_v45 = vrot.slane %v7596_v10, 7  ;;  %v2771_v20 = vrot.slane %v7597_v30, 6  ;;  %v6466_v48 = vld [vmem:[%s7304_s1 + $0xc0] sm:$0xff]   ;;  %v6506_v30 = vld [vmem:[%s5334_s10 + $0x8] sm:$0x7] }
  0xb2   : > { %v6451_v32 = vsel %vm6292_vm11, %v2749_v36, %v2752_v63  ;;  %v2772_v15 = vrot.slane %v7598_v55, 7  ;;  %v2757_v14 = vrot.slane %v2756_v21, 4  ;;  %v7599_v63 = vshrl.u32 %v5750_v62, 16  ;;  %v6510_v55 = vld [vmem:[%s5334_s10 + $0x68] sm:$0x7] }
  0xb3   : > { %v2765_v11 = vor.u32 %v2764_v19, %v2763_v4  ;;  %v2762_v50 = vrot.slane %v2760_v3, 4  ;;  %v2769_v38 = vor.u32 %v2768_v45, %v2767_v1  ;;  %v7600_v4 = vld [vmem:[#allocation39_spill] sm:$0xff]  ;;  %v7601_v19 = vcombine.low %v5796_v58, %v5814_v26  ;;  %v6537_v58 = vld [vmem:[%s5334_s10 + $0x14] sm:$0x7] }
  0xb4   : > { %4691 = vmatpush3.bf16.msra.mxu1 %v5199_v27  ;;  %v2773_v37 = vor.u32 %v2772_v15, %v2771_v20  ;;  %v2776_v43 = vrot.slane %v7599_v63, 6  ;;  %v2777_v36 = vrot.slane %v7600_v4, 7  ;;  %v7602_v27 = vcombine.low %v6334_v28, %v6338_v47  ;;  %v7606_v1 = vld [vmem:[#allocation83_spill] sm:$0xff]  ;;  %v7609_v15 = vld [vmem:[#allocation40_spill] sm:$0xff] }
  0xb5   : > { %4916 = vmatprep.subr.bf16.mxu1 %v6466_v48  ;;  %v6477_v62 = vsel %vm6292_vm11, %v2757_v14, %v2760_v3  ;;  %v6481_v21 = vsel %vm6292_vm11, %v2762_v50, %v2765_v11  ;;  %v2770_v59 = vrot.slane %v2769_v38, 4  ;;  %v7603_v26 = vcombine.low %v5853_v29, %v5856_v2  ;;  %v5196_v29 = vld [vmem:[%s7304_s1 + $0x190] sm:$0xff]   ;;  %v7610_v50 = vld [vmem:[#allocation41_spill] sm:$0xff]  ;;  %v7621_v23 = vld [vmem:[#allocation47_spill] sm:$0xff] }
  0xb6   : > { %4661 = vmatmul.mubr.bf16.gmra.mrb[16].mxu1 %v7601_v19  ;;  %4837 = vmatmul.mubr.bf16.vlgmr.msra.gmra.mrb[0].mxu0 %v7602_v27  ;;  %v2775_v28 = vrot.slane %v2773_v37, 4  ;;  %v2778_v47 = vor.u32 %v2777_v36, %v2776_v43  ;;  %v4001_v10 = vrot.slane %v7606_v1, 9  ;;  %v7607_v45 = vcombine.low %v6361_v41, %v6365_v44  ;;  %v7612_v19 = vld [vmem:[#allocation42_spill] sm:$0xff] }
  0xb7   : > { %4869 = vmatpush3.bf16.msra.mxu0 %v6129_v9  ;;  %4664 = vmatprep.mubr.bf16.mxu1 %v7603_v26  ;;  %v6502_v2 = vsel %vm6292_vm11, %v2770_v59, %v2773_v37  ;;  %v7608_v9 = vld [vmem:[#allocation84_spill] sm:$0xff]  ;;  %v1242_v20 = vrot.slane %v6506_v30, 5  ;;  %v7445_v41 = vshrl.u32 %v6510_v55, 16  ;;  %v2780_v14 = vrot.slane %v7609_v15, 6  ;;  %v7611_v37 = vld [vmem:[#allocation43_spill] sm:$0xff] }
  0xb8   : > { %4840 = vmatprep.mubr.bf16.mxu0 %v7607_v45  ;;  %4870 = vmatprep.subr.bf16.mxu0 %v5192_v8  ;;  %v1239_v11 = vrot.slane %v7608_v9, 5  ;;  %v6515_v44 = vsel %vm6292_vm11, %v2775_v28, %v2778_v47  ;;  %v2781_v38 = vrot.slane %v7610_v50, 7  ;;  %v2784_v63 = vrot.slane %v7611_v37, 6  ;;  %v7613_v28 = vld [vmem:[#allocation44_spill] sm:$0xff] }
  0xb9   : > { %v2785_v27 = vrot.slane %v7612_v19, 7  ;;  %v2789_v26 = vrot.slane %v7445_v41, 6  ;;  %v2790_v47 = vrot.slane %v7613_v28, 7  ;;  %v4002_v45 = vrot.slane %v6154_v57, 9 }
  0xba   : > { %v6524_v4 = vsel %vm6489_vm14, %v4001_v10, %v1239_v11  ;;  %v1241_v36 = vrot.slane %v1239_v11, 4  ;;  %v2782_v59 = vor.u32 %v2781_v38, %v2780_v14  ;;  %v1246_v11 = vrot.slane %v7614_v31, 5  ;;  %v5200_v14 = vld [vmem:[%s7304_s1 + $0x198] sm:$0xff]  }
  0xbb   : > { %4871 = vmatpush3.bf16.msra.mxu0 %v5192_v8  ;;  %v2786_v10 = vor.u32 %v2785_v27, %v2784_v63  ;;  %v1249_v8 = vrot.slane %v6537_v58, 5  ;;  %v2791_v35 = vor.u32 %v2790_v47, %v2789_v26  ;;  %v7615_v63 = vcombine.low %v5892_v40, %v5895_v24 }
  0xbc   : > { %4872 = vmatprep.subr.bf16.mxu0 %v5196_v29  ;;  %v6533_v43 = vsel %vm6489_vm14, %v1241_v36, %v1242_v20  ;;  %v2783_v41 = vrot.slane %v2782_v59, 4  ;;  %v1818_v20 = vshrl.u32 %v6546_v33, 16  ;;  %v6557_v27 = vsel %vm6489_vm14, %v4002_v45, %v1246_v11  ;;  %v7616_v59 = vld [vmem:[#allocation45_spill] sm:$0xff] }
  0xbd   : > { %v2788_v36 = vrot.slane %v2786_v10, 4  ;;  %v1248_v38 = vrot.slane %v1246_v11, 4  ;;  %v2793_v26 = vrot.slane %v7616_v59, 6  ;;  %v7617_v47 = vcombine.low %v5936_v51, %v5939_v0  ;;  %v7622_v11 = vld [vmem:[#allocation49_spill] sm:$0xff] }
  0xbe   : > { %4665 = vmatmul.mubr.bf16.gmra.mrb[20].mxu1 %v7615_v63  ;;  %4841 = vmatmul.mubr.bf16.gmra.mrb[4].mxu0 %v4172_v16  ;;  %v6568_v40 = vsel %vm6292_vm11, %v2783_v41, %v2786_v10  ;;  %v6570_v24 = vrot.slane %v1818_v20, 5  ;;  %v2794_v25 = vrot.slane %v7619_v18, 7  ;;  %v7620_v16 = vld [vmem:[#allocation48_spill] sm:$0xff]  ;;  %v2798_v52 = vrot.slane %v7621_v23, 7  ;;  %v7626_v18 = vld [vmem:[#allocation51_spill] sm:$0xff] }
  0xbf   : > { %4668 = vmatprep.mubr.bf16.mxu1 %v7617_v47  ;;  %4844 = vmatprep.mubr.bf16.mxu0 %v4173_v56  ;;  %v2797_v45 = vrot.slane %v7620_v16, 6  ;;  %v6576_v51 = vsel %vm6292_vm11, %v2788_v36, %v2791_v35  ;;  %v6580_v0 = vsel %vm6489_vm14, %v1248_v38, %v1249_v8  ;;  %v2802_v56 = vrot.slane %v1818_v20, 6  ;;  %v5201_v35 = vld [vmem:[%s7304_s1 + $0x1a0] sm:$0xff]   ;;  %v7624_v47 = vld [vmem:[#allocation87_spill] sm:$0xff] }
  0xc0   : > { %7618 = vst [vmem:[#allocation7_spill] sm:$0xff] %v6570_v24  ;;  %4873 = vmatpush3.bf16.msra.mxu0 %v5196_v29  ;;  %v2795_v29 = vor.u32 %v2794_v25, %v2793_v26  ;;  %v2803_v63 = vrot.slane %v7622_v11, 7  ;;  %v7623_v38 = vld [vmem:[#allocation86_spill] sm:$0xff]  ;;  %v1253_v42 = vrot.slane %v7624_v47, 5  ;;  %v2807_v59 = vrot.slane %v7626_v18, 7 }
  0xc1   : > { %4874 = vmatprep.subr.bf16.mxu0 %v5200_v14  ;;  %v2799_v8 = vor.u32 %v2798_v52, %v2797_v45  ;;  %v4003_v36 = vrot.slane %v7623_v38, 9  ;;  %v6594_v20 = vld [vmem:[%s5334_s10 + $0x20] sm:$0x7] }
  0xc2   : > { %v1256_v23 = vrot.slane %v6594_v20, 5  ;;  %v2796_v41 = vrot.slane %v2795_v29, 4  ;;  %v2804_v24 = vor.u32 %v2803_v63, %v2802_v56  ;;  %v6598_v16 = vld [vmem:[%s5334_s10 + $0x80] sm:$0x7]  ;;  %v1255_v52 = vrot.slane %v1253_v42, 4  ;;  %v7627_v56 = vld [vmem:[#allocation53_spill] sm:$0xff] }
  0xc3   : > { %v7625_v25 = vld [vmem:[#allocation50_spill] sm:$0xff]  ;;  %v2801_v11 = vrot.slane %v2799_v8, 4  ;;  %v6604_v45 = vsel %vm6489_vm14, %v4003_v36, %v1253_v42  ;;  %v2810_v29 = vrot.slane %v7627_v56, 6  ;;  %v7628_v63 = vld [vmem:[#allocation52_spill] sm:$0xff]  ;;  %v5202_v36 = vld [vmem:[%s7304_s1 + $0x1a8] sm:$0xff]   ;;  %v7630_v42 = vcombine.low %v5982_v53, %v5985_v5 }
  0xc4   : > { %v2806_v10 = vrot.slane %v7625_v25, 6  ;;  %4875 = vmatpush3.bf16.msra.mxu0 %v5200_v14  ;;  %v6609_v28 = vsel %vm6292_vm11, %v2796_v41, %v2799_v8  ;;  %v2811_v26 = vrot.slane %v7628_v63, 7  ;;  %v7629_v25 = vshrl.u32 %v6598_v16, 16  ;;  %v7632_v56 = vld [vmem:[#allocation54_spill] sm:$0xff] }
  0xc5   : > { %4876 = vmatprep.subr.bf16.mxu0 %v5201_v35  ;;  %v7631_v41 = vcombine.low %v6442_v22, %v6451_v32  ;;  %v6626_v8 = vsel %vm6292_vm11, %v2801_v11, %v2804_v24  ;;  %v2816_v18 = vrot.slane %v7632_v56, 7  ;;  %v7633_v53 = vcombine.low %v6041_v54, %v6044_v61  ;;  %v6646_v61 = vld [vmem:[%s5334_s10 + $0x2c] sm:$0x7] }
  0xc6   : > { %v2815_v14 = vrot.slane %v7629_v25, 6  ;;  %4669 = vmatmul.mubr.bf16.gmra.mrb[24].mxu1 %v7630_v42  ;;  %v6630_v25 = vsel %vm6489_vm14, %v1255_v52, %v1256_v23  ;;  %v2808_v63 = vor.u32 %v2807_v59, %v2806_v10  ;;  %v7634_v5 = vcombine.low %v6477_v62, %v6481_v21  ;;  %v6650_v21 = vld [vmem:[%s5334_s10 + $0x8c] sm:$0x7]  ;;  %v7638_v52 = vld [vmem:[#allocation57_spill] sm:$0xff] }
  0xc7   : > { %4845 = vmatmul.mubr.bf16.gmra.mrb[8].mxu0 %v7631_v41  ;;  %4672 = vmatprep.mubr.bf16.mxu1 %v7633_v53  ;;  %v2812_v24 = vor.u32 %v2811_v26, %v2810_v29  ;;  %v4004_v23 = vrot.slane %v6184_v13, 9  ;;  %v1260_v11 = vrot.slane %v6187_v34, 5  ;;  %v1263_v54 = vrot.slane %v6646_v61, 5  ;;  %v7635_v42 = vld [vmem:[#allocation55_spill] sm:$0xff]  ;;  %v7636_v53 = vld [vmem:[#allocation56_spill] sm:$0xff] }
  0xc8   : > { %4848 = vmatprep.mubr.bf16.mxu0 %v7634_v5  ;;  %4877 = vmatpush3.bf16.msra.mxu0 %v5201_v35  ;;  %v2809_v59 = vrot.slane %v2808_v63, 4  ;;  %v2817_v10 = vor.u32 %v2816_v18, %v2815_v14  ;;  %v2819_v41 = vrot.slane %v7635_v42, 6  ;;  %v2820_v26 = vrot.slane %v7636_v53, 7  ;;  %v5203_v18 = vld [vmem:[%s7304_s1 + $0x1b0] sm:$0xff]   ;;  %v7637_v14 = vld [vmem:[#allocation58_spill] sm:$0xff] }
  0xc9   : > { %v2814_v62 = vrot.slane %v2812_v24, 4  ;;  %4878 = vmatprep.subr.bf16.mxu0 %v5202_v36  ;;  %v6664_v29 = vsel %vm6489_vm14, %v4004_v23, %v1260_v11  ;;  %v1262_v63 = vrot.slane %v1260_v11, 4  ;;  %v2823_v5 = vrot.slane %v7637_v14, 6 }
  0xca   : > { %v6660_v35 = vsel %vm6292_vm11, %v2809_v59, %v2812_v24  ;;  %v2821_v22 = vor.u32 %v2820_v26, %v2819_v41  ;;  %v2824_v53 = vrot.slane %v7638_v52, 7  ;;  %v7639_v42 = vshrl.u32 %v6650_v21, 16  ;;  %v7640_v59 = vld [vmem:[#allocation59_spill] sm:$0xff]  ;;  %v6695_v24 = vld [vmem:[%s5334_s10 + $0x38] sm:$0x7] }
  0xcb   : > { %v6669_v32 = vsel %vm6292_vm11, %v2814_v62, %v2817_v10  ;;  %v6678_v23 = vsel %vm6489_vm14, %v1262_v63, %v1263_v54  ;;  %v2829_v11 = vrot.slane %v7640_v59, 7  ;;  %v4005_v10 = vrot.slane %v6199_v12, 9  ;;  %v7644_v62 = vld [vmem:[#allocation61_spill] sm:$0xff] }
  0xcc   : > { %v2828_v56 = vrot.slane %v7639_v42, 6  ;;  %4879 = vmatpush3.bf16.msra.mxu0 %v5202_v36  ;;  %v2822_v41 = vrot.slane %v2821_v22, 4  ;;  %v2825_v26 = vor.u32 %v2824_v53, %v2823_v5  ;;  %v1267_v52 = vrot.slane %v6202_v7, 5  ;;  %v5204_v42 = vld [vmem:[%s7304_s1 + $0x1b8] sm:$0xff]   ;;  %v7643_v53 = vld [vmem:[#allocation60_spill] sm:$0xff] }
  0xcd   : > { %4880 = vmatprep.subr.bf16.mxu0 %v5203_v18  ;;  %v7641_v54 = vcombine.low %v6084_v6, %v6087_v60  ;;  %v7642_v36 = vcombine.low %v6502_v2, %v6515_v44  ;;  %v1270_v22 = vrot.slane %v6695_v24, 5  ;;  %v7446_v5 = vshrl.u32 %v7643_v53, 16 }
  0xce   : > { %v2830_v63 = vor.u32 %v2829_v11, %v2828_v56  ;;  %v2832_v59 = vrot.slane %v7644_v62, 6  ;;  %v7645_v14 = vcombine.low %v6524_v4, %v6533_v43  ;;  %v7646_v6 = vcombine.low %v6568_v40, %v6576_v51  ;;  %v7647_v11 = vld [vmem:[#allocation62_spill] sm:$0xff]  ;;  %v7649_v4 = vld [vmem:[#allocation63_spill] sm:$0xff]  ;;  %v7652_v62 = vld [vmem:[#allocation68_spill] sm:$0xff] }
  0xcf   : > { %4673 = vmatmul.mubr.bf16.gmra.mrb[28].mxu1 %v7641_v54  ;;  %4849 = vmatmul.mubr.bf16.gmra.mrb[12].mxu0 %v7642_v36  ;;  %v6708_v60 = vsel %vm6292_vm11, %v2822_v41, %v2825_v26  ;;  %v2827_v2 = vrot.slane %v2825_v26, 4  ;;  %v6712_v44 = vsel %vm6489_vm14, %v4005_v10, %v1267_v52  ;;  %v1269_v56 = vrot.slane %v1267_v52, 4  ;;  %v7648_v36 = vld [vmem:[#allocation64_spill] sm:$0xff]  ;;  %v7650_v52 = vld [vmem:[#allocation65_spill] sm:$0xff] }
  0xd0   : > { %4692 = vmatprep.mubr.bf16.mxu1 %v7645_v14  ;;  %4852 = vmatprep.mubr.bf16.mxu0 %v7646_v6  ;;  %v2833_v54 = vrot.slane %v7647_v11, 7  ;;  %v2836_v43 = vrot.slane %v7648_v36, 6  ;;  %v2837_v14 = vrot.slane %v7649_v4, 7  ;;  %v2841_v40 = vrot.slane %v7446_v5, 6  ;;  %v7651_v11 = vld [vmem:[#allocation67_spill] sm:$0xff] }
  0xd1   : > { %4881 = vmatpush3.bf16.msra.mxu0 %v5203_v18  ;;  %v6721_v51 = vsel %vm6292_vm11, %v2827_v2, %v2830_v63  ;;  %v6725_v10 = vsel %vm6489_vm14, %v1269_v56, %v1270_v22  ;;  %v2842_v41 = vrot.slane %v7650_v52, 7  ;;  %v4006_v26 = vrot.slane %v6216_v39, 9  ;;  %v6734_v63 = vld [vmem:[%s5334_s10 + $0x40] sm:$0xf]  ;;  %v6738_v22 = vld [vmem:[%s5334_s10 + $0x44] sm:$0x7] }
  0xd2   : > { %4882 = vmatprep.subr.bf16.mxu0 %v5204_v42  ;;  %v2834_v18 = vor.u32 %v2833_v54, %v2832_v59  ;;  %v2838_v53 = vor.u32 %v2837_v14, %v2836_v43  ;;  %v1274_v2 = vrot.slane %v6734_v63, 5  ;;  %v1277_v56 = vrot.slane %v6738_v22, 5  ;;  %v7653_v43 = vld [vmem:[#allocation70_spill] sm:$0xff] }
  0xd3   : > { %v2843_v4 = vor.u32 %v2842_v41, %v2841_v40  ;;  %v7448_v39 = vshrl.u32 %v6008_v49, 16  ;;  %v2845_v6 = vrot.slane %v7651_v11, 6  ;;  %v2846_v19 = vrot.slane %v7652_v62, 7  ;;  %v7654_v40 = vld [vmem:[#allocation69_spill] sm:$0xff] }
  0xd4   : > { %v2835_v52 = vrot.slane %v2834_v18, 4  ;;  %v2840_v36 = vrot.slane %v2838_v53, 4  ;;  %v6746_v59 = vsel %vm6489_vm14, %v4006_v26, %v1274_v2  ;;  %v1276_v54 = vrot.slane %v1274_v2, 4 }
  0xd5   : > { %4883 = vmatpush3.bf16.msra.mxu0 %v5204_v42  ;;  %v2849_v14 = vrot.slane %v7653_v43, 6  ;;  %v2850_v41 = vrot.slane %v7654_v40, 7  ;;  %v7655_v5 = vcombine.low %v6557_v27, %v6580_v0  ;;  %v7656_v18 = vcombine.low %v6609_v28, %v6626_v8 }
  0xd6   : > { %v2839_v42 = vsel %vm6292_vm11, %v2835_v52, %v2838_v53  ;;  %v2844_v26 = vsel %vm6292_vm11, %v2840_v36, %v2843_v4  ;;  %v2847_v2 = vor.u32 %v2846_v19, %v2845_v6  ;;  %v2854_v40 = vrot.slane %v7448_v39, 6  ;;  %v7658_v53 = vld [vmem:[#allocation71_spill] sm:$0xff] }
  0xd7   : > { %4693 = vmatmul.mubr.bf16.vlgmr.msra.gmra.mrb[0].mxu1 %v7655_v5  ;;  %4853 = vmatmul.mubr.bf16.gmra.mrb[16].mxu0 %v7656_v18  ;;  %v7657_v27 = vcombine.low %v6604_v45, %v6630_v25  ;;  %v4181_v28 = vcombine.low %v2839_v42, %v2844_v26  ;;  %v6768_v0 = vsel %vm6489_vm14, %v1276_v54, %v1277_v56  ;;  %v2855_v5 = vrot.slane %v7658_v53, 7  ;;  %v6780_v36 = vld [vmem:[%s5334_s10 + $0x48] sm:$0xf]  ;;  %v6784_v52 = vld [vmem:[%s5334_s10 + $0x4c] sm:$0xf]  ;;  %v7660_v26 = vld [vmem:[#allocation72_spill] sm:$0xff] }
  0xd8   : > { %4924 = vmatpush3.bf16.msra.mxu1 %v6466_v48  ;;  %v2851_v8 = vor.u32 %v2850_v41, %v2849_v14  ;;  %v7659_v19 = vcombine.low %v6660_v35, %v6669_v32  ;;  %v5228_v48 = vld [vmem:[%s7304_s1 + $0xc8] sm:$0xff]   ;;  %v2848_v25 = vrot.slane %v2847_v2, 4  ;;  %v4007_v4 = vrot.slane %v6780_v36, 9  ;;  %v6788_v35 = vld [vmem:[%s5334_s10 + $0x50] sm:$0x7]  ;;  %v7663_v45 = vld [vmem:[#allocation74_spill] sm:$0xff] }
  0xd9   : > { %4696 = vmatprep.mubr.bf16.mxu1 %v7657_v27  ;;  %4917 = vmatprep.subr.bf16.mxu1 %v5228_v48  ;;  %v1281_v6 = vrot.slane %v6784_v52, 5  ;;  %v2856_v32 = vor.u32 %v2855_v5, %v2854_v40  ;;  %v1284_v54 = vrot.slane %v6788_v35, 5  ;;  %v7450_v14 = vshrl.u32 %v6054_v46, 16  ;;  %v7661_v27 = vld [vmem:[#allocation73_spill] sm:$0xff] }
  0xda   : > { %4856 = vmatprep.mubr.bf16.mxu0 %v7659_v19  ;;  %v2853_v56 = vrot.slane %v2851_v8, 4  ;;  %v6794_v41 = vsel %vm6292_vm11, %v2848_v25, %v2851_v8  ;;  %v2858_v2 = vrot.slane %v7660_v26, 6  ;;  %v2859_v5 = vrot.slane %v7661_v27, 7  ;;  %v7662_v19 = vld [vmem:[#allocation75_spill] sm:$0xff]  ;;  %v5232_v25 = vld [vmem:[%s7304_s1 + $0xd0] sm:$0xff]  }
  0xdb   : > { %v6798_v18 = vsel %vm6489_vm14, %v4007_v4, %v1281_v6  ;;  %v1283_v42 = vrot.slane %v1281_v6, 4  ;;  %v2862_v39 = vrot.slane %v7662_v19, 6  ;;  %v2863_v8 = vrot.slane %v7663_v45, 7  ;;  %v6817_v26 = vld [vmem:[%s5334_s10 + $0x54] sm:$0xf] }
  0xdc   : > { %4925 = vmatpush3.bf16.msra.mxu1 %v5228_v48  ;;  %v2857_v40 = vsel %vm6292_vm11, %v2853_v56, %v2856_v32  ;;  %v2867_v6 = vrot.slane %v7450_v14, 6  ;;  %v7664_v56 = vld [vmem:[#allocation76_spill] sm:$0xff]  ;;  %v2860_v27 = vor.u32 %v2859_v5, %v2858_v2  ;;  %v4008_v53 = vrot.slane %v6817_v26, 9  ;;  %v7667_v2 = vld [vmem:[#allocation77_spill] sm:$0xff] }
  0xdd   : > { %4918 = vmatprep.subr.bf16.mxu1 %v5232_v25  ;;  %v4182_v4 = vcombine.low %v6794_v41, %v2857_v40  ;;  %v1285_v48 = vsel %vm6489_vm14, %v1283_v42, %v1284_v54  ;;  %v2868_v32 = vrot.slane %v7664_v56, 7  ;;  %v2864_v45 = vor.u32 %v2863_v8, %v2862_v39  ;;  %v6827_v42 = vld [vmem:[%s5334_s10 + $0x58] sm:$0xf]  ;;  %v7672_v5 = vld [vmem:[#allocation80_spill] sm:$0xff] }
  0xde   : > { %v4039_v19 = vcombine.low %v6798_v18, %v1285_v48  ;;  %v7665_v49 = vcombine.low %v6664_v29, %v6678_v23  ;;  %v7666_v54 = vcombine.low %v6708_v60, %v6721_v51  ;;  %v1288_v40 = vrot.slane %v6827_v42, 5  ;;  %v6831_v18 = vld [vmem:[%s5334_s10 + $0x5c] sm:$0x7]  ;;  %v7669_v23 = vld [vmem:[#allocation78_spill] sm:$0xff]  ;;  %v7670_v51 = vld [vmem:[#allocation79_spill] sm:$0xff] }
  0xdf   : > { %v2869_v41 = vor.u32 %v2868_v32, %v2867_v6  ;;  %v1291_v39 = vrot.slane %v6831_v18, 5  ;;  %v7668_v8 = vcombine.low %v6712_v44, %v6725_v10  ;;  %v2866_v29 = vrot.slane %v2864_v45, 4 }
  0xe0   : > { %4697 = vmatmul.mubr.bf16.gmra.mrb[4].mxu1 %v7665_v49  ;;  %4857 = vmatmul.mubr.bf16.gmra.mrb[20].mxu0 %v7666_v54  ;;  %v2861_v49 = vrot.slane %v2860_v27, 4  ;;  %v2871_v60 = vrot.slane %v7669_v23, 6  ;;  %v2872_v48 = vrot.slane %v7670_v51, 7  ;;  %v6842_v6 = vsel %vm6489_vm14, %v4008_v53, %v1288_v40  ;;  %v7671_v54 = vld [vmem:[#allocation81_spill] sm:$0xff]  ;;  %v7674_v51 = vld [vmem:[#allocation82_spill] sm:$0xff] }
  0xe1   : > { %4700 = vmatprep.mubr.bf16.mxu1 %v7668_v8  ;;  %4860 = vmatprep.mubr.bf16.mxu0 %v4181_v28  ;;  %v1290_v32 = vrot.slane %v1288_v40, 4  ;;  %v2875_v14 = vrot.slane %v7671_v54, 6  ;;  %v2876_v44 = vrot.slane %v7672_v5, 7  ;;  %v2870_v28 = vsel %vm6292_vm11, %v2866_v29, %v2869_v41  ;;  %v5236_v27 = vld [vmem:[%s7304_s1 + $0xd8] sm:$0xff]   ;;  %v6863_v29 = vld [vmem:[%s5334_s10 + $0x60] sm:$0xf] }
  0xe2   : > { %4926 = vmatpush3.bf16.msra.mxu1 %v5232_v25  ;;  %v2865_v10 = vsel %vm6292_vm11, %v2861_v49, %v2864_v45  ;;  %v2873_v53 = vor.u32 %v2872_v48, %v2871_v60  ;;  %v7673_v25 = vshrl.u32 %v7667_v2, 16  ;;  %v2881_v45 = vrot.slane %v7674_v51, 7  ;;  %v6867_v60 = vld [vmem:[%s5334_s10 + $0x64] sm:$0xf] }
  0xe3   : > { %4919 = vmatprep.subr.bf16.mxu1 %v5236_v27  ;;  %v4183_v8 = vcombine.low %v2865_v10, %v2870_v28  ;;  %v6857_v54 = vsel %vm6489_vm14, %v1290_v32, %v1291_v39  ;;  %v2877_v5 = vor.u32 %v2876_v44, %v2875_v14  ;;  %v4009_v23 = vrot.slane %v6863_v29, 9 }
  0xe4   : > { %v2880_v40 = vrot.slane %v7673_v25, 6  ;;  %v4040_v41 = vcombine.low %v6842_v6, %v6857_v54  ;;  %v2874_v49 = vrot.slane %v2873_v53, 4  ;;  %v1295_v48 = vrot.slane %v6867_v60, 5  ;;  %v5239_v53 = vld [vmem:[%s7304_s1 + $0xe0] sm:$0xff]  }
  0xe5   : > { %v2879_v10 = vrot.slane %v2877_v5, 4  ;;  %v1298_v39 = vrot.slane %v6510_v55, 5 }
  0xe6   : > { %v2882_v28 = vor.u32 %v2881_v45, %v2880_v40  ;;  %4927 = vmatpush3.bf16.msra.mxu1 %v5236_v27  ;;  %v2878_v14 = vsel %vm6292_vm11, %v2874_v49, %v2877_v5  ;;  %v1296_v32 = vsel %vm6489_vm14, %v4009_v23, %v1295_v48  ;;  %v1297_v44 = vrot.slane %v1295_v48, 4 }
  0xe7   : > { %4920 = vmatprep.subr.bf16.mxu1 %v5239_v53  ;;  %v7675_v27 = vcombine.low %v6746_v59, %v6768_v0  ;;  %v4193_v23 = vrot.slane %v7606_v1, 11  ;;  %v3211_v40 = vrot.slane %v7608_v9, 7  ;;  %v3214_v45 = vrot.slane %v6506_v30, 7  ;;  %v6893_v0 = vld [vmem:[%s5334_s10 + $0x6c] sm:$0xf] }
  0xe8   : > { %4861 = vmatmul.mubr.bf16.gmra.mrb[24].mxu0 %v4182_v4  ;;  %v2883_v5 = vsel %vm6292_vm11, %v2879_v10, %v2882_v28  ;;  %v1299_v59 = vsel %vm6489_vm14, %v1297_v44, %v1298_v39  ;;  %v4010_v17 = vrot.slane %v6893_v0, 9  ;;  %v6897_v4 = vld [vmem:[%s5334_s10 + $0x70] sm:$0xf]  ;;  %v4194_v28 = vrot.slane %v6154_v57, 11 }
  0xe9   : > { %4701 = vmatmul.mubr.bf16.gmra.mrb[8].mxu1 %v7675_v27  ;;  %4864 = vmatprep.mubr.bf16.mxu0 %v4183_v8  ;;  %v4184_v49 = vcombine.low %v2878_v14, %v2883_v5  ;;  %v1302_v48 = vrot.slane %v6897_v4, 5  ;;  %v4041_v1 = vcombine.low %v1296_v32, %v1299_v59  ;;  %v3212_v9 = vsel %vm6883_vm1, %v4193_v23, %v3211_v40  ;;  %v5242_v14 = vld [vmem:[%s7304_s1 + $0xe8] sm:$0xff]   ;;  %v6920_v5 = vld [vmem:[%s5334_s10 + $0x7c] sm:$0xf] }
  0xea   : > { %4704 = vmatprep.mubr.bf16.mxu1 %v4039_v19  ;;  %v3213_v30 = vrot.slane %v3211_v40, 4  ;;  %v1305_v19 = vrot.slane %v6546_v33, 5  ;;  %4928 = vmatpush3.bf16.msra.mxu1 %v5239_v53  ;;  %v3218_v39 = vrot.slane %v7614_v31, 7  ;;  %v3221_v44 = vrot.slane %v6537_v58, 7  ;;  %v6916_v53 = vld [vmem:[%s5334_s10 + $0x78] sm:$0xf] }
  0xeb   : > { %v6905_v8 = vsel %vm6489_vm14, %v4010_v17, %v1302_v48  ;;  %v1304_v10 = vrot.slane %v1302_v48, 4  ;;  %4921 = vmatprep.subr.bf16.mxu1 %v5242_v14  ;;  %v4011_v27 = vrot.slane %v6916_v53, 9  ;;  %v1309_v57 = vrot.slane %v6920_v5, 5 }
  0xec   : > { %v3215_v32 = vsel %vm6883_vm1, %v3213_v30, %v3214_v45  ;;  %v3219_v40 = vsel %vm6883_vm1, %v4194_v28, %v3218_v39  ;;  %v3220_v59 = vrot.slane %v3218_v39, 4  ;;  %v1312_v48 = vrot.slane %v6598_v16, 5 }
  0xed   : > { %v4225_v23 = vcombine.low %v3212_v9, %v3215_v32  ;;  %v1306_v31 = vsel %vm6489_vm14, %v1304_v10, %v1305_v19  ;;  %v6930_v58 = vsel %vm6489_vm14, %v4011_v27, %v1309_v57  ;;  %v1311_v17 = vrot.slane %v1309_v57, 4 }
  0xee   : > { %v4042_v45 = vcombine.low %v6905_v8, %v1306_v31  ;;  %4929 = vmatpush3.bf16.msra.mxu1 %v5242_v14  ;;  %v3222_v9 = vsel %vm6883_vm1, %v3220_v59, %v3221_v44  ;;  %v4195_v30 = vrot.slane %v7623_v38, 11  ;;  %v3225_v19 = vrot.slane %v7624_v47, 7  ;;  %v5245_v8 = vld [vmem:[%s7304_s1 + $0xf0] sm:$0xff]   ;;  %v6947_v14 = vld [vmem:[%s5334_s10 + $0x84] sm:$0xf] }
  0xef   : > { %v3228_v10 = vrot.slane %v6594_v20, 7  ;;  %4922 = vmatprep.subr.bf16.mxu1 %v5245_v8  ;;  %v4226_v28 = vcombine.low %v3219_v40, %v3222_v9  ;;  %v1313_v39 = vsel %vm6489_vm14, %v1311_v17, %v1312_v48  ;;  %v4012_v38 = vrot.slane %v6947_v14, 9  ;;  %v6951_v47 = vld [vmem:[%s5334_s10 + $0x88] sm:$0xf]  ;;  %v6968_v31 = vld [vmem:[%s5334_s10 + $0x90] sm:$0xf] }
  0xf0   : > { %4865 = vmatmul.mubr.bf16.gmra.mrb[28].mxu0 %v4184_v49  ;;  %v1316_v20 = vrot.slane %v6951_v47, 5  ;;  %v4043_v6 = vcombine.low %v6930_v58, %v1313_v39  ;;  %v3226_v54 = vsel %vm6883_vm1, %v4195_v30, %v3225_v19  ;;  %v1319_v49 = vrot.slane %v6650_v21, 5  ;;  %v6972_v59 = vld [vmem:[%s5334_s10 + $0x94] sm:$0xf] }
  0xf1   : > { %4705 = vmatmul.mubr.bf16.gmra.mrb[12].mxu1 %v4040_v41  ;;  %4884 = vmatprep.mubr.bf16.mxu0 %v4225_v23  ;;  %v3227_v41 = vrot.slane %v3225_v19, 4  ;;  %v4196_v27 = vrot.slane %v6184_v13, 11  ;;  %v3232_v57 = vrot.slane %v6187_v34, 7  ;;  %v3235_v23 = vrot.slane %v6646_v61, 7  ;;  %v5250_v13 = vld [vmem:[%s7304_s1 + $0xf8] sm:$0xff]  }
  0xf2   : > { %4708 = vmatprep.mubr.bf16.mxu1 %v4041_v1  ;;  %v6960_v32 = vsel %vm6489_vm14, %v4012_v38, %v1316_v20  ;;  %v1318_v44 = vrot.slane %v1316_v20, 4  ;;  %4930 = vmatpush3.bf16.msra.mxu1 %v5245_v8  ;;  %v4013_v40 = vrot.slane %v6968_v31, 9  ;;  %v1323_v58 = vrot.slane %v6972_v59, 5 }
  0xf3   : > { %v3229_v1 = vsel %vm6883_vm1, %v3227_v41, %v3228_v10  ;;  %4923 = vmatprep.subr.bf16.mxu1 %v5250_v13  ;;  %v6984_v61 = vsel %vm6883_vm1, %v4196_v27, %v3232_v57  ;;  %v3234_v48 = vrot.slane %v3232_v57, 4  ;;  %v6993_v10 = vld [vmem:[%s5334_s10 + $0x98] sm:$0x7]  ;;  %v4197_v38 = vrot.slane %v6199_v12, 11  ;;  %v7009_v27 = vld [vmem:[%s5334_s10 + $0xa0] sm:$0xf] }
  0xf4   : > { %v4227_v34 = vcombine.low %v3226_v54, %v3229_v1  ;;  %v6980_v17 = vsel %vm6489_vm14, %v1318_v44, %v1319_v49  ;;  %v6990_v30 = vsel %vm6489_vm14, %v4013_v40, %v1323_v58  ;;  %v1325_v19 = vrot.slane %v1323_v58, 4  ;;  %v7016_v1 = vld [vmem:[%s5334_s10 + $0xa4] sm:$0x7]  ;;  %v5255_v58 = vld [vmem:[%s5334_s10 + $0x3c] sm:$0xf] }
  0xf5   : > { %v4044_v9 = vcombine.low %v6960_v32, %v6980_v17  ;;  %v1326_v8 = vrot.slane %v6993_v10, 5  ;;  %v3236_v39 = vsel %vm6883_vm1, %v3234_v48, %v3235_v23  ;;  %v3239_v20 = vrot.slane %v6202_v7, 7  ;;  %v7005_v32 = vld [vmem:[%s5334_s10 + $0x9c] sm:$0xf]  ;;  %v7029_v48 = vld [vmem:[%s5334_s10 + $0xa8] sm:$0xf] }
  0xf6   : > { %v3242_v54 = vrot.slane %v6695_v24, 7  ;;  %4931 = vmatpush3.bf16.msra.mxu1 %v5250_v13  ;;  %v4228_v41 = vcombine.low %v6984_v61, %v3236_v39  ;;  %v4014_v44 = vrot.slane %v7005_v32, 9  ;;  %v1330_v57 = vrot.slane %v7009_v27, 5 }
  0xf7   : > { %v1327_v49 = vsel %vm6489_vm14, %v1325_v19, %v1326_v8  ;;  %v3240_v12 = vsel %vm6883_vm1, %v4197_v38, %v3239_v20  ;;  %v3241_v24 = vrot.slane %v3239_v20, 4  ;;  %v1333_v23 = vrot.slane %v7016_v1, 5 }
  0xf8   : > { %4885 = vmatmul.mubr.bf16.vlgmr.msra.gmra.mrb[0].mxu0 %v4226_v28  ;;  %v4045_v7 = vcombine.low %v6990_v30, %v1327_v49  ;;  %v7021_v40 = vsel %vm6489_vm14, %v4014_v44, %v1330_v57  ;;  %v4198_v28 = vrot.slane %v5255_v58, 11  ;;  %v3246_v13 = vrot.slane %v6734_v63, 7 }
  0xf9   : > { %4709 = vmatmul.mubr.bf16.gmra.mrb[16].mxu1 %v4042_v45  ;;  %4888 = vmatprep.mubr.bf16.mxu0 %v4227_v34  ;;  %v1332_v45 = vrot.slane %v1330_v57, 4  ;;  %v3243_v17 = vsel %vm6883_vm1, %v3241_v24, %v3242_v54  ;;  %v3249_v61 = vrot.slane %v6738_v22, 7  ;;  %v7033_v34 = vld [vmem:[%s5334_s10 + $0xac] sm:$0xf]  ;;  %v7044_v54 = vld [vmem:[%s5334_s10 + $0xb0] sm:$0x7] }
  0xfa   : > { %4712 = vmatprep.mubr.bf16.mxu1 %v4043_v6  ;;  %v4015_v6 = vrot.slane %v7029_v48, 9  ;;  %v1337_v30 = vrot.slane %v7033_v34, 5  ;;  %v4229_v19 = vcombine.low %v3240_v12, %v3243_v17  ;;  %v3247_v63 = vsel %vm6883_vm1, %v4198_v28, %v3246_v13  ;;  %v7059_v28 = vld [vmem:[%s5334_s10 + $0xb8] sm:$0xf] }
  0xfb   : > { %v1334_v8 = vsel %vm6489_vm14, %v1332_v45, %v1333_v23  ;;  %v3248_v39 = vrot.slane %v3246_v13, 4  ;;  %v1340_v49 = vrot.slane %v7044_v54, 5  ;;  %v4199_v57 = vrot.slane %v6780_v36, 11  ;;  %v7055_v45 = vld [vmem:[%s5334_s10 + $0xb4] sm:$0xf] }
  0xfc   : > { %v4046_v22 = vcombine.low %v7021_v40, %v1334_v8  ;;  %v1338_v38 = vsel %vm6489_vm14, %v4015_v6, %v1337_v30  ;;  %v1339_v20 = vrot.slane %v1337_v30, 4  ;;  %v3253_v12 = vrot.slane %v6784_v52, 7  ;;  %v7065_v52 = vld [vmem:[%s5334_s10 + $0xbc] sm:$0x7] }
  0xfd   : > { %v3250_v44 = vsel %vm6883_vm1, %v3248_v39, %v3249_v61  ;;  %v3256_v24 = vrot.slane %v6788_v35, 7  ;;  %v4016_v58 = vrot.slane %v7055_v45, 9  ;;  %v1344_v13 = vrot.slane %v7059_v28, 5 }
  0xfe   : > { %v4230_v23 = vcombine.low %v3247_v63, %v3250_v44  ;;  %v1341_v40 = vsel %vm6489_vm14, %v1339_v20, %v1340_v49  ;;  %v3254_v36 = vsel %vm6883_vm1, %v4199_v57, %v3253_v12  ;;  %v3255_v61 = vrot.slane %v3253_v12, 4  ;;  %v7678_v57 = vld [vmem:[#allocation42_spill] sm:$0xff] }
  0xff   : > { %v4047_v17 = vcombine.low %v1338_v38, %v1341_v40  ;;  %v1347_v35 = vrot.slane %v7065_v52, 5  ;;  %v7070_v6 = vsel %vm6489_vm14, %v4016_v58, %v1344_v13  ;;  %v1346_v30 = vrot.slane %v1344_v13, 4 }
 0x100   : > { %4889 = vmatmul.mubr.bf16.gmra.mrb[4].mxu0 %v4228_v41  ;;  %v4200_v8 = vrot.slane %v6817_v26, 11  ;;  %v3260_v63 = vrot.slane %v6827_v42, 7  ;;  %v3257_v39 = vsel %vm6883_vm1, %v3255_v61, %v3256_v24  ;;  %v3263_v38 = vrot.slane %v6831_v18, 7  ;;  %v7680_v24 = vld [vmem:[#allocation44_spill] sm:$0xff] }
 0x101   : > { %4713 = vmatmul.mubr.bf16.gmra.mrb[20].mxu1 %v4044_v9  ;;  %4892 = vmatprep.mubr.bf16.mxu0 %v4229_v19  ;;  %v1794_v20 = vrot.slane %v7609_v15, 5  ;;  %v1795_v9 = vrot.slane %v7610_v50, 6  ;;  %v4231_v41 = vcombine.low %v3254_v36, %v3257_v39  ;;  %v1348_v49 = vsel %vm6489_vm14, %v1346_v30, %v1347_v35 }
 0x102   : > { %4716 = vmatprep.mubr.bf16.mxu1 %v4045_v7  ;;  %v3261_v26 = vsel %vm6883_vm1, %v4200_v8, %v3260_v63  ;;  %v3262_v44 = vrot.slane %v3260_v63, 4  ;;  %v4048_v42 = vcombine.low %v7070_v6, %v1348_v49  ;;  %v1798_v19 = vrot.slane %v7611_v37, 5  ;;  %v7681_v6 = vld [vmem:[#allocation45_spill] sm:$0xff]  ;;  %v7682_v8 = vld [vmem:[#allocation46_spill] sm:$0xff] }
 0x103   : > { %v1796_v7 = vor.u32 %v1795_v9, %v1794_v20  ;;  %v1799_v12 = vrot.slane %v7678_v57, 6  ;;  %v7679_v50 = vshrl.u32 %v6510_v55, 16  ;;  %v1806_v3 = vrot.slane %v7680_v24, 6 }
 0x104   : > { %v3264_v15 = vsel %vm6883_vm1, %v3262_v44, %v3263_v38  ;;  %v4201_v40 = vrot.slane %v6863_v29, 11  ;;  %v3267_v61 = vrot.slane %v6867_v60, 7  ;;  %v3270_v37 = vrot.slane %v6510_v55, 7  ;;  %v7685_v44 = vld [vmem:[#allocation7_spill] sm:$0xff] }
 0x105   : > { %v1805_v18 = vrot.slane %v7679_v50, 5  ;;  %v4232_v58 = vcombine.low %v3261_v26, %v3264_v15  ;;  %v1797_v13 = vrot.slane %v1796_v7, 4  ;;  %v1800_v36 = vor.u32 %v1799_v12, %v1798_v19  ;;  %v7684_v26 = vld [vmem:[#allocation48_spill] sm:$0xff]  ;;  %v7686_v7 = vld [vmem:[#allocation49_spill] sm:$0xff] }
 0x106   : > { %v1809_v30 = vrot.slane %v7681_v6, 5  ;;  %v1810_v63 = vrot.slane %v7682_v8, 6  ;;  %v3268_v9 = vsel %vm6883_vm1, %v4201_v40, %v3267_v61  ;;  %v3269_v29 = vrot.slane %v3267_v61, 4  ;;  %v7691_v61 = vld [vmem:[#allocation51_spill] sm:$0xff]  ;;  %v7692_v6 = vld [vmem:[#allocation53_spill] sm:$0xff] }
 0x107   : > { %v1807_v35 = vor.u32 %v1806_v3, %v1805_v18  ;;  %v1801_v38 = vsel %vm5409_vm5, %v1797_v13, %v1800_v36  ;;  %v1802_v20 = vrot.slane %v1800_v36, 4  ;;  %v1813_v60 = vrot.slane %v7684_v26, 5  ;;  %v7688_v3 = vld [vmem:[#allocation47_spill] sm:$0xff] }
 0x108   : > { %4893 = vmatmul.mubr.bf16.gmra.mrb[8].mxu0 %v4230_v23  ;;  %v1811_v49 = vor.u32 %v1810_v63, %v1809_v30  ;;  %v7687_v55 = vrot.slane %v7686_v7, 6  ;;  %v4202_v57 = vrot.slane %v6893_v0, 11  ;;  %v3271_v15 = vsel %vm6883_vm1, %v3269_v29, %v3270_v37  ;;  %v7693_v30 = vld [vmem:[#allocation52_spill] sm:$0xff]  ;;  %v7695_v29 = vld [vmem:[#allocation54_spill] sm:$0xff] }
 0x109   : > { %4717 = vmatmul.mubr.bf16.gmra.mrb[24].mxu1 %v4046_v22  ;;  %4896 = vmatprep.mubr.bf16.mxu0 %v4231_v41  ;;  %v1808_v12 = vsel %vm5409_vm5, %v1802_v20, %v1807_v35  ;;  %v3274_v22 = vrot.slane %v6897_v4, 7  ;;  %v3277_v23 = vrot.slane %v6546_v33, 7  ;;  %v4233_v18 = vcombine.low %v3268_v9, %v3271_v15  ;;  %v7690_v41 = vld [vmem:[#allocation50_spill] sm:$0xff] }
 0x10a   : > { %v1822_v19 = vor.u32 %v7687_v55, %v7685_v44  ;;  %4720 = vmatprep.mubr.bf16.mxu1 %v4047_v17  ;;  %v4081_v50 = vcombine.low %v1801_v38, %v1808_v12  ;;  %v1812_v24 = vrot.slane %v1811_v49, 4  ;;  %v7689_v40 = vrot.slane %v7688_v3, 6 }
 0x10b   : > { %v3275_v0 = vsel %vm6883_vm1, %v4202_v57, %v3274_v22  ;;  %v3276_v17 = vrot.slane %v3274_v22, 4  ;;  %v1824_v36 = vrot.slane %v7690_v41, 5  ;;  %v1825_v35 = vrot.slane %v7691_v61, 6 }
 0x10c   : > { %v1815_v13 = vor.u32 %v7689_v40, %v1813_v60  ;;  %v1828_v33 = vrot.slane %v7692_v6, 5  ;;  %v1829_v8 = vrot.slane %v7693_v30, 6  ;;  %v7694_v20 = vshrl.u32 %v6598_v16, 16  ;;  %v7697_v40 = vld [vmem:[#allocation56_spill] sm:$0xff] }
 0x10d   : > { %v3278_v63 = vsel %vm6883_vm1, %v3276_v17, %v3277_v23  ;;  %v1826_v38 = vor.u32 %v1825_v35, %v1824_v36  ;;  %v1836_v49 = vrot.slane %v7695_v29, 6  ;;  %v4203_v7 = vrot.slane %v6916_v53, 11  ;;  %v7698_v17 = vld [vmem:[#allocation58_spill] sm:$0xff]  ;;  %v7701_v35 = vld [vmem:[#allocation59_spill] sm:$0xff] }
 0x10e   : > { %v1816_v37 = vsel %vm5409_vm5, %v1812_v24, %v1815_v13  ;;  %v1817_v4 = vrot.slane %v1815_v13, 4  ;;  %v1835_v9 = vrot.slane %v7694_v20, 5  ;;  %v4234_v60 = vcombine.low %v3275_v0, %v3278_v63  ;;  %v7696_v24 = vld [vmem:[#allocation55_spill] sm:$0xff]  ;;  %v7702_v20 = vld [vmem:[#allocation61_spill] sm:$0xff]  ;;  %v7703_v29 = vld [vmem:[#allocation62_spill] sm:$0xff] }
 0x10f   : > { %v1830_v44 = vor.u32 %v1829_v8, %v1828_v33  ;;  %v1827_v57 = vrot.slane %v1826_v38, 4  ;;  %v3281_v15 = vrot.slane %v6920_v5, 7  ;;  %v3284_v23 = vrot.slane %v6598_v16, 7  ;;  %v7699_v16 = vld [vmem:[#allocation57_spill] sm:$0xff] }
 0x110   : > { %v1823_v26 = vsel %vm5409_vm5, %v1817_v4, %v1822_v19  ;;  %v1837_v12 = vor.u32 %v1836_v49, %v1835_v9  ;;  %4897 = vmatmul.mubr.bf16.gmra.mrb[12].mxu0 %v4232_v58  ;;  %v1839_v3 = vrot.slane %v7696_v24, 5  ;;  %v1840_v13 = vrot.slane %v7697_v40, 6 }
 0x111   : > { %v4082_v55 = vcombine.low %v1816_v37, %v1823_v26  ;;  %4721 = vmatmul.mubr.bf16.gmra.mrb[28].mxu1 %v4048_v42  ;;  %v1832_v22 = vrot.slane %v1830_v44, 4  ;;  %4900 = vmatprep.mubr.bf16.mxu0 %v4233_v18  ;;  %v1831_v19 = vsel %vm5409_vm5, %v1827_v57, %v1830_v44  ;;  %v3282_v53 = vsel %vm6883_vm1, %v4203_v7, %v3281_v15 }
 0x112   : > { %4756 = vmatprep.mubr.bf16.mxu1 %v4081_v50  ;;  %v3283_v0 = vrot.slane %v3281_v15, 4  ;;  %v1843_v5 = vrot.slane %v7698_v17, 5  ;;  %v1841_v58 = vor.u32 %v1840_v13, %v1839_v3  ;;  %v1844_v41 = vrot.slane %v7699_v16, 6  ;;  %v7708_v13 = vld [vmem:[#allocation65_spill] sm:$0xff] }
 0x113   : > { %v1838_v42 = vsel %vm5409_vm5, %v1832_v22, %v1837_v12  ;;  %v7700_v36 = vshrl.u32 %v6650_v21, 16  ;;  %v1851_v37 = vrot.slane %v7701_v35, 6  ;;  %v4204_v4 = vrot.slane %v6947_v14, 11  ;;  %v7704_v12 = vld [vmem:[#allocation64_spill] sm:$0xff]  ;;  %v7705_v22 = vld [vmem:[#allocation63_spill] sm:$0xff]  ;;  %v7709_v35 = vld [vmem:[#allocation69_spill] sm:$0xff] }
 0x114   : > { %v4083_v50 = vcombine.low %v1831_v19, %v1838_v42  ;;  %v3285_v18 = vsel %vm6883_vm1, %v3283_v0, %v3284_v23  ;;  %v1842_v33 = vrot.slane %v1841_v58, 4  ;;  %v1845_v30 = vor.u32 %v1844_v41, %v1843_v5  ;;  %v7706_v23 = vld [vmem:[#allocation60_spill] sm:$0xff] }
 0x115   : > { %v1850_v61 = vrot.slane %v7700_v36, 5  ;;  %v4235_v6 = vcombine.low %v3282_v53, %v3285_v18  ;;  %v3288_v8 = vrot.slane %v6951_v47, 7  ;;  %v3291_v38 = vrot.slane %v6650_v21, 7 }
 0x116   : > { %v1854_v9 = vrot.slane %v7702_v20, 5  ;;  %v1855_v49 = vrot.slane %v7703_v29, 6  ;;  %v1846_v26 = vsel %vm5409_vm5, %v1842_v33, %v1845_v30  ;;  %v1847_v44 = vrot.slane %v1845_v30, 4  ;;  %v7712_v33 = vld [vmem:[#allocation71_spill] sm:$0xff] }
 0x117   : > { %v1852_v63 = vor.u32 %v1851_v37, %v1850_v61  ;;  %v3289_v7 = vsel %vm6883_vm1, %v4204_v4, %v3288_v8  ;;  %v3290_v14 = vrot.slane %v3288_v8, 4  ;;  %v1858_v15 = vrot.slane %v7704_v12, 5  ;;  %v7710_v4 = vld [vmem:[#allocation66_spill] sm:$0xff] }
 0x118   : > { %v1856_v57 = vor.u32 %v1855_v49, %v1854_v9  ;;  %v1859_v47 = vrot.slane %v7705_v22, 6  ;;  %v7707_v24 = vshrl.u32 %v7706_v23, 16  ;;  %4901 = vmatmul.mubr.bf16.gmra.mrb[16].mxu0 %v4234_v60  ;;  %v1866_v19 = vrot.slane %v7708_v13, 6 }
 0x119   : > { %4757 = vmatmul.mubr.bf16.vlgmr.msra.gmra.mrb[16].mxu1 %v4082_v55  ;;  %v1853_v3 = vsel %vm5409_vm5, %v1847_v44, %v1852_v63  ;;  %v3292_v40 = vsel %vm6883_vm1, %v3290_v14, %v3291_v38  ;;  %v4205_v53 = vrot.slane %v6968_v31, 11  ;;  %4904 = vmatprep.mubr.bf16.mxu0 %v4235_v6  ;;  %v3295_v55 = vrot.slane %v6972_v59, 7 }
 0x11a   : > { %v1865_v21 = vrot.slane %v7707_v24, 5  ;;  %4760 = vmatprep.mubr.bf16.mxu1 %v4083_v50  ;;  %v4084_v0 = vcombine.low %v1846_v26, %v1853_v3  ;;  %v4236_v17 = vcombine.low %v3289_v7, %v3292_v40  ;;  %v1857_v5 = vrot.slane %v1856_v57, 4 }
 0x11b   : > { %v1860_v42 = vor.u32 %v1859_v47, %v1858_v15  ;;  %v3298_v60 = vrot.slane %v6993_v10, 7  ;;  %v1869_v16 = vrot.slane %v7651_v11, 5  ;;  %v1870_v61 = vrot.slane %v7652_v62, 6  ;;  %v7715_v15 = vld [vmem:[#allocation75_spill] sm:$0xff]  ;;  %v7716_v47 = vld [vmem:[#allocation74_spill] sm:$0xff] }
 0x11c   : > { %v1867_v58 = vor.u32 %v1866_v19, %v1865_v21  ;;  %v1873_v31 = vrot.slane %v7653_v43, 5  ;;  %v3296_v50 = vsel %vm6883_vm1, %v4205_v53, %v3295_v55  ;;  %v3297_v18 = vrot.slane %v3295_v55, 4 }
 0x11d   : > { %v1861_v41 = vsel %vm5409_vm5, %v1857_v5, %v1860_v42  ;;  %v1862_v36 = vrot.slane %v1860_v42, 4  ;;  %v1874_v37 = vrot.slane %v7709_v35, 6  ;;  %v7711_v59 = vshrl.u32 %v7710_v4, 16 }
 0x11e   : > { %v1871_v10 = vor.u32 %v1870_v61, %v1869_v16  ;;  %v1881_v30 = vrot.slane %v7712_v33, 6  ;;  %v4206_v8 = vrot.slane %v7005_v32, 11  ;;  %v3299_v43 = vsel %vm6883_vm1, %v3297_v18, %v3298_v60  ;;  %v7713_v32 = vld [vmem:[#allocation72_spill] sm:$0xff]  ;;  %v7718_v16 = vld [vmem:[#allocation78_spill] sm:$0xff] }
 0x11f   : > { %v1880_v6 = vrot.slane %v7711_v59, 5  ;;  %v1868_v11 = vsel %vm5409_vm5, %v1862_v36, %v1867_v58  ;;  %v1875_v63 = vor.u32 %v1874_v37, %v1873_v31  ;;  %v3302_v38 = vrot.slane %v7009_v27, 7  ;;  %v7714_v27 = vld [vmem:[#allocation73_spill] sm:$0xff]  ;;  %v7719_v36 = vld [vmem:[#allocation79_spill] sm:$0xff]  ;;  %v7721_v18 = vld [vmem:[#allocation80_spill] sm:$0xff] }
 0x120   : > { %v4085_v62 = vcombine.low %v1861_v41, %v1868_v11  ;;  %v4237_v20 = vcombine.low %v3296_v50, %v3299_v43  ;;  %v1872_v9 = vrot.slane %v1871_v10, 4  ;;  %v3305_v49 = vrot.slane %v7016_v1, 7  ;;  %4905 = vmatmul.mubr.bf16.gmra.mrb[20].mxu0 %v4236_v17  ;;  %v7720_v31 = vld [vmem:[#allocation81_spill] sm:$0xff] }
 0x121   : > { %v1882_v29 = vor.u32 %v1881_v30, %v1880_v6  ;;  %4761 = vmatmul.mubr.bf16.gmra.mrb[20].mxu1 %v4084_v0  ;;  %v1877_v26 = vrot.slane %v1875_v63, 4  ;;  %v3303_v44 = vsel %vm6883_vm1, %v4206_v8, %v3302_v38  ;;  %v3304_v7 = vrot.slane %v3302_v38, 4 }
 0x122   : > { %v1884_v14 = vrot.slane %v7713_v32, 5  ;;  %4764 = vmatprep.mubr.bf16.mxu1 %v4085_v62  ;;  %4908 = vmatprep.mubr.bf16.mxu0 %v4237_v20  ;;  %v1876_v57 = vsel %vm5409_vm5, %v1872_v9, %v1875_v63  ;;  %v1885_v12 = vrot.slane %v7714_v27, 6  ;;  %v1888_v22 = vrot.slane %v7715_v15, 5 }
 0x123   : > { %v1889_v1 = vrot.slane %v7716_v47, 6  ;;  %v1883_v23 = vsel %vm5409_vm5, %v1877_v26, %v1882_v29  ;;  %v3306_v24 = vsel %vm6883_vm1, %v3304_v7, %v3305_v49  ;;  %v7717_v21 = vshrl.u32 %v6054_v46, 16 }
 0x124   : > { %v1896_v40 = vrot.slane %v7664_v56, 6  ;;  %v4086_v13 = vcombine.low %v1876_v57, %v1883_v23  ;;  %v4238_v19 = vcombine.low %v3303_v44, %v3306_v24  ;;  %v1886_v53 = vor.u32 %v1885_v12, %v1884_v14  ;;  %v7240_v24 = vld [vmem:[%s7305_s2] ss:$0 sm:$0xff] }
 0x125   : > { %v1895_v3 = vrot.slane %v7717_v21, 5  ;;  %v1890_v0 = vor.u32 %v1889_v1, %v1888_v22  ;;  %v4207_v5 = vrot.slane %v7029_v48, 11  ;;  %v3309_v42 = vrot.slane %v7033_v34, 7 }
 0x126   : > { %v3312_v58 = vrot.slane %v7044_v54, 7  ;;  %v1887_v55 = vrot.slane %v1886_v53, 4  ;;  %v1899_v41 = vrot.slane %v7718_v16, 5  ;;  %v1900_v46 = vrot.slane %v7719_v36, 6 }
 0x127   : > { %v1897_v17 = vor.u32 %v1896_v40, %v1895_v3  ;;  %v1892_v60 = vrot.slane %v1890_v0, 4  ;;  %v3310_v56 = vsel %vm6883_vm1, %v4207_v5, %v3309_v42  ;;  %v3311_v61 = vrot.slane %v3309_v42, 4 }
 0x128   : > { %v1903_v50 = vrot.slane %v7720_v31, 5  ;;  %v1904_v35 = vrot.slane %v7721_v18, 6  ;;  %v1891_v48 = vsel %vm5409_vm5, %v1887_v55, %v1890_v0  ;;  %v1901_v54 = vor.u32 %v1900_v46, %v1899_v41  ;;  %4909 = vmatmul.mubr.bf16.gmra.mrb[24].mxu0 %v4238_v19 }
 0x129   : > { %v1898_v34 = vsel %vm5409_vm5, %v1892_v60, %v1897_v17  ;;  %v7722_v37 = vshrl.u32 %v7667_v2, 16  ;;  %4765 = vmatmul.mubr.bf16.gmra.mrb[24].mxu1 %v4086_v13  ;;  %v3313_v6 = vsel %vm6883_vm1, %v3311_v61, %v3312_v58  ;;  %v1911_v10 = vrot.slane %v7674_v51, 6 }
 0x12a   : > { %v4087_v59 = vcombine.low %v1891_v48, %v1898_v34  ;;  %v1905_v11 = vor.u32 %v1904_v35, %v1903_v50  ;;  %v4239_v33 = vcombine.low %v3310_v56, %v3313_v6  ;;  %v1902_v30 = vrot.slane %v1901_v54, 4 }
 0x12b   : > { %v1910_v4 = vrot.slane %v7722_v37, 5  ;;  %v4208_v8 = vrot.slane %v7055_v45, 11  ;;  %v3316_v62 = vrot.slane %v7059_v28, 7  ;;  %v3319_v2 = vrot.slane %v7065_v52, 7 }
 0x12c   : > { %4768 = vmatprep.mubr.bf16.mxu1 %v4087_v59  ;;  %v1907_v43 = vrot.slane %v1905_v11, 4  ;;  %4912 = vmatprep.mubr.bf16.mxu0 %v4239_v33  ;;  %v1906_v38 = vsel %vm5409_vm5, %v1902_v30, %v1905_v11 }
 0x12d   : > { %v1912_v63 = vor.u32 %v1911_v10, %v1910_v4  ;;  %v3317_v20 = vsel %vm6883_vm1, %v4208_v8, %v3316_v62  ;;  %v3318_v9 = vrot.slane %v3316_v62, 4 }
 0x12f   : > { %v1913_v51 = vsel %vm5409_vm5, %v1907_v43, %v1912_v63  ;;  %v3320_v45 = vsel %vm6883_vm1, %v3318_v9, %v3319_v2 }
 0x130   : > { %v4088_v29 = vcombine.low %v1906_v38, %v1913_v51  ;;  %v4240_v28 = vcombine.low %v3317_v20, %v3320_v45 }
 0x132   : > { %4769 = vmatmul.mubr.bf16.gmra.mrb[28].mxu1 %v4088_v29  ;;  %4913 = vmatmul.mubr.bf16.gmra.mrb[28].mxu0 %v4240_v28 }
 0x1aa   : > { %v4694_v49 = vpop.f32.mrb[0].mxu1 }
 0x1ab   : > { %v1512_v52 = vpop.f32.mrb[1].mxu1 }
 0x1ac   : > { %v4695_v26 = vpop.f32.mrb[2].mxu1 }
 0x1ad   : > { %v1515_v44 = vpop.f32.mrb[3].mxu1 }
 0x1b3   : > { %v4698_v7 = vpop.f32.mrb[4].mxu1 }
 0x1b4   : > { %v1528_v32 = vpop.f32.mrb[5].mxu1 }
 0x1b5   : > { %v4699_v14 = vpop.f32.mrb[6].mxu1 }
 0x1b6   : > { %v1531_v57 = vpop.f32.mrb[7].mxu1 }
 0x1bc   : > { %v4702_v27 = vpop.f32.mrb[8].mxu1 }
 0x1bd   : > { %v1544_v12 = vpop.f32.mrb[9].mxu1 }
 0x1be   : > { %v4703_v15 = vpop.f32.mrb[10].mxu1 }
 0x1bf   : > { %v1547_v39 = vpop.f32.mrb[11].mxu1 }
 0x1c4   : > { %v7229_v22 = vpop.f32.mrb[12].mxu1 }
 0x1c5   : > { %v7231_v25 = vpop.f32.mrb[13].mxu1 }
 0x1c6   : > { %v7233_v47 = vpop.f32.mrb[14].mxu1 }
 0x1c7   : > { %v7235_v1 = vpop.f32.mrb[15].mxu1 }
 0x1cb   : > { %v4886_v23 = vpop.f32.mrb[0].mxu0 }
 0x1cc   : > { %v4932_v21 = vadd.f32 %v4886_v23, %v4694_v49  ;;  %v3484_v3 = vpop.f32.mrb[1].mxu0 }
 0x1cd   : > { %v4933_v40 = vadd.f32 %v3484_v3, %v1512_v52  ;;  %v4887_v13 = vpop.f32.mrb[2].mxu0 }
 0x1ce   : > { %v3652_v19 = vadd.f32 %v4932_v21, %v7240_v24  ;;  %v4934_v53 = vadd.f32 %v4887_v13, %v4695_v26  ;;  %v3487_v0 = vpop.f32.mrb[3].mxu0 }
 0x1cf   : > { %v3650_v17 = vadd.f32 %v4933_v40, %v7240_v24  ;;  %v4935_v5 = vadd.f32 %v3487_v0, %v1515_v44 }
 0x1d0   : > { %v3653_v42 = vadd.f32 %v4934_v53, %v7240_v24  ;;  %v3684_v55 = vmax.f32 %v3652_v19, 0.0 }
 0x1d1   : > { %v3651_v58 = vadd.f32 %v4935_v5, %v7240_v24  ;;  %v3682_v16 = vmax.f32 %v3650_v17, 0.0 }
 0x1d2   : > { %v3685_v60 = vmax.f32 %v3653_v42, 0.0 }
 0x1d3   : > { %v3683_v41 = vmax.f32 %v3651_v58, 0.0  ;;  %v4890_v36 = vpop.f32.mrb[4].mxu0 }
 0x1d4   : > { %v4325_v46 = vpack.c.bf16 %v3685_v60, %v3684_v55  ;;  %v4936_v56 = vadd.f32 %v4890_v36, %v4698_v7  ;;  %v3500_v61 = vpop.f32.mrb[5].mxu0 }
 0x1d5   : > { %v4320_v31 = vpack.c.bf16 %v3683_v41, %v3682_v16  ;;  %v4937_v50 = vadd.f32 %v3500_v61, %v1528_v32  ;;  %v4891_v18 = vpop.f32.mrb[6].mxu0 }
 0x1d6   : > { %4397 = vst [vmem:[%s7250_s29 + $0x8] sm:$0xff] %v4325_v46   ;;  %v3656_v35 = vadd.f32 %v4936_v56, %v7240_v24  ;;  %v4938_v48 = vadd.f32 %v4891_v18, %v4699_v14  ;;  %v3503_v34 = vpop.f32.mrb[7].mxu0 }
 0x1d7   : > { %4321 = vst [vmem:[%s7250_s29] sm:$0xff] %v4320_v31   ;;  %v3654_v54 = vadd.f32 %v4937_v50, %v7240_v24  ;;  %v4939_v37 = vadd.f32 %v3503_v34, %v1531_v57 }
 0x1d8   : > { %v3657_v4 = vadd.f32 %v4938_v48, %v7240_v24  ;;  %v3688_v6 = vmax.f32 %v3656_v35, 0.0 }
 0x1d9   : > { %v3655_v59 = vadd.f32 %v4939_v37, %v7240_v24  ;;  %v3686_v10 = vmax.f32 %v3654_v54, 0.0 }
 0x1da   : > { %v3689_v11 = vmax.f32 %v3657_v4, 0.0 }
 0x1db   : > { %v3687_v33 = vmax.f32 %v3655_v59, 0.0  ;;  %v4894_v30 = vpop.f32.mrb[8].mxu0 }
 0x1dc   : > { %v4335_v8 = vpack.c.bf16 %v3689_v11, %v3688_v6  ;;  %v4940_v62 = vadd.f32 %v4894_v30, %v4702_v27  ;;  %v3516_v43 = vpop.f32.mrb[9].mxu0 }
 0x1dd   : > { %v4330_v63 = vpack.c.bf16 %v3687_v33, %v3686_v10  ;;  %v4941_v2 = vadd.f32 %v3516_v43, %v1544_v12  ;;  %v4895_v38 = vpop.f32.mrb[10].mxu0 }
 0x1de   : > { %4399 = vst [vmem:[%s7250_s29 + $0x18] sm:$0xff] %v4335_v8   ;;  %v3660_v20 = vadd.f32 %v4940_v62, %v7240_v24  ;;  %v4942_v9 = vadd.f32 %v4895_v38, %v4703_v15  ;;  %v3519_v51 = vpop.f32.mrb[11].mxu0 }
 0x1df   : > { %4398 = vst [vmem:[%s7250_s29 + $0x10] sm:$0xff] %v4330_v63   ;;  %v3658_v29 = vadd.f32 %v4941_v2, %v7240_v24  ;;  %v4943_v45 = vadd.f32 %v3519_v51, %v1547_v39 }
 0x1e0   : > { %v3661_v28 = vadd.f32 %v4942_v9, %v7240_v24  ;;  %v3692_v52 = vmax.f32 %v3660_v20, 0.0 }
 0x1e1   : > { %v3659_v49 = vadd.f32 %v4943_v45, %v7240_v24  ;;  %v3690_v44 = vmax.f32 %v3658_v29, 0.0 }
 0x1e2   : > { %v3693_v26 = vmax.f32 %v3661_v28, 0.0 }
 0x1e3   : > { %v3691_v7 = vmax.f32 %v3659_v49, 0.0  ;;  %v4898_v32 = vpop.f32.mrb[12].mxu0 }
 0x1e4   : > { %v4345_v14 = vpack.c.bf16 %v3693_v26, %v3692_v52  ;;  %v4944_v57 = vadd.f32 %v4898_v32, %v7229_v22  ;;  %v3532_v27 = vpop.f32.mrb[13].mxu0 }
 0x1e5   : > { %v4340_v12 = vpack.c.bf16 %v3691_v7, %v3690_v44  ;;  %v4945_v15 = vadd.f32 %v3532_v27, %v7231_v25  ;;  %v4899_v23 = vpop.f32.mrb[14].mxu0 }
 0x1e6   : > { %4401 = vst [vmem:[%s7250_s29 + $0x28] sm:$0xff] %v4345_v14   ;;  %v3664_v39 = vadd.f32 %v4944_v57, %v7240_v24  ;;  %v4946_v21 = vadd.f32 %v4899_v23, %v7233_v47  ;;  %v3535_v3 = vpop.f32.mrb[15].mxu0 }
 0x1e7   : > { %4400 = vst [vmem:[%s7250_s29 + $0x20] sm:$0xff] %v4340_v12   ;;  %v3662_v40 = vadd.f32 %v4945_v15, %v7240_v24  ;;  %v4947_v13 = vadd.f32 %v3535_v3, %v7235_v1 }
 0x1e8   : > { %v3665_v19 = vadd.f32 %v4946_v21, %v7240_v24  ;;  %v3696_v53 = vmax.f32 %v3664_v39, 0.0 }
 0x1e9   : > { %v3663_v22 = vadd.f32 %v4947_v13, %v7240_v24  ;;  %v3694_v25 = vmax.f32 %v3662_v40, 0.0 }
 0x1ea   : > { %v3697_v0 = vmax.f32 %v3665_v19, 0.0 }
 0x1eb   : > { %v3695_v17 = vmax.f32 %v3663_v22, 0.0  ;;  %v4902_v42 = vpop.f32.mrb[16].mxu0 }
 0x1ec   : > { %v4758_v5 = vpop.f32.mrb[16].mxu1  ;;  %v4355_v58 = vpack.c.bf16 %v3697_v0, %v3696_v53  ;;  %v3548_v60 = vpop.f32.mrb[17].mxu0 }
 0x1ed   : > { %v4948_v47 = vadd.f32 %v4902_v42, %v4758_v5  ;;  %v2141_v55 = vpop.f32.mrb[17].mxu1  ;;  %v4350_v16 = vpack.c.bf16 %v3695_v17, %v3694_v25  ;;  %v4903_v1 = vpop.f32.mrb[18].mxu0 }
 0x1ee   : > { %v4949_v41 = vadd.f32 %v3548_v60, %v2141_v55  ;;  %v4759_v36 = vpop.f32.mrb[18].mxu1  ;;  %4403 = vst [vmem:[%s7250_s29 + $0x38] sm:$0xff] %v4355_v58   ;;  %v3551_v31 = vpop.f32.mrb[19].mxu0 }
 0x1ef   : > { %v3668_v46 = vadd.f32 %v4948_v47, %v7240_v24  ;;  %v4950_v56 = vadd.f32 %v4903_v1, %v4759_v36  ;;  %v2144_v61 = vpop.f32.mrb[19].mxu1  ;;  %4402 = vst [vmem:[%s7250_s29 + $0x30] sm:$0xff] %v4350_v16  }
 0x1f0   : > { %v3666_v50 = vadd.f32 %v4949_v41, %v7240_v24  ;;  %v4951_v18 = vadd.f32 %v3551_v31, %v2144_v61 }
 0x1f1   : > { %v3669_v35 = vadd.f32 %v4950_v56, %v7240_v24  ;;  %v3700_v34 = vmax.f32 %v3668_v46, 0.0 }
 0x1f2   : > { %v3667_v48 = vadd.f32 %v4951_v18, %v7240_v24  ;;  %v3698_v37 = vmax.f32 %v3666_v50, 0.0 }
 0x1f3   : > { %v3701_v54 = vmax.f32 %v3669_v35, 0.0  ;;  %v4906_v6 = vpop.f32.mrb[20].mxu0 }
 0x1f4   : > { %v3699_v4 = vmax.f32 %v3667_v48, 0.0  ;;  %v4762_v59 = vpop.f32.mrb[20].mxu1  ;;  %v3564_v30 = vpop.f32.mrb[21].mxu0 }
 0x1f5   : > { %v4365_v11 = vpack.c.bf16 %v3701_v54, %v3700_v34  ;;  %v4952_v10 = vadd.f32 %v4906_v6, %v4762_v59  ;;  %v2157_v33 = vpop.f32.mrb[21].mxu1  ;;  %v4907_v63 = vpop.f32.mrb[22].mxu0 }
 0x1f6   : > { %v4360_v8 = vpack.c.bf16 %v3699_v4, %v3698_v37  ;;  %v4953_v62 = vadd.f32 %v3564_v30, %v2157_v33  ;;  %v4763_v43 = vpop.f32.mrb[22].mxu1  ;;  %v3567_v9 = vpop.f32.mrb[23].mxu0 }
 0x1f7   : > { %4405 = vst [vmem:[%s7250_s29 + $0x48] sm:$0xff] %v4365_v11   ;;  %v3672_v2 = vadd.f32 %v4952_v10, %v7240_v24  ;;  %v4954_v38 = vadd.f32 %v4907_v63, %v4763_v43  ;;  %v2160_v20 = vpop.f32.mrb[23].mxu1 }
 0x1f8   : > { %4404 = vst [vmem:[%s7250_s29 + $0x40] sm:$0xff] %v4360_v8   ;;  %v3670_v51 = vadd.f32 %v4953_v62, %v7240_v24  ;;  %v4955_v29 = vadd.f32 %v3567_v9, %v2160_v20 }
 0x1f9   : > { %v3673_v45 = vadd.f32 %v4954_v38, %v7240_v24  ;;  %v3704_v49 = vmax.f32 %v3672_v2, 0.0 }
 0x1fa   : > { %v3671_v28 = vadd.f32 %v4955_v29, %v7240_v24  ;;  %v3702_v26 = vmax.f32 %v3670_v51, 0.0 }
 0x1fb   : > { %v3705_v52 = vmax.f32 %v3673_v45, 0.0  ;;  %v4910_v32 = vpop.f32.mrb[24].mxu0 }
 0x1fc   : > { %v3703_v44 = vmax.f32 %v3671_v28, 0.0  ;;  %v4766_v7 = vpop.f32.mrb[24].mxu1  ;;  %v3580_v12 = vpop.f32.mrb[25].mxu0 }
 0x1fd   : > { %v4375_v14 = vpack.c.bf16 %v3705_v52, %v3704_v49  ;;  %v4956_v57 = vadd.f32 %v4910_v32, %v4766_v7  ;;  %v2173_v27 = vpop.f32.mrb[25].mxu1  ;;  %v4911_v21 = vpop.f32.mrb[26].mxu0 }
 0x1fe   : > { %v4370_v15 = vpack.c.bf16 %v3703_v44, %v3702_v26  ;;  %v4957_v23 = vadd.f32 %v3580_v12, %v2173_v27  ;;  %v4767_v39 = vpop.f32.mrb[26].mxu1  ;;  %v3583_v19 = vpop.f32.mrb[27].mxu0 }
 0x1ff   : > { %4407 = vst [vmem:[%s7250_s29 + $0x58] sm:$0xff] %v4375_v14   ;;  %v3676_v3 = vadd.f32 %v4956_v57, %v7240_v24  ;;  %v4958_v40 = vadd.f32 %v4911_v21, %v4767_v39  ;;  %v2176_v13 = vpop.f32.mrb[27].mxu1 }
 0x200   : > { %4406 = vst [vmem:[%s7250_s29 + $0x50] sm:$0xff] %v4370_v15   ;;  %v3674_v22 = vadd.f32 %v4957_v23, %v7240_v24  ;;  %v4959_v53 = vadd.f32 %v3583_v19, %v2176_v13 }
 0x201   : > { %v3677_v0 = vadd.f32 %v4958_v40, %v7240_v24  ;;  %v3708_v17 = vmax.f32 %v3676_v3, 0.0 }
 0x202   : > { %v3675_v25 = vadd.f32 %v4959_v53, %v7240_v24  ;;  %v3706_v42 = vmax.f32 %v3674_v22, 0.0 }
 0x203   : > { %v3709_v5 = vmax.f32 %v3677_v0, 0.0 }
 0x204   : > { %v3707_v58 = vmax.f32 %v3675_v25, 0.0 }
 0x205   : > { %v4770_v47 = vpop.f32.mrb[28].mxu1  ;;  %v4914_v55 = vpop.f32.mrb[28].mxu0  ;;  %v4385_v60 = vpack.c.bf16 %v3709_v5, %v3708_v17 }
 0x206   : > { %v4960_v16 = vadd.f32 %v4914_v55, %v4770_v47  ;;  %v2189_v41 = vpop.f32.mrb[29].mxu1  ;;  %v3596_v36 = vpop.f32.mrb[29].mxu0  ;;  %v4380_v1 = vpack.c.bf16 %v3707_v58, %v3706_v42 }
 0x207   : > { %v4961_v46 = vadd.f32 %v3596_v36, %v2189_v41  ;;  %v4771_v56 = vpop.f32.mrb[30].mxu1  ;;  %v4915_v61 = vpop.f32.mrb[30].mxu0  ;;  %4409 = vst [vmem:[%s7250_s29 + $0x68] sm:$0xff] %v4385_v60  }
 0x208   : > { %v3680_v31 = vadd.f32 %v4960_v16, %v7240_v24  ;;  %v4962_v50 = vadd.f32 %v4915_v61, %v4771_v56  ;;  %v2192_v18 = vpop.f32.mrb[31].mxu1  ;;  %v3599_v35 = vpop.f32.mrb[31].mxu0  ;;  %4408 = vst [vmem:[%s7250_s29 + $0x60] sm:$0xff] %v4380_v1  }
 0x209   : > { %v3678_v48 = vadd.f32 %v4961_v46, %v7240_v24  ;;  %v4963_v34 = vadd.f32 %v3599_v35, %v2192_v18 }
 0x20a   : > { %v3681_v54 = vadd.f32 %v4962_v50, %v7240_v24  ;;  %v3712_v4 = vmax.f32 %v3680_v31, 0.0 }
 0x20b   : > { %v3679_v37 = vadd.f32 %v4963_v34, %v7240_v24  ;;  %v3710_v6 = vmax.f32 %v3678_v48, 0.0 }
 0x20c   : > { %v3713_v59 = vmax.f32 %v3681_v54, 0.0 }
 0x20d   : > { %v3711_v11 = vmax.f32 %v3679_v37, 0.0 }
 0x20e   : > { %v4395_v10 = vpack.c.bf16 %v3713_v59, %v3712_v4 }
 0x20f   : > { %v4390_v33 = vpack.c.bf16 %v3711_v11, %v3710_v6 }
 0x210   : > { %4411 = vst [vmem:[%s7250_s29 + $0x78] sm:$0xff] %v4395_v10  }
 0x211   : > { %4410 = vst [vmem:[%s7250_s29 + $0x70] sm:$0xff] %v4390_v33  }
 0x212 PF: > { %s13_s12 = sadd.s32 1, %s5268_s12  }
 0x213   : > { %p10_p4 = scmp.ge.s32.totalorder %s13_s12, 4  }
 0x215   :  { %12 = sbr.rel (!%p10_p4) target bundleno = 1 (0x1), region = 68 }

// kernel: inception_c_forward.10
= control target key start
LH: loop header
LB: loop body
LE: loop exit
PB: predicated region body
PF: predicated region fallthrough
CT: control target
= control target key end

     0   :  { %s5814_s12 = smov 0   ;;  %s8035_s0 = inlined_call_operand.vmem [shape: bf16[2,16,22,128], index: 0, kind: input, shape index: {}]   ;;  %s8036_s1 = inlined_call_operand.vmem [shape: bf16[7,128,192], index: 1, kind: input, shape index: {}]   ;;  %s8037_s2 = inlined_call_operand.vmem [shape: f32[1,192], index: 2, kind: input, shape index: {}]   ;;  %s8038_s3 = inlined_call_operand.vmem [shape: bf16[2,256,192], index: 3, kind: output, shape index: {}]  }
   0x1 LB: > { %s4673_s13 = sadd.s32 4294967295, %s5791_s12   ;;  %p4677_p0 = scmp.ge.s32.totalorder %s5791_s12, 1  ;;  %s5791_s12 = sphi %s5814_s12, %s13_s12  }
   0x2   : > { %p137_p1 = scmp.lt.s32.totalorder %s5791_s12, 3 }
   0x4   : > { %p138_p2 = pnand %p4677_p0, %p137_p1 }
   0x6   : > { %141 = sbr.rel (%p138_p2) target bundleno = 712 (0x2c8), region = 32 }
   0xd   : > { %v5526_v0 = vld [vmem:[%s8036_s1 + $0x84] ss:$8 sps:$4 sm:$0xff]   ;;  %v8046_v2 = vmov 0   ;;  %v5530_v3 = vld [vmem:[%s8036_s1 + $0x80] ss:$8 sps:$4 sm:$0xff]   ;;  %p161_p3 = scmp.lt.s32.totalorder %s4673_s13, 1 }
   0xe   : > { %v5528_v1 = vld [vmem:[%s8036_s1 + $0x184] ss:$8 sps:$4 sm:$0xff]   ;;  %816 = vmatprep.mubr.bf16.mxu1 %v8046_v2  ;;  %2331 = vmatprep.mubr.bf16.mxu0 %v8046_v2  ;;  %v5531_v4 = vld [vmem:[%s8036_s1 + $0x180] ss:$8 sps:$4 sm:$0xff]   ;;  %v5532_v5 = vld [vmem:[%s8036_s1 + $0x94] ss:$8 sps:$4 sm:$0xff]  }
   0xf   : > { %784 = vmatprep.subr.bf16.mxu1 %v5526_v0  ;;  %2299 = vmatprep.subr.bf16.mxu0 %v5528_v1  ;;  %v5534_v6 = vld [vmem:[%s8036_s1 + $0x194] ss:$8 sps:$4 sm:$0xff]   ;;  %v5536_v7 = vld [vmem:[%s8036_s1 + $0x90] ss:$8 sps:$4 sm:$0xff]   ;;  %v5538_v9 = vld [vmem:[%s8036_s1 + $0xa4] ss:$8 sps:$4 sm:$0xff]  }
  0x10   : > { %785 = vmatpush1.bf16.msra.mxu1 %v5530_v3  ;;  %2300 = vmatpush1.bf16.msra.mxu0 %v5531_v4  ;;  %v5537_v8 = vld [vmem:[%s8036_s1 + $0x190] ss:$8 sps:$4 sm:$0xff]   ;;  %v5540_v10 = vld [vmem:[%s8036_s1 + $0x1a4] ss:$8 sps:$4 sm:$0xff]   ;;  %v5542_v11 = vld [vmem:[%s8036_s1 + $0xa0] ss:$8 sps:$4 sm:$0xff]  }
  0x11   : > { %786 = vmatprep.subr.bf16.mxu1 %v5532_v5  ;;  %2301 = vmatprep.subr.bf16.mxu0 %v5534_v6  ;;  %v5543_v12 = vld [vmem:[%s8036_s1 + $0x1a0] ss:$8 sps:$4 sm:$0xff]   ;;  %v5544_v13 = vld [vmem:[%s8036_s1 + $0xb4] ss:$8 sps:$4 sm:$0xff]   ;;  %s8372_s13 = smov (!%p161_p3, %s4673_s13), 1  ;;  %v8164_v60 = vmov 0 }
  0x12   : > { %v5546_v14 = vld [vmem:[%s8036_s1 + $0x1b4] ss:$8 sps:$4 sm:$0xff]   ;;  %v5548_v15 = vld [vmem:[%s8036_s1 + $0xb0] ss:$8 sps:$4 sm:$0xff]   ;;  %v5550_v17 = vld [vmem:[%s8036_s1 + $0xc4] ss:$8 sps:$4 sm:$0xff]  }
  0x13   : > { %v5549_v16 = vld [vmem:[%s8036_s1 + $0x1b0] ss:$8 sps:$4 sm:$0xff]   ;;  %v5552_v18 = vld [vmem:[%s8036_s1 + $0x1c4] ss:$8 sps:$4 sm:$0xff]   ;;  %s5516_s25 = smul.u32 192, %s8372_s13  ;;  %vm2556_vm6 = vcmask 1041408  }
  0x14   : > { %787 = vmatpush1.bf16.msra.mxu1 %v5536_v7  ;;  %2302 = vmatpush1.bf16.msra.mxu0 %v5537_v8  ;;  %v5554_v19 = vld [vmem:[%s8036_s1 + $0xc0] ss:$8 sps:$4 sm:$0xff]   ;;  %v5556_v21 = vld [vmem:[%s8036_s1 + $0xd4] ss:$8 sps:$4 sm:$0xff]   ;;  %vm236_vm0 = vsmask.f32 3328 }
  0x15   : > { %788 = vmatprep.subr.bf16.mxu1 %v5538_v9  ;;  %2303 = vmatprep.subr.bf16.mxu0 %v5540_v10  ;;  %v5555_v20 = vld [vmem:[%s8036_s1 + $0x1c0] ss:$8 sps:$4 sm:$0xff]   ;;  %v5558_v22 = vld [vmem:[%s8036_s1 + $0x1d4] ss:$8 sps:$4 sm:$0xff]   ;;  %s5900_s9 = scalar_lea.vmem %s8035_s0, %s5516_s25  ;;  %vm237_vm1 = vsmask.f32 7440 }
  0x16   : > { %vm1895_vm2 = vsmask.f32 2304  ;;  %v5560_v23 = vld [vmem:[%s8036_s1 + $0xd0] ss:$8 sps:$4 sm:$0xff]   ;;  %vm1896_vm3 = vsmask.f32 6416  ;;  %vm5967_vm4 = vmor %vm236_vm0, %vm237_vm1 }
  0x17   : > { %v5561_v24 = vld [vmem:[%s8036_s1 + $0x1d0] ss:$8 sps:$4 sm:$0xff]   ;;  %v5562_v25 = vld [vmem:[%s8036_s1 + $0xe4] ss:$8 sps:$4 sm:$0xff]   ;;  %v5915_v27 = vld [vmem:[%s5900_s9] sm:$0xf] }
  0x18   : > { %789 = vmatpush1.bf16.msra.mxu1 %v5542_v11  ;;  %2304 = vmatpush1.bf16.msra.mxu0 %v5543_v12  ;;  %v5564_v26 = vld [vmem:[%s8036_s1 + $0x1e4] ss:$8 sps:$4 sm:$0xff]   ;;  %v5566_v29 = vld [vmem:[%s8036_s1 + $0xe0] ss:$8 sps:$4 sm:$0xff]   ;;  %v5927_v31 = vshrl.u32 %v5915_v27, 16  ;;  %v5930_v32 = vshll.u32 %v5915_v27, 16  ;;  %vm5983_vm5 = vmor %vm1895_vm2, %vm1896_vm3 }
  0x19   : > { %790 = vmatprep.subr.bf16.mxu1 %v5544_v13  ;;  %2305 = vmatprep.subr.bf16.mxu0 %v5546_v14  ;;  %v5918_v28 = vld [vmem:[%s5900_s9 + $0x4] sm:$0xf]  ;;  %v5924_v30 = vld [vmem:[%s5900_s9 + $0x8] sm:$0x7]  ;;  %v5568_v38 = vld [vmem:[%s8036_s1 + $0xf4] ss:$8 sps:$4 sm:$0xff]  }
  0x1a   : > { %v5933_v33 = vshll.u32 %v5918_v28, 16  ;;  %v5936_v34 = vshrl.u32 %v5918_v28, 16  ;;  %v5567_v35 = vld [vmem:[%s8036_s1 + $0x1e0] ss:$8 sps:$4 sm:$0xff]   ;;  %v5942_v36 = vshll.u32 %v5924_v30, 16  ;;  %v8042_v37 = vshrl.u32 %v5924_v30, 16 }
  0x1b   : > { %v242_v39 = vrot.slane %v5927_v31, 4  ;;  %v245_v40 = vrot.slane %v5930_v32, 5  ;;  %v5570_v43 = vld [vmem:[%s8036_s1 + $0x1f4] ss:$8 sps:$4 sm:$0xff]   ;;  %v1898_v45 = vrot.slane %v5927_v31, 5  ;;  %v1899_v50 = vrot.slane %v5930_v32, 6 }
  0x1c   : > { %791 = vmatpush1.bf16.msra.mxu1 %v5548_v15  ;;  %2306 = vmatpush1.bf16.msra.mxu0 %v5549_v16  ;;  %v251_v41 = vrot.slane %v5933_v33, 5  ;;  %v255_v42 = vrot.slane %v5936_v34, 4  ;;  %v261_v44 = vrot.slane %v5942_v36, 5  ;;  %v5572_v46 = vld [vmem:[%s8036_s1 + $0xf0] ss:$8 sps:$4 sm:$0xff]   ;;  %v1902_v51 = vrot.slane %v5936_v34, 5 }
  0x1d   : > { %792 = vmatprep.subr.bf16.mxu1 %v5550_v17  ;;  %2307 = vmatprep.subr.bf16.mxu0 %v5552_v18  ;;  %v5573_v47 = vld [vmem:[%s8036_s1 + $0x1f0] ss:$8 sps:$4 sm:$0xff]   ;;  %v246_v48 = vor.u32 %v245_v40, %v242_v39  ;;  %v5576_v53 = vld [vmem:[%s8036_s1 + $0x4] ss:$8 sps:$4 sm:$0xff]   ;;  %v1903_v54 = vrot.slane %v5933_v33, 6  ;;  %v1909_v55 = vrot.slane %v8042_v37, 5  ;;  %v1900_v61 = vor.u32 %v1899_v50, %v1898_v45 }
  0x1e   : > { %v256_v49 = vor.u32 %v255_v42, %v251_v41  ;;  %v1910_v56 = vrot.slane %v5942_v36, 6  ;;  %v5979_v57 = vld [vmem:[%s5900_s9 + $0xc] sm:$0xf]  ;;  %v8165_v60 = vsel %vm5983_vm5, 4294967295, %v8164_v60  ;;  %v5991_v63 = vld [vmem:[%s5900_s9 + $0x10] sm:$0xf] }
  0x1f   : > { %v247_v58 = vrot.slane %v246_v48, 4  ;;  %8166 = vst [vmem:[#allocation2_spill] sm:$0xff] %v8165_v60  ;;  %v5579_v62 = vld [vmem:[%s8036_s1 + $0x204] ss:$8 sps:$4 sm:$0xff]   ;;  %v1904_v0 = vor.u32 %v1903_v54, %v1902_v51  ;;  %v5994_v3 = vld [vmem:[%s5900_s9 + $0x14] sm:$0x7] }
  0x20   : > { %793 = vmatpush1.bf16.msra.mxu1 %v5554_v19  ;;  %2308 = vmatpush1.bf16.msra.mxu0 %v5555_v20  ;;  %v257_v59 = vrot.slane %v256_v49, 4  ;;  %v1911_v1 = vor.u32 %v1910_v56, %v1909_v55  ;;  %8167 = vst [vmem:[#allocation3_spill] sm:$0xff] %v5994_v3  ;;  %v5997_v4 = vshrl.u32 %v5979_v57, 16  ;;  %v6000_v5 = vshll.u32 %v5979_v57, 16  ;;  %v5574_v8 = vld [vmem:[%s8036_s1] ss:$8 sps:$4 sm:$0xff]  }
  0x21   : > { %794 = vmatprep.subr.bf16.mxu1 %v5556_v21  ;;  %2309 = vmatprep.subr.bf16.mxu0 %v5558_v22  ;;  %v252_v6 = vsel %vm5967_vm4, %v247_v58, %v251_v41  ;;  %v1901_v9 = vrot.slane %v1900_v61, 4  ;;  %v6010_v10 = vshll.u32 %v5991_v63, 16  ;;  %v1906_v12 = vrot.slane %v1904_v0, 4  ;;  %v5577_v13 = vld [vmem:[%s8036_s1 + $0x200] ss:$8 sps:$4 sm:$0xff]   ;;  %s5083_s6 = sshll.u32 %s8372_s13, 8 }
  0x22   : > { %8168 = vst [vmem:[#allocation4_spill] sm:$0xff] %v5997_v4  ;;  %8169 = vst [vmem:[#allocation5_spill] sm:$0xff] %v6000_v5  ;;  %v262_v7 = vsel %vm5967_vm4, %v257_v59, %v261_v44  ;;  %v266_v14 = vrot.slane %v5997_v4, 4  ;;  %v269_v15 = vrot.slane %v6000_v5, 5  ;;  %v6021_v18 = vshrl.u32 %v5991_v63, 16  ;;  %s7844_s10 = scalar_lea.vmem %s8038_s3, %s5083_s6 }
  0x23   : > { %8170 = vst [vmem:[#allocation6_spill] sm:$0xff] %v6010_v10  ;;  %v4697_v11 = vcombine.low %v252_v6, %v262_v7  ;;  %v1905_v16 = vsel %vm5983_vm5, %v1901_v9, %v1904_v0  ;;  %v275_v17 = vrot.slane %v6010_v10, 5  ;;  %v6024_v19 = vshll.u32 %v5994_v3, 16  ;;  %v5582_v20 = vld [vmem:[%s8036_s1 + $0x214] ss:$8 sps:$4 sm:$0xff]  }
  0x24   : > { %795 = vmatpush1.bf16.msra.mxu1 %v5560_v23  ;;  %2310 = vmatpush1.bf16.msra.mxu0 %v5561_v24  ;;  %8171 = vst [vmem:[#allocation7_spill] sm:$0xff] %v6021_v18  ;;  %v1912_v21 = vsel %vm5983_vm5, %v1906_v12, %v1911_v1  ;;  %v270_v22 = vor.u32 %v269_v15, %v266_v14  ;;  %v1913_v23 = vrot.slane %v5997_v4, 5  ;;  %v1914_v24 = vrot.slane %v6000_v5, 6  ;;  %v5585_v44 = vld [vmem:[%s8036_s1 + $0x14] ss:$8 sps:$4 sm:$0xff]  }
  0x25   : > { %796 = vmatprep.subr.bf16.mxu1 %v5562_v25  ;;  %2311 = vmatprep.subr.bf16.mxu0 %v5564_v26  ;;  %8172 = vst [vmem:[#allocation8_spill] sm:$0xff] %v6024_v19  ;;  %v6034_v25 = vld [vmem:[%s5900_s9 + $0x18] sm:$0xf]  ;;  %v6037_v26 = vld [vmem:[%s5900_s9 + $0x1c] sm:$0xf]  ;;  %v1917_v39 = vrot.slane %v6021_v18, 5 }
  0x26   : > { %v271_v40 = vrot.slane %v270_v22, 4  ;;  %v1915_v41 = vor.u32 %v1914_v24, %v1913_v23  ;;  %v1918_v42 = vrot.slane %v6010_v10, 6  ;;  %v6052_v48 = vshll.u32 %v6034_v25, 16  ;;  %v5583_v49 = vld [vmem:[%s8036_s1 + $0x10] ss:$8 sps:$4 sm:$0xff]  }
  0x27   : > { %v5580_v55 = vld [vmem:[%s8036_s1 + $0x210] ss:$8 sps:$4 sm:$0xff]   ;;  %v6066_v56 = vld [vmem:[%s5900_s9 + $0x20] sm:$0x7]  ;;  %v5588_v0 = vld [vmem:[%s8036_s1 + $0x224] ss:$8 sps:$4 sm:$0xff]  }
  0x28   : > { %797 = vmatpush1.bf16.msra.mxu1 %v5566_v29  ;;  %2312 = vmatpush1.bf16.msra.mxu0 %v5567_v35  ;;  %v4841_v29 = vcombine.low %v1905_v16, %v1912_v21  ;;  %v279_v35 = vrot.slane %v6021_v18, 4  ;;  %8174 = vst [vmem:[#allocation10_spill] sm:$0xff] %v6052_v48  ;;  %v276_v50 = vsel %vm5967_vm4, %v271_v40, %v275_v17  ;;  %v1916_v51 = vrot.slane %v1915_v41, 4  ;;  %v5586_v14 = vld [vmem:[%s8036_s1 + $0x220] ss:$8 sps:$4 sm:$0xff]  }
  0x29   : > { %798 = vmatprep.subr.bf16.mxu1 %v5568_v38  ;;  %2313 = vmatprep.subr.bf16.mxu0 %v5570_v43  ;;  %v285_v38 = vrot.slane %v6024_v19, 5  ;;  %v8041_v43 = vshrl.u32 %v5994_v3, 16  ;;  %8175 = vst [vmem:[#allocation11_spill] sm:$0xff] %v6066_v56  ;;  %v293_v61 = vrot.slane %v6052_v48, 5  ;;  %v6092_v15 = vld [vmem:[%s5900_s9 + $0x24] sm:$0xf] }
  0x2a   : > { %v280_v45 = vor.u32 %v279_v35, %v275_v17  ;;  %v6099_v22 = vld [vmem:[%s5900_s9 + $0x28] sm:$0xf]  ;;  %v5591_v23 = vld [vmem:[%s8036_s1 + $0x234] ss:$8 sps:$4 sm:$0xff]   ;;  %v6240_v37 = vld [vmem:[%s5900_s9 + $0x44] sm:$0x7] }
  0x2b   : > { %v1924_v54 = vrot.slane %v8041_v43, 5  ;;  %8191 = vst [vmem:[#allocation27_spill] sm:$0xff] %v6240_v37  ;;  %vm2557_vm7 = vcmask 1045508   ;;  %v2599_v5 = vrot.slane %v6240_v37, 6  ;;  %v6745_v4 = vld [vmem:[%s5900_s9 + $0xb0] sm:$0x7] }
  0x2c   : > { %799 = vmatpush1.bf16.msra.mxu1 %v5572_v46  ;;  %2314 = vmatpush1.bf16.msra.mxu0 %v5573_v47  ;;  %v1925_v46 = vrot.slane %v6024_v19, 6  ;;  %v6049_v47 = vshrl.u32 %v6034_v25, 16  ;;  %v281_v58 = vrot.slane %v280_v45, 4  ;;  %v5594_v45 = vld [vmem:[%s8036_s1 + $0x24] ss:$8 sps:$4 sm:$0xff]   ;;  %vm6457_vm8 = vmor %vm2556_vm6, %vm2557_vm7  ;;  %v3097_v52 = vrot.slane %v5933_v33, 7 }
  0x2d   : > { %1153 = vmatprep.subr.bf16.mxu1 %v5576_v53  ;;  %2832 = vmatprep.subr.bf16.mxu0 %v5579_v62  ;;  %v1919_v53 = vor.u32 %v1918_v42, %v1917_v39  ;;  %v6072_v62 = vshll.u32 %v6037_v26, 16  ;;  %v5592_v39 = vld [vmem:[%s8036_s1 + $0x20] ss:$8 sps:$4 sm:$0xff]   ;;  %v6555_v19 = vld [vmem:[%s5900_s9 + $0x8c] sm:$0x7]  ;;  %vm1362_vm12 = vcmask 1042432  }
  0x2e   : > { %8173 = vst [vmem:[#allocation9_spill] sm:$0xff] %v6049_v47  ;;  %v290_v59 = vrot.slane %v6049_v47, 4  ;;  %v1926_v7 = vor.u32 %v1925_v46, %v1924_v54  ;;  %v286_v9 = vsel %vm5967_vm4, %v281_v58, %v285_v38  ;;  %v1928_v21 = vrot.slane %v6049_v47, 5 }
  0x2f   : > { %817 = vmatmul.mubr.bf16.vlgmr.msra.gmra.mrb[0].mxu1 %v4697_v11  ;;  %2332 = vmatmul.mubr.bf16.vlgmr.msra.gmra.mrb[0].mxu0 %v4841_v29  ;;  %8176 = vst [vmem:[#allocation12_spill] sm:$0xff] %v6072_v62  ;;  %v1920_v1 = vsel %vm5983_vm5, %v1916_v51, %v1919_v53  ;;  %v1921_v6 = vrot.slane %v1919_v53, 4  ;;  %v299_v12 = vrot.slane %v6072_v62, 5  ;;  %v4698_v16 = vcombine.low %v276_v50, %v286_v9  ;;  %v6120_v51 = vld [vmem:[%s5900_s9 + $0x2c] sm:$0x7] }
  0x30   : > { %1154 = vmatpush1.bf16.msra.mxu1 %v5574_v8  ;;  %2833 = vmatpush1.bf16.msra.mxu0 %v5577_v13  ;;  %v6080_v8 = vshrl.u32 %v6037_v26, 16  ;;  %v294_v11 = vor.u32 %v293_v61, %v290_v59  ;;  %v6086_v13 = vshll.u32 %v6066_v56, 16  ;;  %v1929_v38 = vrot.slane %v6052_v48, 6  ;;  %8179 = vst [vmem:[#allocation15_spill] sm:$0xff] %v6120_v51  ;;  %v5589_v61 = vld [vmem:[%s8036_s1 + $0x230] ss:$8 sps:$4 sm:$0xff]  }
  0x31   : > { %826 = vmatprep.mubr.bf16.mxu1 %v8046_v2  ;;  %2341 = vmatprep.mubr.bf16.mxu0 %v8046_v2  ;;  %v1927_v17 = vsel %vm5983_vm5, %v1921_v6, %v1926_v7  ;;  %v1933_v42 = vrot.slane %v6072_v62, 6  ;;  %v6123_v53 = vshrl.u32 %v6092_v15, 16  ;;  %v6129_v59 = vshll.u32 %v6092_v15, 16  ;;  %v5597_v9 = vld [vmem:[%s8036_s1 + $0x244] ss:$8 sps:$4 sm:$0xff]  }
  0x32   : > { %2834 = vmatprep.subr.bf16.mxu0 %v5582_v20  ;;  %8177 = vst [vmem:[#allocation13_spill] sm:$0xff] %v6080_v8  ;;  %1155 = vmatprep.subr.bf16.mxu1 %v5585_v44  ;;  %8178 = vst [vmem:[#allocation14_spill] sm:$0xff] %v6086_v13  ;;  %v303_v20 = vrot.slane %v6080_v8, 4  ;;  %v4842_v24 = vcombine.low %v1920_v1, %v1927_v17  ;;  %v295_v29 = vrot.slane %v294_v11, 4  ;;  %v309_v35 = vrot.slane %v6086_v13, 5 }
  0x33   : > { %v1932_v41 = vrot.slane %v6080_v8, 5  ;;  %v8040_v44 = vshrl.u32 %v6066_v56, 16  ;;  %v1940_v50 = vrot.slane %v6086_v13, 6  ;;  %8180 = vst [vmem:[#allocation16_spill] sm:$0xff] %v6123_v53  ;;  %8181 = vst [vmem:[#allocation17_spill] sm:$0xff] %v6129_v59  ;;  %v314_v1 = vrot.slane %v6123_v53, 4 }
  0x34   : > { %1156 = vmatpush1.bf16.msra.mxu1 %v5583_v49  ;;  %2835 = vmatpush1.bf16.msra.mxu0 %v5580_v55  ;;  %v304_v40 = vor.u32 %v303_v20, %v299_v12  ;;  %v300_v46 = vsel %vm5967_vm4, %v295_v29, %v299_v12  ;;  %v1930_v49 = vor.u32 %v1929_v38, %v1928_v21  ;;  %v6136_v6 = vshll.u32 %v6099_v22, 16 }
  0x35   : > { %2836 = vmatprep.subr.bf16.mxu0 %v5588_v0  ;;  %v1934_v55 = vor.u32 %v1933_v42, %v1932_v41  ;;  %v1939_v58 = vrot.slane %v8040_v44, 5  ;;  %v6139_v7 = vshrl.u32 %v6099_v22, 16  ;;  %1157 = vmatprep.subr.bf16.mxu1 %v5594_v45  ;;  %v5595_v41 = vld [vmem:[%s8036_s1 + $0x240] ss:$8 sps:$4 sm:$0xff]   ;;  %v5600_v42 = vld [vmem:[%s8036_s1 + $0x254] ss:$8 sps:$4 sm:$0xff]  }
  0x36   : > { %v305_v54 = vrot.slane %v304_v40, 4  ;;  %v1931_v0 = vrot.slane %v1930_v49, 4  ;;  %8182 = vst [vmem:[#allocation18_spill] sm:$0xff] %v6136_v6  ;;  %v323_v21 = vrot.slane %v6136_v6, 5  ;;  %v1943_v40 = vrot.slane %v6123_v53, 5 }
  0x37   : > { %827 = vmatmul.mubr.bf16.gmra.mrb[4].mxu1 %v4698_v16  ;;  %2342 = vmatmul.mubr.bf16.gmra.mrb[4].mxu0 %v4842_v24  ;;  %8183 = vst [vmem:[#allocation19_spill] sm:$0xff] %v6139_v7  ;;  %v1936_v12 = vrot.slane %v1934_v55, 4  ;;  %v317_v16 = vrot.slane %v6129_v59, 5  ;;  %v6152_v24 = vld [vmem:[%s5900_s9 + $0x30] sm:$0xf]  ;;  %v1944_v49 = vrot.slane %v6129_v59, 6 }
  0x38   : > { %836 = vmatprep.mubr.bf16.mxu1 %v8046_v2  ;;  %2351 = vmatprep.mubr.bf16.mxu0 %v8046_v2  ;;  %v310_v11 = vsel %vm5967_vm4, %v305_v54, %v309_v35  ;;  %v1935_v20 = vsel %vm5983_vm5, %v1931_v0, %v1934_v55  ;;  %v6157_v35 = vshll.u32 %v6120_v51, 16  ;;  %v5601_v54 = vld [vmem:[%s8036_s1 + $0x30] ss:$8 sps:$4 sm:$0xff]   ;;  %v8039_v0 = vshrl.u32 %v6120_v51, 16 }
  0x39   : > { %2837 = vmatpush1.bf16.msra.mxu0 %v5586_v14  ;;  %v1941_v14 = vor.u32 %v1940_v50, %v1939_v58  ;;  %1158 = vmatpush1.bf16.msra.mxu1 %v5592_v39  ;;  %v4699_v17 = vcombine.low %v300_v46, %v310_v11  ;;  %v318_v38 = vor.u32 %v317_v16, %v314_v1  ;;  %v6161_v39 = vld [vmem:[%s5900_s9 + $0x34] sm:$0xf]  ;;  %v1947_v50 = vrot.slane %v6139_v7, 5 }
  0x3a   : > { %2838 = vmatprep.subr.bf16.mxu0 %v5591_v23  ;;  %v327_v23 = vrot.slane %v6139_v7, 4  ;;  %8184 = vst [vmem:[#allocation20_spill] sm:$0xff] %v6157_v35  ;;  %v333_v58 = vrot.slane %v6157_v35, 5  ;;  %v5603_v1 = vld [vmem:[%s8036_s1 + $0x34] ss:$8 sps:$4 sm:$0xff]   ;;  %v1945_v11 = vor.u32 %v1944_v49, %v1943_v40  ;;  %v6596_v10 = vshll.u32 %v6555_v19, 16 }
  0x3b   : > { %v1942_v29 = vsel %vm5983_vm5, %v1936_v12, %v1941_v14  ;;  %v319_v55 = vrot.slane %v318_v38, 4  ;;  %v1955_v12 = vrot.slane %v6157_v35, 6  ;;  %v6183_v14 = vshrl.u32 %v6152_v24, 16  ;;  %v5598_v38 = vld [vmem:[%s8036_s1 + $0x250] ss:$8 sps:$4 sm:$0xff]   ;;  %1159 = vmatprep.subr.bf16.mxu1 %v5603_v1 }
  0x3c   : > { %v4843_v45 = vcombine.low %v1935_v20, %v1942_v29  ;;  %v328_v46 = vor.u32 %v327_v23, %v323_v21  ;;  %v1954_v20 = vrot.slane %v8039_v0, 5  ;;  %v6191_v23 = vld [vmem:[%s5900_s9 + $0x38] sm:$0x7]  ;;  %v6194_v29 = vshll.u32 %v6152_v24, 16  ;;  %v6219_v1 = vld [vmem:[%s5900_s9 + $0x3c] sm:$0xf] }
  0x3d   : > { %2839 = vmatpush1.bf16.msra.mxu0 %v5589_v61  ;;  %v1948_v61 = vrot.slane %v6136_v6, 6  ;;  %8185 = vst [vmem:[#allocation21_spill] sm:$0xff] %v6183_v14  ;;  %v324_v16 = vsel %vm5967_vm4, %v319_v55, %v323_v21  ;;  %8186 = vst [vmem:[#allocation22_spill] sm:$0xff] %v6191_v23  ;;  %v338_v21 = vrot.slane %v6183_v14, 4  ;;  %1160 = vmatpush1.bf16.msra.mxu1 %v5601_v54  ;;  %v8049_v43 = vshrl.u32 %v6191_v23, 16 }
  0x3e   : > { %2840 = vmatprep.subr.bf16.mxu0 %v5597_v9  ;;  %v329_v9 = vrot.slane %v328_v46, 4  ;;  %8187 = vst [vmem:[#allocation23_spill] sm:$0xff] %v6194_v29  ;;  %v6203_v46 = vshll.u32 %v6161_v39, 16  ;;  %v1956_v55 = vor.u32 %v1955_v12, %v1954_v20  ;;  %v1958_v20 = vrot.slane %v6183_v14, 5  ;;  %v6335_v7 = vld [vmem:[%s5900_s9 + $0x54] sm:$0xf] }
  0x3f   : > { %837 = vmatmul.mubr.bf16.gmra.mrb[8].mxu1 %v4699_v17  ;;  %2352 = vmatmul.mubr.bf16.gmra.mrb[8].mxu0 %v4843_v45  ;;  %v1949_v17 = vor.u32 %v1948_v61, %v1947_v50  ;;  %v1946_v45 = vrot.slane %v1945_v11, 4  ;;  %v341_v61 = vrot.slane %v6194_v29, 5  ;;  %v6213_v11 = vshrl.u32 %v6161_v39, 16  ;;  %8230 = vst [vmem:[#allocation62_spill] sm:$0xff] %v6596_v10 }
  0x40   : > { %846 = vmatprep.mubr.bf16.mxu1 %v8046_v2  ;;  %2361 = vmatprep.mubr.bf16.mxu0 %v8046_v2  ;;  %v334_v40 = vsel %vm5967_vm4, %v329_v9, %v333_v58  ;;  %8188 = vst [vmem:[#allocation24_spill] sm:$0xff] %v6203_v46  ;;  %v347_v9 = vrot.slane %v6203_v46, 5  ;;  %v1959_v54 = vrot.slane %v6194_v29, 6  ;;  %v6281_v14 = vshll.u32 %v6240_v37, 16 }
  0x41   : > { %2841 = vmatpush1.bf16.msra.mxu0 %v5595_v41  ;;  %v5606_v41 = vld [vmem:[%s8036_s1 + $0x264] ss:$8 sps:$4 sm:$0xff]   ;;  %v4700_v49 = vcombine.low %v324_v16, %v334_v40  ;;  %v1951_v50 = vrot.slane %v1949_v17, 4  ;;  %v1950_v58 = vsel %vm5983_vm5, %v1946_v45, %v1949_v17  ;;  %8189 = vst [vmem:[#allocation25_spill] sm:$0xff] %v6213_v11  ;;  %v342_v12 = vor.u32 %v341_v61, %v338_v21  ;;  %v6226_v17 = vld [vmem:[%s5900_s9 + $0x40] sm:$0xf] }
  0x42   : > { %2842 = vmatprep.subr.bf16.mxu0 %v5600_v42  ;;  %v6216_v42 = vshll.u32 %v6191_v23, 16  ;;  %v5604_v40 = vld [vmem:[%s8036_s1 + $0x260] ss:$8 sps:$4 sm:$0xff]   ;;  %v351_v0 = vrot.slane %v6213_v11, 4  ;;  %v5609_v21 = vld [vmem:[%s8036_s1 + $0x274] ss:$8 sps:$4 sm:$0xff]   ;;  %v1960_v61 = vor.u32 %v1959_v54, %v1958_v20 }
  0x43   : > { %v1957_v16 = vsel %vm5983_vm5, %v1951_v50, %v1956_v55  ;;  %v1962_v50 = vrot.slane %v6213_v11, 5  ;;  %v343_v55 = vrot.slane %v342_v12, 4  ;;  %v6248_v11 = vshll.u32 %v6219_v1, 16  ;;  %8196 = vst [vmem:[#allocation32_spill] sm:$0xff] %v6281_v14 }
  0x44   : > { %8190 = vst [vmem:[#allocation26_spill] sm:$0xff] %v6216_v42  ;;  %v4844_v45 = vcombine.low %v1950_v58, %v1957_v16  ;;  %v357_v44 = vrot.slane %v6216_v42, 5  ;;  %v352_v58 = vor.u32 %v351_v0, %v347_v9  ;;  %v1970_v16 = vrot.slane %v6216_v42, 6  ;;  %v5612_v42 = vld [vmem:[%s8036_s1 + $0x44] ss:$8 sps:$4 sm:$0xff]  }
  0x45   : > { %2843 = vmatpush1.bf16.msra.mxu0 %v5598_v38  ;;  %v1963_v38 = vrot.slane %v6203_v46, 6  ;;  %8193 = vst [vmem:[#allocation29_spill] sm:$0xff] %v6248_v11  ;;  %v348_v12 = vsel %vm5967_vm4, %v343_v55, %v347_v9  ;;  %v1961_v20 = vrot.slane %v1960_v61, 4  ;;  %v1969_v0 = vrot.slane %v8049_v43, 5  ;;  %1161 = vmatprep.subr.bf16.mxu1 %v5612_v42  ;;  %v6291_v42 = vld [vmem:[%s5900_s9 + $0x4c] sm:$0xf] }
  0x46   : > { %2844 = vmatprep.subr.bf16.mxu0 %v5606_v41  ;;  %v6245_v41 = vshrl.u32 %v6219_v1, 16  ;;  %v353_v46 = vrot.slane %v352_v58, 4  ;;  %v365_v29 = vrot.slane %v6248_v11, 5  ;;  %v6267_v9 = vshll.u32 %v6226_v17, 16 }
  0x47   : > { %847 = vmatmul.mubr.bf16.gmra.mrb[12].mxu1 %v4700_v49  ;;  %2362 = vmatmul.mubr.bf16.gmra.mrb[12].mxu0 %v4844_v45  ;;  %v5610_v49 = vld [vmem:[%s8036_s1 + $0x40] ss:$8 sps:$4 sm:$0xff]   ;;  %v1964_v54 = vor.u32 %v1963_v38, %v1962_v50  ;;  %v5607_v45 = vld [vmem:[%s8036_s1 + $0x270] ss:$8 sps:$4 sm:$0xff]   ;;  %v1971_v61 = vor.u32 %v1970_v16, %v1969_v0  ;;  %v6275_v38 = vshrl.u32 %v6226_v17, 16  ;;  %vm1363_vm13 = vcmask 1046532  }
  0x48   : > { %856 = vmatprep.mubr.bf16.mxu1 %v8046_v2  ;;  %8192 = vst [vmem:[#allocation28_spill] sm:$0xff] %v6245_v41  ;;  %2371 = vmatprep.mubr.bf16.mxu0 %v8046_v2  ;;  %v362_v2 = vrot.slane %v6245_v41, 4  ;;  %8194 = vst [vmem:[#allocation30_spill] sm:$0xff] %v6267_v9  ;;  %v358_v58 = vsel %vm5967_vm4, %v353_v46, %v357_v44  ;;  %v6288_v0 = vld [vmem:[%s5900_s9 + $0x48] sm:$0xf]  ;;  %v1974_v46 = vrot.slane %v6248_v11, 6 }
  0x49   : > { %2845 = vmatpush1.bf16.msra.mxu0 %v5604_v40  ;;  %v5615_v40 = vld [vmem:[%s8036_s1 + $0x284] ss:$8 sps:$4 sm:$0xff]   ;;  %v1965_v50 = vsel %vm5983_vm5, %v1961_v20, %v1964_v54  ;;  %v1966_v55 = vrot.slane %v1964_v54, 4  ;;  %8195 = vst [vmem:[#allocation31_spill] sm:$0xff] %v6275_v38  ;;  %1162 = vmatpush1.bf16.msra.mxu1 %v5610_v49  ;;  %v4701_v35 = vcombine.low %v348_v12, %v358_v58  ;;  %v375_v16 = vrot.slane %v6275_v38, 4  ;;  %vm7189_vm14 = vmor %vm1362_vm12, %vm1363_vm13 }
  0x4a   : > { %2846 = vmatprep.subr.bf16.mxu0 %v5609_v21  ;;  %v366_v43 = vor.u32 %v365_v29, %v362_v2  ;;  %v371_v21 = vrot.slane %v6267_v9, 5  ;;  %v1973_v54 = vrot.slane %v6245_v41, 5  ;;  %v381_v29 = vrot.slane %v6281_v14, 5 }
  0x4b   : > { %v1972_v20 = vsel %vm5983_vm5, %v1966_v55, %v1971_v61  ;;  %v1977_v12 = vrot.slane %v6275_v38, 5  ;;  %v1978_v55 = vrot.slane %v6267_v9, 6  ;;  %v6306_v58 = vshrl.u32 %v6288_v0, 16 }
  0x4c   : > { %v4845_v2 = vcombine.low %v1965_v50, %v1972_v20  ;;  %v367_v44 = vrot.slane %v366_v43, 4  ;;  %v376_v49 = vor.u32 %v375_v16, %v371_v21  ;;  %v8197_v43 = vmov 0   ;;  %v5618_v20 = vld [vmem:[%s8036_s1 + $0x54] ss:$8 sps:$4 sm:$0xff]  }
  0x4d   : > { %2847 = vmatpush1.bf16.msra.mxu0 %v5607_v45  ;;  %v5616_v45 = vld [vmem:[%s8036_s1 + $0x50] ss:$8 sps:$4 sm:$0xff]   ;;  %8198 = vst [vmem:[#allocation33_spill] sm:$0xff] %v6306_v58  ;;  %v1979_v61 = vor.u32 %v1978_v55, %v1977_v12  ;;  %v6315_v38 = vshll.u32 %v6288_v0, 16  ;;  %1163 = vmatprep.subr.bf16.mxu1 %v5618_v20  ;;  %vm3089_vm9 = vsmask.f32 1280 }
  0x4e   : > { %3461 = vmatprep.subr.bf16.mxu0 %v5615_v40  ;;  %v372_v50 = vsel %vm5967_vm4, %v367_v44, %v371_v21  ;;  %v1975_v40 = vor.u32 %v1974_v46, %v1973_v54  ;;  %v377_v16 = vrot.slane %v376_v49, 4  ;;  %v6318_v54 = vld [vmem:[%s5900_s9 + $0x50] sm:$0x7]  ;;  %v386_v44 = vrot.slane %v6306_v58, 4  ;;  %1164 = vmatpush1.bf16.msra.mxu1 %v5616_v45  ;;  %v6344_v45 = vld [vmem:[%s5900_s9 + $0x58] sm:$0xf] }
  0x4f   : > { %857 = vmatmul.mubr.bf16.gmra.mrb[16].mxu1 %v4701_v35  ;;  %2372 = vmatmul.mubr.bf16.gmra.mrb[16].mxu0 %v4845_v2  ;;  %v1985_v35 = vrot.slane %v6281_v14, 6  ;;  %v8199_v2 = vshrl.u32 %v6240_v37, 16  ;;  %8200 = vst [vmem:[#allocation34_spill] sm:$0xff] %v6315_v38  ;;  %v6322_v46 = vshll.u32 %v6291_v42, 16  ;;  %v6325_v14 = vshrl.u32 %v6291_v42, 16 }
  0x50   : > { %866 = vmatprep.mubr.bf16.mxu1 %v8197_v43  ;;  %2381 = vmatprep.mubr.bf16.mxu0 %v8197_v43  ;;  %v1976_v21 = vrot.slane %v1975_v40, 4  ;;  %v382_v49 = vsel %vm5967_vm4, %v377_v16, %v381_v29  ;;  %v1981_v12 = vrot.slane %v1979_v61, 4  ;;  %v6340_v29 = vshll.u32 %v6318_v54, 16 }
  0x51   : > { %v1984_v9 = vrot.slane %v8199_v2, 5  ;;  %8201 = vst [vmem:[#allocation35_spill] sm:$0xff] %v6322_v46  ;;  %8202 = vst [vmem:[#allocation36_spill] sm:$0xff] %v6325_v14  ;;  %v389_v2 = vrot.slane %v6315_v38, 5  ;;  %v4702_v40 = vcombine.low %v372_v50, %v382_v49  ;;  %v395_v41 = vrot.slane %v6322_v46, 5 }
  0x52   : > { %v1980_v11 = vsel %vm5983_vm5, %v1976_v21, %v1979_v61  ;;  %v399_v6 = vrot.slane %v6325_v14, 4  ;;  %8203 = vst [vmem:[#allocation37_spill] sm:$0xff] %v6340_v29  ;;  %v1989_v61 = vrot.slane %v6315_v38, 6  ;;  %v1992_v16 = vrot.slane %v6325_v14, 5  ;;  %v5622_v21 = vld [vmem:[%s8036_s1 + $0x60] ss:$8 sps:$4 sm:$0xff]  }
  0x53   : > { %v1986_v55 = vor.u32 %v1985_v35, %v1984_v9  ;;  %v390_v59 = vor.u32 %v389_v2, %v386_v44  ;;  %v1988_v9 = vrot.slane %v6306_v58, 5  ;;  %v5624_v44 = vld [vmem:[%s8036_s1 + $0x64] ss:$8 sps:$4 sm:$0xff]   ;;  %v6360_v14 = vshrl.u32 %v6335_v7, 16  ;;  %v6368_v38 = vld [vmem:[%s5900_s9 + $0x5c] sm:$0x7] }
  0x54   : > { %v400_v35 = vor.u32 %v399_v6, %v395_v41  ;;  %v8064_v6 = vshrl.u32 %v6318_v54, 16  ;;  %1165 = vmatprep.subr.bf16.mxu1 %v5624_v44  ;;  %vm3090_vm10 = vsmask.f32 5392  ;;  %vm3718_vm15 = vcmask 1040384  }
  0x55   : > { %v1987_v20 = vsel %vm5983_vm5, %v1981_v12, %v1986_v55  ;;  %v391_v49 = vrot.slane %v390_v59, 4  ;;  %v405_v12 = vrot.slane %v6340_v29, 5  ;;  %v1990_v2 = vor.u32 %v1989_v61, %v1988_v9  ;;  %8204 = vst [vmem:[#allocation38_spill] sm:$0xff] %v6360_v14  ;;  %1166 = vmatpush1.bf16.msra.mxu1 %v5622_v21  ;;  %vm6820_vm11 = vmor %vm3089_vm9, %vm3090_vm10 }
  0x56   : > { %v4846_v50 = vcombine.low %v1980_v11, %v1987_v20  ;;  %v1993_v11 = vrot.slane %v6322_v46, 6  ;;  %v401_v55 = vrot.slane %v400_v35, 4  ;;  %v2000_v20 = vrot.slane %v6340_v29, 6 }
  0x57   : > { %867 = vmatmul.mubr.bf16.gmra.mrb[20].mxu1 %v4702_v40  ;;  %v396_v59 = vsel %vm5967_vm4, %v391_v49, %v395_v41  ;;  %v1999_v46 = vrot.slane %v8064_v6, 5  ;;  %v1991_v35 = vrot.slane %v1990_v2, 4  ;;  %v410_v61 = vrot.slane %v6360_v14, 4 }
  0x58   : > { %2382 = vmatmul.mubr.bf16.gmra.mrb[20].mxu0 %v4846_v50  ;;  %876 = vmatprep.mubr.bf16.mxu1 %v8197_v43  ;;  %v1994_v40 = vor.u32 %v1993_v11, %v1992_v16  ;;  %v6371_v50 = vshll.u32 %v6335_v7, 16  ;;  %v406_v9 = vsel %vm5967_vm4, %v401_v55, %v405_v12  ;;  %v6377_v29 = vshll.u32 %v6344_v45, 16 }
  0x59   : > { %2391 = vmatprep.mubr.bf16.mxu0 %v8197_v43  ;;  %v4703_v41 = vcombine.low %v396_v59, %v406_v9  ;;  %v2001_v49 = vor.u32 %v2000_v20, %v1999_v46  ;;  %v6384_v55 = vshrl.u32 %v6344_v45, 16  ;;  %v6387_v2 = vshll.u32 %v6368_v38, 16  ;;  %v6394_v9 = vld [vmem:[%s5900_s9 + $0x60] sm:$0xf] }
  0x5a   : > { %8205 = vst [vmem:[#allocation39_spill] sm:$0xff] %v6371_v50  ;;  %8206 = vst [vmem:[#allocation40_spill] sm:$0xff] %v6377_v29  ;;  %v1996_v16 = vrot.slane %v1994_v40, 4  ;;  %v413_v11 = vrot.slane %v6371_v50, 5  ;;  %v1995_v44 = vsel %vm5983_vm5, %v1991_v35, %v1994_v40  ;;  %v419_v12 = vrot.slane %v6377_v29, 5 }
  0x5b   : > { %8207 = vst [vmem:[#allocation41_spill] sm:$0xff] %v6384_v55  ;;  %8208 = vst [vmem:[#allocation42_spill] sm:$0xff] %v6387_v2  ;;  %v2003_v20 = vrot.slane %v6360_v14, 5  ;;  %v2004_v59 = vrot.slane %v6371_v50, 6  ;;  %v5628_v40 = vld [vmem:[%s8036_s1 + $0x70] ss:$8 sps:$4 sm:$0xff]  }
  0x5c   : > { %v2002_v21 = vsel %vm5983_vm5, %v1996_v16, %v2001_v49  ;;  %v414_v46 = vor.u32 %v413_v11, %v410_v61  ;;  %v423_v6 = vrot.slane %v6384_v55, 4  ;;  %v429_v58 = vrot.slane %v6387_v2, 5  ;;  %v5630_v61 = vld [vmem:[%s8036_s1 + $0x74] ss:$8 sps:$4 sm:$0xff]   ;;  %v6408_v14 = vld [vmem:[%s5900_s9 + $0x64] sm:$0xf] }
  0x5d   : > { %v4847_v35 = vcombine.low %v1995_v44, %v2002_v21  ;;  %v2007_v53 = vrot.slane %v6384_v55, 5  ;;  %v2005_v49 = vor.u32 %v2004_v59, %v2003_v20  ;;  %v2008_v11 = vrot.slane %v6377_v29, 6  ;;  %v6424_v29 = vld [vmem:[%s5900_s9 + $0x68] sm:$0x7]  ;;  %1167 = vmatprep.subr.bf16.mxu1 %v5630_v61  ;;  %v5637_v61 = vld [vmem:[%s8036_s1 + $0x104] ss:$8 sps:$4 sm:$0xff]  }
  0x5e   : > { %v415_v16 = vrot.slane %v414_v46, 4  ;;  %v8074_v50 = vshrl.u32 %v6368_v38, 16  ;;  %v424_v44 = vor.u32 %v423_v6, %v419_v12  ;;  %v2015_v21 = vrot.slane %v6387_v2, 6  ;;  %1168 = vmatpush1.bf16.msra.mxu1 %v5628_v40 }
  0x5f   : > { %877 = vmatmul.mubr.bf16.gmra.mrb[24].mxu1 %v4703_v41  ;;  %v6413_v55 = vshrl.u32 %v6394_v9, 16  ;;  %v6416_v41 = vshll.u32 %v6394_v9, 16  ;;  %v2006_v20 = vrot.slane %v2005_v49, 4  ;;  %v2009_v59 = vor.u32 %v2008_v11, %v2007_v53  ;;  %1638 = vmatprep.subr.bf16.mxu1 %v5637_v61 }
  0x60   : > { %2392 = vmatmul.mubr.bf16.gmra.mrb[24].mxu0 %v4847_v35  ;;  %886 = vmatprep.mubr.bf16.mxu1 %v8197_v43  ;;  %v420_v46 = vsel %vm5967_vm4, %v415_v16, %v419_v12  ;;  %v2014_v35 = vrot.slane %v8074_v50, 5  ;;  %v425_v6 = vrot.slane %v424_v44, 4  ;;  %v6429_v62 = vshll.u32 %v6408_v14, 16 }
  0x61   : > { %8209 = vst [vmem:[#allocation43_spill] sm:$0xff] %v6413_v55  ;;  %8210 = vst [vmem:[#allocation44_spill] sm:$0xff] %v6416_v41  ;;  %2401 = vmatprep.mubr.bf16.mxu0 %v8197_v43  ;;  %v434_v2 = vrot.slane %v6413_v55, 4  ;;  %v437_v13 = vrot.slane %v6416_v41, 5  ;;  %v2010_v53 = vsel %vm5983_vm5, %v2006_v20, %v2009_v59  ;;  %v2011_v12 = vrot.slane %v2009_v59, 4 }
  0x62   : > { %8211 = vst [vmem:[#allocation45_spill] sm:$0xff] %v6429_v62  ;;  %v2016_v16 = vor.u32 %v2015_v21, %v2014_v35  ;;  %v6434_v49 = vshrl.u32 %v6408_v14, 16  ;;  %v430_v11 = vsel %vm5967_vm4, %v425_v6, %v429_v58  ;;  %v443_v50 = vrot.slane %v6429_v62, 5  ;;  %v6446_v20 = vld [vmem:[%s5900_s9 + $0x6c] sm:$0xf] }
  0x63   : > { %v438_v44 = vor.u32 %v437_v13, %v434_v2  ;;  %v6443_v40 = vshll.u32 %v6424_v29, 16  ;;  %v4704_v21 = vcombine.low %v420_v46, %v430_v11  ;;  %v6452_v41 = vld [vmem:[%s5900_s9 + $0x70] sm:$0xf]  ;;  %v4873_v6 = vrot.slane %v5915_v27, 10  ;;  %v6465_v11 = vld [vmem:[%s5900_s9 + $0x74] sm:$0x7] }
  0x64   : > { %8212 = vst [vmem:[#allocation46_spill] sm:$0xff] %v6434_v49  ;;  %v2017_v59 = vsel %vm5983_vm5, %v2011_v12, %v2016_v16  ;;  %v447_v35 = vrot.slane %v6434_v49, 4  ;;  %v2561_v12 = vrot.slane %v5918_v28, 6  ;;  %v2564_v16 = vrot.slane %v5924_v30, 6  ;;  %v6501_v62 = vld [vmem:[%s5900_s9 + $0x7c] sm:$0xf] }
  0x65   : > { %8213 = vst [vmem:[#allocation47_spill] sm:$0xff] %v6443_v40  ;;  %v4848_v55 = vcombine.low %v2010_v53, %v2017_v59  ;;  %v439_v58 = vrot.slane %v438_v44, 4  ;;  %v453_v13 = vrot.slane %v6443_v40, 5  ;;  %v6471_v61 = vshrl.u32 %v6446_v20, 16  ;;  %v6492_v40 = vld [vmem:[%s5900_s9 + $0x78] sm:$0xf] }
  0x66   : > { %v448_v46 = vor.u32 %v447_v35, %v443_v50  ;;  %v6474_v44 = vshll.u32 %v6446_v20, 16  ;;  %v6477_v27 = vshll.u32 %v6452_v41, 16  ;;  %v6483_v59 = vshrl.u32 %v6452_v41, 16  ;;  %v5613_v49 = vld [vmem:[%s8036_s1 + $0x280] ss:$8 sps:$4 sm:$0xff]  }
  0x67   : > { %887 = vmatmul.mubr.bf16.gmra.mrb[28].mxu1 %v4704_v21  ;;  %v444_v53 = vsel %vm5967_vm4, %v439_v58, %v443_v50  ;;  %8216 = vst [vmem:[#allocation48_spill] sm:$0xff] %v6471_v61  ;;  %v2563_v21 = vrot.slane %v2561_v12, 4  ;;  %v458_v50 = vrot.slane %v6471_v61, 4  ;;  %v6489_v60 = vshll.u32 %v6465_v11, 16 }
  0x68   : > { %2402 = vmatmul.mubr.bf16.gmra.mrb[28].mxu0 %v4848_v55  ;;  %896 = vmatprep.mubr.bf16.mxu1 %v8197_v43  ;;  %8217 = vst [vmem:[#allocation49_spill] sm:$0xff] %v6474_v44  ;;  %8218 = vst [vmem:[#allocation50_spill] sm:$0xff] %v6477_v27  ;;  %v449_v28 = vrot.slane %v448_v46, 4  ;;  %v2562_v55 = vsel %vm6457_vm8, %v4873_v6, %v2561_v12  ;;  %v461_v35 = vrot.slane %v6474_v44, 5  ;;  %v467_v58 = vrot.slane %v6477_v27, 5 }
  0x69   : > { %2864 = vmatprep.mubr.bf16.mxu0 %v8197_v43  ;;  %8219 = vst [vmem:[#allocation51_spill] sm:$0xff] %v6483_v59  ;;  %8220 = vst [vmem:[#allocation52_spill] sm:$0xff] %v6489_v60  ;;  %v2565_v6 = vsel %vm6457_vm8, %v2563_v21, %v2564_v16  ;;  %v471_v12 = vrot.slane %v6483_v59, 4  ;;  %v4874_v61 = vrot.slane %v5979_v57, 10  ;;  %v477_v48 = vrot.slane %v6489_v60, 5 }
  0x6a   : > { %v454_v46 = vsel %vm5967_vm4, %v449_v28, %v453_v13  ;;  %v4905_v27 = vcombine.low %v2562_v55, %v2565_v6  ;;  %v462_v8 = vor.u32 %v461_v35, %v458_v50  ;;  %v2568_v13 = vrot.slane %v5991_v63, 6  ;;  %v6510_v28 = vld [vmem:[%s5900_s9 + $0x80] sm:$0x7]  ;;  %v5621_v63 = vld [vmem:[%s8036_s1 + $0x294] ss:$8 sps:$4 sm:$0xff]  }
  0x6b   : > { %v4705_v44 = vcombine.low %v444_v53, %v454_v46  ;;  %v472_v47 = vor.u32 %v471_v12, %v467_v58  ;;  %v2571_v16 = vrot.slane %v5994_v3, 6  ;;  %v6513_v57 = vshrl.u32 %v6492_v40, 16  ;;  %v5619_v12 = vld [vmem:[%s8036_s1 + $0x290] ss:$8 sps:$4 sm:$0xff]  }
  0x6c   : > { %v463_v21 = vrot.slane %v462_v8, 4  ;;  %v6516_v53 = vshll.u32 %v6492_v40, 16  ;;  %v6519_v55 = vshll.u32 %v6501_v62, 16  ;;  %v6522_v50 = vshrl.u32 %v6501_v62, 16 }
  0x6d   : > { %8221 = vst [vmem:[#allocation53_spill] sm:$0xff] %v6513_v57  ;;  %v473_v35 = vrot.slane %v472_v47, 4  ;;  %v2569_v46 = vsel %vm6457_vm8, %v4874_v61, %v2568_v13  ;;  %v2570_v8 = vrot.slane %v2568_v13, 4  ;;  %v482_v6 = vrot.slane %v6513_v57, 4  ;;  %v6540_v13 = vld [vmem:[%s5900_s9 + $0x84] sm:$0xf] }
  0x6e   : > { %8222 = vst [vmem:[#allocation54_spill] sm:$0xff] %v6516_v53  ;;  %8223 = vst [vmem:[#allocation55_spill] sm:$0xff] %v6519_v55  ;;  %v468_v60 = vsel %vm5967_vm4, %v463_v21, %v467_v58  ;;  %v491_v47 = vrot.slane %v6519_v55, 5  ;;  %v495_v61 = vrot.slane %v6522_v50, 4  ;;  %v6548_v58 = vshll.u32 %v6510_v28, 16 }
  0x6f   : > { %8224 = vst [vmem:[#allocation56_spill] sm:$0xff] %v6522_v50  ;;  %897 = vmatmul.mubr.bf16.gmra.mrb[32].mxu1 %v4705_v44  ;;  %v485_v44 = vrot.slane %v6516_v53, 5  ;;  %v2572_v57 = vsel %vm6457_vm8, %v2570_v8, %v2571_v16  ;;  %v4875_v21 = vrot.slane %v6034_v25, 10  ;;  %v6552_v53 = vld [vmem:[%s5900_s9 + $0x88] sm:$0xf]  ;;  %v2578_v25 = vrot.slane %v6066_v56, 6 }
  0x70   : > { %2865 = vmatmul.mubr.bf16.vlgmr.msra.gmra.mrb[0].mxu0 %v4905_v27  ;;  %906 = vmatprep.mubr.bf16.mxu1 %v8197_v43  ;;  %v478_v27 = vsel %vm5967_vm4, %v473_v35, %v477_v48  ;;  %8225 = vst [vmem:[#allocation57_spill] sm:$0xff] %v6548_v58  ;;  %v4906_v50 = vcombine.low %v2569_v46, %v2572_v57  ;;  %v5627_v48 = vld [vmem:[%s8036_s1 + $0x2a4] ss:$8 sps:$4 sm:$0xff]   ;;  %v501_v16 = vrot.slane %v6548_v58, 5  ;;  %v2575_v35 = vrot.slane %v6037_v26, 6 }
  0x71   : > { %3462 = vmatpush1.bf16.msra.mxu0 %v5613_v49  ;;  %2874 = vmatprep.mubr.bf16.mxu0 %v8197_v43  ;;  %v4706_v55 = vcombine.low %v468_v60, %v478_v27  ;;  %v486_v59 = vor.u32 %v485_v44, %v482_v6  ;;  %v496_v49 = vor.u32 %v495_v61, %v491_v47  ;;  %v6564_v60 = vshrl.u32 %v6540_v13, 16  ;;  %v5625_v57 = vld [vmem:[%s8036_s1 + $0x2a0] ss:$8 sps:$4 sm:$0xff]   ;;  %v6576_v44 = vld [vmem:[%s5900_s9 + $0x90] sm:$0xf] }
  0x72   : > { %3463 = vmatprep.subr.bf16.mxu0 %v5621_v63  ;;  %v6570_v8 = vshll.u32 %v6540_v13, 16  ;;  %v6573_v6 = vshll.u32 %v6552_v53, 16  ;;  %v5633_v26 = vld [vmem:[%s8036_s1 + $0x2b4] ss:$8 sps:$4 sm:$0xff]   ;;  %v2577_v61 = vrot.slane %v2575_v35, 4  ;;  %vm3719_vm0 = vcmask 1044484  }
  0x73   : > { %8226 = vst [vmem:[#allocation58_spill] sm:$0xff] %v6564_v60  ;;  %v487_v63 = vrot.slane %v486_v59, 4  ;;  %v497_v46 = vrot.slane %v496_v49, 4  ;;  %v506_v27 = vrot.slane %v6564_v60, 4  ;;  %v6583_v59 = vshrl.u32 %v6552_v53, 16  ;;  %vm7449_vm1 = vmor %vm3718_vm15, %vm3719_vm0 }
  0x74   : > { %8227 = vst [vmem:[#allocation59_spill] sm:$0xff] %v6570_v8  ;;  %8228 = vst [vmem:[#allocation60_spill] sm:$0xff] %v6573_v6  ;;  %v509_v49 = vrot.slane %v6570_v8, 5  ;;  %v515_v58 = vrot.slane %v6573_v6, 5  ;;  %v6588_v56 = vld [vmem:[%s5900_s9 + $0x94] sm:$0xf] }
  0x75   : > { %3464 = vmatpush1.bf16.msra.mxu0 %v5619_v12  ;;  %8229 = vst [vmem:[#allocation61_spill] sm:$0xff] %v6583_v59  ;;  %v492_v3 = vsel %vm5967_vm4, %v487_v63, %v491_v47  ;;  %v502_v12 = vsel %vm5967_vm4, %v497_v46, %v501_v16  ;;  %v519_v60 = vrot.slane %v6583_v59, 4  ;;  %v5631_v8 = vld [vmem:[%s8036_s1 + $0x2b0] ss:$8 sps:$4 sm:$0xff]   ;;  %v5640_v16 = vld [vmem:[%s8036_s1 + $0x2c4] ss:$8 sps:$4 sm:$0xff]   ;;  %v2579_v63 = vsel %vm6457_vm8, %v2577_v61, %v2578_v25 }
  0x76   : > { %3465 = vmatprep.subr.bf16.mxu0 %v5627_v48  ;;  %v510_v48 = vor.u32 %v509_v49, %v506_v27  ;;  %v6605_v47 = vld [vmem:[%s5900_s9 + $0x98] sm:$0x7]  ;;  %v6615_v6 = vshrl.u32 %v6576_v44, 16  ;;  %v525_v27 = vrot.slane %v6596_v10, 5  ;;  %v6619_v49 = vshll.u32 %v6576_v44, 16 }
  0x77   : > { %907 = vmatmul.mubr.bf16.gmra.mrb[36].mxu1 %v4706_v55  ;;  %v2576_v55 = vsel %vm6457_vm8, %v4875_v21, %v2575_v35  ;;  %v520_v46 = vor.u32 %v519_v60, %v515_v58  ;;  %v4707_v21 = vcombine.low %v492_v3, %v502_v12  ;;  %v6623_v25 = vshll.u32 %v6588_v56, 16  ;;  %v6629_v60 = vld [vmem:[%s5900_s9 + $0x9c] sm:$0xf] }
  0x78   : > { %2875 = vmatmul.mubr.bf16.gmra.mrb[4].mxu0 %v4906_v50  ;;  %916 = vmatprep.mubr.bf16.mxu1 %v8197_v43  ;;  %v2582_v50 = vrot.slane %v6099_v22, 6  ;;  %8231 = vst [vmem:[#allocation63_spill] sm:$0xff] %v6615_v6  ;;  %v511_v35 = vrot.slane %v510_v48, 4  ;;  %8232 = vst [vmem:[#allocation64_spill] sm:$0xff] %v6619_v49  ;;  %v530_v18 = vrot.slane %v6615_v6, 4  ;;  %v6626_v22 = vshrl.u32 %v6588_v56, 16 }
  0x79   : > { %2884 = vmatprep.mubr.bf16.mxu0 %v8197_v43  ;;  %3466 = vmatpush1.bf16.msra.mxu0 %v5625_v57  ;;  %v521_v59 = vrot.slane %v520_v46, 4  ;;  %8233 = vst [vmem:[#allocation65_spill] sm:$0xff] %v6623_v25  ;;  %v4907_v57 = vcombine.low %v2576_v55, %v2579_v63  ;;  %v4876_v3 = vrot.slane %v6092_v15, 10  ;;  %v2585_v61 = vrot.slane %v6120_v51, 6  ;;  %v6635_v48 = vld [vmem:[%s5900_s9 + $0xa0] sm:$0xf] }
  0x7a   : > { %3467 = vmatprep.subr.bf16.mxu0 %v5633_v26  ;;  %8234 = vst [vmem:[#allocation66_spill] sm:$0xff] %v6626_v22  ;;  %v533_v12 = vrot.slane %v6619_v49, 5  ;;  %v2584_v26 = vrot.slane %v2582_v50, 4  ;;  %v539_v46 = vrot.slane %v6623_v25, 5  ;;  %v543_v6 = vrot.slane %v6626_v22, 4 }
  0x7b   : > { %v6640_v10 = vshll.u32 %v6605_v47, 16  ;;  %v5638_v55 = vld [vmem:[%s8036_s1 + $0x2c0] ss:$8 sps:$4 sm:$0xff]   ;;  %v516_v15 = vsel %vm5967_vm4, %v511_v35, %v515_v58  ;;  %v526_v63 = vsel %vm5967_vm4, %v521_v59, %v525_v27  ;;  %v5648_v25 = vld [vmem:[%s8036_s1 + $0x2d4] ss:$8 sps:$4 sm:$0xff]   ;;  %v6654_v51 = vshrl.u32 %v6629_v60, 16 }
  0x7c   : > { %v534_v22 = vor.u32 %v533_v12, %v530_v18  ;;  %v544_v49 = vor.u32 %v543_v6, %v539_v46  ;;  %v2583_v58 = vsel %vm6457_vm8, %v4876_v3, %v2582_v50  ;;  %v6660_v59 = vshll.u32 %v6629_v60, 16  ;;  %v5646_v35 = vld [vmem:[%s8036_s1 + $0x2d0] ss:$8 sps:$4 sm:$0xff]  }
  0x7d   : > { %8235 = vst [vmem:[#allocation67_spill] sm:$0xff] %v6640_v10  ;;  %3468 = vmatpush1.bf16.msra.mxu0 %v5631_v8  ;;  %v2589_v8 = vrot.slane %v6161_v39, 6  ;;  %8236 = vst [vmem:[#allocation68_spill] sm:$0xff] %v6654_v51  ;;  %v6666_v18 = vshrl.u32 %v6635_v48, 16  ;;  %v4708_v39 = vcombine.low %v516_v15, %v526_v63  ;;  %v2586_v6 = vsel %vm6457_vm8, %v2584_v26, %v2585_v61  ;;  %v5656_v61 = vld [vmem:[%s8036_s1 + $0x2e4] ss:$8 sps:$4 sm:$0xff]  }
  0x7e   : > { %3469 = vmatprep.subr.bf16.mxu0 %v5640_v16  ;;  %8237 = vst [vmem:[#allocation69_spill] sm:$0xff] %v6660_v59  ;;  %v6663_v16 = vshll.u32 %v6635_v48, 16  ;;  %v4877_v50 = vrot.slane %v6152_v24, 10  ;;  %v554_v27 = vrot.slane %v6654_v51, 4  ;;  %v535_v24 = vrot.slane %v534_v22, 4 }
  0x7f   : > { %917 = vmatmul.mubr.bf16.gmra.mrb[40].mxu1 %v4707_v21  ;;  %8239 = vst [vmem:[#allocation71_spill] sm:$0xff] %v6666_v18  ;;  %v549_v21 = vrot.slane %v6640_v10, 5  ;;  %v567_v12 = vrot.slane %v6666_v18, 4  ;;  %v545_v26 = vrot.slane %v544_v49, 4  ;;  %v2592_v15 = vrot.slane %v6191_v23, 6 }
  0x80   : > { %2885 = vmatmul.mubr.bf16.gmra.mrb[8].mxu0 %v4907_v57  ;;  %926 = vmatprep.mubr.bf16.mxu1 %v8197_v43  ;;  %8238 = vst [vmem:[#allocation70_spill] sm:$0xff] %v6663_v16  ;;  %v557_v57 = vrot.slane %v6660_v59, 5  ;;  %v563_v3 = vrot.slane %v6663_v16, 5  ;;  %v6685_v63 = vld [vmem:[%s5900_s9 + $0xa4] sm:$0x7]  ;;  %v4908_v10 = vcombine.low %v2583_v58, %v2586_v6  ;;  %v540_v58 = vsel %vm5967_vm4, %v535_v24, %v539_v46 }
  0x81   : > { %2894 = vmatprep.mubr.bf16.mxu0 %v8197_v43  ;;  %3470 = vmatpush1.bf16.msra.mxu0 %v5638_v55  ;;  %v2591_v55 = vrot.slane %v2589_v8, 4  ;;  %v6688_v51 = vld [vmem:[%s5900_s9 + $0xa8] sm:$0xf]  ;;  %v6691_v59 = vld [vmem:[%s5900_s9 + $0xac] sm:$0xf]  ;;  %v6697_v22 = vshll.u32 %v6685_v63, 16  ;;  %v550_v6 = vsel %vm5967_vm4, %v545_v26, %v549_v21 }
  0x82   : > { %3471 = vmatprep.subr.bf16.mxu0 %v5648_v25  ;;  %v5654_v25 = vld [vmem:[%s8036_s1 + $0x2e0] ss:$8 sps:$4 sm:$0xff]   ;;  %v558_v16 = vor.u32 %v557_v57, %v554_v27  ;;  %v568_v18 = vor.u32 %v567_v12, %v563_v3  ;;  %v5664_v49 = vld [vmem:[%s8036_s1 + $0x2f4] ss:$8 sps:$4 sm:$0xff]   ;;  %v6712_v57 = vshrl.u32 %v6688_v51, 16  ;;  %v6718_v46 = vshll.u32 %v6691_v59, 16 }
  0x83   : > { %8240 = vst [vmem:[#allocation72_spill] sm:$0xff] %v6697_v22  ;;  %v2593_v27 = vsel %vm6457_vm8, %v2591_v55, %v2592_v15  ;;  %v6721_v21 = vshrl.u32 %v6691_v59, 16  ;;  %v5672_v24 = vld [vmem:[%s8036_s1 + $0x304] ss:$8 sps:$4 sm:$0xff]   ;;  %v4709_v26 = vcombine.low %v540_v58, %v550_v6  ;;  %v6733_v15 = vld [vmem:[%s5900_s9 + $0xb4] sm:$0xf] }
  0x84   : > { %8241 = vst [vmem:[#allocation73_spill] sm:$0xff] %v6712_v57  ;;  %8243 = vst [vmem:[#allocation75_spill] sm:$0xff] %v6718_v46  ;;  %v569_v12 = vrot.slane %v568_v18, 4  ;;  %v587_v23 = vrot.slane %v6718_v46, 5  ;;  %v6740_v18 = vld [vmem:[%s5900_s9 + $0xb8] sm:$0xf] }
  0x85   : > { %3472 = vmatpush1.bf16.msra.mxu0 %v5646_v35  ;;  %v2590_v35 = vsel %vm6457_vm8, %v4877_v50, %v2589_v8  ;;  %8244 = vst [vmem:[#allocation76_spill] sm:$0xff] %v6721_v21  ;;  %v5662_v8 = vld [vmem:[%s8036_s1 + $0x2f0] ss:$8 sps:$4 sm:$0xff]   ;;  %v559_v50 = vrot.slane %v558_v16, 4  ;;  %v591_v16 = vrot.slane %v6721_v21, 4  ;;  %v6761_v46 = vshrl.u32 %v6740_v18, 16 }
  0x86   : > { %3473 = vmatprep.subr.bf16.mxu0 %v5656_v61  ;;  %v573_v61 = vrot.slane %v6697_v22, 5  ;;  %v4909_v55 = vcombine.low %v2590_v35, %v2593_v27  ;;  %v6752_v35 = vshrl.u32 %v6733_v15, 16  ;;  %v6755_v27 = vshll.u32 %v6733_v15, 16 }
  0x87   : > { %927 = vmatmul.mubr.bf16.gmra.mrb[44].mxu1 %v4708_v39  ;;  %v6715_v39 = vshll.u32 %v6688_v51, 16  ;;  %v564_v58 = vsel %vm5967_vm4, %v559_v50, %v563_v3  ;;  %v6765_v50 = vshll.u32 %v6745_v4, 16  ;;  %vm4583_vm2 = vcmask 1043456  }
  0x88   : > { %2895 = vmatmul.mubr.bf16.gmra.mrb[12].mxu0 %v4908_v10  ;;  %936 = vmatprep.mubr.bf16.mxu1 %v8197_v43  ;;  %v2596_v10 = vrot.slane %v6226_v17, 6  ;;  %v578_v17 = vrot.slane %v6712_v57, 4  ;;  %v574_v6 = vsel %vm5967_vm4, %v569_v12, %v573_v61  ;;  %vm4584_vm3 = vcmask 523268  }
  0x89   : > { %8242 = vst [vmem:[#allocation74_spill] sm:$0xff] %v6715_v39  ;;  %2904 = vmatprep.mubr.bf16.mxu0 %v8197_v43  ;;  %3474 = vmatpush1.bf16.msra.mxu0 %v5654_v25  ;;  %v581_v25 = vrot.slane %v6715_v39, 5  ;;  %v597_v37 = vrot.slane %v6765_v50, 5 }
  0x8a   : > { %3475 = vmatprep.subr.bf16.mxu0 %v5664_v49  ;;  %v4878_v49 = vrot.slane %v6219_v1, 10  ;;  %v2598_v22 = vrot.slane %v2596_v10, 4  ;;  %v6758_v1 = vshll.u32 %v6740_v18, 16 }
  0x8b   : > { %v582_v3 = vor.u32 %v581_v25, %v578_v17  ;;  %v605_v17 = vrot.slane %v6755_v27, 5 }
  0x8c   : > { %8245 = vst [vmem:[#allocation77_spill] sm:$0xff] %v6758_v1  ;;  %v2597_v12 = vsel %vm6457_vm8, %v4878_v49, %v2596_v10  ;;  %v2600_v61 = vsel %vm6457_vm8, %v2598_v22, %v2599_v5  ;;  %v611_v25 = vrot.slane %v6758_v1, 5  ;;  %v6779_v10 = vld [vmem:[%s5900_s9 + $0xbc] sm:$0x7]  ;;  %v4879_v5 = vrot.slane %v6288_v0, 10 }
  0x8d   : > { %3476 = vmatpush1.bf16.msra.mxu0 %v5662_v8  ;;  %v592_v8 = vor.u32 %v591_v16, %v587_v23  ;;  %v615_v16 = vrot.slane %v6761_v46, 4  ;;  %v4910_v21 = vcombine.low %v2597_v12, %v2600_v61  ;;  %v583_v39 = vrot.slane %v582_v3, 4 }
  0x8e   : > { %3994 = vmatprep.subr.bf16.mxu0 %v5672_v24  ;;  %v2603_v24 = vrot.slane %v6291_v42, 6  ;;  %v2606_v42 = vrot.slane %v6318_v54, 6  ;;  %v2610_v61 = vrot.slane %v6344_v45, 6  ;;  %v3102_v45 = vrot.slane %v5942_v36, 7 }
  0x8f   : > { %937 = vmatmul.mubr.bf16.gmra.mrb[48].mxu1 %v4709_v26  ;;  %v4710_v26 = vcombine.low %v564_v58, %v574_v6  ;;  %v593_v57 = vrot.slane %v592_v8, 4  ;;  %v616_v58 = vor.u32 %v615_v16, %v611_v25  ;;  %v6784_v6 = vshll.u32 %v6779_v10, 16 }
  0x90   : > { %2905 = vmatmul.mubr.bf16.gmra.mrb[16].mxu0 %v4909_v55  ;;  %946 = vmatprep.mubr.bf16.mxu1 %v8197_v43  ;;  %v602_v55 = vrot.slane %v6752_v35, 4  ;;  %v2605_v22 = vrot.slane %v2603_v24, 4  ;;  %v588_v3 = vsel %vm5967_vm4, %v583_v39, %v587_v23  ;;  %v2604_v0 = vsel %vm6457_vm8, %v4879_v5, %v2603_v24 }
  0x91   : > { %2914 = vmatprep.mubr.bf16.mxu0 %v8197_v43  ;;  %v598_v8 = vsel %vm5967_vm4, %v593_v57, %v597_v37  ;;  %v4880_v23 = vrot.slane %v6335_v7, 10  ;;  %v2612_v39 = vrot.slane %v2610_v61, 4  ;;  %v2613_v37 = vrot.slane %v6368_v38, 6 }
  0x92   : > { %v606_v49 = vor.u32 %v605_v17, %v602_v55  ;;  %v2607_v12 = vsel %vm6457_vm8, %v2605_v22, %v2606_v42  ;;  %v617_v55 = vrot.slane %v616_v58, 4  ;;  %v621_v17 = vrot.slane %v6784_v6, 5 }
  0x93   : > { %v4911_v16 = vcombine.low %v2604_v0, %v2607_v12  ;;  %v8246_v5 = vshrl.u32 %v5924_v30, 16  ;;  %v2611_v7 = vsel %vm6457_vm8, %v4880_v23, %v2610_v61  ;;  %v2614_v42 = vsel %vm6457_vm8, %v2612_v39, %v2613_v37  ;;  %v6840_v23 = vld [vmem:[%s5900_s9] sm:$0xf]  ;;  %v6843_v39 = vld [vmem:[%s5900_s9 + $0x4] sm:$0xf] }
  0x94   : > { %v622_v24 = vsel %vm5967_vm4, %v617_v55, %v621_v17  ;;  %v3092_v36 = vrot.slane %v5927_v31, 6  ;;  %v3093_v30 = vrot.slane %v5930_v32, 7  ;;  %v4912_v58 = vcombine.low %v2611_v7, %v2614_v42  ;;  %v5645_v42 = vld [vmem:[%s8036_s1 + $0x114] ss:$8 sps:$4 sm:$0xff]  }
  0x95   : > { %v3101_v22 = vrot.slane %v8246_v5, 6  ;;  %v2620_v12 = vrot.slane %v6424_v29, 6  ;;  %v2624_v55 = vrot.slane %v6452_v41, 6  ;;  %v4729_v37 = vcombine.low %v6840_v23, %v6843_v39 }
  0x96   : > { %v3094_v61 = vor.u32 %v3093_v30, %v3092_v36  ;;  %v4882_v5 = vrot.slane %v6446_v20, 10  ;;  %v2627_v7 = vrot.slane %v6465_v11, 6  ;;  %v5653_v36 = vld [vmem:[%s8036_s1 + $0x124] ss:$8 sps:$4 sm:$0xff]  }
  0x97   : > { %947 = vmatmul.mubr.bf16.gmra.mrb[52].mxu1 %v4710_v26  ;;  %v4711_v26 = vcombine.low %v588_v3, %v598_v8  ;;  %v4881_v3 = vrot.slane %v6394_v9, 10  ;;  %v3096_v8 = vrot.slane %v5936_v34, 6  ;;  %v6871_v30 = vld [vmem:[%s5900_s9 + $0xc] sm:$0xf] }
  0x98   : > { %2915 = vmatmul.mubr.bf16.gmra.mrb[20].mxu0 %v4910_v21  ;;  %956 = vmatprep.mubr.bf16.mxu1 %v8197_v43  ;;  %v607_v21 = vrot.slane %v606_v49, 4  ;;  %v3095_v31 = vrot.slane %v3094_v61, 4  ;;  %v2634_v61 = vrot.slane %v6510_v28, 6 }
  0x99   : > { %2924 = vmatprep.mubr.bf16.mxu0 %v8197_v43 }
  0x9a   : > { %v612_v57 = vsel %vm5967_vm4, %v607_v21, %v611_v25  ;;  %v2617_v25 = vrot.slane %v6408_v14, 6  ;;  %v3098_v21 = vor.u32 %v3097_v52, %v3096_v8  ;;  %v2625_v52 = vsel %vm6457_vm8, %v4882_v5, %v2624_v55  ;;  %vm7846_vm4 = vmor %vm4584_vm3, %vm4583_vm2 }
  0x9b   : > { %v4712_v49 = vcombine.low %v612_v57, %v622_v24  ;;  %v5635_v24 = vld [vmem:[%s8036_s1 + $0x100] ss:$8 sps:$4 sm:$0xff]   ;;  %v4884_v5 = vrot.slane %v6540_v13, 10 }
  0x9c   : > { %v2619_v0 = vrot.slane %v2617_v25, 4  ;;  %v3100_v32 = vrot.slane %v3098_v21, 4  ;;  %v2618_v34 = vsel %vm6457_vm8, %v4881_v3, %v2617_v25  ;;  %v6833_v17 = vsel %vm6820_vm11, %v3095_v31, %v3098_v21  ;;  %v5643_v25 = vld [vmem:[%s8036_s1 + $0x110] ss:$8 sps:$4 sm:$0xff]   ;;  %v5661_v21 = vld [vmem:[%s8036_s1 + $0x134] ss:$8 sps:$4 sm:$0xff]  }
  0x9e   : > { %v2621_v29 = vsel %vm6457_vm8, %v2619_v0, %v2620_v12  ;;  %v4883_v0 = vrot.slane %v6492_v40, 10 }
  0x9f   : > { %957 = vmatmul.mubr.bf16.gmra.mrb[56].mxu1 %v4711_v26  ;;  %v3103_v26 = vor.u32 %v3102_v45, %v3101_v22  ;;  %v4913_v45 = vcombine.low %v2618_v34, %v2621_v29  ;;  %v2626_v22 = vrot.slane %v2624_v55, 4  ;;  %v5659_v34 = vld [vmem:[%s8036_s1 + $0x130] ss:$8 sps:$4 sm:$0xff]   ;;  %v5669_v29 = vld [vmem:[%s8036_s1 + $0x144] ss:$8 sps:$4 sm:$0xff]  }
  0xa0   : > { %2925 = vmatmul.mubr.bf16.gmra.mrb[24].mxu0 %v4911_v16  ;;  %966 = vmatprep.mubr.bf16.mxu1 %v8197_v43  ;;  %v6900_v55 = vld [vmem:[%s5900_s9 + $0x18] sm:$0xf] }
  0xa1   : > { %2934 = vmatprep.mubr.bf16.mxu0 %v8197_v43  ;;  %v6837_v16 = vsel %vm6820_vm11, %v3100_v32, %v3103_v26  ;;  %v2628_v11 = vsel %vm6457_vm8, %v2626_v22, %v2627_v7  ;;  %v5651_v26 = vld [vmem:[%s8036_s1 + $0x120] ss:$8 sps:$4 sm:$0xff]   ;;  %v2638_v32 = vrot.slane %v6552_v53, 6  ;;  %v2641_v7 = vrot.slane %v6555_v19, 6 }
  0xa2   : > { %v4953_v57 = vcombine.low %v6833_v17, %v6837_v16  ;;  %v4914_v8 = vcombine.low %v2625_v52, %v2628_v11  ;;  %v2645_v11 = vrot.slane %v6588_v56, 6  ;;  %v5678_v17 = vld [vmem:[%s8036_s1 + $0x310] ss:$8 sps:$4 sm:$0xff]   ;;  %v5688_v16 = vld [vmem:[%s8036_s1 + $0x324] ss:$8 sps:$4 sm:$0xff]  }
  0xa3   : > { %v2640_v22 = vrot.slane %v2638_v32, 4  ;;  %v2639_v19 = vsel %vm6457_vm8, %v4884_v5, %v2638_v32 }
  0xa5   : > { %v2642_v52 = vsel %vm6457_vm8, %v2640_v22, %v2641_v7  ;;  %v4886_v7 = vrot.slane %v6629_v60, 10 }
  0xa7   : > { %967 = vmatmul.mubr.bf16.gmra.mrb[60].mxu1 %v4712_v49  ;;  %v2631_v49 = vrot.slane %v6501_v62, 6 }
  0xa8   : > { %2935 = vmatmul.mubr.bf16.gmra.mrb[28].mxu0 %v4912_v58  ;;  %1185 = vmatprep.mubr.bf16.mxu1 %v8197_v43  ;;  %v6874_v58 = vld [vmem:[%s5900_s9 + $0x10] sm:$0xf] }
  0xa9   : > { %2944 = vmatprep.mubr.bf16.mxu0 %v8197_v43  ;;  %v4730_v3 = vcombine.low %v6871_v30, %v6874_v58  ;;  %v2633_v12 = vrot.slane %v2631_v49, 4  ;;  %v2632_v31 = vsel %vm6457_vm8, %v4883_v0, %v2631_v49  ;;  %v5675_v49 = vld [vmem:[%s8036_s1 + $0x150] ss:$8 sps:$4 sm:$0xff]  }
  0xab   : > { %v2635_v28 = vsel %vm6457_vm8, %v2633_v12, %v2634_v61  ;;  %v4916_v12 = vcombine.low %v2639_v19, %v2642_v52  ;;  %v4885_v61 = vrot.slane %v6576_v44, 10  ;;  %v5720_v19 = vld [vmem:[%s8036_s1 + $0x184] ss:$8 sps:$4 sm:$0xff]  }
  0xaf   : > { %1186 = vmatmul.mubr.bf16.vlgmr.msra.gmra.mrb[0].mxu1 %v4729_v37  ;;  %v6903_v37 = vld [vmem:[%s5900_s9 + $0x1c] sm:$0xf] }
  0xb0   : > { %2945 = vmatmul.mubr.bf16.gmra.mrb[32].mxu0 %v4913_v45  ;;  %1639 = vmatpush1.bf16.msra.mxu1 %v5635_v24  ;;  %v4731_v24 = vcombine.low %v6900_v55, %v6903_v37  ;;  %v4915_v45 = vcombine.low %v2632_v31, %v2635_v28  ;;  %v5683_v31 = vld [vmem:[%s8036_s1 + $0x160] ss:$8 sps:$4 sm:$0xff]   ;;  %v5693_v28 = vld [vmem:[%s8036_s1 + $0x174] ss:$8 sps:$4 sm:$0xff]  }
  0xb1   : > { %1195 = vmatprep.mubr.bf16.mxu1 %v8197_v43  ;;  %2954 = vmatprep.mubr.bf16.mxu0 %v8197_v43 }
  0xb2   : > { %1640 = vmatprep.subr.bf16.mxu1 %v5645_v42  ;;  %v5667_v42 = vld [vmem:[%s8036_s1 + $0x140] ss:$8 sps:$4 sm:$0xff]  }
  0xb4   : > { %1641 = vmatpush1.bf16.msra.mxu1 %v5643_v25  ;;  %v5677_v25 = vld [vmem:[%s8036_s1 + $0x154] ss:$8 sps:$4 sm:$0xff]  }
  0xb5   : > { %1642 = vmatprep.subr.bf16.mxu1 %v5653_v36  ;;  %v5685_v36 = vld [vmem:[%s8036_s1 + $0x164] ss:$8 sps:$4 sm:$0xff]  }
  0xb7   : > { %1196 = vmatmul.mubr.bf16.gmra.mrb[4].mxu1 %v4730_v3  ;;  %v6929_v3 = vld [vmem:[%s5900_s9 + $0x24] sm:$0xf] }
  0xb8   : > { %2955 = vmatmul.mubr.bf16.gmra.mrb[36].mxu0 %v4914_v8  ;;  %1205 = vmatprep.mubr.bf16.mxu1 %v8197_v43  ;;  %v6932_v8 = vld [vmem:[%s5900_s9 + $0x28] sm:$0xf] }
  0xb9   : > { %2964 = vmatprep.mubr.bf16.mxu0 %v8197_v43  ;;  %1643 = vmatpush1.bf16.msra.mxu1 %v5651_v26  ;;  %v4732_v0 = vcombine.low %v6929_v3, %v6932_v8  ;;  %v2647_v26 = vrot.slane %v2645_v11, 4 }
  0xba   : > { %1644 = vmatprep.subr.bf16.mxu1 %v5661_v21  ;;  %v2648_v21 = vrot.slane %v6605_v47, 6  ;;  %v2646_v47 = vsel %vm6457_vm8, %v4885_v61, %v2645_v11  ;;  %v4887_v61 = vrot.slane %v6688_v51, 10 }
  0xbc   : > { %v2649_v32 = vsel %vm6457_vm8, %v2647_v26, %v2648_v21  ;;  %v2662_v21 = vrot.slane %v6745_v4, 6 }
  0xbd   : > { %1645 = vmatpush1.bf16.msra.mxu1 %v5659_v34  ;;  %v2652_v34 = vrot.slane %v6635_v48, 6  ;;  %v4917_v22 = vcombine.low %v2646_v47, %v2649_v32  ;;  %v2666_v47 = vrot.slane %v6740_v18, 6  ;;  %v6992_v32 = vld [vmem:[%s5900_s9 + $0x48] sm:$0xf] }
  0xbe   : > { %1646 = vmatprep.subr.bf16.mxu1 %v5669_v29  ;;  %v5691_v29 = vld [vmem:[%s8036_s1 + $0x170] ss:$8 sps:$4 sm:$0xff]  }
  0xbf   : > { %1206 = vmatmul.mubr.bf16.gmra.mrb[8].mxu1 %v4731_v24  ;;  %v6955_v24 = vld [vmem:[%s5900_s9 + $0x30] sm:$0xf]  ;;  %v2653_v52 = vsel %vm6457_vm8, %v4886_v7, %v2652_v34  ;;  %v2669_v7 = vrot.slane %v6779_v10, 6 }
  0xc0   : > { %2965 = vmatmul.mubr.bf16.gmra.mrb[40].mxu0 %v4915_v45  ;;  %1215 = vmatprep.mubr.bf16.mxu1 %v8197_v43  ;;  %v6958_v45 = vld [vmem:[%s5900_s9 + $0x34] sm:$0xf] }
  0xc1   : > { %2974 = vmatprep.mubr.bf16.mxu0 %v8197_v43  ;;  %1647 = vmatpush1.bf16.msra.mxu1 %v5667_v42  ;;  %v4733_v5 = vcombine.low %v6955_v24, %v6958_v45  ;;  %v2654_v42 = vrot.slane %v2652_v34, 4  ;;  %v6995_v34 = vld [vmem:[%s5900_s9 + $0x4c] sm:$0xf] }
  0xc2   : > { %1648 = vmatprep.subr.bf16.mxu1 %v5677_v25  ;;  %v2655_v25 = vrot.slane %v6685_v63, 6  ;;  %v2659_v63 = vrot.slane %v6691_v59, 6  ;;  %v4735_v4 = vcombine.low %v6992_v32, %v6995_v34 }
  0xc4   : > { %v2656_v11 = vsel %vm6457_vm8, %v2654_v42, %v2655_v25  ;;  %v2661_v26 = vrot.slane %v2659_v63, 4 }
  0xc5   : > { %1649 = vmatpush1.bf16.msra.mxu1 %v5675_v49  ;;  %v6975_v49 = vld [vmem:[%s5900_s9 + $0x3c] sm:$0xf] }
  0xc6   : > { %1650 = vmatprep.subr.bf16.mxu1 %v5685_v36  ;;  %v6978_v36 = vld [vmem:[%s5900_s9 + $0x40] sm:$0xf] }
  0xc7   : > { %1216 = vmatmul.mubr.bf16.gmra.mrb[12].mxu1 %v4732_v0  ;;  %v4734_v0 = vcombine.low %v6975_v49, %v6978_v36 }
  0xc8   : > { %2975 = vmatmul.mubr.bf16.gmra.mrb[44].mxu0 %v4916_v12  ;;  %1225 = vmatprep.mubr.bf16.mxu1 %v8197_v43  ;;  %v4918_v12 = vcombine.low %v2653_v52, %v2656_v11  ;;  %v7011_v52 = vld [vmem:[%s5900_s9 + $0x58] sm:$0xf] }
  0xc9   : > { %2984 = vmatprep.mubr.bf16.mxu0 %v8197_v43  ;;  %1651 = vmatpush1.bf16.msra.mxu1 %v5683_v31  ;;  %v2660_v31 = vsel %vm6457_vm8, %v4887_v61, %v2659_v63  ;;  %v8249_v63 = vld [vmem:[#allocation4_spill] sm:$0xff] }
  0xca   : > { %1652 = vmatprep.subr.bf16.mxu1 %v5693_v28  ;;  %v2663_v28 = vsel %vm6457_vm8, %v2661_v26, %v2662_v21  ;;  %v8251_v26 = vld [vmem:[#allocation7_spill] sm:$0xff] }
  0xcb   : > { %v3109_v21 = vrot.slane %v8251_v26, 6  ;;  %v8257_v26 = vld [vmem:[#allocation10_spill] sm:$0xff] }
  0xcd   : > { %1653 = vmatpush1.bf16.msra.mxu1 %v5691_v29  ;;  %v4919_v29 = vcombine.low %v2660_v31, %v2663_v28  ;;  %v8252_v31 = vld [vmem:[#allocation6_spill] sm:$0xff] }
  0xce   : > { %5116 = vmatprep.subr.bf16.mxu1 %v5720_v19  ;;  %v7008_v19 = vld [vmem:[%s5900_s9 + $0x54] sm:$0xf]  ;;  %v3110_v28 = vrot.slane %v8252_v31, 7 }
  0xcf   : > { %1226 = vmatmul.mubr.bf16.gmra.mrb[16].mxu1 %v4733_v5  ;;  %v4888_v5 = vrot.slane %v6733_v15, 10  ;;  %v4736_v11 = vcombine.low %v7008_v19, %v7011_v52 }
  0xd0   : > { %2985 = vmatmul.mubr.bf16.gmra.mrb[48].mxu0 %v4917_v22  ;;  %1235 = vmatprep.mubr.bf16.mxu1 %v8197_v43  ;;  %v2668_v22 = vrot.slane %v2666_v47, 4 }
  0xd1   : > { %2994 = vmatprep.mubr.bf16.mxu0 %v8197_v43  ;;  %v2667_v42 = vsel %vm6457_vm8, %v4888_v5, %v2666_v47  ;;  %v3111_v47 = vor.u32 %v3110_v28, %v3109_v21  ;;  %v8258_v21 = vld [vmem:[#allocation13_spill] sm:$0xff]  ;;  %v8259_v28 = vld [vmem:[#allocation12_spill] sm:$0xff] }
  0xd2   : > { %v2670_v25 = vsel %vm6457_vm8, %v2668_v22, %v2669_v7  ;;  %v8255_v22 = vld [vmem:[#allocation8_spill] sm:$0xff]  ;;  %v3122_v31 = vrot.slane %v8258_v21, 6 }
  0xd3   : > { %v4920_v10 = vcombine.low %v2667_v42, %v2670_v25  ;;  %v3115_v7 = vrot.slane %v8255_v22, 7  ;;  %v4737_v42 = vcombine.low %v6394_v9, %v6408_v14  ;;  %v8260_v9 = vld [vmem:[#allocation11_spill] sm:$0xff] }
  0xd7   : > { %1236 = vmatmul.mubr.bf16.gmra.mrb[20].mxu1 %v4734_v0  ;;  %v3105_v0 = vrot.slane %v8249_v63, 6  ;;  %v8256_v63 = vld [vmem:[#allocation9_spill] sm:$0xff] }
  0xd8   : > { %2995 = vmatmul.mubr.bf16.gmra.mrb[52].mxu0 %v4918_v12  ;;  %1245 = vmatprep.mubr.bf16.mxu1 %v8197_v43  ;;  %v8250_v12 = vld [vmem:[#allocation5_spill] sm:$0xff] }
  0xd9   : > { %3004 = vmatprep.mubr.bf16.mxu0 %v8197_v43  ;;  %v3106_v61 = vrot.slane %v8250_v12, 7  ;;  %v3118_v12 = vrot.slane %v8256_v63, 6 }
  0xdb   : > { %v3107_v2 = vor.u32 %v3106_v61, %v3105_v0  ;;  %v3113_v0 = vrot.slane %v3111_v47, 4 }
  0xdd   : > { %v3108_v25 = vrot.slane %v3107_v2, 4  ;;  %v8261_v2 = vshrl.u32 %v8260_v9, 16  ;;  %v5686_v9 = vld [vmem:[%s8036_s1 + $0x320] ss:$8 sps:$4 sm:$0xff]  }
  0xdf   : > { %1246 = vmatmul.mubr.bf16.gmra.mrb[24].mxu1 %v4735_v4  ;;  %v8253_v4 = vld [vmem:[#allocation3_spill] sm:$0xff]  ;;  %v3127_v22 = vrot.slane %v8261_v2, 6  ;;  %v3112_v63 = vsel %vm6820_vm11, %v3108_v25, %v3111_v47  ;;  %v8263_v47 = vld [vmem:[#allocation16_spill] sm:$0xff] }
  0xe0   : > { %3005 = vmatmul.mubr.bf16.gmra.mrb[56].mxu0 %v4919_v29  ;;  %1255 = vmatprep.mubr.bf16.mxu1 %v8197_v43  ;;  %v8254_v29 = vshrl.u32 %v8253_v4, 16  ;;  %v3123_v4 = vrot.slane %v8259_v28, 7  ;;  %v3131_v25 = vrot.slane %v8263_v47, 6  ;;  %v8271_v47 = vld [vmem:[#allocation23_spill] sm:$0xff] }
  0xe1   : > { %3014 = vmatprep.mubr.bf16.mxu0 %v8197_v43 }
  0xe2   : > { %v3114_v5 = vrot.slane %v8254_v29, 6  ;;  %v5680_v29 = vld [vmem:[%s8036_s1 + $0x314] ss:$8 sps:$4 sm:$0xff]  }
  0xe4   : > { %v3116_v61 = vor.u32 %v3115_v7, %v3114_v5  ;;  %v8262_v5 = vld [vmem:[#allocation14_spill] sm:$0xff] }
  0xe5   : > { %v3128_v7 = vrot.slane %v8262_v5, 7 }
  0xe7   : > { %1256 = vmatmul.mubr.bf16.gmra.mrb[28].mxu1 %v4736_v11  ;;  %v3119_v11 = vrot.slane %v8257_v26, 7  ;;  %v3124_v26 = vor.u32 %v3123_v4, %v3122_v31  ;;  %v8265_v31 = vld [vmem:[#allocation19_spill] sm:$0xff]  ;;  %v8266_v4 = vld [vmem:[#allocation18_spill] sm:$0xff] }
  0xe8   : > { %3015 = vmatmul.mubr.bf16.gmra.mrb[60].mxu0 %v4920_v10  ;;  %1265 = vmatprep.mubr.bf16.mxu1 %v8197_v43  ;;  %v5670_v10 = vld [vmem:[%s8036_s1 + $0x300] ss:$8 sps:$4 sm:$0xff]   ;;  %v3135_v28 = vrot.slane %v8265_v31, 6 }
  0xe9   : > { %3493 = vmatprep.mubr.bf16.mxu0 %v8197_v43  ;;  %v3120_v14 = vor.u32 %v3119_v11, %v3118_v12  ;;  %v3126_v21 = vrot.slane %v3124_v26, 4 }
  0xeb   : > { %v3121_v11 = vrot.slane %v3120_v14, 4  ;;  %v8267_v14 = vld [vmem:[#allocation15_spill] sm:$0xff] }
  0xec   : > { %v8268_v2 = vshrl.u32 %v8267_v14, 16 }
  0xef   : > { %1266 = vmatmul.mubr.bf16.gmra.mrb[32].mxu1 %v4737_v42  ;;  %v3117_v42 = vsel %vm6820_vm11, %v3113_v0, %v3116_v61  ;;  %v8264_v0 = vld [vmem:[#allocation17_spill] sm:$0xff] }
  0xf0   : > { %3494 = vmatmul.mubr.bf16.vlgmr.msra.gmra.mrb[0].mxu0 %v4953_v57  ;;  %1275 = vmatprep.mubr.bf16.mxu1 %v8197_v43  ;;  %v4738_v57 = vcombine.low %v6446_v20, %v6452_v41  ;;  %v4954_v12 = vcombine.low %v3112_v63, %v3117_v42  ;;  %v3132_v61 = vrot.slane %v8264_v0, 7  ;;  %v5696_v41 = vld [vmem:[%s8036_s1 + $0x334] ss:$8 sps:$4 sm:$0xff]   ;;  %v3125_v20 = vsel %vm6820_vm11, %v3121_v11, %v3124_v26  ;;  %v5700_v26 = vld [vmem:[%s8036_s1 + $0x344] ss:$8 sps:$4 sm:$0xff]  }
  0xf1   : > { %3995 = vmatpush1.bf16.msra.mxu0 %v5670_v10  ;;  %3503 = vmatprep.mubr.bf16.mxu0 %v8197_v43  ;;  %v3129_v10 = vor.u32 %v3128_v7, %v3127_v22  ;;  %v3140_v22 = vrot.slane %v8268_v2, 6  ;;  %v8269_v42 = vld [vmem:[#allocation20_spill] sm:$0xff]  ;;  %v8270_v11 = vld [vmem:[#allocation21_spill] sm:$0xff] }
  0xf2   : > { %3996 = vmatprep.subr.bf16.mxu0 %v5680_v29  ;;  %v3136_v29 = vrot.slane %v8266_v4, 7  ;;  %v3133_v7 = vor.u32 %v3132_v61, %v3131_v25  ;;  %v3145_v25 = vrot.slane %v8271_v47, 7  ;;  %v8273_v4 = vld [vmem:[#allocation24_spill] sm:$0xff] }
  0xf3   : > { %v3130_v5 = vsel %vm6820_vm11, %v3126_v21, %v3129_v10  ;;  %v3144_v10 = vrot.slane %v8270_v11, 6  ;;  %v8272_v21 = vld [vmem:[#allocation25_spill] sm:$0xff] }
  0xf4   : > { %v3137_v63 = vor.u32 %v3136_v29, %v3135_v28  ;;  %v3148_v0 = vrot.slane %v8272_v21, 6  ;;  %v3134_v61 = vrot.slane %v3133_v7, 4  ;;  %v3149_v29 = vrot.slane %v8273_v4, 7  ;;  %v8276_v7 = vld [vmem:[#allocation26_spill] sm:$0xff] }
  0xf5   : > { %3997 = vmatpush1.bf16.msra.mxu0 %v5678_v17  ;;  %v3141_v17 = vrot.slane %v8269_v42, 7  ;;  %v3154_v42 = vrot.slane %v8276_v7, 7  ;;  %v5704_v4 = vld [vmem:[%s8036_s1 + $0x360] ss:$8 sps:$4 sm:$0xff]  }
  0xf6   : > { %3998 = vmatprep.subr.bf16.mxu0 %v5688_v16  ;;  %v5694_v16 = vld [vmem:[%s8036_s1 + $0x330] ss:$8 sps:$4 sm:$0xff]   ;;  %v3139_v31 = vrot.slane %v3137_v63, 4  ;;  %v3138_v2 = vsel %vm6820_vm11, %v3134_v61, %v3137_v63 }
  0xf7   : > { %1276 = vmatmul.mubr.bf16.gmra.mrb[36].mxu1 %v4738_v57  ;;  %v4739_v57 = vcombine.low %v6492_v40, %v6501_v62  ;;  %v3142_v28 = vor.u32 %v3141_v17, %v3140_v22  ;;  %v5703_v62 = vld [vmem:[%s8036_s1 + $0x354] ss:$8 sps:$4 sm:$0xff]   ;;  %v3146_v40 = vor.u32 %v3145_v25, %v3144_v10  ;;  %v5701_v17 = vld [vmem:[%s8036_s1 + $0x350] ss:$8 sps:$4 sm:$0xff]  }
  0xf8   : > { %3504 = vmatmul.mubr.bf16.gmra.mrb[4].mxu0 %v4954_v12  ;;  %1285 = vmatprep.mubr.bf16.mxu1 %v8197_v43  ;;  %v4955_v12 = vcombine.low %v3125_v20, %v3130_v5  ;;  %v3150_v5 = vor.u32 %v3149_v29, %v3148_v0  ;;  %v8278_v10 = vld [vmem:[#allocation29_spill] sm:$0xff]  ;;  %v8279_v0 = vld [vmem:[#allocation31_spill] sm:$0xff] }
  0xf9   : > { %3513 = vmatprep.mubr.bf16.mxu0 %v8197_v43  ;;  %3999 = vmatpush1.bf16.msra.mxu0 %v5686_v9  ;;  %v5698_v9 = vld [vmem:[%s8036_s1 + $0x340] ss:$8 sps:$4 sm:$0xff]   ;;  %v3143_v22 = vsel %vm6820_vm11, %v3139_v31, %v3142_v28  ;;  %v3158_v47 = vrot.slane %v8278_v10, 7  ;;  %v3161_v61 = vrot.slane %v8279_v0, 6 }
  0xfa   : > { %4000 = vmatprep.subr.bf16.mxu0 %v5696_v41  ;;  %v8274_v41 = vld [vmem:[#allocation22_spill] sm:$0xff]  ;;  %v4956_v63 = vcombine.low %v3138_v2, %v3143_v22  ;;  %v3152_v25 = vrot.slane %v3150_v5, 4  ;;  %v5707_v22 = vld [vmem:[%s8036_s1 + $0x370] ss:$8 sps:$4 sm:$0xff]  }
  0xfb   : > { %v8275_v20 = vshrl.u32 %v8274_v41, 16  ;;  %v8280_v31 = vld [vmem:[#allocation30_spill] sm:$0xff] }
  0xfc   : > { %v3162_v28 = vrot.slane %v8280_v31, 7 }
  0xfd   : > { %4001 = vmatpush1.bf16.msra.mxu0 %v5694_v16  ;;  %v3153_v14 = vrot.slane %v8275_v20, 6  ;;  %v5706_v16 = vld [vmem:[%s8036_s1 + $0x364] ss:$8 sps:$4 sm:$0xff]  }
  0xfe   : > { %4002 = vmatprep.subr.bf16.mxu0 %v5700_v26  ;;  %v4740_v26 = vcombine.low %v6540_v13, %v6552_v53  ;;  %v5709_v53 = vld [vmem:[%s8036_s1 + $0x374] ss:$8 sps:$4 sm:$0xff]  }
  0xff   : > { %1286 = vmatmul.mubr.bf16.gmra.mrb[40].mxu1 %v4739_v57  ;;  %v3147_v57 = vrot.slane %v3146_v40, 4  ;;  %v3155_v21 = vor.u32 %v3154_v42, %v3153_v14  ;;  %v8281_v40 = vld [vmem:[#allocation27_spill] sm:$0xff]  ;;  %v8283_v14 = vld [vmem:[#allocation32_spill] sm:$0xff] }
 0x100   : > { %3514 = vmatmul.mubr.bf16.gmra.mrb[8].mxu0 %v4955_v12  ;;  %1295 = vmatprep.mubr.bf16.mxu1 %v8197_v43  ;;  %v8277_v12 = vld [vmem:[#allocation28_spill] sm:$0xff]  ;;  %v8282_v41 = vshrl.u32 %v8281_v40, 16  ;;  %v3167_v2 = vrot.slane %v8283_v14, 7 }
 0x101   : > { %3523 = vmatprep.mubr.bf16.mxu0 %v8197_v43  ;;  %4003 = vmatpush1.bf16.msra.mxu0 %v5698_v9  ;;  %v3157_v11 = vrot.slane %v8277_v12, 6  ;;  %v3151_v13 = vsel %vm6820_vm11, %v3147_v57, %v3150_v5  ;;  %v3156_v9 = vsel %vm6820_vm11, %v3152_v25, %v3155_v21  ;;  %v4741_v5 = vcombine.low %v6576_v44, %v6588_v56 }
 0x102   : > { %4004 = vmatprep.subr.bf16.mxu0 %v5703_v62  ;;  %v3163_v62 = vor.u32 %v3162_v28, %v3161_v61  ;;  %v3166_v20 = vrot.slane %v8282_v41, 6  ;;  %v4957_v7 = vcombine.low %v3151_v13, %v3156_v9  ;;  %v8288_v56 = vshrl.u32 %v6318_v54, 16  ;;  %v8289_v28 = vld [vmem:[#allocation37_spill] sm:$0xff]  ;;  %v8290_v9 = vld [vmem:[#allocation38_spill] sm:$0xff]  ;;  %v8291_v54 = vld [vmem:[#allocation39_spill] sm:$0xff] }
 0x103   : > { %v3159_v29 = vor.u32 %v3158_v47, %v3157_v11  ;;  %v8286_v11 = vld [vmem:[#allocation36_spill] sm:$0xff]  ;;  %v8287_v47 = vld [vmem:[#allocation35_spill] sm:$0xff]  ;;  %v3183_v40 = vrot.slane %v8290_v9, 6  ;;  %v3184_v41 = vrot.slane %v8291_v54, 7 }
 0x104   : > { %v3165_v57 = vrot.slane %v3163_v62, 4  ;;  %v3168_v12 = vor.u32 %v3167_v2, %v3166_v20  ;;  %v3174_v10 = vrot.slane %v8286_v11, 6  ;;  %v3175_v25 = vrot.slane %v8287_v47, 7  ;;  %v8292_v2 = vld [vmem:[#allocation41_spill] sm:$0xff]  ;;  %v8296_v11 = vld [vmem:[#allocation43_spill] sm:$0xff]  ;;  %v8297_v47 = vld [vmem:[#allocation44_spill] sm:$0xff] }
 0x105   : > { %4005 = vmatpush1.bf16.msra.mxu0 %v5701_v17  ;;  %v3160_v42 = vrot.slane %v3159_v29, 4  ;;  %v8284_v17 = vld [vmem:[#allocation33_spill] sm:$0xff]  ;;  %v3179_v44 = vrot.slane %v8288_v56, 6 }
 0x106   : > { %4006 = vmatprep.subr.bf16.mxu0 %v5706_v16  ;;  %v3170_v16 = vrot.slane %v8284_v17, 6  ;;  %v3169_v61 = vsel %vm6820_vm11, %v3165_v57, %v3168_v12  ;;  %v3176_v31 = vor.u32 %v3175_v25, %v3174_v10  ;;  %v7163_v57 = vld [vmem:[%s5900_s9 + $0x68] sm:$0x7]  ;;  %v3196_v10 = vrot.slane %v8296_v11, 6 }
 0x107   : > { %1296 = vmatmul.mubr.bf16.gmra.mrb[44].mxu1 %v4740_v26  ;;  %v8285_v26 = vld [vmem:[#allocation34_spill] sm:$0xff]  ;;  %v3164_v0 = vsel %vm6820_vm11, %v3160_v42, %v3163_v62  ;;  %v3187_v62 = vrot.slane %v8292_v2, 6  ;;  %v8160_v12 = vshrl.u32 %v7163_v57, 16  ;;  %v3197_v25 = vrot.slane %v8297_v47, 7  ;;  %v7186_v2 = vld [vmem:[%s5900_s9 + $0x8] sm:$0x7] }
 0x108   : > { %3524 = vmatmul.mubr.bf16.gmra.mrb[12].mxu0 %v4956_v63  ;;  %1305 = vmatprep.mubr.bf16.mxu1 %v8197_v43  ;;  %v3171_v63 = vrot.slane %v8285_v26, 7  ;;  %v4958_v13 = vcombine.low %v3164_v0, %v3169_v61  ;;  %v3178_v20 = vrot.slane %v3176_v31, 4  ;;  %v8295_v26 = vld [vmem:[#allocation42_spill] sm:$0xff]  ;;  %v4743_v0 = vcombine.low %v6688_v51, %v6691_v59 }
 0x109   : > { %3533 = vmatprep.mubr.bf16.mxu0 %v8197_v43  ;;  %4007 = vmatpush1.bf16.msra.mxu0 %v5704_v4  ;;  %v3180_v4 = vrot.slane %v8289_v28, 7  ;;  %v3205_v9 = vrot.slane %v8160_v12, 6  ;;  %v4744_v51 = vcombine.low %v6733_v15, %v6740_v18  ;;  %v4761_v59 = vrot.slane %v6840_v23, 9  ;;  %v8315_v12 = vld [vmem:[#allocation61_spill] sm:$0xff] }
 0x10a   : > { %4008 = vmatprep.subr.bf16.mxu0 %v5709_v53  ;;  %v3172_v21 = vor.u32 %v3171_v63, %v3170_v16  ;;  %v4742_v53 = vcombine.low %v6629_v60, %v6635_v48  ;;  %v3185_v48 = vor.u32 %v3184_v41, %v3183_v40  ;;  %v3193_v63 = vrot.slane %v8295_v26, 7  ;;  %v8300_v40 = vld [vmem:[#allocation47_spill] sm:$0xff] }
 0x10b   : > { %v3181_v14 = vor.u32 %v3180_v4, %v3179_v44  ;;  %v3206_v54 = vrot.slane %v8300_v40, 7 }
 0x10c   : > { %v3173_v29 = vrot.slane %v3172_v21, 4  ;;  %v8298_v21 = vld [vmem:[#allocation46_spill] sm:$0xff] }
 0x10d   : > { %4009 = vmatpush1.bf16.msra.mxu0 %v5707_v22  ;;  %v8293_v22 = vld [vmem:[#allocation40_spill] sm:$0xff]  ;;  %v3182_v17 = vsel %vm6820_vm11, %v3178_v20, %v3181_v14  ;;  %v3200_v56 = vrot.slane %v8298_v21, 6  ;;  %v3207_v23 = vor.u32 %v3206_v54, %v3205_v9 }
 0x10e   : > { %v3177_v60 = vsel %vm6820_vm11, %v3173_v29, %v3176_v31  ;;  %v3186_v31 = vrot.slane %v3185_v48, 4  ;;  %v8303_v48 = vld [vmem:[#allocation48_spill] sm:$0xff] }
 0x10f   : > { %1306 = vmatmul.mubr.bf16.gmra.mrb[48].mxu1 %v4741_v5  ;;  %v3188_v5 = vrot.slane %v8293_v22, 7  ;;  %v4959_v61 = vcombine.low %v3177_v60, %v3182_v17 }
 0x110   : > { %3534 = vmatmul.mubr.bf16.gmra.mrb[16].mxu0 %v4957_v7  ;;  %1315 = vmatprep.mubr.bf16.mxu1 %v8197_v43  ;;  %v8294_v7 = vshrl.u32 %v6368_v38, 16  ;;  %v8299_v38 = vld [vmem:[#allocation45_spill] sm:$0xff] }
 0x111   : > { %3543 = vmatprep.mubr.bf16.mxu0 %v8197_v43  ;;  %v3189_v16 = vor.u32 %v3188_v5, %v3187_v62  ;;  %v3201_v44 = vrot.slane %v8299_v38, 7  ;;  %v1370_v62 = vrot.slane %v7186_v2, 5  ;;  %v7194_v5 = vld [vmem:[%s5900_s9 + $0x74] sm:$0x7] }
 0x112   : > { %v3192_v42 = vrot.slane %v8294_v7, 6  ;;  %v8159_v60 = vshrl.u32 %v7194_v5, 16  ;;  %v3209_v7 = vrot.slane %v8303_v48, 6 }
 0x113   : > { %v3191_v28 = vrot.slane %v3189_v16, 4  ;;  %v3202_v29 = vor.u32 %v3201_v44, %v3200_v56  ;;  %v3190_v41 = vsel %vm6820_vm11, %v3186_v31, %v3189_v16  ;;  %v8305_v16 = vld [vmem:[#allocation51_spill] sm:$0xff]  ;;  %v1374_v31 = vrot.slane %v6874_v58, 5  ;;  %v7217_v58 = vld [vmem:[%s5900_s9 + $0x14] sm:$0x7] }
 0x114   : > { %v3194_v4 = vor.u32 %v3193_v63, %v3192_v42  ;;  %v8304_v42 = vld [vmem:[#allocation49_spill] sm:$0xff]  ;;  %v3213_v26 = vrot.slane %v8305_v16, 6  ;;  %v8306_v63 = vld [vmem:[#allocation50_spill] sm:$0xff] }
 0x115   : > { %v3204_v18 = vrot.slane %v3202_v29, 4  ;;  %v3210_v17 = vrot.slane %v8304_v42, 7 }
 0x116   : > { %v3195_v20 = vsel %vm6820_vm11, %v3191_v28, %v3194_v4 }
 0x117   : > { %1316 = vmatmul.mubr.bf16.gmra.mrb[52].mxu1 %v4742_v53  ;;  %v1367_v53 = vrot.slane %v6843_v39, 5  ;;  %v3211_v28 = vor.u32 %v3210_v17, %v3209_v7  ;;  %v8309_v17 = vld [vmem:[#allocation54_spill] sm:$0xff] }
 0x118   : > { %3544 = vmatmul.mubr.bf16.gmra.mrb[20].mxu0 %v4958_v13  ;;  %1325 = vmatprep.mubr.bf16.mxu1 %v8197_v43  ;;  %v3198_v13 = vor.u32 %v3197_v25, %v3196_v10  ;;  %v3214_v10 = vrot.slane %v8306_v63, 7  ;;  %v4960_v25 = vcombine.low %v3190_v41, %v3195_v20  ;;  %v1376_v41 = vrot.slane %v1374_v31, 4 }
 0x119   : > { %3553 = vmatprep.mubr.bf16.mxu0 %v8197_v43  ;;  %v1369_v14 = vrot.slane %v1367_v53, 4  ;;  %v1368_v56 = vsel %vm7189_vm14, %v4761_v59, %v1367_v53  ;;  %v8307_v53 = vld [vmem:[#allocation52_spill] sm:$0xff]  ;;  %v4762_v59 = vrot.slane %v6871_v30, 9  ;;  %v3212_v20 = vrot.slane %v3211_v28, 4 }
 0x11a   : > { %v3199_v15 = vrot.slane %v3198_v13, 4  ;;  %v3215_v4 = vor.u32 %v3214_v10, %v3213_v26  ;;  %v3218_v13 = vrot.slane %v8159_v60, 6  ;;  %v3219_v9 = vrot.slane %v8307_v53, 7  ;;  %v8310_v10 = vld [vmem:[#allocation56_spill] sm:$0xff]  ;;  %v8322_v53 = vld [vmem:[#allocation65_spill] sm:$0xff] }
 0x11b   : > { %v1371_v44 = vsel %vm7189_vm14, %v1369_v14, %v1370_v62  ;;  %v3223_v26 = vrot.slane %v8309_v17, 7 }
 0x11c   : > { %v3217_v14 = vrot.slane %v3215_v4, 4  ;;  %v3220_v62 = vor.u32 %v3219_v9, %v3218_v13  ;;  %v1381_v13 = vrot.slane %v6903_v37, 5  ;;  %v5732_v9 = vld [vmem:[%s8036_s1 + $0x180] ss:$8 sps:$4 sm:$0xff]  }
 0x11e   : > { %v3221_v28 = vsel %vm6820_vm11, %v3217_v14, %v3220_v62  ;;  %v1383_v62 = vrot.slane %v1381_v13, 4 }
 0x11f   : > { %1326 = vmatmul.mubr.bf16.gmra.mrb[56].mxu1 %v4743_v0  ;;  %v3203_v0 = vsel %vm6820_vm11, %v3199_v15, %v3202_v29  ;;  %v4793_v29 = vcombine.low %v1368_v56, %v1371_v44  ;;  %v7221_v15 = vld [vmem:[%s5900_s9 + $0x80] sm:$0x7]  ;;  %v8311_v56 = vld [vmem:[#allocation55_spill] sm:$0xff]  ;;  %v1375_v44 = vsel %vm7189_vm14, %v4762_v59, %v1374_v31 }
 0x120   : > { %3554 = vmatmul.mubr.bf16.gmra.mrb[24].mxu0 %v4959_v61  ;;  %1335 = vmatprep.mubr.bf16.mxu1 %v8197_v43  ;;  %v3208_v61 = vsel %vm6820_vm11, %v3204_v18, %v3207_v23  ;;  %v8158_v18 = vshrl.u32 %v7221_v15, 16  ;;  %v8308_v23 = vld [vmem:[#allocation53_spill] sm:$0xff]  ;;  %v3227_v30 = vrot.slane %v8311_v56, 7  ;;  %v8316_v56 = vld [vmem:[#allocation60_spill] sm:$0xff] }
 0x121   : > { %3563 = vmatprep.mubr.bf16.mxu0 %v8197_v43  ;;  %v4961_v54 = vcombine.low %v3203_v0, %v3208_v61  ;;  %v3222_v7 = vrot.slane %v8308_v23, 6  ;;  %v3216_v61 = vsel %vm6820_vm11, %v3212_v20, %v3215_v4  ;;  %v5733_v20 = vld [vmem:[%s8036_s1 + $0x194] ss:$8 sps:$4 sm:$0xff]  }
 0x122   : > { %v3231_v59 = vrot.slane %v8158_v18, 6  ;;  %v4962_v14 = vcombine.low %v3216_v61, %v3221_v28  ;;  %v8313_v61 = vld [vmem:[#allocation58_spill] sm:$0xff] }
 0x123   : > { %v3224_v31 = vor.u32 %v3223_v26, %v3222_v7  ;;  %v7250_v7 = vld [vmem:[%s5900_s9 + $0x20] sm:$0x7]  ;;  %v3235_v28 = vrot.slane %v8313_v61, 6 }
 0x124   : > { %v1384_v26 = vrot.slane %v7250_v7, 5 }
 0x127   : > { %1336 = vmatmul.mubr.bf16.gmra.mrb[60].mxu1 %v4744_v51  ;;  %v1377_v51 = vrot.slane %v7217_v58, 5 }
 0x128   : > { %3564 = vmatmul.mubr.bf16.gmra.mrb[28].mxu0 %v4960_v25  ;;  %1670 = vmatprep.mubr.bf16.mxu1 %v8197_v43  ;;  %v3226_v25 = vrot.slane %v8310_v10, 6  ;;  %v7287_v10 = vld [vmem:[%s5900_s9 + $0x98] sm:$0x7] }
 0x129   : > { %3573 = vmatprep.mubr.bf16.mxu0 %v8197_v43  ;;  %v1378_v0 = vsel %vm7189_vm14, %v1376_v41, %v1377_v51  ;;  %v8312_v41 = vld [vmem:[#allocation57_spill] sm:$0xff] }
 0x12a   : > { %v3232_v51 = vrot.slane %v8312_v41, 7  ;;  %v4794_v4 = vcombine.low %v1375_v44, %v1378_v0  ;;  %v7258_v44 = vld [vmem:[%s5900_s9 + $0x8c] sm:$0x7]  ;;  %v3239_v41 = vrot.slane %v8315_v12, 6  ;;  %v4764_v0 = vrot.slane %v6929_v3, 9 }
 0x12c   : > { %v3233_v18 = vor.u32 %v3232_v51, %v3231_v59  ;;  %v5737_v59 = vld [vmem:[%s8036_s1 + $0x1a4] ss:$8 sps:$4 sm:$0xff]  }
 0x12f   : > { %1671 = vmatmul.mubr.bf16.vlgmr.msra.gmra.mrb[0].mxu1 %v4793_v29  ;;  %v3228_v29 = vor.u32 %v3227_v30, %v3226_v25  ;;  %v1388_v25 = vrot.slane %v6932_v8, 5  ;;  %v3225_v30 = vrot.slane %v3224_v31, 4  ;;  %v3240_v31 = vrot.slane %v8316_v56, 7 }
 0x130   : > { %3574 = vmatmul.mubr.bf16.gmra.mrb[32].mxu0 %v4961_v54  ;;  %5124 = vmatpush1.bf16.msra.mxu1 %v5732_v9  ;;  %v4763_v54 = vrot.slane %v6900_v55, 9  ;;  %v5735_v55 = vld [vmem:[%s8036_s1 + $0x190] ss:$8 sps:$4 sm:$0xff]  }
 0x131   : > { %1680 = vmatprep.mubr.bf16.mxu1 %v8197_v43  ;;  %3583 = vmatprep.mubr.bf16.mxu0 %v8197_v43  ;;  %v3230_v9 = vrot.slane %v3228_v29, 4  ;;  %v1390_v56 = vrot.slane %v1388_v25, 4 }
 0x132   : > { %5117 = vmatprep.subr.bf16.mxu1 %v5733_v20  ;;  %v8314_v20 = vld [vmem:[#allocation59_spill] sm:$0xff]  ;;  %v1382_v51 = vsel %vm7189_vm14, %v4763_v54, %v1381_v13  ;;  %v8317_v13 = vshrl.u32 %v7258_v44, 16 }
 0x133   : > { %v3236_v60 = vrot.slane %v8314_v20, 7  ;;  %v7274_v20 = vld [vmem:[%s5900_s9 + $0x2c] sm:$0x7] }
 0x134   : > { %5125 = vmatpush1.bf16.msra.mxu1 %v5735_v55  ;;  %v1385_v55 = vsel %vm7189_vm14, %v1383_v62, %v1384_v26  ;;  %v1391_v12 = vrot.slane %v7274_v20, 5  ;;  %v3244_v54 = vrot.slane %v8317_v13, 6  ;;  %v3241_v62 = vor.u32 %v3240_v31, %v3239_v41  ;;  %v8318_v26 = vld [vmem:[#allocation62_spill] sm:$0xff]  ;;  %v5741_v41 = vld [vmem:[%s8036_s1 + $0x1b4] ss:$8 sps:$4 sm:$0xff]  }
 0x135   : > { %5118 = vmatprep.subr.bf16.mxu1 %v5737_v59  ;;  %v3229_v59 = vsel %vm6820_vm11, %v3225_v30, %v3228_v29  ;;  %v3237_v3 = vor.u32 %v3236_v60, %v3235_v28  ;;  %v3245_v61 = vrot.slane %v8318_v26, 7  ;;  %v5740_v29 = vld [vmem:[%s8036_s1 + $0x1a0] ss:$8 sps:$4 sm:$0xff]   ;;  %v3253_v60 = vrot.slane %v8322_v53, 7  ;;  %v5742_v53 = vld [vmem:[%s8036_s1 + $0x1b0] ss:$8 sps:$4 sm:$0xff]  }
 0x136   : > { %v8321_v13 = vld [vmem:[#allocation66_spill] sm:$0xff]  ;;  %v4795_v28 = vcombine.low %v1382_v51, %v1385_v55  ;;  %v3243_v26 = vrot.slane %v3241_v62, 4  ;;  %v8323_v55 = vshrl.u32 %v7287_v10, 16 }
 0x137   : > { %1681 = vmatmul.mubr.bf16.gmra.mrb[4].mxu1 %v4794_v4  ;;  %v3234_v4 = vsel %vm6820_vm11, %v3230_v9, %v3233_v18  ;;  %v8319_v18 = vld [vmem:[#allocation63_spill] sm:$0xff]  ;;  %v8320_v9 = vld [vmem:[#allocation64_spill] sm:$0xff]  ;;  %v3252_v23 = vrot.slane %v8321_v13, 6  ;;  %v1395_v13 = vrot.slane %v6958_v45, 5 }
 0x138   : > { %3584 = vmatmul.mubr.bf16.gmra.mrb[36].mxu0 %v4962_v14  ;;  %1690 = vmatprep.mubr.bf16.mxu1 %v8197_v43  ;;  %v3248_v30 = vrot.slane %v8319_v18, 6  ;;  %v3249_v17 = vrot.slane %v8320_v9, 7  ;;  %v4963_v31 = vcombine.low %v3229_v59, %v3234_v4  ;;  %v1389_v14 = vsel %vm7189_vm14, %v4764_v0, %v1388_v25  ;;  %v8324_v25 = vld [vmem:[#allocation67_spill] sm:$0xff]  ;;  %v7322_v4 = vld [vmem:[%s5900_s9 + $0x38] sm:$0x7] }
 0x139   : > { %3593 = vmatprep.mubr.bf16.mxu0 %v8197_v43  ;;  %5126 = vmatpush1.bf16.msra.mxu1 %v5740_v29  ;;  %v1392_v29 = vsel %vm7189_vm14, %v1390_v56, %v1391_v12  ;;  %v3238_v18 = vrot.slane %v3237_v3, 4  ;;  %v3246_v9 = vor.u32 %v3245_v61, %v3244_v54  ;;  %v3254_v51 = vor.u32 %v3253_v60, %v3252_v23  ;;  %v5743_v12 = vld [vmem:[%s8036_s1 + $0x1c4] ss:$8 sps:$4 sm:$0xff]   ;;  %v5745_v3 = vld [vmem:[%s8036_s1 + $0x1c0] ss:$8 sps:$4 sm:$0xff]  }
 0x13a   : > { %5119 = vmatprep.subr.bf16.mxu1 %v5741_v41  ;;  %v3250_v41 = vor.u32 %v3249_v17, %v3248_v30  ;;  %v3257_v59 = vrot.slane %v8323_v55, 6  ;;  %v3258_v0 = vrot.slane %v8324_v25, 7  ;;  %v4796_v56 = vcombine.low %v1389_v14, %v1392_v29  ;;  %v7329_v60 = vld [vmem:[%s5900_s9 + $0xa4] sm:$0x7]  ;;  %v8327_v29 = vld [vmem:[#allocation71_spill] sm:$0xff] }
 0x13b   : > { %v3242_v23 = vsel %vm6820_vm11, %v3238_v18, %v3241_v62  ;;  %v3247_v17 = vsel %vm6820_vm11, %v3243_v26, %v3246_v9  ;;  %v1397_v61 = vrot.slane %v1395_v13, 4  ;;  %v1398_v54 = vrot.slane %v7322_v4, 5  ;;  %v5747_v26 = vld [vmem:[%s8036_s1 + $0x1d4] ss:$8 sps:$4 sm:$0xff]   ;;  %v5754_v25 = vld [vmem:[%s8036_s1 + $0x1f0] ss:$8 sps:$4 sm:$0xff]  }
 0x13c   : > { %v3251_v14 = vrot.slane %v3250_v41, 4  ;;  %v3259_v30 = vor.u32 %v3258_v0, %v3257_v59  ;;  %v8325_v18 = vld [vmem:[#allocation68_spill] sm:$0xff]  ;;  %v3265_v55 = vrot.slane %v8327_v29, 6  ;;  %v4964_v41 = vcombine.low %v3242_v23, %v3247_v17 }
 0x13d   : > { %5127 = vmatpush1.bf16.msra.mxu1 %v5742_v53  ;;  %v4765_v53 = vrot.slane %v6955_v24, 9  ;;  %v3256_v24 = vrot.slane %v3254_v51, 4  ;;  %v3261_v9 = vrot.slane %v8325_v18, 6  ;;  %v5748_v0 = vld [vmem:[%s8036_s1 + $0x1d0] ss:$8 sps:$4 sm:$0xff]   ;;  %v8329_v17 = vshrl.u32 %v7329_v60, 16 }
 0x13e   : > { %5120 = vmatprep.subr.bf16.mxu1 %v5743_v12  ;;  %v8328_v12 = vld [vmem:[#allocation70_spill] sm:$0xff]  ;;  %v3255_v62 = vsel %vm6820_vm11, %v3251_v14, %v3254_v51 }
 0x13f   : > { %1691 = vmatmul.mubr.bf16.gmra.mrb[8].mxu1 %v4795_v28  ;;  %v8326_v28 = vld [vmem:[#allocation69_spill] sm:$0xff]  ;;  %v1396_v59 = vsel %vm7189_vm14, %v4765_v53, %v1395_v13  ;;  %v3260_v29 = vsel %vm6820_vm11, %v3256_v24, %v3259_v30  ;;  %v5749_v13 = vld [vmem:[%s8036_s1 + $0x1e4] ss:$8 sps:$4 sm:$0xff]   ;;  %v5750_v14 = vld [vmem:[%s8036_s1 + $0x1e0] ss:$8 sps:$4 sm:$0xff]   ;;  %v4766_v24 = vrot.slane %v6975_v49, 9 }
 0x140   : > { %3594 = vmatmul.mubr.bf16.gmra.mrb[40].mxu0 %v4963_v31  ;;  %1700 = vmatprep.mubr.bf16.mxu1 %v8197_v43  ;;  %v3262_v31 = vrot.slane %v8326_v28, 7  ;;  %v8332_v49 = vld [vmem:[#allocation74_spill] sm:$0xff]  ;;  %v8334_v28 = vld [vmem:[#allocation75_spill] sm:$0xff] }
 0x141   : > { %3603 = vmatprep.mubr.bf16.mxu0 %v8197_v43  ;;  %5128 = vmatpush1.bf16.msra.mxu1 %v5745_v3  ;;  %v3266_v3 = vrot.slane %v8328_v12, 7  ;;  %v1402_v12 = vrot.slane %v6978_v36, 5  ;;  %v3279_v18 = vrot.slane %v8334_v28, 7 }
 0x142   : > { %5121 = vmatprep.subr.bf16.mxu1 %v5747_v26  ;;  %v1399_v26 = vsel %vm7189_vm14, %v1397_v61, %v1398_v54  ;;  %v3263_v53 = vor.u32 %v3262_v31, %v3261_v9  ;;  %v3270_v61 = vrot.slane %v8329_v17, 6  ;;  %v8330_v54 = vld [vmem:[#allocation72_spill] sm:$0xff]  ;;  %v7364_v9 = vld [vmem:[%s5900_s9 + $0x44] sm:$0x7]  ;;  %v3275_v17 = vrot.slane %v8332_v49, 7 }
 0x143   : > { %v3267_v23 = vor.u32 %v3266_v3, %v3265_v55  ;;  %v4797_v51 = vcombine.low %v1396_v59, %v1399_v26  ;;  %v1404_v30 = vrot.slane %v1402_v12, 4  ;;  %v1405_v31 = vrot.slane %v7364_v9, 5  ;;  %v5752_v55 = vld [vmem:[%s8036_s1 + $0x1f4] ss:$8 sps:$4 sm:$0xff]   ;;  %v7371_v26 = vld [vmem:[%s5900_s9 + $0xb0] sm:$0x7] }
 0x144   : > { %v3264_v3 = vrot.slane %v3263_v53, 4  ;;  %v1403_v53 = vsel %vm7189_vm14, %v4766_v24, %v1402_v12  ;;  %v8335_v12 = vshrl.u32 %v7371_v26, 16  ;;  %v3284_v24 = vrot.slane %v6765_v50, 7 }
 0x145   : > { %5129 = vmatpush1.bf16.msra.mxu1 %v5748_v0  ;;  %v3271_v0 = vrot.slane %v8330_v54, 7 }
 0x146   : > { %5122 = vmatprep.subr.bf16.mxu1 %v5749_v13  ;;  %v1409_v13 = vrot.slane %v6995_v34, 5 }
 0x147   : > { %1701 = vmatmul.mubr.bf16.gmra.mrb[12].mxu1 %v4796_v56  ;;  %v4965_v56 = vcombine.low %v3255_v62, %v3260_v29  ;;  %v3272_v59 = vor.u32 %v3271_v0, %v3270_v61  ;;  %v8331_v62 = vld [vmem:[#allocation73_spill] sm:$0xff]  ;;  %v1406_v61 = vsel %vm7189_vm14, %v1404_v30, %v1405_v31  ;;  %v3268_v0 = vsel %vm6820_vm11, %v3264_v3, %v3267_v23 }
 0x148   : > { %3604 = vmatmul.mubr.bf16.gmra.mrb[44].mxu0 %v4964_v41  ;;  %1710 = vmatprep.mubr.bf16.mxu1 %v8197_v43  ;;  %v3269_v41 = vrot.slane %v3267_v23, 4  ;;  %v3274_v29 = vrot.slane %v8331_v62, 6  ;;  %v4798_v30 = vcombine.low %v1403_v53, %v1406_v61  ;;  %v4767_v31 = vrot.slane %v6992_v32, 9 }
 0x149   : > { %3613 = vmatprep.mubr.bf16.mxu0 %v8197_v43  ;;  %5130 = vmatpush1.bf16.msra.mxu1 %v5750_v14  ;;  %v8333_v14 = vld [vmem:[#allocation76_spill] sm:$0xff]  ;;  %v1411_v3 = vrot.slane %v1409_v13, 4  ;;  %v3291_v53 = vrot.slane %v6761_v46, 6  ;;  %v3292_v32 = vrot.slane %v6758_v1, 7 }
 0x14a   : > { %5123 = vmatprep.subr.bf16.mxu1 %v5752_v55  ;;  %v3278_v54 = vrot.slane %v8333_v14, 6  ;;  %v3273_v55 = vsel %vm6820_vm11, %v3269_v41, %v3272_v59  ;;  %v7397_v41 = vld [vmem:[%s5900_s9 + $0x50] sm:$0x7]  ;;  %v1410_v61 = vsel %vm7189_vm14, %v4767_v31, %v1409_v13 }
 0x14b   : > { %v4966_v23 = vcombine.low %v3268_v0, %v3273_v55  ;;  %v1412_v34 = vrot.slane %v7397_v41, 5 }
 0x14c   : > { %v3280_v28 = vor.u32 %v3279_v18, %v3278_v54  ;;  %v7401_v18 = vld [vmem:[%s5900_s9 + $0xbc] sm:$0x7] }
 0x14d   : > { %5131 = vmatpush1.bf16.msra.mxu1 %v5754_v25  ;;  %v3276_v25 = vor.u32 %v3275_v17, %v3274_v29  ;;  %v2132_v54 = vshrl.u32 %v7401_v18, 16  ;;  %v3287_v17 = vrot.slane %v6752_v35, 6  ;;  %v1413_v0 = vsel %vm7189_vm14, %v1411_v3, %v1412_v34 }
 0x14e   : > { %v3282_v59 = vrot.slane %v3280_v28, 4  ;;  %v4799_v31 = vcombine.low %v1410_v61, %v1413_v0  ;;  %v4768_v34 = vrot.slane %v7008_v19, 9  ;;  %v3723_v0 = vrot.slane %v6843_v39, 7 }
 0x14f   : > { %1711 = vmatmul.mubr.bf16.gmra.mrb[16].mxu1 %v4797_v51  ;;  %v3283_v51 = vrot.slane %v8335_v12, 6  ;;  %v3288_v12 = vrot.slane %v6755_v27, 7  ;;  %v3296_v13 = vrot.slane %v2132_v54, 6 }
 0x150   : > { %3614 = vmatmul.mubr.bf16.gmra.mrb[48].mxu0 %v4965_v56  ;;  %1720 = vmatprep.mubr.bf16.mxu1 %v8197_v43  ;;  %v3277_v56 = vrot.slane %v3276_v25, 4 }
 0x151   : > { %3623 = vmatprep.mubr.bf16.mxu0 %v8197_v43  ;;  %v3285_v29 = vor.u32 %v3284_v24, %v3283_v51  ;;  %v1416_v51 = vrot.slane %v7011_v52, 5  ;;  %v3289_v24 = vor.u32 %v3288_v12, %v3287_v17  ;;  %v7433_v12 = vld [vmem:[%s5900_s9 + $0x64] sm:$0xf] }
 0x152   : > { %v3281_v55 = vsel %vm6820_vm11, %v3277_v56, %v3280_v28  ;;  %v7424_v56 = vld [vmem:[%s5900_s9 + $0x5c] sm:$0x7] }
 0x153   : > { %v3286_v25 = vsel %vm6820_vm11, %v3282_v59, %v3285_v29  ;;  %v1418_v28 = vrot.slane %v1416_v51, 4  ;;  %v1419_v59 = vrot.slane %v7424_v56, 5  ;;  %v3290_v52 = vrot.slane %v3289_v24, 4 }
 0x154   : > { %v4967_v3 = vcombine.low %v3281_v55, %v3286_v25  ;;  %v1417_v17 = vsel %vm7189_vm14, %v4768_v34, %v1416_v51  ;;  %v7443_v51 = vld [vmem:[%s5900_s9 + $0x60] sm:$0xf] }
 0x155   : > { %v1420_v19 = vsel %vm7189_vm14, %v1418_v28, %v1419_v59  ;;  %v4769_v24 = vrot.slane %v7443_v51, 9  ;;  %v7459_v28 = vld [vmem:[%s5900_s9 + $0x70] sm:$0xf] }
 0x156   : > { %v4800_v55 = vcombine.low %v1417_v17, %v1420_v19 }
 0x157   : > { %1721 = vmatmul.mubr.bf16.gmra.mrb[20].mxu1 %v4798_v30  ;;  %v3293_v30 = vor.u32 %v3292_v32, %v3291_v53  ;;  %v1423_v53 = vrot.slane %v7433_v12, 5 }
 0x158   : > { %3624 = vmatmul.mubr.bf16.gmra.mrb[52].mxu0 %v4966_v23  ;;  %1730 = vmatprep.mubr.bf16.mxu1 %v8197_v43  ;;  %v3297_v23 = vrot.slane %v6784_v6, 7 }
 0x159   : > { %3633 = vmatprep.mubr.bf16.mxu0 %v8197_v43  ;;  %v3295_v29 = vrot.slane %v3293_v30, 4  ;;  %v3294_v32 = vsel %vm6820_vm11, %v3290_v52, %v3293_v30  ;;  %v1424_v39 = vsel %vm7189_vm14, %v4769_v24, %v1423_v53  ;;  %v5764_v24 = vld [vmem:[%s5900_s9 + $0xc] sm:$0xf] }
 0x15a   : > { %v3298_v1 = vor.u32 %v3297_v23, %v3296_v13  ;;  %v1425_v13 = vrot.slane %v1423_v53, 4  ;;  %v1426_v23 = vrot.slane %v7163_v57, 5 }
 0x15c   : > { %v3299_v61 = vsel %vm6820_vm11, %v3295_v29, %v3298_v1  ;;  %v3726_v1 = vrot.slane %v7186_v2, 7  ;;  %v1427_v34 = vsel %vm7189_vm14, %v1425_v13, %v1426_v23  ;;  %v1430_v2 = vrot.slane %v7459_v28, 5  ;;  %v5762_v29 = vld [vmem:[%s5900_s9 + $0x10] sm:$0xf] }
 0x15d   : > { %v4968_v25 = vcombine.low %v3294_v32, %v3299_v61  ;;  %v3730_v17 = vrot.slane %v5762_v29, 7  ;;  %v4801_v19 = vcombine.low %v1424_v39, %v1427_v34  ;;  %v7469_v32 = vld [vmem:[%s5900_s9 + $0x6c] sm:$0xf]  ;;  %v4986_v13 = vrot.slane %v5764_v24, 11 }
 0x15e   : > { %v4770_v61 = vrot.slane %v7469_v32, 9  ;;  %v3737_v34 = vrot.slane %v6903_v37, 7 }
 0x15f   : > { %1731 = vmatmul.mubr.bf16.gmra.mrb[24].mxu1 %v4799_v31  ;;  %v5760_v31 = vld [vmem:[%s5900_s9] sm:$0xf]  ;;  %v3732_v23 = vrot.slane %v3730_v17, 4 }
 0x160   : > { %3634 = vmatmul.mubr.bf16.gmra.mrb[56].mxu0 %v4967_v3  ;;  %1740 = vmatprep.mubr.bf16.mxu1 %v8197_v43  ;;  %v4985_v30 = vrot.slane %v5760_v31, 11  ;;  %v3725_v3 = vrot.slane %v3723_v0, 4  ;;  %v1431_v31 = vsel %vm7189_vm14, %v4770_v61, %v1430_v2  ;;  %v5767_v61 = vld [vmem:[%s5900_s9 + $0x18] sm:$0xf] }
 0x161   : > { %3643 = vmatprep.mubr.bf16.mxu0 %v8197_v43 }
 0x162   : > { %v3724_v59 = vsel %vm7449_vm1, %v4985_v30, %v3723_v0  ;;  %v3727_v52 = vsel %vm7449_vm1, %v3725_v3, %v3726_v1  ;;  %v3733_v0 = vrot.slane %v7217_v58, 7  ;;  %v7481_v3 = vld [vmem:[%s5900_s9 + $0x7c] sm:$0xf]  ;;  %v3731_v58 = vsel %vm7449_vm1, %v4986_v13, %v3730_v17  ;;  %v7503_v13 = vld [vmem:[%s5900_s9 + $0x88] sm:$0xf] }
 0x163   : > { %v5017_v53 = vcombine.low %v3724_v59, %v3727_v52  ;;  %v1437_v1 = vrot.slane %v7481_v3, 5  ;;  %v7491_v52 = vld [vmem:[%s5900_s9 + $0x78] sm:$0xf]  ;;  %v3740_v17 = vrot.slane %v7250_v7, 7 }
 0x164   : > { %v3734_v39 = vsel %vm7449_vm1, %v3732_v23, %v3733_v0  ;;  %v4771_v29 = vrot.slane %v7491_v52, 9  ;;  %v1444_v23 = vrot.slane %v7503_v13, 5 }
 0x166   : > { %v1438_v37 = vsel %vm7189_vm14, %v4771_v29, %v1437_v1  ;;  %v5770_v29 = vld [vmem:[%s5900_s9 + $0x24] sm:$0xf] }
 0x167   : > { %1741 = vmatmul.mubr.bf16.gmra.mrb[28].mxu1 %v4800_v55  ;;  %v1432_v55 = vrot.slane %v1430_v2, 4  ;;  %v5018_v2 = vcombine.low %v3731_v58, %v3734_v39  ;;  %v7513_v58 = vld [vmem:[%s5900_s9 + $0x84] sm:$0xf] }
 0x168   : > { %3644 = vmatmul.mubr.bf16.gmra.mrb[60].mxu0 %v4968_v25  ;;  %1750 = vmatprep.mubr.bf16.mxu1 %v8197_v43  ;;  %v1433_v25 = vrot.slane %v7194_v5, 5  ;;  %v4772_v39 = vrot.slane %v7513_v58, 9 }
 0x169   : > { %4026 = vmatprep.mubr.bf16.mxu0 %v8197_v43 }
 0x16a   : > { %v1434_v30 = vsel %vm7189_vm14, %v1432_v55, %v1433_v25  ;;  %v4987_v55 = vrot.slane %v5767_v61, 11  ;;  %v3739_v25 = vrot.slane %v3737_v34, 4 }
 0x16b   : > { %v4802_v59 = vcombine.low %v1431_v31, %v1434_v30  ;;  %v3744_v31 = vrot.slane %v6932_v8, 7  ;;  %v1445_v8 = vsel %vm7189_vm14, %v4772_v39, %v1444_v23  ;;  %v5773_v39 = vld [vmem:[%s5900_s9 + $0x30] sm:$0xf] }
 0x16c   : > { %v3738_v7 = vsel %vm7449_vm1, %v4987_v55, %v3737_v34  ;;  %v3741_v0 = vsel %vm7449_vm1, %v3739_v25, %v3740_v17  ;;  %v3747_v34 = vrot.slane %v7274_v20, 7  ;;  %v7525_v55 = vld [vmem:[%s5900_s9 + $0x94] sm:$0xf] }
 0x16d   : > { %v1451_v25 = vrot.slane %v7525_v55, 5 }
 0x16f   : > { %1751 = vmatmul.mubr.bf16.gmra.mrb[32].mxu1 %v4801_v19  ;;  %v1439_v19 = vrot.slane %v1437_v1, 4  ;;  %v5019_v1 = vcombine.low %v3738_v7, %v3741_v0  ;;  %v7535_v7 = vld [vmem:[%s5900_s9 + $0x90] sm:$0xf] }
 0x170   : > { %4027 = vmatmul.mubr.bf16.vlgmr.msra.gmra.mrb[0].mxu0 %v5017_v53  ;;  %1760 = vmatprep.mubr.bf16.mxu1 %v8197_v43  ;;  %v1440_v53 = vrot.slane %v7221_v15, 5  ;;  %v4773_v0 = vrot.slane %v7535_v7, 9 }
 0x171   : > { %4036 = vmatprep.mubr.bf16.mxu0 %v8197_v43 }
 0x172   : > { %v1441_v24 = vsel %vm7189_vm14, %v1439_v19, %v1440_v53  ;;  %v4988_v19 = vrot.slane %v5770_v29, 11  ;;  %v3746_v53 = vrot.slane %v3744_v31, 4 }
 0x173   : > { %v4803_v30 = vcombine.low %v1438_v37, %v1441_v24  ;;  %v3751_v37 = vrot.slane %v6958_v45, 7  ;;  %v1452_v45 = vsel %vm7189_vm14, %v4773_v0, %v1451_v25  ;;  %v5776_v0 = vld [vmem:[%s5900_s9 + $0x3c] sm:$0xf] }
 0x174   : > { %v3745_v20 = vsel %vm7449_vm1, %v4988_v19, %v3744_v31  ;;  %v3748_v17 = vsel %vm7449_vm1, %v3746_v53, %v3747_v34  ;;  %v3754_v31 = vrot.slane %v7322_v4, 7  ;;  %v7547_v19 = vld [vmem:[%s5900_s9 + $0xa0] sm:$0xf] }
 0x175   : > { %v1458_v53 = vrot.slane %v7547_v19, 5 }
 0x177   : > { %1761 = vmatmul.mubr.bf16.gmra.mrb[36].mxu1 %v4802_v59  ;;  %v1446_v59 = vrot.slane %v1444_v23, 4  ;;  %v5020_v23 = vcombine.low %v3745_v20, %v3748_v17  ;;  %v7557_v20 = vld [vmem:[%s5900_s9 + $0x9c] sm:$0xf] }
 0x178   : > { %4037 = vmatmul.mubr.bf16.gmra.mrb[4].mxu0 %v5018_v2  ;;  %1770 = vmatprep.mubr.bf16.mxu1 %v8197_v43  ;;  %v1447_v2 = vrot.slane %v7258_v44, 5  ;;  %v4774_v17 = vrot.slane %v7557_v20, 9 }
 0x179   : > { %4046 = vmatprep.mubr.bf16.mxu0 %v8197_v43 }
 0x17a   : > { %v1448_v61 = vsel %vm7189_vm14, %v1446_v59, %v1447_v2  ;;  %v4989_v59 = vrot.slane %v5773_v39, 11  ;;  %v3753_v2 = vrot.slane %v3751_v37, 4 }
 0x17b   : > { %v4804_v24 = vcombine.low %v1445_v8, %v1448_v61  ;;  %v3758_v8 = vrot.slane %v6978_v36, 7  ;;  %v1459_v36 = vsel %vm7189_vm14, %v4774_v17, %v1458_v53  ;;  %v1468_v17 = vrot.slane %v7371_v26, 5 }
 0x17c   : > { %v3752_v4 = vsel %vm7449_vm1, %v4989_v59, %v3751_v37  ;;  %v3755_v34 = vsel %vm7449_vm1, %v3753_v2, %v3754_v31  ;;  %v3761_v37 = vrot.slane %v7364_v9, 7  ;;  %v7569_v59 = vld [vmem:[%s5900_s9 + $0xac] sm:$0xf] }
 0x17d   : > { %v1465_v2 = vrot.slane %v7569_v59, 5 }
 0x17f   : > { %1771 = vmatmul.mubr.bf16.gmra.mrb[40].mxu1 %v4803_v30  ;;  %v1453_v30 = vrot.slane %v1451_v25, 4  ;;  %v5021_v25 = vcombine.low %v3752_v4, %v3755_v34  ;;  %v7579_v34 = vld [vmem:[%s5900_s9 + $0xa8] sm:$0xf] }
 0x180   : > { %4047 = vmatmul.mubr.bf16.gmra.mrb[8].mxu0 %v5019_v1  ;;  %1780 = vmatprep.mubr.bf16.mxu1 %v8197_v43  ;;  %v1454_v1 = vrot.slane %v7287_v10, 5 }
 0x181   : > { %4056 = vmatprep.mubr.bf16.mxu0 %v8197_v43 }
 0x182   : > { %v1455_v29 = vsel %vm7189_vm14, %v1453_v30, %v1454_v1  ;;  %v4990_v30 = vrot.slane %v5776_v0, 11  ;;  %v3760_v1 = vrot.slane %v3758_v8, 4 }
 0x183   : > { %v4805_v61 = vcombine.low %v1452_v45, %v1455_v29  ;;  %v5778_v45 = vld [vmem:[%s5900_s9 + $0x4c] sm:$0xf] }
 0x184   : > { %v3759_v9 = vsel %vm7449_vm1, %v4990_v30, %v3758_v8  ;;  %v3762_v31 = vsel %vm7449_vm1, %v3760_v1, %v3761_v37  ;;  %v3765_v29 = vrot.slane %v5778_v45, 7  ;;  %v3768_v8 = vrot.slane %v7397_v41, 7  ;;  %v7591_v37 = vld [vmem:[%s5900_s9 + $0xb8] sm:$0xf] }
 0x186   : > { %v3767_v0 = vrot.slane %v3765_v29, 4 }
 0x187   : > { %1781 = vmatmul.mubr.bf16.gmra.mrb[44].mxu1 %v4804_v24  ;;  %v1460_v24 = vrot.slane %v1458_v53, 4  ;;  %v5022_v53 = vcombine.low %v3759_v9, %v3762_v31  ;;  %v5782_v9 = vld [vmem:[%s5900_s9 + $0x58] sm:$0xf] }
 0x188   : > { %4057 = vmatmul.mubr.bf16.gmra.mrb[12].mxu0 %v5020_v23  ;;  %1790 = vmatprep.mubr.bf16.mxu1 %v8197_v43  ;;  %v1461_v23 = vrot.slane %v7329_v60, 5  ;;  %v3772_v31 = vrot.slane %v5782_v9, 7 }
 0x189   : > { %4066 = vmatprep.mubr.bf16.mxu0 %v8197_v43 }
 0x18a   : > { %v1462_v39 = vsel %vm7189_vm14, %v1460_v24, %v1461_v23  ;;  %v5780_v24 = vld [vmem:[%s5900_s9 + $0x48] sm:$0xf]  ;;  %v3774_v9 = vrot.slane %v3772_v31, 4 }
 0x18b   : > { %v4806_v4 = vcombine.low %v1459_v36, %v1462_v39  ;;  %v4991_v23 = vrot.slane %v5780_v24, 11  ;;  %v1472_v36 = vrot.slane %v7591_v37, 5  ;;  %v3769_v39 = vsel %vm7449_vm1, %v3767_v0, %v3768_v8  ;;  %v5784_v0 = vld [vmem:[%s5900_s9 + $0x54] sm:$0xf] }
 0x18c   : > { %v4992_v8 = vrot.slane %v5784_v0, 11  ;;  %v3782_v0 = vrot.slane %v7163_v57, 7 }
 0x18d   : > { %v3766_v41 = vsel %vm7449_vm1, %v4991_v23, %v3765_v29  ;;  %v1474_v29 = vrot.slane %v1472_v36, 4  ;;  %v1475_v23 = vrot.slane %v7401_v18, 5 }
 0x18f   : > { %1791 = vmatmul.mubr.bf16.gmra.mrb[48].mxu1 %v4805_v61  ;;  %v4775_v61 = vrot.slane %v7579_v34, 9 }
 0x190   : > { %4067 = vmatmul.mubr.bf16.gmra.mrb[16].mxu0 %v5021_v25  ;;  %1800 = vmatprep.mubr.bf16.mxu1 %v8197_v43  ;;  %v1467_v25 = vrot.slane %v1465_v2, 4 }
 0x191   : > { %4076 = vmatprep.mubr.bf16.mxu0 %v8197_v43  ;;  %v1466_v30 = vsel %vm7189_vm14, %v4775_v61, %v1465_v2  ;;  %v2023_v2 = vrot.slane %v8299_v38, 6  ;;  %v2022_v61 = vrot.slane %v8298_v21, 5  ;;  %v3775_v38 = vrot.slane %v7424_v56, 7 }
 0x192   : > { %v1469_v1 = vsel %vm7189_vm14, %v1467_v25, %v1468_v17  ;;  %v5023_v25 = vcombine.low %v3766_v41, %v3769_v39  ;;  %v7605_v17 = vld [vmem:[%s5900_s9 + $0xb4] sm:$0xf]  ;;  %v1476_v39 = vsel %vm7189_vm14, %v1474_v29, %v1475_v23 }
 0x193   : > { %v4807_v45 = vcombine.low %v1466_v30, %v1469_v1  ;;  %v4776_v24 = vrot.slane %v7605_v17, 9  ;;  %v2030_v30 = vrot.slane %v8300_v40, 6  ;;  %v2024_v1 = vor.u32 %v2023_v2, %v2022_v61 }
 0x194   : > { %v3773_v40 = vsel %vm7449_vm1, %v4992_v8, %v3772_v31  ;;  %v3776_v56 = vsel %vm7449_vm1, %v3774_v9, %v3775_v38  ;;  %v2033_v2 = vrot.slane %v8303_v48, 5  ;;  %v4993_v31 = vrot.slane %v7443_v51, 11 }
 0x195   : > { %v1473_v41 = vsel %vm7189_vm14, %v4776_v24, %v1472_v36  ;;  %v2038_v36 = vrot.slane %v8306_v63, 6  ;;  %v5024_v29 = vcombine.low %v3773_v40, %v3776_v56  ;;  %v8339_v48 = vshrl.u32 %v7194_v5, 16  ;;  %v8343_v56 = vld [vmem:[#allocation54_spill] sm:$0xff] }
 0x196   : > { %v4808_v22 = vcombine.low %v1473_v41, %v1476_v39  ;;  %v3786_v51 = vrot.slane %v7459_v28, 7  ;;  %v8342_v39 = vld [vmem:[#allocation53_spill] sm:$0xff] }
 0x197   : > { %1801 = vmatmul.mubr.bf16.gmra.mrb[52].mxu1 %v4806_v4  ;;  %v2018_v4 = vrot.slane %v8296_v11, 5  ;;  %v8338_v11 = vshrl.u32 %v7163_v57, 16  ;;  %v2044_v9 = vrot.slane %v8339_v48, 5  ;;  %v2048_v40 = vrot.slane %v8342_v39, 5  ;;  %v8347_v48 = vld [vmem:[#allocation57_spill] sm:$0xff] }
 0x198   : > { %4077 = vmatmul.mubr.bf16.gmra.mrb[20].mxu0 %v5022_v53  ;;  %1810 = vmatprep.mubr.bf16.mxu1 %v8197_v43  ;;  %v2019_v53 = vrot.slane %v8297_v47, 6 }
 0x199   : > { %4086 = vmatprep.mubr.bf16.mxu0 %v8197_v43  ;;  %v2029_v47 = vrot.slane %v8338_v11, 5 }
 0x19a   : > { %v2020_v21 = vor.u32 %v2019_v53, %v2018_v4  ;;  %v2034_v4 = vrot.slane %v8304_v42, 6  ;;  %v2037_v53 = vrot.slane %v8305_v16, 5  ;;  %v8340_v42 = vld [vmem:[#allocation52_spill] sm:$0xff] }
 0x19b   : > { %v2031_v24 = vor.u32 %v2030_v30, %v2029_v47  ;;  %v2045_v38 = vrot.slane %v8340_v42, 6 }
 0x19c   : > { %v2021_v61 = vrot.slane %v2020_v21, 4  ;;  %v2035_v8 = vor.u32 %v2034_v4, %v2033_v2  ;;  %v2049_v2 = vrot.slane %v8343_v56, 6  ;;  %v8344_v4 = vld [vmem:[#allocation56_spill] sm:$0xff]  ;;  %v4995_v56 = vrot.slane %v7491_v52, 11 }
 0x19e   : > { %v2025_v63 = vsel %vm5983_vm5, %v2021_v61, %v2024_v1  ;;  %v2036_v21 = vrot.slane %v2035_v8, 4  ;;  %v4994_v61 = vrot.slane %v7469_v32, 11 }
 0x19f   : > { %1811 = vmatmul.mubr.bf16.gmra.mrb[56].mxu1 %v4807_v45  ;;  %v3779_v45 = vrot.slane %v7433_v12, 7  ;;  %v2039_v12 = vor.u32 %v2038_v36, %v2037_v53  ;;  %v2052_v53 = vrot.slane %v8344_v4, 5  ;;  %v8345_v36 = vld [vmem:[#allocation55_spill] sm:$0xff]  ;;  %v3796_v4 = vrot.slane %v7221_v15, 7 }
 0x1a0   : > { %4087 = vmatmul.mubr.bf16.gmra.mrb[24].mxu0 %v5023_v25  ;;  %1820 = vmatprep.mubr.bf16.mxu1 %v8197_v43  ;;  %v2026_v25 = vrot.slane %v2024_v1, 4  ;;  %v2046_v1 = vor.u32 %v2045_v38, %v2044_v9  ;;  %v2053_v28 = vrot.slane %v8345_v36, 6  ;;  %v2060_v9 = vrot.slane %v8347_v48, 6  ;;  %v8356_v48 = vld [vmem:[#allocation66_spill] sm:$0xff] }
 0x1a1   : > { %4096 = vmatprep.mubr.bf16.mxu0 %v8197_v43  ;;  %v3781_v23 = vrot.slane %v3779_v45, 4  ;;  %v3780_v57 = vsel %vm7449_vm1, %v4993_v31, %v3779_v45  ;;  %v2041_v41 = vrot.slane %v2039_v12, 4  ;;  %v3789_v45 = vrot.slane %v7194_v5, 7 }
 0x1a2   : > { %v2032_v30 = vsel %vm5983_vm5, %v2026_v25, %v2031_v24  ;;  %v3788_v25 = vrot.slane %v3786_v51, 4  ;;  %v2040_v24 = vsel %vm5983_vm5, %v2036_v21, %v2039_v12  ;;  %v2050_v31 = vor.u32 %v2049_v2, %v2048_v40  ;;  %v8349_v21 = vld [vmem:[#allocation59_spill] sm:$0xff]  ;;  %v8351_v40 = vld [vmem:[#allocation60_spill] sm:$0xff] }
 0x1a3   : > { %v3783_v11 = vsel %vm7449_vm1, %v3781_v23, %v3782_v0  ;;  %v4849_v47 = vcombine.low %v2025_v63, %v2032_v30  ;;  %v2054_v23 = vor.u32 %v2053_v28, %v2052_v53  ;;  %v8346_v0 = vshrl.u32 %v7221_v15, 16 }
 0x1a4   : > { %v3787_v5 = vsel %vm7449_vm1, %v4994_v61, %v3786_v51  ;;  %v3790_v32 = vsel %vm7449_vm1, %v3788_v25, %v3789_v45  ;;  %v3793_v12 = vrot.slane %v7481_v3, 7  ;;  %v2051_v63 = vrot.slane %v2050_v31, 4  ;;  %v8353_v25 = vld [vmem:[#allocation62_spill] sm:$0xff]  ;;  %v8354_v31 = vld [vmem:[#allocation63_spill] sm:$0xff] }
 0x1a5   : > { %v2059_v8 = vrot.slane %v8346_v0, 5  ;;  %v5026_v38 = vcombine.low %v3787_v5, %v3790_v32  ;;  %v2056_v30 = vrot.slane %v2054_v23, 4  ;;  %v2068_v51 = vrot.slane %v8351_v40, 6  ;;  %v8355_v0 = vld [vmem:[#allocation64_spill] sm:$0xff]  ;;  %v8357_v5 = vld [vmem:[#allocation65_spill] sm:$0xff] }
 0x1a6   : > { %v3795_v2 = vrot.slane %v3793_v12, 4  ;;  %v2055_v3 = vsel %vm5983_vm5, %v2051_v63, %v2054_v23  ;;  %v2075_v52 = vrot.slane %v8353_v25, 6  ;;  %v3794_v15 = vsel %vm7449_vm1, %v4995_v56, %v3793_v12 }
 0x1a7   : > { %1821 = vmatmul.mubr.bf16.gmra.mrb[60].mxu1 %v4808_v22  ;;  %v5025_v22 = vcombine.low %v3780_v57, %v3783_v11  ;;  %v2061_v57 = vor.u32 %v2060_v9, %v2059_v8  ;;  %v8348_v11 = vld [vmem:[#allocation58_spill] sm:$0xff]  ;;  %v2078_v23 = vrot.slane %v8354_v31, 5  ;;  %v2079_v8 = vrot.slane %v8355_v0, 6 }
 0x1a8   : > { %4097 = vmatmul.mubr.bf16.gmra.mrb[28].mxu0 %v5024_v29  ;;  %2411 = vmatprep.mubr.bf16.mxu1 %v8197_v43  ;;  %v2047_v29 = vsel %vm5983_vm5, %v2041_v41, %v2046_v1  ;;  %v2064_v41 = vrot.slane %v8349_v21, 6  ;;  %v8350_v1 = vld [vmem:[#allocation61_spill] sm:$0xff]  ;;  %v3797_v45 = vsel %vm7449_vm1, %v3795_v2, %v3796_v4  ;;  %v2082_v9 = vrot.slane %v8356_v48, 5  ;;  %v8360_v2 = vld [vmem:[#allocation68_spill] sm:$0xff] }
 0x1a9   : > { %4106 = vmatprep.mubr.bf16.mxu0 %v8197_v43  ;;  %v4850_v42 = vcombine.low %v2040_v24, %v2047_v29  ;;  %v2067_v39 = vrot.slane %v8350_v1, 5  ;;  %v2062_v53 = vsel %vm5983_vm5, %v2056_v30, %v2061_v57  ;;  %v3800_v24 = vrot.slane %v7503_v13, 7  ;;  %v8359_v1 = vld [vmem:[#allocation67_spill] sm:$0xff] }
 0x1aa   : > { %v4851_v29 = vcombine.low %v2055_v3, %v2062_v53  ;;  %v2083_v32 = vrot.slane %v8357_v5, 6  ;;  %v4996_v12 = vrot.slane %v7513_v58, 11  ;;  %v2080_v13 = vor.u32 %v2079_v8, %v2078_v23  ;;  %v8361_v3 = vld [vmem:[#allocation69_spill] sm:$0xff] }
 0x1ab   : > { %v2069_v28 = vor.u32 %v2068_v51, %v2067_v39  ;;  %v3802_v57 = vrot.slane %v3800_v24, 4  ;;  %v8358_v21 = vshrl.u32 %v7287_v10, 16  ;;  %v2090_v39 = vrot.slane %v8359_v1, 6 }
 0x1ac   : > { %v3807_v56 = vrot.slane %v7525_v55, 7  ;;  %v2093_v4 = vrot.slane %v8360_v2, 5  ;;  %v2094_v53 = vrot.slane %v8361_v3, 6  ;;  %v3810_v23 = vrot.slane %v7287_v10, 7 }
 0x1ad   : > { %v2071_v63 = vrot.slane %v2069_v28, 4  ;;  %v8364_v8 = vshrl.u32 %v7329_v60, 16  ;;  %v4998_v1 = vrot.slane %v7557_v20, 11  ;;  %v3821_v2 = vrot.slane %v7569_v59, 7 }
 0x1ae   : > { %v3809_v31 = vrot.slane %v3807_v56, 4  ;;  %v2095_v0 = vor.u32 %v2094_v53, %v2093_v4 }
 0x1af   : > { %2412 = vmatmul.mubr.bf16.vlgmr.msra.gmra.mrb[32].mxu1 %v4849_v47  ;;  %v2063_v47 = vrot.slane %v8348_v11, 5  ;;  %v3803_v11 = vrot.slane %v7258_v44, 7  ;;  %v2104_v48 = vrot.slane %v8364_v8, 5 }
 0x1b0   : > { %4107 = vmatmul.mubr.bf16.gmra.mrb[32].mxu0 %v5025_v22  ;;  %2421 = vmatprep.mubr.bf16.mxu1 %v8197_v43  ;;  %v8352_v22 = vshrl.u32 %v7258_v44, 16  ;;  %v3801_v44 = vsel %vm7449_vm1, %v4996_v12, %v3800_v24  ;;  %v4997_v24 = vrot.slane %v7535_v7, 11  ;;  %v3814_v7 = vrot.slane %v7547_v19, 7 }
 0x1b1   : > { %4116 = vmatprep.mubr.bf16.mxu0 %v8197_v43  ;;  %v2065_v36 = vor.u32 %v2064_v41, %v2063_v47  ;;  %v2084_v47 = vor.u32 %v2083_v32, %v2082_v9  ;;  %v2089_v41 = vrot.slane %v8358_v21, 5  ;;  %v3804_v51 = vsel %vm7449_vm1, %v3802_v57, %v3803_v11  ;;  %v8365_v9 = vld [vmem:[#allocation72_spill] sm:$0xff]  ;;  %v8366_v21 = vld [vmem:[#allocation75_spill] sm:$0xff] }
 0x1b2   : > { %v2074_v61 = vrot.slane %v8352_v22, 5  ;;  %v2105_v5 = vrot.slane %v8365_v9, 6  ;;  %v3808_v10 = vsel %vm7449_vm1, %v4997_v24, %v3807_v56  ;;  %v2108_v11 = vrot.slane %v8331_v62, 5 }
 0x1b3   : > { %v2113_v19 = vrot.slane %v8366_v21, 6  ;;  %v2120_v56 = vrot.slane %v6765_v50, 6  ;;  %v2123_v50 = vrot.slane %v6752_v35, 5 }
 0x1b4   : > { %v2076_v30 = vor.u32 %v2075_v52, %v2074_v61  ;;  %v2081_v52 = vrot.slane %v2080_v13, 4  ;;  %v2106_v57 = vor.u32 %v2105_v5, %v2104_v48  ;;  %v2109_v13 = vrot.slane %v8332_v49, 6 }
 0x1b5   : > { %v8367_v49 = vshrl.u32 %v7371_v26, 16  ;;  %v5000_v5 = vrot.slane %v7605_v17, 11 }
 0x1b6   : > { %v2077_v58 = vsel %vm5983_vm5, %v2071_v63, %v2076_v30  ;;  %v2085_v32 = vsel %vm5983_vm5, %v2081_v52, %v2084_v47  ;;  %v2096_v30 = vrot.slane %v2095_v0, 4  ;;  %v2110_v62 = vor.u32 %v2109_v13, %v2108_v11 }
 0x1b7   : > { %2422 = vmatmul.mubr.bf16.gmra.mrb[36].mxu1 %v4850_v42  ;;  %v5027_v42 = vcombine.low %v3794_v15, %v3797_v45  ;;  %v2086_v15 = vrot.slane %v2084_v47, 4  ;;  %v2091_v45 = vor.u32 %v2090_v39, %v2089_v41  ;;  %v2112_v47 = vrot.slane %v8333_v14, 5 }
 0x1b8   : > { %4117 = vmatmul.mubr.bf16.gmra.mrb[36].mxu0 %v5026_v38  ;;  %2431 = vmatprep.mubr.bf16.mxu1 %v8197_v43  ;;  %v2066_v38 = vrot.slane %v2065_v36, 4  ;;  %v8362_v36 = vld [vmem:[#allocation71_spill] sm:$0xff]  ;;  %v3816_v39 = vrot.slane %v3814_v7, 4  ;;  %v2119_v14 = vrot.slane %v8367_v49, 5  ;;  %v2111_v53 = vrot.slane %v2110_v62, 4 }
 0x1b9   : > { %4126 = vmatprep.mubr.bf16.mxu0 %v8197_v43  ;;  %v2097_v22 = vrot.slane %v8362_v36, 5 }
 0x1ba   : > { %v2070_v40 = vsel %vm5983_vm5, %v2066_v38, %v2069_v28  ;;  %v8363_v28 = vld [vmem:[#allocation70_spill] sm:$0xff]  ;;  %v3811_v38 = vsel %vm7449_vm1, %v3809_v31, %v3810_v23  ;;  %v3828_v23 = vrot.slane %v7591_v37, 7 }
 0x1bb   : > { %v2098_v61 = vrot.slane %v8363_v28, 6  ;;  %v4852_v25 = vcombine.low %v2070_v40, %v2077_v58  ;;  %v5029_v41 = vcombine.low %v3808_v10, %v3811_v38  ;;  %v3817_v40 = vrot.slane %v7329_v60, 7 }
 0x1bc   : > { %v3815_v60 = vsel %vm7449_vm1, %v4998_v1, %v3814_v7  ;;  %v2124_v28 = vrot.slane %v6755_v27, 6 }
 0x1bd   : > { %v2099_v55 = vor.u32 %v2098_v61, %v2097_v22  ;;  %v3818_v20 = vsel %vm7449_vm1, %v3816_v39, %v3817_v40  ;;  %v2121_v22 = vor.u32 %v2120_v56, %v2119_v14  ;;  %v2127_v61 = vrot.slane %v6761_v46, 5 }
 0x1be   : > { %v5030_v3 = vcombine.low %v3815_v60, %v3818_v20  ;;  %v2125_v35 = vor.u32 %v2124_v28, %v2123_v50  ;;  %v2134_v46 = vrot.slane %v2132_v54, 5  ;;  %v3830_v54 = vrot.slane %v3828_v23, 4 }
 0x1bf   : > { %2432 = vmatmul.mubr.bf16.gmra.mrb[40].mxu1 %v4851_v29  ;;  %v5028_v29 = vcombine.low %v3801_v44, %v3804_v51  ;;  %v2101_v12 = vrot.slane %v2099_v55, 4  ;;  %v2100_v58 = vsel %vm5983_vm5, %v2096_v30, %v2099_v55  ;;  %v2114_v51 = vor.u32 %v2113_v19, %v2112_v47 }
 0x1c0   : > { %4127 = vmatmul.mubr.bf16.gmra.mrb[40].mxu0 %v5027_v42  ;;  %2441 = vmatprep.mubr.bf16.mxu1 %v8197_v43  ;;  %v2092_v42 = vsel %vm5983_vm5, %v2086_v15, %v2091_v45  ;;  %v4999_v15 = vrot.slane %v7579_v34, 11  ;;  %v3823_v45 = vrot.slane %v3821_v2, 4  ;;  %v2135_v34 = vrot.slane %v6784_v6, 6 }
 0x1c1   : > { %4136 = vmatprep.mubr.bf16.mxu0 %v8197_v43  ;;  %v4853_v63 = vcombine.low %v2085_v32, %v2092_v42  ;;  %v2107_v44 = vsel %vm5983_vm5, %v2101_v12, %v2106_v57  ;;  %v2116_v36 = vrot.slane %v2114_v51, 4  ;;  %v2115_v59 = vsel %vm5983_vm5, %v2111_v53, %v2114_v51 }
 0x1c2   : > { %v4854_v4 = vcombine.low %v2100_v58, %v2107_v44  ;;  %v2126_v8 = vrot.slane %v2125_v35, 4  ;;  %v2136_v9 = vor.u32 %v2135_v34, %v2134_v46  ;;  %v3831_v6 = vrot.slane %v7401_v18, 7 }
 0x1c3   : > { %v2122_v24 = vsel %vm5983_vm5, %v2116_v36, %v2121_v22  ;;  %v3829_v42 = vsel %vm7449_vm1, %v5000_v5, %v3828_v23 }
 0x1c4   : > { %v4855_v0 = vcombine.low %v2115_v59, %v2122_v24  ;;  %v3832_v17 = vsel %vm7449_vm1, %v3830_v54, %v3831_v6 }
 0x1c5   : > { %v5032_v18 = vcombine.low %v3829_v42, %v3832_v17 }
 0x1c7   : > { %2442 = vmatmul.mubr.bf16.gmra.mrb[44].mxu1 %v4852_v25  ;;  %v8368_v25 = vld [vmem:[#allocation77_spill] sm:$0xff] }
 0x1c8   : > { %4137 = vmatmul.mubr.bf16.gmra.mrb[44].mxu0 %v5028_v29  ;;  %2451 = vmatprep.mubr.bf16.mxu1 %v8197_v43  ;;  %v2128_v52 = vrot.slane %v8368_v25, 6  ;;  %v3824_v29 = vrot.slane %v7371_v26, 7  ;;  %v3822_v26 = vsel %vm7449_vm1, %v4999_v15, %v3821_v2 }
 0x1c9   : > { %4146 = vmatprep.mubr.bf16.mxu0 %v8197_v43 }
 0x1ca   : > { %v2129_v27 = vor.u32 %v2128_v52, %v2127_v61  ;;  %v3825_v31 = vsel %vm7449_vm1, %v3823_v45, %v3824_v29  ;;  %v4251_v61 = vld [vmem:[%s8037_s2] sm:$0x3] }
 0x1cb   : > { %v5031_v55 = vcombine.low %v3822_v26, %v3825_v31 }
 0x1cc   : > { %v2131_v48 = vrot.slane %v2129_v27, 4  ;;  %v2130_v32 = vsel %vm5983_vm5, %v2126_v8, %v2129_v27 }
 0x1ce   : > { %v2137_v37 = vsel %vm5983_vm5, %v2131_v48, %v2136_v9 }
 0x1cf   : > { %2452 = vmatmul.mubr.bf16.gmra.mrb[48].mxu1 %v4853_v63  ;;  %v4856_v7 = vcombine.low %v2130_v32, %v2137_v37 }
 0x1d0   : > { %4147 = vmatmul.mubr.bf16.gmra.mrb[48].mxu0 %v5029_v41  ;;  %2461 = vmatprep.mubr.bf16.mxu1 %v8197_v43 }
 0x1d1   : > { %4156 = vmatprep.mubr.bf16.mxu0 %v8197_v43 }
 0x1d7   : > { %2462 = vmatmul.mubr.bf16.gmra.mrb[52].mxu1 %v4854_v4  ;;  %v4253_v4 = vlaneseq }
 0x1d8   : > { %4157 = vmatmul.mubr.bf16.gmra.mrb[52].mxu0 %v5030_v3  ;;  %2471 = vmatprep.mubr.bf16.mxu1 %v8197_v43 }
 0x1d9   : > { %4166 = vmatprep.mubr.bf16.mxu0 %v8197_v43  ;;  %v4254_v53 = vshrl.u32 %v4253_v4, 7 }
 0x1db   : > { %v4255_v28 = vsub.s32 0, %v4254_v53  ;;  %v4259_v25 = vsub.s32 1, %v4254_v53 }
 0x1dd   : > { %v7832_v52 = vrot.slane %v4251_v61, %v4255_v28  ;;  %v7834_v45 = vrot.slane %v4251_v61, %v4259_v25 }
 0x1df   : > { %2472 = vmatmul.mubr.bf16.gmra.mrb[56].mxu1 %v4855_v0 }
 0x1e0   : > { %4167 = vmatmul.mubr.bf16.gmra.mrb[56].mxu0 %v5031_v55  ;;  %2481 = vmatprep.mubr.bf16.mxu1 %v8197_v43 }
 0x1e1   : > { %4176 = vmatprep.mubr.bf16.mxu0 %v8197_v43 }
 0x1e7   : > { %2482 = vmatmul.mubr.bf16.gmra.mrb[60].mxu1 %v4856_v7 }
 0x1e8   : > { %4177 = vmatmul.mubr.bf16.gmra.mrb[60].mxu0 %v5032_v18 }
 0x202   : > { %v1672_v10 = vpop.f32.mrb[0].mxu1 }
 0x203   : > { %v1674_v38 = vpop.f32.mrb[1].mxu1 }
 0x204   : > { %v1676_v63 = vpop.f32.mrb[2].mxu1 }
 0x205   : > { %v1678_v30 = vpop.f32.mrb[3].mxu1 }
 0x20a   : > { %v1682_v12 = vpop.f32.mrb[4].mxu1 }
 0x20b   : > { %v1684_v57 = vpop.f32.mrb[5].mxu1 }
 0x20c   : > { %v7777_v16 = vpop.f32.mrb[6].mxu1 }
 0x20d   : > { %v7779_v11 = vpop.f32.mrb[7].mxu1 }
 0x212   : > { %v7781_v43 = vpop.f32.mrb[8].mxu1 }
 0x213   : > { %v7783_v13 = vpop.f32.mrb[9].mxu1 }
 0x214   : > { %v7785_v33 = vpop.f32.mrb[10].mxu1 }
 0x215   : > { %v7787_v47 = vpop.f32.mrb[11].mxu1 }
 0x21a   : > { %v7789_v21 = vpop.f32.mrb[12].mxu1 }
 0x21b   : > { %v7791_v19 = vpop.f32.mrb[13].mxu1 }
 0x21c   : > { %v7793_v41 = vpop.f32.mrb[14].mxu1 }
 0x21d   : > { %v7795_v1 = vpop.f32.mrb[15].mxu1 }
 0x222   : > { %v7797_v39 = vpop.f32.mrb[16].mxu1 }
 0x223   : > { %v7799_v40 = vpop.f32.mrb[17].mxu1 }
 0x224   : > { %v7801_v58 = vpop.f32.mrb[18].mxu1 }
 0x225   : > { %v7803_v44 = vpop.f32.mrb[19].mxu1 }
 0x22a   : > { %v7805_v62 = vpop.f32.mrb[20].mxu1 }
 0x22b   : > { %v7807_v51 = vpop.f32.mrb[21].mxu1 }
 0x22c   : > { %v7809_v49 = vpop.f32.mrb[22].mxu1 }
 0x22d   : > { %v7811_v14 = vpop.f32.mrb[23].mxu1 }
 0x232   : > { %v7813_v56 = vpop.f32.mrb[24].mxu1 }
 0x233   : > { %v7815_v60 = vpop.f32.mrb[25].mxu1 }
 0x234   : > { %v7817_v20 = vpop.f32.mrb[26].mxu1 }
 0x235   : > { %v7819_v2 = vpop.f32.mrb[27].mxu1 }
 0x23a   : > { %v7821_v3 = vpop.f32.mrb[28].mxu1 }
 0x23b   : > { %v7823_v36 = vpop.f32.mrb[29].mxu1 }
 0x23c   : > { %v7825_v22 = vpop.f32.mrb[30].mxu1 }
 0x23d   : > { %v7827_v50 = vpop.f32.mrb[31].mxu1 }
 0x243   : > { %v4028_v15 = vpop.f32.mrb[0].mxu0 }
 0x244   : > { %v5132_v29 = vadd.f32 %v4028_v15, %v1672_v10  ;;  %v4030_v59 = vpop.f32.mrb[1].mxu0 }
 0x245   : > { %v5133_v24 = vadd.f32 %v4030_v59, %v1674_v38  ;;  %v4032_v35 = vpop.f32.mrb[2].mxu0 }
 0x246   : > { %v4263_v27 = vadd.f32 %v5132_v29, %v7832_v52  ;;  %v5134_v46 = vadd.f32 %v4032_v35, %v1676_v63  ;;  %v4034_v34 = vpop.f32.mrb[3].mxu0 }
 0x247   : > { %v4264_v26 = vadd.f32 %v5133_v24, %v7834_v45  ;;  %v5135_v31 = vadd.f32 %v4034_v34, %v1678_v30 }
 0x248   : > { %v4327_v23 = vmax.f32 %v4263_v27, 0.0  ;;  %v4265_v0 = vadd.f32 %v5134_v46, %v7832_v52 }
 0x249   : > { %v4328_v55 = vmax.f32 %v4264_v26, 0.0  ;;  %v4266_v8 = vadd.f32 %v5135_v31, %v7834_v45 }
 0x24a   : > { %v4329_v9 = vmax.f32 %v4265_v0, 0.0 }
 0x24b   : > { %v5084_v5 = vpack.c.bf16 %v4328_v55, %v4327_v23  ;;  %v4330_v54 = vmax.f32 %v4266_v8, 0.0  ;;  %v4038_v6 = vpop.f32.mrb[4].mxu0 }
 0x24c   : > { %v5136_v32 = vadd.f32 %v4038_v6, %v1682_v12  ;;  %v4040_v37 = vpop.f32.mrb[5].mxu0 }
 0x24d   : > { %4586 = vst.msk [vmem:[%s7844_s10] sm:$0xff] %vm7846_vm4, %v5084_v5  ;;  %v5085_v42 = vpack.c.bf16 %v4330_v54, %v4329_v9  ;;  %v5137_v17 = vadd.f32 %v4040_v37, %v1684_v57  ;;  %v4042_v7 = vpop.f32.mrb[6].mxu0 }
 0x24e   : > { %v4267_v18 = vadd.f32 %v5136_v32, %v7832_v52  ;;  %v5138_v10 = vadd.f32 %v4042_v7, %v7777_v16  ;;  %v4044_v38 = vpop.f32.mrb[7].mxu0 }
 0x24f   : > { %4587 = vst.msk [vmem:[%s7844_s10 + $0x8] sm:$0xff] %vm7846_vm4, %v5085_v42  ;;  %v4268_v63 = vadd.f32 %v5137_v17, %v7834_v45  ;;  %v5139_v30 = vadd.f32 %v4044_v38, %v7779_v11 }
 0x250   : > { %v4331_v12 = vmax.f32 %v4267_v18, 0.0  ;;  %v4269_v4 = vadd.f32 %v5138_v10, %v7832_v52 }
 0x251   : > { %v4332_v53 = vmax.f32 %v4268_v63, 0.0  ;;  %v4270_v57 = vadd.f32 %v5139_v30, %v7834_v45 }
 0x252   : > { %v4333_v28 = vmax.f32 %v4269_v4, 0.0 }
 0x253   : > { %v5086_v61 = vpack.c.bf16 %v4332_v53, %v4331_v12  ;;  %v4334_v25 = vmax.f32 %v4270_v57, 0.0  ;;  %v4048_v15 = vpop.f32.mrb[8].mxu0 }
 0x254   : > { %v5140_v16 = vadd.f32 %v4048_v15, %v7781_v43  ;;  %v4050_v29 = vpop.f32.mrb[9].mxu0 }
 0x255   : > { %4588 = vst.msk [vmem:[%s7844_s10 + $0x10] sm:$0xff] %vm7846_vm4, %v5086_v61  ;;  %v5087_v59 = vpack.c.bf16 %v4334_v25, %v4333_v28  ;;  %v5141_v11 = vadd.f32 %v4050_v29, %v7783_v13  ;;  %v4052_v24 = vpop.f32.mrb[10].mxu0 }
 0x256   : > { %v4271_v35 = vadd.f32 %v5140_v16, %v7832_v52  ;;  %v5142_v27 = vadd.f32 %v4052_v24, %v7785_v33  ;;  %v4054_v46 = vpop.f32.mrb[11].mxu0 }
 0x257   : > { %4589 = vst.msk [vmem:[%s7844_s10 + $0x18] sm:$0xff] %vm7846_vm4, %v5087_v59  ;;  %v4272_v34 = vadd.f32 %v5141_v11, %v7834_v45  ;;  %v5143_v43 = vadd.f32 %v4054_v46, %v7787_v47 }
 0x258   : > { %v4335_v26 = vmax.f32 %v4271_v35, 0.0  ;;  %v4273_v31 = vadd.f32 %v5142_v27, %v7832_v52 }
 0x259   : > { %v4336_v23 = vmax.f32 %v4272_v34, 0.0  ;;  %v4274_v13 = vadd.f32 %v5143_v43, %v7834_v45 }
 0x25a   : > { %v4337_v0 = vmax.f32 %v4273_v31, 0.0 }
 0x25b   : > { %v5088_v55 = vpack.c.bf16 %v4336_v23, %v4335_v26  ;;  %v4338_v8 = vmax.f32 %v4274_v13, 0.0  ;;  %v4058_v9 = vpop.f32.mrb[12].mxu0 }
 0x25c   : > { %v5144_v33 = vadd.f32 %v4058_v9, %v7789_v21  ;;  %v4060_v5 = vpop.f32.mrb[13].mxu0 }
 0x25d   : > { %4590 = vst.msk [vmem:[%s7844_s10 + $0x20] sm:$0xff] %vm7846_vm4, %v5088_v55  ;;  %v5089_v54 = vpack.c.bf16 %v4338_v8, %v4337_v0  ;;  %v5145_v47 = vadd.f32 %v4060_v5, %v7791_v19  ;;  %v4062_v6 = vpop.f32.mrb[14].mxu0 }
 0x25e   : > { %v4275_v32 = vadd.f32 %v5144_v33, %v7832_v52  ;;  %v5146_v37 = vadd.f32 %v4062_v6, %v7793_v41  ;;  %v4064_v42 = vpop.f32.mrb[15].mxu0 }
 0x25f   : > { %4591 = vst.msk [vmem:[%s7844_s10 + $0x28] sm:$0xff] %vm7846_vm4, %v5089_v54  ;;  %v4276_v17 = vadd.f32 %v5145_v47, %v7834_v45  ;;  %v5147_v21 = vadd.f32 %v4064_v42, %v7795_v1 }
 0x260   : > { %v4339_v7 = vmax.f32 %v4275_v32, 0.0  ;;  %v4277_v18 = vadd.f32 %v5146_v37, %v7832_v52 }
 0x261   : > { %v4340_v10 = vmax.f32 %v4276_v17, 0.0  ;;  %v4278_v19 = vadd.f32 %v5147_v21, %v7834_v45 }
 0x262   : > { %v4341_v38 = vmax.f32 %v4277_v18, 0.0 }
 0x263   : > { %v5090_v63 = vpack.c.bf16 %v4340_v10, %v4339_v7  ;;  %v4342_v30 = vmax.f32 %v4278_v19, 0.0  ;;  %v4068_v12 = vpop.f32.mrb[16].mxu0 }
 0x264   : > { %v5148_v41 = vadd.f32 %v4068_v12, %v7797_v39  ;;  %v4070_v4 = vpop.f32.mrb[17].mxu0 }
 0x265   : > { %4592 = vst.msk [vmem:[%s7844_s10 + $0x30] sm:$0xff] %vm7846_vm4, %v5090_v63  ;;  %v5091_v53 = vpack.c.bf16 %v4342_v30, %v4341_v38  ;;  %v5149_v1 = vadd.f32 %v4070_v4, %v7799_v40  ;;  %v4072_v57 = vpop.f32.mrb[18].mxu0 }
 0x266   : > { %v4279_v28 = vadd.f32 %v5148_v41, %v7832_v52  ;;  %v5150_v61 = vadd.f32 %v4072_v57, %v7801_v58  ;;  %v4074_v25 = vpop.f32.mrb[19].mxu0 }
 0x267   : > { %4593 = vst.msk [vmem:[%s7844_s10 + $0x38] sm:$0xff] %vm7846_vm4, %v5091_v53  ;;  %v4280_v15 = vadd.f32 %v5149_v1, %v7834_v45  ;;  %v5151_v39 = vadd.f32 %v4074_v25, %v7803_v44 }
 0x268   : > { %v4343_v16 = vmax.f32 %v4279_v28, 0.0  ;;  %v4281_v29 = vadd.f32 %v5150_v61, %v7832_v52 }
 0x269   : > { %v4344_v59 = vmax.f32 %v4280_v15, 0.0  ;;  %v4282_v40 = vadd.f32 %v5151_v39, %v7834_v45 }
 0x26a   : > { %v4345_v11 = vmax.f32 %v4281_v29, 0.0 }
 0x26b   : > { %v5092_v24 = vpack.c.bf16 %v4344_v59, %v4343_v16  ;;  %v4346_v35 = vmax.f32 %v4282_v40, 0.0  ;;  %v4078_v27 = vpop.f32.mrb[20].mxu0 }
 0x26c   : > { %v5152_v58 = vadd.f32 %v4078_v27, %v7805_v62  ;;  %v4080_v46 = vpop.f32.mrb[21].mxu0 }
 0x26d   : > { %4594 = vst.msk [vmem:[%s7844_s10 + $0x40] sm:$0xff] %vm7846_vm4, %v5092_v24  ;;  %v5093_v34 = vpack.c.bf16 %v4346_v35, %v4345_v11  ;;  %v5153_v44 = vadd.f32 %v4080_v46, %v7807_v51  ;;  %v4082_v43 = vpop.f32.mrb[22].mxu0 }
 0x26e   : > { %v4283_v26 = vadd.f32 %v5152_v58, %v7832_v52  ;;  %v5154_v31 = vadd.f32 %v4082_v43, %v7809_v49  ;;  %v4084_v23 = vpop.f32.mrb[23].mxu0 }
 0x26f   : > { %4595 = vst.msk [vmem:[%s7844_s10 + $0x48] sm:$0xff] %vm7846_vm4, %v5093_v34  ;;  %v4284_v13 = vadd.f32 %v5153_v44, %v7834_v45  ;;  %v5155_v62 = vadd.f32 %v4084_v23, %v7811_v14 }
 0x270   : > { %v4347_v0 = vmax.f32 %v4283_v26, 0.0  ;;  %v4285_v55 = vadd.f32 %v5154_v31, %v7832_v52 }
 0x271   : > { %v4348_v8 = vmax.f32 %v4284_v13, 0.0  ;;  %v4286_v51 = vadd.f32 %v5155_v62, %v7834_v45 }
 0x272   : > { %v4349_v9 = vmax.f32 %v4285_v55, 0.0 }
 0x273   : > { %v5094_v33 = vpack.c.bf16 %v4348_v8, %v4347_v0  ;;  %v4350_v5 = vmax.f32 %v4286_v51, 0.0  ;;  %v4088_v54 = vpop.f32.mrb[24].mxu0 }
 0x274   : > { %v5156_v49 = vadd.f32 %v4088_v54, %v7813_v56  ;;  %v4090_v47 = vpop.f32.mrb[25].mxu0 }
 0x275   : > { %4596 = vst.msk [vmem:[%s7844_s10 + $0x50] sm:$0xff] %vm7846_vm4, %v5094_v33  ;;  %v5095_v6 = vpack.c.bf16 %v4350_v5, %v4349_v9  ;;  %v5157_v14 = vadd.f32 %v4090_v47, %v7815_v60  ;;  %v4092_v32 = vpop.f32.mrb[26].mxu0 }
 0x276   : > { %v4287_v37 = vadd.f32 %v5156_v49, %v7832_v52  ;;  %v5158_v42 = vadd.f32 %v4092_v32, %v7817_v20  ;;  %v4094_v17 = vpop.f32.mrb[27].mxu0 }
 0x277   : > { %4597 = vst.msk [vmem:[%s7844_s10 + $0x58] sm:$0xff] %vm7846_vm4, %v5095_v6  ;;  %v4288_v21 = vadd.f32 %v5157_v14, %v7834_v45  ;;  %v5159_v56 = vadd.f32 %v4094_v17, %v7819_v2 }
 0x278   : > { %v4351_v7 = vmax.f32 %v4287_v37, 0.0  ;;  %v4289_v18 = vadd.f32 %v5158_v42, %v7832_v52 }
 0x279   : > { %v4352_v10 = vmax.f32 %v4288_v21, 0.0  ;;  %v4290_v60 = vadd.f32 %v5159_v56, %v7834_v45 }
 0x27a   : > { %v4353_v19 = vmax.f32 %v4289_v18, 0.0 }
 0x27b   : > { %v5096_v38 = vpack.c.bf16 %v4352_v10, %v4351_v7  ;;  %v4354_v63 = vmax.f32 %v4290_v60, 0.0  ;;  %v4098_v30 = vpop.f32.mrb[28].mxu0 }
 0x27c   : > { %v5160_v20 = vadd.f32 %v4098_v30, %v7821_v3  ;;  %v4100_v12 = vpop.f32.mrb[29].mxu0 }
 0x27d   : > { %4598 = vst.msk [vmem:[%s7844_s10 + $0x60] sm:$0xff] %vm7846_vm4, %v5096_v38  ;;  %v5097_v41 = vpack.c.bf16 %v4354_v63, %v4353_v19  ;;  %v5161_v2 = vadd.f32 %v4100_v12, %v7823_v36  ;;  %v4102_v4 = vpop.f32.mrb[30].mxu0 }
 0x27e   : > { %v4291_v53 = vadd.f32 %v5160_v20, %v7832_v52  ;;  %v5162_v1 = vadd.f32 %v4102_v4, %v7825_v22  ;;  %v4104_v57 = vpop.f32.mrb[31].mxu0 }
 0x27f   : > { %4599 = vst.msk [vmem:[%s7844_s10 + $0x68] sm:$0xff] %vm7846_vm4, %v5097_v41  ;;  %v4292_v28 = vadd.f32 %v5161_v2, %v7834_v45  ;;  %v5163_v3 = vadd.f32 %v4104_v57, %v7827_v50 }
 0x280   : > { %v4355_v61 = vmax.f32 %v4291_v53, 0.0  ;;  %v4293_v25 = vadd.f32 %v5162_v1, %v7832_v52 }
 0x281   : > { %v4356_v15 = vmax.f32 %v4292_v28, 0.0  ;;  %v4294_v36 = vadd.f32 %v5163_v3, %v7834_v45 }
 0x282   : > { %v4357_v39 = vmax.f32 %v4293_v25, 0.0  ;;  %v2413_v16 = vpop.f32.mrb[32].mxu1 }
 0x283   : > { %v5098_v29 = vpack.c.bf16 %v4356_v15, %v4355_v61  ;;  %v4358_v22 = vmax.f32 %v4294_v36, 0.0  ;;  %v4108_v59 = vpop.f32.mrb[32].mxu0  ;;  %v2415_v40 = vpop.f32.mrb[33].mxu1 }
 0x284   : > { %v5164_v11 = vadd.f32 %v4108_v59, %v2413_v16  ;;  %v4110_v24 = vpop.f32.mrb[33].mxu0  ;;  %v2417_v35 = vpop.f32.mrb[34].mxu1 }
 0x285   : > { %4600 = vst.msk [vmem:[%s7844_s10 + $0x70] sm:$0xff] %vm7846_vm4, %v5098_v29  ;;  %v5099_v50 = vpack.c.bf16 %v4358_v22, %v4357_v39  ;;  %v5165_v27 = vadd.f32 %v4110_v24, %v2415_v40  ;;  %v4112_v58 = vpop.f32.mrb[34].mxu0  ;;  %v2419_v46 = vpop.f32.mrb[35].mxu1 }
 0x286   : > { %v4295_v34 = vadd.f32 %v5164_v11, %v7832_v52  ;;  %v5166_v44 = vadd.f32 %v4112_v58, %v2417_v35  ;;  %v4114_v43 = vpop.f32.mrb[35].mxu0 }
 0x287   : > { %4601 = vst.msk [vmem:[%s7844_s10 + $0x78] sm:$0xff] %vm7846_vm4, %v5099_v50  ;;  %v4296_v26 = vadd.f32 %v5165_v27, %v7834_v45  ;;  %v5167_v31 = vadd.f32 %v4114_v43, %v2419_v46 }
 0x288   : > { %v4359_v23 = vmax.f32 %v4295_v34, 0.0  ;;  %v4297_v13 = vadd.f32 %v5166_v44, %v7832_v52 }
 0x289   : > { %v4360_v62 = vmax.f32 %v4296_v26, 0.0  ;;  %v4298_v0 = vadd.f32 %v5167_v31, %v7834_v45 }
 0x28a   : > { %v4361_v55 = vmax.f32 %v4297_v13, 0.0  ;;  %v2423_v8 = vpop.f32.mrb[36].mxu1 }
 0x28b   : > { %v5100_v51 = vpack.c.bf16 %v4360_v62, %v4359_v23  ;;  %v4362_v9 = vmax.f32 %v4298_v0, 0.0  ;;  %v4118_v33 = vpop.f32.mrb[36].mxu0  ;;  %v2425_v5 = vpop.f32.mrb[37].mxu1 }
 0x28c   : > { %v5168_v54 = vadd.f32 %v4118_v33, %v2423_v8  ;;  %v4120_v49 = vpop.f32.mrb[37].mxu0  ;;  %v2427_v47 = vpop.f32.mrb[38].mxu1 }
 0x28d   : > { %4602 = vst.msk [vmem:[%s7844_s10 + $0x80] sm:$0xff] %vm7846_vm4, %v5100_v51  ;;  %v5101_v6 = vpack.c.bf16 %v4362_v9, %v4361_v55  ;;  %v5169_v14 = vadd.f32 %v4120_v49, %v2425_v5  ;;  %v4122_v32 = vpop.f32.mrb[38].mxu0  ;;  %v2429_v37 = vpop.f32.mrb[39].mxu1 }
 0x28e   : > { %v4299_v42 = vadd.f32 %v5168_v54, %v7832_v52  ;;  %v5170_v17 = vadd.f32 %v4122_v32, %v2427_v47  ;;  %v4124_v21 = vpop.f32.mrb[39].mxu0 }
 0x28f   : > { %4603 = vst.msk [vmem:[%s7844_s10 + $0x88] sm:$0xff] %vm7846_vm4, %v5101_v6  ;;  %v4300_v56 = vadd.f32 %v5169_v14, %v7834_v45  ;;  %v5171_v7 = vadd.f32 %v4124_v21, %v2429_v37 }
 0x290   : > { %v4363_v18 = vmax.f32 %v4299_v42, 0.0  ;;  %v4301_v10 = vadd.f32 %v5170_v17, %v7832_v52 }
 0x291   : > { %v4364_v60 = vmax.f32 %v4300_v56, 0.0  ;;  %v4302_v19 = vadd.f32 %v5171_v7, %v7834_v45 }
 0x292   : > { %v4365_v38 = vmax.f32 %v4301_v10, 0.0  ;;  %v2433_v63 = vpop.f32.mrb[40].mxu1 }
 0x293   : > { %v5102_v30 = vpack.c.bf16 %v4364_v60, %v4363_v18  ;;  %v4366_v20 = vmax.f32 %v4302_v19, 0.0  ;;  %v4128_v12 = vpop.f32.mrb[40].mxu0  ;;  %v2435_v41 = vpop.f32.mrb[41].mxu1 }
 0x294   : > { %v5172_v2 = vadd.f32 %v4128_v12, %v2433_v63  ;;  %v4130_v4 = vpop.f32.mrb[41].mxu0  ;;  %v2437_v53 = vpop.f32.mrb[42].mxu1 }
 0x295   : > { %4604 = vst.msk [vmem:[%s7844_s10 + $0x90] sm:$0xff] %vm7846_vm4, %v5102_v30  ;;  %v5103_v1 = vpack.c.bf16 %v4366_v20, %v4365_v38  ;;  %v5173_v57 = vadd.f32 %v4130_v4, %v2435_v41  ;;  %v4132_v28 = vpop.f32.mrb[42].mxu0  ;;  %v2439_v3 = vpop.f32.mrb[43].mxu1 }
 0x296   : > { %v4303_v61 = vadd.f32 %v5172_v2, %v7832_v52  ;;  %v5174_v25 = vadd.f32 %v4132_v28, %v2437_v53  ;;  %v4134_v15 = vpop.f32.mrb[43].mxu0 }
 0x297   : > { %4605 = vst.msk [vmem:[%s7844_s10 + $0x98] sm:$0xff] %vm7846_vm4, %v5103_v1  ;;  %v4304_v36 = vadd.f32 %v5173_v57, %v7834_v45  ;;  %v5175_v39 = vadd.f32 %v4134_v15, %v2439_v3 }
 0x298   : > { %v4367_v16 = vmax.f32 %v4303_v61, 0.0  ;;  %v4305_v29 = vadd.f32 %v5174_v25, %v7832_v52 }
 0x299   : > { %v4368_v22 = vmax.f32 %v4304_v36, 0.0  ;;  %v4306_v59 = vadd.f32 %v5175_v39, %v7834_v45 }
 0x29a   : > { %v4369_v40 = vmax.f32 %v4305_v29, 0.0  ;;  %v2443_v11 = vpop.f32.mrb[44].mxu1 }
 0x29b   : > { %v5104_v24 = vpack.c.bf16 %v4368_v22, %v4367_v16  ;;  %v4370_v35 = vmax.f32 %v4306_v59, 0.0  ;;  %v4138_v50 = vpop.f32.mrb[44].mxu0  ;;  %v2445_v27 = vpop.f32.mrb[45].mxu1 }
 0x29c   : > { %v5176_v58 = vadd.f32 %v4138_v50, %v2443_v11  ;;  %v4140_v46 = vpop.f32.mrb[45].mxu0  ;;  %v2447_v34 = vpop.f32.mrb[46].mxu1 }
 0x29d   : > { %4606 = vst.msk [vmem:[%s7844_s10 + $0xa0] sm:$0xff] %vm7846_vm4, %v5104_v24  ;;  %v5105_v44 = vpack.c.bf16 %v4370_v35, %v4369_v40  ;;  %v5177_v43 = vadd.f32 %v4140_v46, %v2445_v27  ;;  %v4142_v26 = vpop.f32.mrb[46].mxu0  ;;  %v2449_v31 = vpop.f32.mrb[47].mxu1 }
 0x29e   : > { %v4307_v23 = vadd.f32 %v5176_v58, %v7832_v52  ;;  %v5178_v13 = vadd.f32 %v4142_v26, %v2447_v34  ;;  %v4144_v62 = vpop.f32.mrb[47].mxu0 }
 0x29f   : > { %4607 = vst.msk [vmem:[%s7844_s10 + $0xa8] sm:$0xff] %vm7846_vm4, %v5105_v44  ;;  %v4308_v0 = vadd.f32 %v5177_v43, %v7834_v45  ;;  %v5179_v55 = vadd.f32 %v4144_v62, %v2449_v31 }
 0x2a0   : > { %v4371_v8 = vmax.f32 %v4307_v23, 0.0  ;;  %v4309_v51 = vadd.f32 %v5178_v13, %v7832_v52 }
 0x2a1   : > { %v4372_v9 = vmax.f32 %v4308_v0, 0.0  ;;  %v4310_v33 = vadd.f32 %v5179_v55, %v7834_v45 }
 0x2a2   : > { %v4373_v5 = vmax.f32 %v4309_v51, 0.0  ;;  %v2453_v54 = vpop.f32.mrb[48].mxu1 }
 0x2a3   : > { %v5106_v49 = vpack.c.bf16 %v4372_v9, %v4371_v8  ;;  %v4374_v47 = vmax.f32 %v4310_v33, 0.0  ;;  %v4148_v6 = vpop.f32.mrb[48].mxu0  ;;  %v2455_v14 = vpop.f32.mrb[49].mxu1 }
 0x2a4   : > { %v5180_v32 = vadd.f32 %v4148_v6, %v2453_v54  ;;  %v4150_v37 = vpop.f32.mrb[49].mxu0  ;;  %v2457_v42 = vpop.f32.mrb[50].mxu1 }
 0x2a5   : > { %4608 = vst.msk [vmem:[%s7844_s10 + $0xb0] sm:$0xff] %vm7846_vm4, %v5106_v49  ;;  %v5107_v17 = vpack.c.bf16 %v4374_v47, %v4373_v5  ;;  %v5181_v21 = vadd.f32 %v4150_v37, %v2455_v14  ;;  %v4152_v56 = vpop.f32.mrb[50].mxu0  ;;  %v2459_v7 = vpop.f32.mrb[51].mxu1 }
 0x2a6   : > { %v4311_v18 = vadd.f32 %v5180_v32, %v7832_v52  ;;  %v5182_v10 = vadd.f32 %v4152_v56, %v2457_v42  ;;  %v4154_v60 = vpop.f32.mrb[51].mxu0 }
 0x2a7   : > { %4609 = vst.msk [vmem:[%s7844_s10 + $0xb8] sm:$0xff] %vm7846_vm4, %v5107_v17  ;;  %v4312_v19 = vadd.f32 %v5181_v21, %v7834_v45  ;;  %v5183_v38 = vadd.f32 %v4154_v60, %v2459_v7 }
 0x2a8   : > { %v4375_v63 = vmax.f32 %v4311_v18, 0.0  ;;  %v4313_v30 = vadd.f32 %v5182_v10, %v7832_v52 }
 0x2a9   : > { %v4376_v20 = vmax.f32 %v4312_v19, 0.0  ;;  %v4314_v12 = vadd.f32 %v5183_v38, %v7834_v45 }
 0x2aa   : > { %v4377_v41 = vmax.f32 %v4313_v30, 0.0  ;;  %v2463_v2 = vpop.f32.mrb[52].mxu1 }
 0x2ab   : > { %v5108_v4 = vpack.c.bf16 %v4376_v20, %v4375_v63  ;;  %v4378_v53 = vmax.f32 %v4314_v12, 0.0  ;;  %v4158_v1 = vpop.f32.mrb[52].mxu0  ;;  %v2465_v57 = vpop.f32.mrb[53].mxu1 }
 0x2ac   : > { %v5184_v28 = vadd.f32 %v4158_v1, %v2463_v2  ;;  %v4160_v3 = vpop.f32.mrb[53].mxu0  ;;  %v2467_v61 = vpop.f32.mrb[54].mxu1 }
 0x2ad   : > { %4610 = vst.msk [vmem:[%s7844_s10 + $0xc0] sm:$0xff] %vm7846_vm4, %v5108_v4  ;;  %v5109_v25 = vpack.c.bf16 %v4378_v53, %v4377_v41  ;;  %v5185_v15 = vadd.f32 %v4160_v3, %v2465_v57  ;;  %v4162_v36 = vpop.f32.mrb[54].mxu0  ;;  %v2469_v39 = vpop.f32.mrb[55].mxu1 }
 0x2ae   : > { %v4315_v16 = vadd.f32 %v5184_v28, %v7832_v52  ;;  %v5186_v29 = vadd.f32 %v4162_v36, %v2467_v61  ;;  %v4164_v22 = vpop.f32.mrb[55].mxu0 }
 0x2af   : > { %4611 = vst.msk [vmem:[%s7844_s10 + $0xc8] sm:$0xff] %vm7846_vm4, %v5109_v25  ;;  %v4316_v59 = vadd.f32 %v5185_v15, %v7834_v45  ;;  %v5187_v40 = vadd.f32 %v4164_v22, %v2469_v39 }
 0x2b0   : > { %v4379_v11 = vmax.f32 %v4315_v16, 0.0  ;;  %v4317_v24 = vadd.f32 %v5186_v29, %v7832_v52 }
 0x2b1   : > { %v4380_v35 = vmax.f32 %v4316_v59, 0.0  ;;  %v4318_v50 = vadd.f32 %v5187_v40, %v7834_v45 }
 0x2b2   : > { %v4381_v27 = vmax.f32 %v4317_v24, 0.0  ;;  %v2473_v58 = vpop.f32.mrb[56].mxu1 }
 0x2b3   : > { %v5110_v46 = vpack.c.bf16 %v4380_v35, %v4379_v11  ;;  %v4382_v34 = vmax.f32 %v4318_v50, 0.0  ;;  %v4168_v44 = vpop.f32.mrb[56].mxu0  ;;  %v2475_v43 = vpop.f32.mrb[57].mxu1 }
 0x2b4   : > { %v5188_v26 = vadd.f32 %v4168_v44, %v2473_v58  ;;  %v4170_v31 = vpop.f32.mrb[57].mxu0  ;;  %v2477_v23 = vpop.f32.mrb[58].mxu1 }
 0x2b5   : > { %4612 = vst.msk [vmem:[%s7844_s10 + $0xd0] sm:$0xff] %vm7846_vm4, %v5110_v46  ;;  %v5111_v13 = vpack.c.bf16 %v4382_v34, %v4381_v27  ;;  %v5189_v62 = vadd.f32 %v4170_v31, %v2475_v43  ;;  %v4172_v0 = vpop.f32.mrb[58].mxu0  ;;  %v2479_v55 = vpop.f32.mrb[59].mxu1 }
 0x2b6   : > { %v4319_v8 = vadd.f32 %v5188_v26, %v7832_v52  ;;  %v5190_v51 = vadd.f32 %v4172_v0, %v2477_v23  ;;  %v4174_v9 = vpop.f32.mrb[59].mxu0 }
 0x2b7   : > { %4613 = vst.msk [vmem:[%s7844_s10 + $0xd8] sm:$0xff] %vm7846_vm4, %v5111_v13  ;;  %v4320_v33 = vadd.f32 %v5189_v62, %v7834_v45  ;;  %v5191_v5 = vadd.f32 %v4174_v9, %v2479_v55 }
 0x2b8   : > { %v4383_v54 = vmax.f32 %v4319_v8, 0.0  ;;  %v4321_v49 = vadd.f32 %v5190_v51, %v7832_v52 }
 0x2b9   : > { %v4384_v47 = vmax.f32 %v4320_v33, 0.0  ;;  %v4322_v6 = vadd.f32 %v5191_v5, %v7834_v45 }
 0x2ba   : > { %v4385_v14 = vmax.f32 %v4321_v49, 0.0  ;;  %v2483_v32 = vpop.f32.mrb[60].mxu1 }
 0x2bb   : > { %v5112_v37 = vpack.c.bf16 %v4384_v47, %v4383_v54  ;;  %v4386_v42 = vmax.f32 %v4322_v6, 0.0  ;;  %v4178_v17 = vpop.f32.mrb[60].mxu0  ;;  %v2485_v21 = vpop.f32.mrb[61].mxu1 }
 0x2bc   : > { %v5192_v56 = vadd.f32 %v4178_v17, %v2483_v32  ;;  %v4180_v7 = vpop.f32.mrb[61].mxu0  ;;  %v2487_v18 = vpop.f32.mrb[62].mxu1 }
 0x2bd   : > { %4614 = vst.msk [vmem:[%s7844_s10 + $0xe0] sm:$0xff] %vm7846_vm4, %v5112_v37  ;;  %v5113_v10 = vpack.c.bf16 %v4386_v42, %v4385_v14  ;;  %v5193_v60 = vadd.f32 %v4180_v7, %v2485_v21  ;;  %v4182_v19 = vpop.f32.mrb[62].mxu0  ;;  %v2489_v38 = vpop.f32.mrb[63].mxu1 }
 0x2be   : > { %v4323_v63 = vadd.f32 %v5192_v56, %v7832_v52  ;;  %v5194_v30 = vadd.f32 %v4182_v19, %v2487_v18  ;;  %v4184_v20 = vpop.f32.mrb[63].mxu0 }
 0x2bf   : > { %4615 = vst.msk [vmem:[%s7844_s10 + $0xe8] sm:$0xff] %vm7846_vm4, %v5113_v10  ;;  %v4324_v12 = vadd.f32 %v5193_v60, %v7834_v45  ;;  %v5195_v41 = vadd.f32 %v4184_v20, %v2489_v38 }
 0x2c0   : > { %v4387_v2 = vmax.f32 %v4323_v63, 0.0  ;;  %v4325_v4 = vadd.f32 %v5194_v30, %v7832_v52 }
 0x2c1   : > { %v4388_v53 = vmax.f32 %v4324_v12, 0.0  ;;  %v4326_v1 = vadd.f32 %v5195_v41, %v7834_v45 }
 0x2c2   : > { %v4389_v57 = vmax.f32 %v4325_v4, 0.0 }
 0x2c3   : > { %v5114_v28 = vpack.c.bf16 %v4388_v53, %v4387_v2  ;;  %v4390_v3 = vmax.f32 %v4326_v1, 0.0 }
 0x2c5   : > { %4616 = vst.msk [vmem:[%s7844_s10 + $0xf0] sm:$0xff] %vm7846_vm4, %v5114_v28  ;;  %v5115_v61 = vpack.c.bf16 %v4390_v3, %v4389_v57 }
 0x2c7   : > { %4617 = vst.msk [vmem:[%s7844_s10 + $0xf8] sm:$0xff] %vm7846_vm4, %v5115_v61 }
 0x2c8 PF: > { %s13_s12 = sadd.s32 1, %s5791_s12  }
 0x2c9   : > { %p10_p4 = scmp.ge.s32.totalorder %s13_s12, 4  }
 0x2cb   :  { %12 = sbr.rel (!%p10_p4) target bundleno = 1 (0x1), region = 68 }

</bundles_post_ra>
